<compile_context>
chip_gen: v6e
topology: v6e:2x2x1
jax: 0.10.0
libtpu: 0.0.40
codegen_flags: <defaults>
</compile_context>

<pallas_src>
import numpy as np
import jax
import jax.numpy as jnp
from jax.experimental import pallas as pl
from jax.experimental.pallas import tpu as pltpu

LANE = 128     # lane width: hidden/gate/vocab feature dims padded to this
SUBLANE = 8    # sublane width: batch padded to this


def _round_up(x, m):
    return ((x + m - 1) // m) * m


def _full_spec(shape):
    # whole array as a single resident block (grid has one point)
    return pl.BlockSpec(shape, lambda i, _n=len(shape): (0,) * _n)


# ----------------------------------------------------------------------------
# Fused GRU-stack kernel factory: all layers (+ optional dense head) in one
# pallas_call.  Weights are packed fused over gates: W_ih (INp, 3Hp),
# W_hh (Hp, 3Hp), biases (1, 3Hp), gate order (r, z, n).  Padded rows/lanes are
# zero so the padded computation is exactly the unpadded one.
# ----------------------------------------------------------------------------
def make_gru_stack_kernel(num_layers, T, Bp, Hp, out_pad, has_dense):
    G3 = 3 * Hp

    def kernel(*refs):
        x_ref, h0_ref = refs[0], refs[1]
        pos = 2
        layer_refs = []
        for _ in range(num_layers):
            layer_refs.append(refs[pos:pos + 4])          # wih, whh, bih, bhh
            pos += 4
        if has_dense:
            wout_ref, bout_ref = refs[pos], refs[pos + 1]
            pos += 2
        y_ref, hT_ref = refs[pos], refs[pos + 1]
        pos += 2
        gi_scr = refs[pos]
        pos += 1
        # hidden-state sequence buffer: scratch when a dense head follows,
        # otherwise write the last layer straight into the (lane-dense) output.
        seq_ref = refs[pos] if has_dense else y_ref

        for l in range(num_layers):
            wih_ref, whh_ref, bih_ref, bhh_ref = layer_refs[l]

            # ---- hoisted input projection for ALL timesteps (one big matmul),
            #      b_ih folded in; stored once into VMEM scratch. ----
            x_in = x_ref[...] if l == 0 else seq_ref[...]          # (T, Bp, INp)
            x2 = x_in.reshape(T * Bp, x_in.shape[-1])
            gi_all = jnp.dot(x2, wih_ref[...],
                             preferred_element_type=jnp.float32) + bih_ref[...]
            gi_scr[...] = gi_all.reshape(T, Bp, G3)

            whh = whh_ref[...]                                     # (Hp, 3Hp) resident
            bhh_b = jnp.broadcast_to(bhh_ref[...], (Bp, G3))       # hoisted broadcast
            h0 = h0_ref[l]                                         # (Bp, Hp)

            def step(t, h):
                gi = gi_scr[t]                                     # (Bp, 3Hp)
                gh = jnp.dot(h, whh,
                             preferred_element_type=jnp.float32) + bhh_b
                r = jax.nn.sigmoid(gi[:, 0 * Hp:1 * Hp] + gh[:, 0 * Hp:1 * Hp])
                z = jax.nn.sigmoid(gi[:, 1 * Hp:2 * Hp] + gh[:, 1 * Hp:2 * Hp])
                n = jnp.tanh(gi[:, 2 * Hp:3 * Hp] + r * gh[:, 2 * Hp:3 * Hp])
                h_new = (1.0 - z) * n + z * h
                seq_ref[t] = h_new                                 # lane-dense (Bp, Hp) store
                return h_new

            h_last = jax.lax.fori_loop(0, T, step, h0, unroll=True)
            hT_ref[l] = h_last

        if has_dense:
            h2 = seq_ref[...].reshape(T * Bp, Hp)
            logits = jnp.dot(h2, wout_ref[...],
                             preferred_element_type=jnp.float32) + bout_ref[...]
            y_ref[...] = logits.reshape(T, Bp, out_pad).astype(y_ref.dtype)

    return kernel


def gru_stack_pallas(x_pad, h0_pad, layers, dense=None):
    """x_pad: (T, Bp, INp) f32, h0_pad: (L, Bp, Hp) f32 -> (y_pad, hT_pad)."""
    T, Bp, _ = x_pad.shape
    L, _, Hp = h0_pad.shape
    has_dense = dense is not None
    out_pad = dense["w"].shape[1] if has_dense else Hp

    inputs = [x_pad, h0_pad]
    in_specs = [_full_spec(x_pad.shape), _full_spec(h0_pad.shape)]
    for lyr in layers:
        for name in ("wih", "whh", "bih", "bhh"):
            inputs.append(lyr[name])
            in_specs.append(_full_spec(lyr[name].shape))
    if has_dense:
        inputs += [dense["w"], dense["b"]]
        in_specs += [_full_spec(dense["w"].shape), _full_spec(dense["b"].shape)]

    out_shape = (jax.ShapeDtypeStruct((T, Bp, out_pad), jnp.float32),
                 jax.ShapeDtypeStruct((L, Bp, Hp), jnp.float32))
    out_specs = (_full_spec((T, Bp, out_pad)), _full_spec((L, Bp, Hp)))

    scratch = [pltpu.VMEM((T, Bp, 3 * Hp), jnp.float32)]   # precomputed input gates
    if has_dense:
        scratch.append(pltpu.VMEM((T, Bp, Hp), jnp.float32))  # hidden-state sequence

    flops = 2 * T * Bp * sum(int(l["wih"].shape[0]) * 3 * Hp + Hp * 3 * Hp
                             for l in layers)
    if has_dense:
        flops += 2 * T * Bp * Hp * out_pad
    transcendentals = 3 * T * Bp * Hp * L
    bytes_accessed = (sum(int(np.prod(a.shape)) * 4 for a in inputs)
                      + (T * Bp * out_pad + L * Bp * Hp) * 4)

    kernel = make_gru_stack_kernel(L, T, Bp, Hp, out_pad, has_dense)
    return pl.pallas_call(
        kernel,
        out_shape=out_shape,
        grid_spec=pltpu.PrefetchScalarGridSpec(
            num_scalar_prefetch=0,
            grid=(1,),                        # single grid point: time loop is in-kernel
            in_specs=in_specs,
            out_specs=out_specs,
            scratch_shapes=scratch),
        compiler_params=pltpu.CompilerParams(
            dimension_semantics=("arbitrary",)),
        cost_estimate=pl.CostEstimate(flops=int(flops),
                                      transcendentals=int(transcendentals),
                                      bytes_accessed=int(bytes_accessed)),
    )(*inputs)


# ----------------------------------------------------------------------------
# Wrapper glue (embedding gather, transposes, context concat, padding) in plain
# JAX; the heavy recurrent work runs in the two fused Pallas kernels.
# ----------------------------------------------------------------------------
def _pad_tbf(x, Bp, Fp):
    T, B, F = x.shape
    return jnp.pad(x, ((0, 0), (0, Bp - B), (0, Fp - F)))


def encoder_decoder_pallas(enc_X, dec_X, packed, cfg):
    B, H, V = cfg["batch"], cfg["num_hiddens"], cfg["tgt_vocab"]
    Bp, Hp, L = cfg["Bp"], cfg["Hp"], cfg["num_layers"]

    # ----- encoder -----
    xe = jnp.take(packed["enc"]["embedding"], enc_X, axis=0)      # (B, Te, E)
    xe = jnp.transpose(xe, (1, 0, 2))                             # (Te, B, E) time-major
    xe = _pad_tbf(xe, Bp, cfg["enc_inp"])                         # (Te, Bp, 128)
    h0 = jnp.zeros((L, Bp, Hp), jnp.float32)                      # torch default h0 = 0
    _, enc_state = gru_stack_pallas(xe, h0, packed["enc"]["layers"])   # (L, Bp, Hp)

    # ----- decoder (init_state = encoder final state) -----
    xd = jnp.take(packed["dec"]["embedding"], dec_X, axis=0)      # (B, Td, E)
    xd = jnp.transpose(xd, (1, 0, 2))                             # (Td, B, E)
    ctx = enc_state[L - 1, :B, :H]                                # last-layer context (B, H)
    ctx = jnp.broadcast_to(ctx[None], (xd.shape[0], B, H))
    xd = jnp.concatenate([xd, ctx], axis=2)                       # (Td, B, E+H)
    xd = _pad_tbf(xd, Bp, cfg["dec_inp"])
    y, dec_state = gru_stack_pallas(xd, enc_state, packed["dec"]["layers"],
                                    dense=packed["dec"]["dense"])

    dec_out = jnp.transpose(y[:, :B, :V], (1, 0, 2))              # (B, Td, V) batch-first
    return dec_out, dec_state[:, :B, :H]


# ----------------------------------------------------------------------------
# Parameters: natural (torch-like) layout for init/reference, packed+padded
# fused layout for the kernels.
# ----------------------------------------------------------------------------
def init_params(k_enc, k_dec, src_vocab, tgt_vocab, E, H, L):
    s = 1.0 / np.sqrt(H)

    def gru_layer(key, in_dim):
        ks = jax.random.split(key, 4)
        u = lambda kk, shp: jax.random.uniform(kk, shp, minval=-s, maxval=s,
                                               dtype=jnp.float32)
        return {"wih": u(ks[0], (3, in_dim, H)), "whh": u(ks[1], (3, H, H)),
                "bih": u(ks[2], (3, H)), "bhh": u(ks[3], (3, H))}

    ek = jax.random.split(k_enc, L + 1)
    dk = jax.random.split(k_dec, L + 3)
    enc = {"embedding": 0.1 * jax.random.normal(ek[0], (src_vocab, E), jnp.float32),
           "layers": [gru_layer(ek[1 + l], E if l == 0 else H) for l in range(L)]}
    dec = {"embedding": 0.1 * jax.random.normal(dk[0], (tgt_vocab, E), jnp.float32),
           "layers": [gru_layer(dk[1 + l], E + H if l == 0 else H) for l in range(L)],
           "wout": jax.random.uniform(dk[L + 1], (H, tgt_vocab), minval=-s, maxval=s,
                                      dtype=jnp.float32),
           "bout": jax.random.uniform(dk[L + 2], (tgt_vocab,), minval=-s, maxval=s,
                                      dtype=jnp.float32)}
    return {"encoder": enc, "decoder": dec}


def _pack_gru_layer(layer, in_pad, Hp):
    wih, whh, bih, bhh = layer["wih"], layer["whh"], layer["bih"], layer["bhh"]
    _, in_dim, H = wih.shape
    wih_p = jnp.zeros((in_pad, 3 * Hp), jnp.float32)
    whh_p = jnp.zeros((Hp, 3 * Hp), jnp.float32)
    bih_p = jnp.zeros((1, 3 * Hp), jnp.float32)
    bhh_p = jnp.zeros((1, 3 * Hp), jnp.float32)
    for g in range(3):                       # gate order (r, z, n), matching torch.nn.GRU
        c = g * Hp
        wih_p = wih_p.at[:in_dim, c:c + H].set(wih[g])
        whh_p = whh_p.at[:H, c:c + H].set(whh[g])
        bih_p = bih_p.at[0, c:c + H].set(bih[g])
        bhh_p = bhh_p.at[0, c:c + H].set(bhh[g])
    return {"wih": wih_p, "whh": whh_p, "bih": bih_p, "bhh": bhh_p}


def pack_params(params, batch):
    enc, dec = params["encoder"], params["decoder"]
    H = enc["layers"][0]["whh"].shape[-1]
    E = enc["embedding"].shape[-1]
    V = dec["wout"].shape[-1]
    L = len(enc["layers"])
    Hp = _round_up(H, LANE)
    Bp = _round_up(batch, SUBLANE)
    enc_inp = _round_up(E, LANE)
    dec_inp = _round_up(E + H, LANE)
    Vp = _round_up(V, LANE)

    packed = {
        "enc": {"embedding": enc["embedding"],
                "layers": [_pack_gru_layer(enc["layers"][l],
                                           enc_inp if l == 0 else Hp, Hp)
                           for l in range(L)]},
        "dec": {"embedding": dec["embedding"],
                "layers": [_pack_gru_layer(dec["layers"][l],
                                           dec_inp if l == 0 else Hp, Hp)
                           for l in range(L)],
                "dense": {"w": jnp.zeros((Hp, Vp), jnp.float32).at[:H, :V].set(dec["wout"]),
                          "b": jnp.zeros((1, Vp), jnp.float32).at[0, :V].set(dec["bout"])}},
    }
    cfg = {"num_layers": L, "num_hiddens": H, "embed_size": E, "tgt_vocab": V,
           "Hp": Hp, "Bp": Bp, "enc_inp": enc_inp, "dec_inp": dec_inp,
           "Vp": Vp, "batch": batch}
    return packed, cfg


# ----------------------------------------------------------------------------
# Pure-JAX reference (torch.nn.GRU semantics) for correctness checking.
# ----------------------------------------------------------------------------
def _gru_layer_ref(x, h0, p):
    def step(h, x_t):
        r = jax.nn.sigmoid(x_t @ p["wih"][0] + p["bih"][0] + h @ p["whh"][0] + p["bhh"][0])
        z = jax.nn.sigmoid(x_t @ p["wih"][1] + p["bih"][1] + h @ p["whh"][1] + p["bhh"][1])
        n = jnp.tanh(x_t @ p["wih"][2] + p["bih"][2] + r * (h @ p["whh"][2] + p["bhh"][2]))
        h_new = (1.0 - z) * n + z * h
        return h_new, h_new
    hT, ys = jax.lax.scan(step, h0, x)
    return ys, hT


def _gru_stack_ref(x, h0, layers):
    finals = []
    for l, p in enumerate(layers):
        x, hT = _gru_layer_ref(x, h0[l], p)
        finals.append(hT)
    return x, jnp.stack(finals, 0)


def encoder_decoder_ref(enc_X, dec_X, params):
    enc, dec = params["encoder"], params["decoder"]
    L = len(enc["layers"])
    H = enc["layers"][0]["whh"].shape[-1]
    B = enc_X.shape[0]
    xe = jnp.transpose(jnp.take(enc["embedding"], enc_X, axis=0), (1, 0, 2))
    _, enc_state = _gru_stack_ref(xe, jnp.zeros((L, B, H), jnp.float32), enc["layers"])
    xd = jnp.transpose(jnp.take(dec["embedding"], dec_X, axis=0), (1, 0, 2))
    ctx = jnp.broadcast_to(enc_state[-1][None], (xd.shape[0], B, H))
    xd = jnp.concatenate([xd, ctx], axis=2)
    y, dec_state = _gru_stack_ref(xd, enc_state, dec["layers"])
    logits = y @ dec["wout"] + dec["bout"]
    return jnp.transpose(logits, (1, 0, 2)), dec_state


if __name__ == "__main__":
    src_vocab, tgt_vocab = 30, 28
    embed_size, num_hiddens, num_layers = 16, 32, 2
    batch, src_len, tgt_len = 2, 8, 7

    key = jax.random.PRNGKey(0)
    k_enc, k_dec, k_src, k_tgt = jax.random.split(key, 4)
    params = init_params(k_enc, k_dec, src_vocab, tgt_vocab,
                         embed_size, num_hiddens, num_layers)
    enc_X = jax.random.randint(k_src, (batch, src_len), 0, src_vocab, dtype=jnp.int32)
    dec_X = jax.random.randint(k_tgt, (batch, tgt_len), 0, tgt_vocab, dtype=jnp.int32)

    packed, cfg = pack_params(params, batch)
    fwd = jax.jit(lambda e, d: encoder_decoder_pallas(e, d, packed, cfg))

    dec_out, dec_state = fwd(enc_X, dec_X)
    dec_out = jax.block_until_ready(dec_out)
    dec_state = jax.block_until_ready(dec_state)

    # sanity-check against pure-JAX reference
    ref_out, ref_state = encoder_decoder_ref(enc_X, dec_X, params)
    np.testing.assert_allclose(np.asarray(dec_out), np.asarray(ref_out),
                               rtol=1e-4, atol=1e-4)
    np.testing.assert_allclose(np.asarray(dec_state), np.asarray(ref_state),
                               rtol=1e-4, atol=1e-4)

    assert dec_out.shape == (batch, tgt_len, tgt_vocab)
    assert dec_state.shape == (num_layers, batch, num_hiddens)
    print("KERNEL_OK")
</pallas_src>

<mosaic_0001>
module attributes {stable_mosaic.version = 11 : i64} {
  func.func @kernel(%arg0: i32, %arg1: memref<8x8x128xf32, #tpu.memory_space<vmem>>, %arg2: memref<2x8x128xf32, #tpu.memory_space<vmem>>, %arg3: memref<128x384xf32, #tpu.memory_space<vmem>>, %arg4: memref<128x384xf32, #tpu.memory_space<vmem>>, %arg5: memref<1x384xf32, #tpu.memory_space<vmem>>, %arg6: memref<1x384xf32, #tpu.memory_space<vmem>>, %arg7: memref<128x384xf32, #tpu.memory_space<vmem>>, %arg8: memref<128x384xf32, #tpu.memory_space<vmem>>, %arg9: memref<1x384xf32, #tpu.memory_space<vmem>>, %arg10: memref<1x384xf32, #tpu.memory_space<vmem>>, %arg11: memref<8x8x128xf32, #tpu.memory_space<vmem>>, %arg12: memref<2x8x128xf32, #tpu.memory_space<vmem>>, %arg13: memref<8x8x384xf32, #tpu.memory_space<vmem>>) attributes {dimension_semantics = [#tpu.dimension_semantics<arbitrary>], iteration_bounds = array<i64: 1>, scalar_prefetch = 0 : i64, scratch_operands = 1 : i64, tpu.core_type = #tpu.core_type<tc>, window_params = [{pipeline_mode = #tpu.pipeline_mode<synchronous>, transform_indices = @transform_0, window_bounds = array<i64: 8, 8, 128>}, {pipeline_mode = #tpu.pipeline_mode<synchronous>, transform_indices = @transform_1, window_bounds = array<i64: 2, 8, 128>}, {pipeline_mode = #tpu.pipeline_mode<synchronous>, transform_indices = @transform_2, window_bounds = array<i64: 128, 384>}, {pipeline_mode = #tpu.pipeline_mode<synchronous>, transform_indices = @transform_3, window_bounds = array<i64: 128, 384>}, {pipeline_mode = #tpu.pipeline_mode<synchronous>, transform_indices = @transform_4, window_bounds = array<i64: 1, 384>}, {pipeline_mode = #tpu.pipeline_mode<synchronous>, transform_indices = @transform_5, window_bounds = array<i64: 1, 384>}, {pipeline_mode = #tpu.pipeline_mode<synchronous>, transform_indices = @transform_6, window_bounds = array<i64: 128, 384>}, {pipeline_mode = #tpu.pipeline_mode<synchronous>, transform_indices = @transform_7, window_bounds = array<i64: 128, 384>}, {pipeline_mode = #tpu.pipeline_mode<synchronous>, transform_indices = @transform_8, window_bounds = array<i64: 1, 384>}, {pipeline_mode = #tpu.pipeline_mode<synchronous>, transform_indices = @transform_9, window_bounds = array<i64: 1, 384>}, {pipeline_mode = #tpu.pipeline_mode<synchronous>, transform_indices = @transform_10, window_bounds = array<i64: 8, 8, 128>}, {pipeline_mode = #tpu.pipeline_mode<synchronous>, transform_indices = @transform_11, window_bounds = array<i64: 2, 8, 128>}]} {
    %c0 = arith.constant 0 : index
    %c0_0 = arith.constant 0 : index
    %c0_1 = arith.constant 0 : index
    %0 = vector.load %arg1[%c0, %c0_0, %c0_1] : memref<8x8x128xf32, #tpu.memory_space<vmem>>, vector<8x8x128xf32>
    %1 = vector.shape_cast %0 : vector<8x8x128xf32> to vector<64x128xf32>
    %c0_2 = arith.constant 0 : index
    %c0_3 = arith.constant 0 : index
    %2 = vector.load %arg3[%c0_2, %c0_3] : memref<128x384xf32, #tpu.memory_space<vmem>>, vector<128x384xf32>
    %cst = arith.constant dense<0.000000e+00> : vector<64x384xf32>
    %3 = tpu.matmul %1, %2, %cst {dimension_numbers = #tpu.dot_dimension_numbers<[1], [0], [0], [1], [0, 0, 1, 1], [], []>} : vector<64x128xf32>, vector<128x384xf32>, vector<64x384xf32> -> vector<64x384xf32>
    %c0_4 = arith.constant 0 : index
    %c0_5 = arith.constant 0 : index
    %4 = vector.load %arg5[%c0_4, %c0_5] : memref<1x384xf32, #tpu.memory_space<vmem>>, vector<1x384xf32>
    %5 = vector.broadcast %4 : vector<1x384xf32> to vector<64x384xf32>
    %6 = arith.addf %3, %5 : vector<64x384xf32>
    %7 = vector.shape_cast %6 : vector<64x384xf32> to vector<8x8x384xf32>
    %c0_6 = arith.constant 0 : index
    %c0_7 = arith.constant 0 : index
    %c0_8 = arith.constant 0 : index
    %8 = vector.load %arg13[%c0_6, %c0_7, %c0_8] : memref<8x8x384xf32, #tpu.memory_space<vmem>>, vector<8x8x384xf32>
    tpu.vector_store %arg13[%c0_6, %c0_7, %c0_8], %7 {strides = array<i32>} : memref<8x8x384xf32, #tpu.memory_space<vmem>>, vector<8x8x384xf32>,
    %c0_9 = arith.constant 0 : index
    %c0_10 = arith.constant 0 : index
    %9 = vector.load %arg4[%c0_9, %c0_10] : memref<128x384xf32, #tpu.memory_space<vmem>>, vector<128x384xf32>
    %c0_11 = arith.constant 0 : index
    %c0_12 = arith.constant 0 : index
    %10 = vector.load %arg6[%c0_11, %c0_12] : memref<1x384xf32, #tpu.memory_space<vmem>>, vector<1x384xf32>
    %11 = vector.shape_cast %10 : vector<1x384xf32> to vector<1x384xf32>
    %12 = vector.broadcast %11 : vector<1x384xf32> to vector<8x384xf32>
    %c0_13 = arith.constant 0 : index
    %c0_14 = arith.constant 0 : index
    %c0_15 = arith.constant 0 : index
    %13 = vector.load %arg2[%c0_13, %c0_14, %c0_15] : memref<2x8x128xf32, #tpu.memory_space<vmem>>, vector<1x8x128xf32>
    %14 = vector.shape_cast %13 : vector<1x8x128xf32> to vector<8x128xf32>
    %c0_i32 = arith.constant 0 : i32
    %15 = arith.index_cast %c0_i32 : i32 to index
    %c0_16 = arith.constant 0 : index
    %c0_17 = arith.constant 0 : index
    %16 = vector.load %arg13[%15, %c0_16, %c0_17] : memref<8x8x384xf32, #tpu.memory_space<vmem>>, vector<1x8x384xf32>
    %17 = vector.shape_cast %16 : vector<1x8x384xf32> to vector<8x384xf32>
    %cst_18 = arith.constant dense<0.000000e+00> : vector<8x384xf32>
    %18 = tpu.matmul %14, %9, %cst_18 {dimension_numbers = #tpu.dot_dimension_numbers<[1], [0], [0], [1], [0, 0, 1, 1], [], []>} : vector<8x128xf32>, vector<128x384xf32>, vector<8x384xf32> -> vector<8x384xf32>
    %19 = arith.addf %18, %12 : vector<8x384xf32>
    %20 = vector.extract_strided_slice %17 {offsets = [0, 0], sizes = [8, 128], strides = [1, 1]} : vector<8x384xf32> to vector<8x128xf32>
    %21 = vector.extract_strided_slice %19 {offsets = [0, 0], sizes = [8, 128], strides = [1, 1]} : vector<8x384xf32> to vector<8x128xf32>
    %22 = arith.addf %20, %21 : vector<8x128xf32>
    %23 = arith.negf %22 : vector<8x128xf32>
    %24 = math.exp %23 : vector<8x128xf32>
    %cst_19 = arith.constant 1.000000e+00 : f32
    %25 = vector.broadcast %cst_19 : f32 to vector<8x128xf32>
    %26 = arith.addf %25, %24 : vector<8x128xf32>
    %27 = arith.divf %25, %26 : vector<8x128xf32>
    %28 = vector.extract_strided_slice %17 {offsets = [0, 128], sizes = [8, 128], strides = [1, 1]} : vector<8x384xf32> to vector<8x128xf32>
    %29 = vector.extract_strided_slice %19 {offsets = [0, 128], sizes = [8, 128], strides = [1, 1]} : vector<8x384xf32> to vector<8x128xf32>
    %30 = arith.addf %28, %29 : vector<8x128xf32>
    %31 = arith.negf %30 : vector<8x128xf32>
    %32 = math.exp %31 : vector<8x128xf32>
    %cst_20 = arith.constant 1.000000e+00 : f32
    %33 = vector.broadcast %cst_20 : f32 to vector<8x128xf32>
    %34 = arith.addf %33, %32 : vector<8x128xf32>
    %35 = arith.divf %33, %34 : vector<8x128xf32>
    %36 = vector.extract_strided_slice %17 {offsets = [0, 256], sizes = [8, 128], strides = [1, 1]} : vector<8x384xf32> to vector<8x128xf32>
    %37 = vector.extract_strided_slice %19 {offsets = [0, 256], sizes = [8, 128], strides = [1, 1]} : vector<8x384xf32> to vector<8x128xf32>
    %38 = arith.mulf %27, %37 : vector<8x128xf32>
    %39 = arith.addf %36, %38 : vector<8x128xf32>
    %40 = math.tanh %39 : vector<8x128xf32>
    %cst_21 = arith.constant 1.000000e+00 : f32
    %41 = vector.broadcast %cst_21 : f32 to vector<8x128xf32>
    %42 = arith.subf %41, %35 : vector<8x128xf32>
    %43 = arith.mulf %42, %40 : vector<8x128xf32>
    %44 = arith.mulf %35, %14 : vector<8x128xf32>
    %45 = arith.addf %43, %44 : vector<8x128xf32>
    %46 = arith.index_cast %c0_i32 : i32 to index
    %c0_22 = arith.constant 0 : index
    %c0_23 = arith.constant 0 : index
    %47 = vector.load %arg11[%46, %c0_22, %c0_23] : memref<8x8x128xf32, #tpu.memory_space<vmem>>, vector<1x8x128xf32>
    %48 = vector.shape_cast %47 : vector<1x8x128xf32> to vector<8x128xf32>
    %49 = vector.shape_cast %45 : vector<8x128xf32> to vector<1x8x128xf32>
    tpu.vector_store %arg11[%46, %c0_22, %c0_23], %49 {strides = array<i32>} : memref<8x8x128xf32, #tpu.memory_space<vmem>>, vector<1x8x128xf32>,
    %c1_i32 = arith.constant 1 : i32
    %50 = arith.index_cast %c1_i32 : i32 to index
    %c0_24 = arith.constant 0 : index
    %c0_25 = arith.constant 0 : index
    %51 = vector.load %arg13[%50, %c0_24, %c0_25] : memref<8x8x384xf32, #tpu.memory_space<vmem>>, vector<1x8x384xf32>
    %52 = vector.shape_cast %51 : vector<1x8x384xf32> to vector<8x384xf32>
    %cst_26 = arith.constant dense<0.000000e+00> : vector<8x384xf32>
    %53 = tpu.matmul %45, %9, %cst_26 {dimension_numbers = #tpu.dot_dimension_numbers<[1], [0], [0], [1], [0, 0, 1, 1], [], []>} : vector<8x128xf32>, vector<128x384xf32>, vector<8x384xf32> -> vector<8x384xf32>
    %54 = arith.addf %53, %12 : vector<8x384xf32>
    %55 = vector.extract_strided_slice %52 {offsets = [0, 0], sizes = [8, 128], strides = [1, 1]} : vector<8x384xf32> to vector<8x128xf32>
    %56 = vector.extract_strided_slice %54 {offsets = [0, 0], sizes = [8, 128], strides = [1, 1]} : vector<8x384xf32> to vector<8x128xf32>
    %57 = arith.addf %55, %56 : vector<8x128xf32>
    %58 = arith.negf %57 : vector<8x128xf32>
    %59 = math.exp %58 : vector<8x128xf32>
    %cst_27 = arith.constant 1.000000e+00 : f32
    %60 = vector.broadcast %cst_27 : f32 to vector<8x128xf32>
    %61 = arith.addf %60, %59 : vector<8x128xf32>
    %62 = arith.divf %60, %61 : vector<8x128xf32>
    %63 = vector.extract_strided_slice %52 {offsets = [0, 128], sizes = [8, 128], strides = [1, 1]} : vector<8x384xf32> to vector<8x128xf32>
    %64 = vector.extract_strided_slice %54 {offsets = [0, 128], sizes = [8, 128], strides = [1, 1]} : vector<8x384xf32> to vector<8x128xf32>
    %65 = arith.addf %63, %64 : vector<8x128xf32>
    %66 = arith.negf %65 : vector<8x128xf32>
    %67 = math.exp %66 : vector<8x128xf32>
    %cst_28 = arith.constant 1.000000e+00 : f32
    %68 = vector.broadcast %cst_28 : f32 to vector<8x128xf32>
    %69 = arith.addf %68, %67 : vector<8x128xf32>
    %70 = arith.divf %68, %69 : vector<8x128xf32>
    %71 = vector.extract_strided_slice %52 {offsets = [0, 256], sizes = [8, 128], strides = [1, 1]} : vector<8x384xf32> to vector<8x128xf32>
    %72 = vector.extract_strided_slice %54 {offsets = [0, 256], sizes = [8, 128], strides = [1, 1]} : vector<8x384xf32> to vector<8x128xf32>
    %73 = arith.mulf %62, %72 : vector<8x128xf32>
    %74 = arith.addf %71, %73 : vector<8x128xf32>
    %75 = math.tanh %74 : vector<8x128xf32>
    %cst_29 = arith.constant 1.000000e+00 : f32
    %76 = vector.broadcast %cst_29 : f32 to vector<8x128xf32>
    %77 = arith.subf %76, %70 : vector<8x128xf32>
    %78 = arith.mulf %77, %75 : vector<8x128xf32>
    %79 = arith.mulf %70, %45 : vector<8x128xf32>
    %80 = arith.addf %78, %79 : vector<8x128xf32>
    %81 = arith.index_cast %c1_i32 : i32 to index
    %c0_30 = arith.constant 0 : index
    %c0_31 = arith.constant 0 : index
    %82 = vector.load %arg11[%81, %c0_30, %c0_31] : memref<8x8x128xf32, #tpu.memory_space<vmem>>, vector<1x8x128xf32>
    %83 = vector.shape_cast %82 : vector<1x8x128xf32> to vector<8x128xf32>
    %84 = vector.shape_cast %80 : vector<8x128xf32> to vector<1x8x128xf32>
    tpu.vector_store %arg11[%81, %c0_30, %c0_31], %84 {strides = array<i32>} : memref<8x8x128xf32, #tpu.memory_space<vmem>>, vector<1x8x128xf32>,
    %c2_i32 = arith.constant 2 : i32
    %85 = arith.index_cast %c2_i32 : i32 to index
    %c0_32 = arith.constant 0 : index
    %c0_33 = arith.constant 0 : index
    %86 = vector.load %arg13[%85, %c0_32, %c0_33] : memref<8x8x384xf32, #tpu.memory_space<vmem>>, vector<1x8x384xf32>
    %87 = vector.shape_cast %86 : vector<1x8x384xf32> to vector<8x384xf32>
    %cst_34 = arith.constant dense<0.000000e+00> : vector<8x384xf32>
    %88 = tpu.matmul %80, %9, %cst_34 {dimension_numbers = #tpu.dot_dimension_numbers<[1], [0], [0], [1], [0, 0, 1, 1], [], []>} : vector<8x128xf32>, vector<128x384xf32>, vector<8x384xf32> -> vector<8x384xf32>
    %89 = arith.addf %88, %12 : vector<8x384xf32>
    %90 = vector.extract_strided_slice %87 {offsets = [0, 0], sizes = [8, 128], strides = [1, 1]} : vector<8x384xf32> to vector<8x128xf32>
    %91 = vector.extract_strided_slice %89 {offsets = [0, 0], sizes = [8, 128], strides = [1, 1]} : vector<8x384xf32> to vector<8x128xf32>
    %92 = arith.addf %90, %91 : vector<8x128xf32>
    %93 = arith.negf %92 : vector<8x128xf32>
    %94 = math.exp %93 : vector<8x128xf32>
    %cst_35 = arith.constant 1.000000e+00 : f32
    %95 = vector.broadcast %cst_35 : f32 to vector<8x128xf32>
    %96 = arith.addf %95, %94 : vector<8x128xf32>
    %97 = arith.divf %95, %96 : vector<8x128xf32>
    %98 = vector.extract_strided_slice %87 {offsets = [0, 128], sizes = [8, 128], strides = [1, 1]} : vector<8x384xf32> to vector<8x128xf32>
    %99 = vector.extract_strided_slice %89 {offsets = [0, 128], sizes = [8, 128], strides = [1, 1]} : vector<8x384xf32> to vector<8x128xf32>
    %100 = arith.addf %98, %99 : vector<8x128xf32>
    %101 = arith.negf %100 : vector<8x128xf32>
    %102 = math.exp %101 : vector<8x128xf32>
    %cst_36 = arith.constant 1.000000e+00 : f32
    %103 = vector.broadcast %cst_36 : f32 to vector<8x128xf32>
    %104 = arith.addf %103, %102 : vector<8x128xf32>
    %105 = arith.divf %103, %104 : vector<8x128xf32>
    %106 = vector.extract_strided_slice %87 {offsets = [0, 256], sizes = [8, 128], strides = [1, 1]} : vector<8x384xf32> to vector<8x128xf32>
    %107 = vector.extract_strided_slice %89 {offsets = [0, 256], sizes = [8, 128], strides = [1, 1]} : vector<8x384xf32> to vector<8x128xf32>
    %108 = arith.mulf %97, %107 : vector<8x128xf32>
    %109 = arith.addf %106, %108 : vector<8x128xf32>
    %110 = math.tanh %109 : vector<8x128xf32>
    %cst_37 = arith.constant 1.000000e+00 : f32
    %111 = vector.broadcast %cst_37 : f32 to vector<8x128xf32>
    %112 = arith.subf %111, %105 : vector<8x128xf32>
    %113 = arith.mulf %112, %110 : vector<8x128xf32>
    %114 = arith.mulf %105, %80 : vector<8x128xf32>
    %115 = arith.addf %113, %114 : vector<8x128xf32>
    %116 = arith.index_cast %c2_i32 : i32 to index
    %c0_38 = arith.constant 0 : index
    %c0_39 = arith.constant 0 : index
    %117 = vector.load %arg11[%116, %c0_38, %c0_39] : memref<8x8x128xf32, #tpu.memory_space<vmem>>, vector<1x8x128xf32>
    %118 = vector.shape_cast %117 : vector<1x8x128xf32> to vector<8x128xf32>
    %119 = vector.shape_cast %115 : vector<8x128xf32> to vector<1x8x128xf32>
    tpu.vector_store %arg11[%116, %c0_38, %c0_39], %119 {strides = array<i32>} : memref<8x8x128xf32, #tpu.memory_space<vmem>>, vector<1x8x128xf32>,
    %c3_i32 = arith.constant 3 : i32
    %120 = arith.index_cast %c3_i32 : i32 to index
    %c0_40 = arith.constant 0 : index
    %c0_41 = arith.constant 0 : index
    %121 = vector.load %arg13[%120, %c0_40, %c0_41] : memref<8x8x384xf32, #tpu.memory_space<vmem>>, vector<1x8x384xf32>
    %122 = vector.shape_cast %121 : vector<1x8x384xf32> to vector<8x384xf32>
    %cst_42 = arith.constant dense<0.000000e+00> : vector<8x384xf32>
    %123 = tpu.matmul %115, %9, %cst_42 {dimension_numbers = #tpu.dot_dimension_numbers<[1], [0], [0], [1], [0, 0, 1, 1], [], []>} : vector<8x128xf32>, vector<128x384xf32>, vector<8x384xf32> -> vector<8x384xf32>
    %124 = arith.addf %123, %12 : vector<8x384xf32>
    %125 = vector.extract_strided_slice %122 {offsets = [0, 0], sizes = [8, 128], strides = [1, 1]} : vector<8x384xf32> to vector<8x128xf32>
    %126 = vector.extract_strided_slice %124 {offsets = [0, 0], sizes = [8, 128], strides = [1, 1]} : vector<8x384xf32> to vector<8x128xf32>
    %127 = arith.addf %125, %126 : vector<8x128xf32>
    %128 = arith.negf %127 : vector<8x128xf32>
    %129 = math.exp %128 : vector<8x128xf32>
    %cst_43 = arith.constant 1.000000e+00 : f32
    %130 = vector.broadcast %cst_43 : f32 to vector<8x128xf32>
    %131 = arith.addf %130, %129 : vector<8x128xf32>
    %132 = arith.divf %130, %131 : vector<8x128xf32>
    %133 = vector.extract_strided_slice %122 {offsets = [0, 128], sizes = [8, 128], strides = [1, 1]} : vector<8x384xf32> to vector<8x128xf32>
    %134 = vector.extract_strided_slice %124 {offsets = [0, 128], sizes = [8, 128], strides = [1, 1]} : vector<8x384xf32> to vector<8x128xf32>
    %135 = arith.addf %133, %134 : vector<8x128xf32>
    %136 = arith.negf %135 : vector<8x128xf32>
    %137 = math.exp %136 : vector<8x128xf32>
    %cst_44 = arith.constant 1.000000e+00 : f32
    %138 = vector.broadcast %cst_44 : f32 to vector<8x128xf32>
    %139 = arith.addf %138, %137 : vector<8x128xf32>
    %140 = arith.divf %138, %139 : vector<8x128xf32>
    %141 = vector.extract_strided_slice %122 {offsets = [0, 256], sizes = [8, 128], strides = [1, 1]} : vector<8x384xf32> to vector<8x128xf32>
    %142 = vector.extract_strided_slice %124 {offsets = [0, 256], sizes = [8, 128], strides = [1, 1]} : vector<8x384xf32> to vector<8x128xf32>
    %143 = arith.mulf %132, %142 : vector<8x128xf32>
    %144 = arith.addf %141, %143 : vector<8x128xf32>
    %145 = math.tanh %144 : vector<8x128xf32>
    %cst_45 = arith.constant 1.000000e+00 : f32
    %146 = vector.broadcast %cst_45 : f32 to vector<8x128xf32>
    %147 = arith.subf %146, %140 : vector<8x128xf32>
    %148 = arith.mulf %147, %145 : vector<8x128xf32>
    %149 = arith.mulf %140, %115 : vector<8x128xf32>
    %150 = arith.addf %148, %149 : vector<8x128xf32>
    %151 = arith.index_cast %c3_i32 : i32 to index
    %c0_46 = arith.constant 0 : index
    %c0_47 = arith.constant 0 : index
    %152 = vector.load %arg11[%151, %c0_46, %c0_47] : memref<8x8x128xf32, #tpu.memory_space<vmem>>, vector<1x8x128xf32>
    %153 = vector.shape_cast %152 : vector<1x8x128xf32> to vector<8x128xf32>
    %154 = vector.shape_cast %150 : vector<8x128xf32> to vector<1x8x128xf32>
    tpu.vector_store %arg11[%151, %c0_46, %c0_47], %154 {strides = array<i32>} : memref<8x8x128xf32, #tpu.memory_space<vmem>>, vector<1x8x128xf32>,
    %c4_i32 = arith.constant 4 : i32
    %155 = arith.index_cast %c4_i32 : i32 to index
    %c0_48 = arith.constant 0 : index
    %c0_49 = arith.constant 0 : index
    %156 = vector.load %arg13[%155, %c0_48, %c0_49] : memref<8x8x384xf32, #tpu.memory_space<vmem>>, vector<1x8x384xf32>
    %157 = vector.shape_cast %156 : vector<1x8x384xf32> to vector<8x384xf32>
    %cst_50 = arith.constant dense<0.000000e+00> : vector<8x384xf32>
    %158 = tpu.matmul %150, %9, %cst_50 {dimension_numbers = #tpu.dot_dimension_numbers<[1], [0], [0], [1], [0, 0, 1, 1], [], []>} : vector<8x128xf32>, vector<128x384xf32>, vector<8x384xf32> -> vector<8x384xf32>
    %159 = arith.addf %158, %12 : vector<8x384xf32>
    %160 = vector.extract_strided_slice %157 {offsets = [0, 0], sizes = [8, 128], strides = [1, 1]} : vector<8x384xf32> to vector<8x128xf32>
    %161 = vector.extract_strided_slice %159 {offsets = [0, 0], sizes = [8, 128], strides = [1, 1]} : vector<8x384xf32> to vector<8x128xf32>
    %162 = arith.addf %160, %161 : vector<8x128xf32>
    %163 = arith.negf %162 : vector<8x128xf32>
    %164 = math.exp %163 : vector<8x128xf32>
    %cst_51 = arith.constant 1.000000e+00 : f32
    %165 = vector.broadcast %cst_51 : f32 to vector<8x128xf32>
    %166 = arith.addf %165, %164 : vector<8x128xf32>
    %167 = arith.divf %165, %166 : vector<8x128xf32>
    %168 = vector.extract_strided_slice %157 {offsets = [0, 128], sizes = [8, 128], strides = [1, 1]} : vector<8x384xf32> to vector<8x128xf32>
    %169 = vector.extract_strided_slice %159 {offsets = [0, 128], sizes = [8, 128], strides = [1, 1]} : vector<8x384xf32> to vector<8x128xf32>
    %170 = arith.addf %168, %169 : vector<8x128xf32>
    %171 = arith.negf %170 : vector<8x128xf32>
    %172 = math.exp %171 : vector<8x128xf32>
    %cst_52 = arith.constant 1.000000e+00 : f32
    %173 = vector.broadcast %cst_52 : f32 to vector<8x128xf32>
    %174 = arith.addf %173, %172 : vector<8x128xf32>
    %175 = arith.divf %173, %174 : vector<8x128xf32>
    %176 = vector.extract_strided_slice %157 {offsets = [0, 256], sizes = [8, 128], strides = [1, 1]} : vector<8x384xf32> to vector<8x128xf32>
    %177 = vector.extract_strided_slice %159 {offsets = [0, 256], sizes = [8, 128], strides = [1, 1]} : vector<8x384xf32> to vector<8x128xf32>
    %178 = arith.mulf %167, %177 : vector<8x128xf32>
    %179 = arith.addf %176, %178 : vector<8x128xf32>
    %180 = math.tanh %179 : vector<8x128xf32>
    %cst_53 = arith.constant 1.000000e+00 : f32
    %181 = vector.broadcast %cst_53 : f32 to vector<8x128xf32>
    %182 = arith.subf %181, %175 : vector<8x128xf32>
    %183 = arith.mulf %182, %180 : vector<8x128xf32>
    %184 = arith.mulf %175, %150 : vector<8x128xf32>
    %185 = arith.addf %183, %184 : vector<8x128xf32>
    %186 = arith.index_cast %c4_i32 : i32 to index
    %c0_54 = arith.constant 0 : index
    %c0_55 = arith.constant 0 : index
    %187 = vector.load %arg11[%186, %c0_54, %c0_55] : memref<8x8x128xf32, #tpu.memory_space<vmem>>, vector<1x8x128xf32>
    %188 = vector.shape_cast %187 : vector<1x8x128xf32> to vector<8x128xf32>
    %189 = vector.shape_cast %185 : vector<8x128xf32> to vector<1x8x128xf32>
    tpu.vector_store %arg11[%186, %c0_54, %c0_55], %189 {strides = array<i32>} : memref<8x8x128xf32, #tpu.memory_space<vmem>>, vector<1x8x128xf32>,
    %c5_i32 = arith.constant 5 : i32
    %190 = arith.index_cast %c5_i32 : i32 to index
    %c0_56 = arith.constant 0 : index
    %c0_57 = arith.constant 0 : index
    %191 = vector.load %arg13[%190, %c0_56, %c0_57] : memref<8x8x384xf32, #tpu.memory_space<vmem>>, vector<1x8x384xf32>
    %192 = vector.shape_cast %191 : vector<1x8x384xf32> to vector<8x384xf32>
    %cst_58 = arith.constant dense<0.000000e+00> : vector<8x384xf32>
    %193 = tpu.matmul %185, %9, %cst_58 {dimension_numbers = #tpu.dot_dimension_numbers<[1], [0], [0], [1], [0, 0, 1, 1], [], []>} : vector<8x128xf32>, vector<128x384xf32>, vector<8x384xf32> -> vector<8x384xf32>
    %194 = arith.addf %193, %12 : vector<8x384xf32>
    %195 = vector.extract_strided_slice %192 {offsets = [0, 0], sizes = [8, 128], strides = [1, 1]} : vector<8x384xf32> to vector<8x128xf32>
    %196 = vector.extract_strided_slice %194 {offsets = [0, 0], sizes = [8, 128], strides = [1, 1]} : vector<8x384xf32> to vector<8x128xf32>
    %197 = arith.addf %195, %196 : vector<8x128xf32>
    %198 = arith.negf %197 : vector<8x128xf32>
    %199 = math.exp %198 : vector<8x128xf32>
    %cst_59 = arith.constant 1.000000e+00 : f32
    %200 = vector.broadcast %cst_59 : f32 to vector<8x128xf32>
    %201 = arith.addf %200, %199 : vector<8x128xf32>
    %202 = arith.divf %200, %201 : vector<8x128xf32>
    %203 = vector.extract_strided_slice %192 {offsets = [0, 128], sizes = [8, 128], strides = [1, 1]} : vector<8x384xf32> to vector<8x128xf32>
    %204 = vector.extract_strided_slice %194 {offsets = [0, 128], sizes = [8, 128], strides = [1, 1]} : vector<8x384xf32> to vector<8x128xf32>
    %205 = arith.addf %203, %204 : vector<8x128xf32>
    %206 = arith.negf %205 : vector<8x128xf32>
    %207 = math.exp %206 : vector<8x128xf32>
    %cst_60 = arith.constant 1.000000e+00 : f32
    %208 = vector.broadcast %cst_60 : f32 to vector<8x128xf32>
    %209 = arith.addf %208, %207 : vector<8x128xf32>
    %210 = arith.divf %208, %209 : vector<8x128xf32>
    %211 = vector.extract_strided_slice %192 {offsets = [0, 256], sizes = [8, 128], strides = [1, 1]} : vector<8x384xf32> to vector<8x128xf32>
    %212 = vector.extract_strided_slice %194 {offsets = [0, 256], sizes = [8, 128], strides = [1, 1]} : vector<8x384xf32> to vector<8x128xf32>
    %213 = arith.mulf %202, %212 : vector<8x128xf32>
    %214 = arith.addf %211, %213 : vector<8x128xf32>
    %215 = math.tanh %214 : vector<8x128xf32>
    %cst_61 = arith.constant 1.000000e+00 : f32
    %216 = vector.broadcast %cst_61 : f32 to vector<8x128xf32>
    %217 = arith.subf %216, %210 : vector<8x128xf32>
    %218 = arith.mulf %217, %215 : vector<8x128xf32>
    %219 = arith.mulf %210, %185 : vector<8x128xf32>
    %220 = arith.addf %218, %219 : vector<8x128xf32>
    %221 = arith.index_cast %c5_i32 : i32 to index
    %c0_62 = arith.constant 0 : index
    %c0_63 = arith.constant 0 : index
    %222 = vector.load %arg11[%221, %c0_62, %c0_63] : memref<8x8x128xf32, #tpu.memory_space<vmem>>, vector<1x8x128xf32>
    %223 = vector.shape_cast %222 : vector<1x8x128xf32> to vector<8x128xf32>
    %224 = vector.shape_cast %220 : vector<8x128xf32> to vector<1x8x128xf32>
    tpu.vector_store %arg11[%221, %c0_62, %c0_63], %224 {strides = array<i32>} : memref<8x8x128xf32, #tpu.memory_space<vmem>>, vector<1x8x128xf32>,
    %c6_i32 = arith.constant 6 : i32
    %225 = arith.index_cast %c6_i32 : i32 to index
    %c0_64 = arith.constant 0 : index
    %c0_65 = arith.constant 0 : index
    %226 = vector.load %arg13[%225, %c0_64, %c0_65] : memref<8x8x384xf32, #tpu.memory_space<vmem>>, vector<1x8x384xf32>
    %227 = vector.shape_cast %226 : vector<1x8x384xf32> to vector<8x384xf32>
    %cst_66 = arith.constant dense<0.000000e+00> : vector<8x384xf32>
    %228 = tpu.matmul %220, %9, %cst_66 {dimension_numbers = #tpu.dot_dimension_numbers<[1], [0], [0], [1], [0, 0, 1, 1], [], []>} : vector<8x128xf32>, vector<128x384xf32>, vector<8x384xf32> -> vector<8x384xf32>
    %229 = arith.addf %228, %12 : vector<8x384xf32>
    %230 = vector.extract_strided_slice %227 {offsets = [0, 0], sizes = [8, 128], strides = [1, 1]} : vector<8x384xf32> to vector<8x128xf32>
    %231 = vector.extract_strided_slice %229 {offsets = [0, 0], sizes = [8, 128], strides = [1, 1]} : vector<8x384xf32> to vector<8x128xf32>
    %232 = arith.addf %230, %231 : vector<8x128xf32>
    %233 = arith.negf %232 : vector<8x128xf32>
    %234 = math.exp %233 : vector<8x128xf32>
    %cst_67 = arith.constant 1.000000e+00 : f32
    %235 = vector.broadcast %cst_67 : f32 to vector<8x128xf32>
    %236 = arith.addf %235, %234 : vector<8x128xf32>
    %237 = arith.divf %235, %236 : vector<8x128xf32>
    %238 = vector.extract_strided_slice %227 {offsets = [0, 128], sizes = [8, 128], strides = [1, 1]} : vector<8x384xf32> to vector<8x128xf32>
    %239 = vector.extract_strided_slice %229 {offsets = [0, 128], sizes = [8, 128], strides = [1, 1]} : vector<8x384xf32> to vector<8x128xf32>
    %240 = arith.addf %238, %239 : vector<8x128xf32>
    %241 = arith.negf %240 : vector<8x128xf32>
    %242 = math.exp %241 : vector<8x128xf32>
    %cst_68 = arith.constant 1.000000e+00 : f32
    %243 = vector.broadcast %cst_68 : f32 to vector<8x128xf32>
    %244 = arith.addf %243, %242 : vector<8x128xf32>
    %245 = arith.divf %243, %244 : vector<8x128xf32>
    %246 = vector.extract_strided_slice %227 {offsets = [0, 256], sizes = [8, 128], strides = [1, 1]} : vector<8x384xf32> to vector<8x128xf32>
    %247 = vector.extract_strided_slice %229 {offsets = [0, 256], sizes = [8, 128], strides = [1, 1]} : vector<8x384xf32> to vector<8x128xf32>
    %248 = arith.mulf %237, %247 : vector<8x128xf32>
    %249 = arith.addf %246, %248 : vector<8x128xf32>
    %250 = math.tanh %249 : vector<8x128xf32>
    %cst_69 = arith.constant 1.000000e+00 : f32
    %251 = vector.broadcast %cst_69 : f32 to vector<8x128xf32>
    %252 = arith.subf %251, %245 : vector<8x128xf32>
    %253 = arith.mulf %252, %250 : vector<8x128xf32>
    %254 = arith.mulf %245, %220 : vector<8x128xf32>
    %255 = arith.addf %253, %254 : vector<8x128xf32>
    %256 = arith.index_cast %c6_i32 : i32 to index
    %c0_70 = arith.constant 0 : index
    %c0_71 = arith.constant 0 : index
    %257 = vector.load %arg11[%256, %c0_70, %c0_71] : memref<8x8x128xf32, #tpu.memory_space<vmem>>, vector<1x8x128xf32>
    %258 = vector.shape_cast %257 : vector<1x8x128xf32> to vector<8x128xf32>
    %259 = vector.shape_cast %255 : vector<8x128xf32> to vector<1x8x128xf32>
    tpu.vector_store %arg11[%256, %c0_70, %c0_71], %259 {strides = array<i32>} : memref<8x8x128xf32, #tpu.memory_space<vmem>>, vector<1x8x128xf32>,
    %c7_i32 = arith.constant 7 : i32
    %260 = arith.index_cast %c7_i32 : i32 to index
    %c0_72 = arith.constant 0 : index
    %c0_73 = arith.constant 0 : index
    %261 = vector.load %arg13[%260, %c0_72, %c0_73] : memref<8x8x384xf32, #tpu.memory_space<vmem>>, vector<1x8x384xf32>
    %262 = vector.shape_cast %261 : vector<1x8x384xf32> to vector<8x384xf32>
    %cst_74 = arith.constant dense<0.000000e+00> : vector<8x384xf32>
    %263 = tpu.matmul %255, %9, %cst_74 {dimension_numbers = #tpu.dot_dimension_numbers<[1], [0], [0], [1], [0, 0, 1, 1], [], []>} : vector<8x128xf32>, vector<128x384xf32>, vector<8x384xf32> -> vector<8x384xf32>
    %264 = arith.addf %263, %12 : vector<8x384xf32>
    %265 = vector.extract_strided_slice %262 {offsets = [0, 0], sizes = [8, 128], strides = [1, 1]} : vector<8x384xf32> to vector<8x128xf32>
    %266 = vector.extract_strided_slice %264 {offsets = [0, 0], sizes = [8, 128], strides = [1, 1]} : vector<8x384xf32> to vector<8x128xf32>
    %267 = arith.addf %265, %266 : vector<8x128xf32>
    %268 = arith.negf %267 : vector<8x128xf32>
    %269 = math.exp %268 : vector<8x128xf32>
    %cst_75 = arith.constant 1.000000e+00 : f32
    %270 = vector.broadcast %cst_75 : f32 to vector<8x128xf32>
    %271 = arith.addf %270, %269 : vector<8x128xf32>
    %272 = arith.divf %270, %271 : vector<8x128xf32>
    %273 = vector.extract_strided_slice %262 {offsets = [0, 128], sizes = [8, 128], strides = [1, 1]} : vector<8x384xf32> to vector<8x128xf32>
    %274 = vector.extract_strided_slice %264 {offsets = [0, 128], sizes = [8, 128], strides = [1, 1]} : vector<8x384xf32> to vector<8x128xf32>
    %275 = arith.addf %273, %274 : vector<8x128xf32>
    %276 = arith.negf %275 : vector<8x128xf32>
    %277 = math.exp %276 : vector<8x128xf32>
    %cst_76 = arith.constant 1.000000e+00 : f32
    %278 = vector.broadcast %cst_76 : f32 to vector<8x128xf32>
    %279 = arith.addf %278, %277 : vector<8x128xf32>
    %280 = arith.divf %278, %279 : vector<8x128xf32>
    %281 = vector.extract_strided_slice %262 {offsets = [0, 256], sizes = [8, 128], strides = [1, 1]} : vector<8x384xf32> to vector<8x128xf32>
    %282 = vector.extract_strided_slice %264 {offsets = [0, 256], sizes = [8, 128], strides = [1, 1]} : vector<8x384xf32> to vector<8x128xf32>
    %283 = arith.mulf %272, %282 : vector<8x128xf32>
    %284 = arith.addf %281, %283 : vector<8x128xf32>
    %285 = math.tanh %284 : vector<8x128xf32>
    %cst_77 = arith.constant 1.000000e+00 : f32
    %286 = vector.broadcast %cst_77 : f32 to vector<8x128xf32>
    %287 = arith.subf %286, %280 : vector<8x128xf32>
    %288 = arith.mulf %287, %285 : vector<8x128xf32>
    %289 = arith.mulf %280, %255 : vector<8x128xf32>
    %290 = arith.addf %288, %289 : vector<8x128xf32>
    %291 = arith.index_cast %c7_i32 : i32 to index
    %c0_78 = arith.constant 0 : index
    %c0_79 = arith.constant 0 : index
    %292 = vector.load %arg11[%291, %c0_78, %c0_79] : memref<8x8x128xf32, #tpu.memory_space<vmem>>, vector<1x8x128xf32>
    %293 = vector.shape_cast %292 : vector<1x8x128xf32> to vector<8x128xf32>
    %294 = vector.shape_cast %290 : vector<8x128xf32> to vector<1x8x128xf32>
    tpu.vector_store %arg11[%291, %c0_78, %c0_79], %294 {strides = array<i32>} : memref<8x8x128xf32, #tpu.memory_space<vmem>>, vector<1x8x128xf32>,
    %c8_i32 = arith.constant 8 : i32
    %c0_80 = arith.constant 0 : index
    %c0_81 = arith.constant 0 : index
    %c0_82 = arith.constant 0 : index
    %295 = vector.load %arg12[%c0_80, %c0_81, %c0_82] : memref<2x8x128xf32, #tpu.memory_space<vmem>>, vector<1x8x128xf32>
    %296 = vector.shape_cast %295 : vector<1x8x128xf32> to vector<8x128xf32>
    %297 = vector.shape_cast %290 : vector<8x128xf32> to vector<1x8x128xf32>
    tpu.vector_store %arg12[%c0_80, %c0_81, %c0_82], %297 {strides = array<i32>} : memref<2x8x128xf32, #tpu.memory_space<vmem>>, vector<1x8x128xf32>,
    %c0_83 = arith.constant 0 : index
    %c0_84 = arith.constant 0 : index
    %c0_85 = arith.constant 0 : index
    %298 = vector.load %arg11[%c0_83, %c0_84, %c0_85] : memref<8x8x128xf32, #tpu.memory_space<vmem>>, vector<8x8x128xf32>
    %299 = vector.shape_cast %298 : vector<8x8x128xf32> to vector<64x128xf32>
    %c0_86 = arith.constant 0 : index
    %c0_87 = arith.constant 0 : index
    %300 = vector.load %arg7[%c0_86, %c0_87] : memref<128x384xf32, #tpu.memory_space<vmem>>, vector<128x384xf32>
    %cst_88 = arith.constant dense<0.000000e+00> : vector<64x384xf32>
    %301 = tpu.matmul %299, %300, %cst_88 {dimension_numbers = #tpu.dot_dimension_numbers<[1], [0], [0], [1], [0, 0, 1, 1], [], []>} : vector<64x128xf32>, vector<128x384xf32>, vector<64x384xf32> -> vector<64x384xf32>
    %c0_89 = arith.constant 0 : index
    %c0_90 = arith.constant 0 : index
    %302 = vector.load %arg9[%c0_89, %c0_90] : memref<1x384xf32, #tpu.memory_space<vmem>>, vector<1x384xf32>
    %303 = vector.broadcast %302 : vector<1x384xf32> to vector<64x384xf32>
    %304 = arith.addf %301, %303 : vector<64x384xf32>
    %305 = vector.shape_cast %304 : vector<64x384xf32> to vector<8x8x384xf32>
    %c0_91 = arith.constant 0 : index
    %c0_92 = arith.constant 0 : index
    %c0_93 = arith.constant 0 : index
    %306 = vector.load %arg13[%c0_91, %c0_92, %c0_93] : memref<8x8x384xf32, #tpu.memory_space<vmem>>, vector<8x8x384xf32>
    tpu.vector_store %arg13[%c0_91, %c0_92, %c0_93], %305 {strides = array<i32>} : memref<8x8x384xf32, #tpu.memory_space<vmem>>, vector<8x8x384xf32>,
    %c0_94 = arith.constant 0 : index
    %c0_95 = arith.constant 0 : index
    %307 = vector.load %arg8[%c0_94, %c0_95] : memref<128x384xf32, #tpu.memory_space<vmem>>, vector<128x384xf32>
    %c0_96 = arith.constant 0 : index
    %c0_97 = arith.constant 0 : index
    %308 = vector.load %arg10[%c0_96, %c0_97] : memref<1x384xf32, #tpu.memory_space<vmem>>, vector<1x384xf32>
    %309 = vector.shape_cast %308 : vector<1x384xf32> to vector<1x384xf32>
    %310 = vector.broadcast %309 : vector<1x384xf32> to vector<8x384xf32>
    %c1 = arith.constant 1 : index
    %c0_98 = arith.constant 0 : index
    %c0_99 = arith.constant 0 : index
    %311 = vector.load %arg2[%c1, %c0_98, %c0_99] : memref<2x8x128xf32, #tpu.memory_space<vmem>>, vector<1x8x128xf32>
    %312 = vector.shape_cast %311 : vector<1x8x128xf32> to vector<8x128xf32>
    %c0_i32_100 = arith.constant 0 : i32
    %313 = arith.index_cast %c0_i32_100 : i32 to index
    %c0_101 = arith.constant 0 : index
    %c0_102 = arith.constant 0 : index
    %314 = vector.load %arg13[%313, %c0_101, %c0_102] : memref<8x8x384xf32, #tpu.memory_space<vmem>>, vector<1x8x384xf32>
    %315 = vector.shape_cast %314 : vector<1x8x384xf32> to vector<8x384xf32>
    %cst_103 = arith.constant dense<0.000000e+00> : vector<8x384xf32>
    %316 = tpu.matmul %312, %307, %cst_103 {dimension_numbers = #tpu.dot_dimension_numbers<[1], [0], [0], [1], [0, 0, 1, 1], [], []>} : vector<8x128xf32>, vector<128x384xf32>, vector<8x384xf32> -> vector<8x384xf32>
    %317 = arith.addf %316, %310 : vector<8x384xf32>
    %318 = vector.extract_strided_slice %315 {offsets = [0, 0], sizes = [8, 128], strides = [1, 1]} : vector<8x384xf32> to vector<8x128xf32>
    %319 = vector.extract_strided_slice %317 {offsets = [0, 0], sizes = [8, 128], strides = [1, 1]} : vector<8x384xf32> to vector<8x128xf32>
    %320 = arith.addf %318, %319 : vector<8x128xf32>
    %321 = arith.negf %320 : vector<8x128xf32>
    %322 = math.exp %321 : vector<8x128xf32>
    %cst_104 = arith.constant 1.000000e+00 : f32
    %323 = vector.broadcast %cst_104 : f32 to vector<8x128xf32>
    %324 = arith.addf %323, %322 : vector<8x128xf32>
    %325 = arith.divf %323, %324 : vector<8x128xf32>
    %326 = vector.extract_strided_slice %315 {offsets = [0, 128], sizes = [8, 128], strides = [1, 1]} : vector<8x384xf32> to vector<8x128xf32>
    %327 = vector.extract_strided_slice %317 {offsets = [0, 128], sizes = [8, 128], strides = [1, 1]} : vector<8x384xf32> to vector<8x128xf32>
    %328 = arith.addf %326, %327 : vector<8x128xf32>
    %329 = arith.negf %328 : vector<8x128xf32>
    %330 = math.exp %329 : vector<8x128xf32>
    %cst_105 = arith.constant 1.000000e+00 : f32
    %331 = vector.broadcast %cst_105 : f32 to vector<8x128xf32>
    %332 = arith.addf %331, %330 : vector<8x128xf32>
    %333 = arith.divf %331, %332 : vector<8x128xf32>
    %334 = vector.extract_strided_slice %315 {offsets = [0, 256], sizes = [8, 128], strides = [1, 1]} : vector<8x384xf32> to vector<8x128xf32>
    %335 = vector.extract_strided_slice %317 {offsets = [0, 256], sizes = [8, 128], strides = [1, 1]} : vector<8x384xf32> to vector<8x128xf32>
    %336 = arith.mulf %325, %335 : vector<8x128xf32>
    %337 = arith.addf %334, %336 : vector<8x128xf32>
    %338 = math.tanh %337 : vector<8x128xf32>
    %cst_106 = arith.constant 1.000000e+00 : f32
    %339 = vector.broadcast %cst_106 : f32 to vector<8x128xf32>
    %340 = arith.subf %339, %333 : vector<8x128xf32>
    %341 = arith.mulf %340, %338 : vector<8x128xf32>
    %342 = arith.mulf %333, %312 : vector<8x128xf32>
    %343 = arith.addf %341, %342 : vector<8x128xf32>
    %344 = arith.index_cast %c0_i32_100 : i32 to index
    %c0_107 = arith.constant 0 : index
    %c0_108 = arith.constant 0 : index
    %345 = vector.load %arg11[%344, %c0_107, %c0_108] : memref<8x8x128xf32, #tpu.memory_space<vmem>>, vector<1x8x128xf32>
    %346 = vector.shape_cast %345 : vector<1x8x128xf32> to vector<8x128xf32>
    %347 = vector.shape_cast %343 : vector<8x128xf32> to vector<1x8x128xf32>
    tpu.vector_store %arg11[%344, %c0_107, %c0_108], %347 {strides = array<i32>} : memref<8x8x128xf32, #tpu.memory_space<vmem>>, vector<1x8x128xf32>,
    %c1_i32_109 = arith.constant 1 : i32
    %348 = arith.index_cast %c1_i32_109 : i32 to index
    %c0_110 = arith.constant 0 : index
    %c0_111 = arith.constant 0 : index
    %349 = vector.load %arg13[%348, %c0_110, %c0_111] : memref<8x8x384xf32, #tpu.memory_space<vmem>>, vector<1x8x384xf32>
    %350 = vector.shape_cast %349 : vector<1x8x384xf32> to vector<8x384xf32>
    %cst_112 = arith.constant dense<0.000000e+00> : vector<8x384xf32>
    %351 = tpu.matmul %343, %307, %cst_112 {dimension_numbers = #tpu.dot_dimension_numbers<[1], [0], [0], [1], [0, 0, 1, 1], [], []>} : vector<8x128xf32>, vector<128x384xf32>, vector<8x384xf32> -> vector<8x384xf32>
    %352 = arith.addf %351, %310 : vector<8x384xf32>
    %353 = vector.extract_strided_slice %350 {offsets = [0, 0], sizes = [8, 128], strides = [1, 1]} : vector<8x384xf32> to vector<8x128xf32>
    %354 = vector.extract_strided_slice %352 {offsets = [0, 0], sizes = [8, 128], strides = [1, 1]} : vector<8x384xf32> to vector<8x128xf32>
    %355 = arith.addf %353, %354 : vector<8x128xf32>
    %356 = arith.negf %355 : vector<8x128xf32>
    %357 = math.exp %356 : vector<8x128xf32>
    %cst_113 = arith.constant 1.000000e+00 : f32
    %358 = vector.broadcast %cst_113 : f32 to vector<8x128xf32>
    %359 = arith.addf %358, %357 : vector<8x128xf32>
    %360 = arith.divf %358, %359 : vector<8x128xf32>
    %361 = vector.extract_strided_slice %350 {offsets = [0, 128], sizes = [8, 128], strides = [1, 1]} : vector<8x384xf32> to vector<8x128xf32>
    %362 = vector.extract_strided_slice %352 {offsets = [0, 128], sizes = [8, 128], strides = [1, 1]} : vector<8x384xf32> to vector<8x128xf32>
    %363 = arith.addf %361, %362 : vector<8x128xf32>
    %364 = arith.negf %363 : vector<8x128xf32>
    %365 = math.exp %364 : vector<8x128xf32>
    %cst_114 = arith.constant 1.000000e+00 : f32
    %366 = vector.broadcast %cst_114 : f32 to vector<8x128xf32>
    %367 = arith.addf %366, %365 : vector<8x128xf32>
    %368 = arith.divf %366, %367 : vector<8x128xf32>
    %369 = vector.extract_strided_slice %350 {offsets = [0, 256], sizes = [8, 128], strides = [1, 1]} : vector<8x384xf32> to vector<8x128xf32>
    %370 = vector.extract_strided_slice %352 {offsets = [0, 256], sizes = [8, 128], strides = [1, 1]} : vector<8x384xf32> to vector<8x128xf32>
    %371 = arith.mulf %360, %370 : vector<8x128xf32>
    %372 = arith.addf %369, %371 : vector<8x128xf32>
    %373 = math.tanh %372 : vector<8x128xf32>
    %cst_115 = arith.constant 1.000000e+00 : f32
    %374 = vector.broadcast %cst_115 : f32 to vector<8x128xf32>
    %375 = arith.subf %374, %368 : vector<8x128xf32>
    %376 = arith.mulf %375, %373 : vector<8x128xf32>
    %377 = arith.mulf %368, %343 : vector<8x128xf32>
    %378 = arith.addf %376, %377 : vector<8x128xf32>
    %379 = arith.index_cast %c1_i32_109 : i32 to index
    %c0_116 = arith.constant 0 : index
    %c0_117 = arith.constant 0 : index
    %380 = vector.load %arg11[%379, %c0_116, %c0_117] : memref<8x8x128xf32, #tpu.memory_space<vmem>>, vector<1x8x128xf32>
    %381 = vector.shape_cast %380 : vector<1x8x128xf32> to vector<8x128xf32>
    %382 = vector.shape_cast %378 : vector<8x128xf32> to vector<1x8x128xf32>
    tpu.vector_store %arg11[%379, %c0_116, %c0_117], %382 {strides = array<i32>} : memref<8x8x128xf32, #tpu.memory_space<vmem>>, vector<1x8x128xf32>,
    %c2_i32_118 = arith.constant 2 : i32
    %383 = arith.index_cast %c2_i32_118 : i32 to index
    %c0_119 = arith.constant 0 : index
    %c0_120 = arith.constant 0 : index
    %384 = vector.load %arg13[%383, %c0_119, %c0_120] : memref<8x8x384xf32, #tpu.memory_space<vmem>>, vector<1x8x384xf32>
    %385 = vector.shape_cast %384 : vector<1x8x384xf32> to vector<8x384xf32>
    %cst_121 = arith.constant dense<0.000000e+00> : vector<8x384xf32>
    %386 = tpu.matmul %378, %307, %cst_121 {dimension_numbers = #tpu.dot_dimension_numbers<[1], [0], [0], [1], [0, 0, 1, 1], [], []>} : vector<8x128xf32>, vector<128x384xf32>, vector<8x384xf32> -> vector<8x384xf32>
    %387 = arith.addf %386, %310 : vector<8x384xf32>
    %388 = vector.extract_strided_slice %385 {offsets = [0, 0], sizes = [8, 128], strides = [1, 1]} : vector<8x384xf32> to vector<8x128xf32>
    %389 = vector.extract_strided_slice %387 {offsets = [0, 0], sizes = [8, 128], strides = [1, 1]} : vector<8x384xf32> to vector<8x128xf32>
    %390 = arith.addf %388, %389 : vector<8x128xf32>
    %391 = arith.negf %390 : vector<8x128xf32>
    %392 = math.exp %391 : vector<8x128xf32>
    %cst_122 = arith.constant 1.000000e+00 : f32
    %393 = vector.broadcast %cst_122 : f32 to vector<8x128xf32>
    %394 = arith.addf %393, %392 : vector<8x128xf32>
    %395 = arith.divf %393, %394 : vector<8x128xf32>
    %396 = vector.extract_strided_slice %385 {offsets = [0, 128], sizes = [8, 128], strides = [1, 1]} : vector<8x384xf32> to vector<8x128xf32>
    %397 = vector.extract_strided_slice %387 {offsets = [0, 128], sizes = [8, 128], strides = [1, 1]} : vector<8x384xf32> to vector<8x128xf32>
    %398 = arith.addf %396, %397 : vector<8x128xf32>
    %399 = arith.negf %398 : vector<8x128xf32>
    %400 = math.exp %399 : vector<8x128xf32>
    %cst_123 = arith.constant 1.000000e+00 : f32
    %401 = vector.broadcast %cst_123 : f32 to vector<8x128xf32>
    %402 = arith.addf %401, %400 : vector<8x128xf32>
    %403 = arith.divf %401, %402 : vector<8x128xf32>
    %404 = vector.extract_strided_slice %385 {offsets = [0, 256], sizes = [8, 128], strides = [1, 1]} : vector<8x384xf32> to vector<8x128xf32>
    %405 = vector.extract_strided_slice %387 {offsets = [0, 256], sizes = [8, 128], strides = [1, 1]} : vector<8x384xf32> to vector<8x128xf32>
    %406 = arith.mulf %395, %405 : vector<8x128xf32>
    %407 = arith.addf %404, %406 : vector<8x128xf32>
    %408 = math.tanh %407 : vector<8x128xf32>
    %cst_124 = arith.constant 1.000000e+00 : f32
    %409 = vector.broadcast %cst_124 : f32 to vector<8x128xf32>
    %410 = arith.subf %409, %403 : vector<8x128xf32>
    %411 = arith.mulf %410, %408 : vector<8x128xf32>
    %412 = arith.mulf %403, %378 : vector<8x128xf32>
    %413 = arith.addf %411, %412 : vector<8x128xf32>
    %414 = arith.index_cast %c2_i32_118 : i32 to index
    %c0_125 = arith.constant 0 : index
    %c0_126 = arith.constant 0 : index
    %415 = vector.load %arg11[%414, %c0_125, %c0_126] : memref<8x8x128xf32, #tpu.memory_space<vmem>>, vector<1x8x128xf32>
    %416 = vector.shape_cast %415 : vector<1x8x128xf32> to vector<8x128xf32>
    %417 = vector.shape_cast %413 : vector<8x128xf32> to vector<1x8x128xf32>
    tpu.vector_store %arg11[%414, %c0_125, %c0_126], %417 {strides = array<i32>} : memref<8x8x128xf32, #tpu.memory_space<vmem>>, vector<1x8x128xf32>,
    %c3_i32_127 = arith.constant 3 : i32
    %418 = arith.index_cast %c3_i32_127 : i32 to index
    %c0_128 = arith.constant 0 : index
    %c0_129 = arith.constant 0 : index
    %419 = vector.load %arg13[%418, %c0_128, %c0_129] : memref<8x8x384xf32, #tpu.memory_space<vmem>>, vector<1x8x384xf32>
    %420 = vector.shape_cast %419 : vector<1x8x384xf32> to vector<8x384xf32>
    %cst_130 = arith.constant dense<0.000000e+00> : vector<8x384xf32>
    %421 = tpu.matmul %413, %307, %cst_130 {dimension_numbers = #tpu.dot_dimension_numbers<[1], [0], [0], [1], [0, 0, 1, 1], [], []>} : vector<8x128xf32>, vector<128x384xf32>, vector<8x384xf32> -> vector<8x384xf32>
    %422 = arith.addf %421, %310 : vector<8x384xf32>
    %423 = vector.extract_strided_slice %420 {offsets = [0, 0], sizes = [8, 128], strides = [1, 1]} : vector<8x384xf32> to vector<8x128xf32>
    %424 = vector.extract_strided_slice %422 {offsets = [0, 0], sizes = [8, 128], strides = [1, 1]} : vector<8x384xf32> to vector<8x128xf32>
    %425 = arith.addf %423, %424 : vector<8x128xf32>
    %426 = arith.negf %425 : vector<8x128xf32>
    %427 = math.exp %426 : vector<8x128xf32>
    %cst_131 = arith.constant 1.000000e+00 : f32
    %428 = vector.broadcast %cst_131 : f32 to vector<8x128xf32>
    %429 = arith.addf %428, %427 : vector<8x128xf32>
    %430 = arith.divf %428, %429 : vector<8x128xf32>
    %431 = vector.extract_strided_slice %420 {offsets = [0, 128], sizes = [8, 128], strides = [1, 1]} : vector<8x384xf32> to vector<8x128xf32>
    %432 = vector.extract_strided_slice %422 {offsets = [0, 128], sizes = [8, 128], strides = [1, 1]} : vector<8x384xf32> to vector<8x128xf32>
    %433 = arith.addf %431, %432 : vector<8x128xf32>
    %434 = arith.negf %433 : vector<8x128xf32>
    %435 = math.exp %434 : vector<8x128xf32>
    %cst_132 = arith.constant 1.000000e+00 : f32
    %436 = vector.broadcast %cst_132 : f32 to vector<8x128xf32>
    %437 = arith.addf %436, %435 : vector<8x128xf32>
    %438 = arith.divf %436, %437 : vector<8x128xf32>
    %439 = vector.extract_strided_slice %420 {offsets = [0, 256], sizes = [8, 128], strides = [1, 1]} : vector<8x384xf32> to vector<8x128xf32>
    %440 = vector.extract_strided_slice %422 {offsets = [0, 256], sizes = [8, 128], strides = [1, 1]} : vector<8x384xf32> to vector<8x128xf32>
    %441 = arith.mulf %430, %440 : vector<8x128xf32>
    %442 = arith.addf %439, %441 : vector<8x128xf32>
    %443 = math.tanh %442 : vector<8x128xf32>
    %cst_133 = arith.constant 1.000000e+00 : f32
    %444 = vector.broadcast %cst_133 : f32 to vector<8x128xf32>
    %445 = arith.subf %444, %438 : vector<8x128xf32>
    %446 = arith.mulf %445, %443 : vector<8x128xf32>
    %447 = arith.mulf %438, %413 : vector<8x128xf32>
    %448 = arith.addf %446, %447 : vector<8x128xf32>
    %449 = arith.index_cast %c3_i32_127 : i32 to index
    %c0_134 = arith.constant 0 : index
    %c0_135 = arith.constant 0 : index
    %450 = vector.load %arg11[%449, %c0_134, %c0_135] : memref<8x8x128xf32, #tpu.memory_space<vmem>>, vector<1x8x128xf32>
    %451 = vector.shape_cast %450 : vector<1x8x128xf32> to vector<8x128xf32>
    %452 = vector.shape_cast %448 : vector<8x128xf32> to vector<1x8x128xf32>
    tpu.vector_store %arg11[%449, %c0_134, %c0_135], %452 {strides = array<i32>} : memref<8x8x128xf32, #tpu.memory_space<vmem>>, vector<1x8x128xf32>,
    %c4_i32_136 = arith.constant 4 : i32
    %453 = arith.index_cast %c4_i32_136 : i32 to index
    %c0_137 = arith.constant 0 : index
    %c0_138 = arith.constant 0 : index
    %454 = vector.load %arg13[%453, %c0_137, %c0_138] : memref<8x8x384xf32, #tpu.memory_space<vmem>>, vector<1x8x384xf32>
    %455 = vector.shape_cast %454 : vector<1x8x384xf32> to vector<8x384xf32>
    %cst_139 = arith.constant dense<0.000000e+00> : vector<8x384xf32>
    %456 = tpu.matmul %448, %307, %cst_139 {dimension_numbers = #tpu.dot_dimension_numbers<[1], [0], [0], [1], [0, 0, 1, 1], [], []>} : vector<8x128xf32>, vector<128x384xf32>, vector<8x384xf32> -> vector<8x384xf32>
    %457 = arith.addf %456, %310 : vector<8x384xf32>
    %458 = vector.extract_strided_slice %455 {offsets = [0, 0], sizes = [8, 128], strides = [1, 1]} : vector<8x384xf32> to vector<8x128xf32>
    %459 = vector.extract_strided_slice %457 {offsets = [0, 0], sizes = [8, 128], strides = [1, 1]} : vector<8x384xf32> to vector<8x128xf32>
    %460 = arith.addf %458, %459 : vector<8x128xf32>
    %461 = arith.negf %460 : vector<8x128xf32>
    %462 = math.exp %461 : vector<8x128xf32>
    %cst_140 = arith.constant 1.000000e+00 : f32
    %463 = vector.broadcast %cst_140 : f32 to vector<8x128xf32>
    %464 = arith.addf %463, %462 : vector<8x128xf32>
    %465 = arith.divf %463, %464 : vector<8x128xf32>
    %466 = vector.extract_strided_slice %455 {offsets = [0, 128], sizes = [8, 128], strides = [1, 1]} : vector<8x384xf32> to vector<8x128xf32>
    %467 = vector.extract_strided_slice %457 {offsets = [0, 128], sizes = [8, 128], strides = [1, 1]} : vector<8x384xf32> to vector<8x128xf32>
    %468 = arith.addf %466, %467 : vector<8x128xf32>
    %469 = arith.negf %468 : vector<8x128xf32>
    %470 = math.exp %469 : vector<8x128xf32>
    %cst_141 = arith.constant 1.000000e+00 : f32
    %471 = vector.broadcast %cst_141 : f32 to vector<8x128xf32>
    %472 = arith.addf %471, %470 : vector<8x128xf32>
    %473 = arith.divf %471, %472 : vector<8x128xf32>
    %474 = vector.extract_strided_slice %455 {offsets = [0, 256], sizes = [8, 128], strides = [1, 1]} : vector<8x384xf32> to vector<8x128xf32>
    %475 = vector.extract_strided_slice %457 {offsets = [0, 256], sizes = [8, 128], strides = [1, 1]} : vector<8x384xf32> to vector<8x128xf32>
    %476 = arith.mulf %465, %475 : vector<8x128xf32>
    %477 = arith.addf %474, %476 : vector<8x128xf32>
    %478 = math.tanh %477 : vector<8x128xf32>
    %cst_142 = arith.constant 1.000000e+00 : f32
    %479 = vector.broadcast %cst_142 : f32 to vector<8x128xf32>
    %480 = arith.subf %479, %473 : vector<8x128xf32>
    %481 = arith.mulf %480, %478 : vector<8x128xf32>
    %482 = arith.mulf %473, %448 : vector<8x128xf32>
    %483 = arith.addf %481, %482 : vector<8x128xf32>
    %484 = arith.index_cast %c4_i32_136 : i32 to index
    %c0_143 = arith.constant 0 : index
    %c0_144 = arith.constant 0 : index
    %485 = vector.load %arg11[%484, %c0_143, %c0_144] : memref<8x8x128xf32, #tpu.memory_space<vmem>>, vector<1x8x128xf32>
    %486 = vector.shape_cast %485 : vector<1x8x128xf32> to vector<8x128xf32>
    %487 = vector.shape_cast %483 : vector<8x128xf32> to vector<1x8x128xf32>
    tpu.vector_store %arg11[%484, %c0_143, %c0_144], %487 {strides = array<i32>} : memref<8x8x128xf32, #tpu.memory_space<vmem>>, vector<1x8x128xf32>,
    %c5_i32_145 = arith.constant 5 : i32
    %488 = arith.index_cast %c5_i32_145 : i32 to index
    %c0_146 = arith.constant 0 : index
    %c0_147 = arith.constant 0 : index
    %489 = vector.load %arg13[%488, %c0_146, %c0_147] : memref<8x8x384xf32, #tpu.memory_space<vmem>>, vector<1x8x384xf32>
    %490 = vector.shape_cast %489 : vector<1x8x384xf32> to vector<8x384xf32>
    %cst_148 = arith.constant dense<0.000000e+00> : vector<8x384xf32>
    %491 = tpu.matmul %483, %307, %cst_148 {dimension_numbers = #tpu.dot_dimension_numbers<[1], [0], [0], [1], [0, 0, 1, 1], [], []>} : vector<8x128xf32>, vector<128x384xf32>, vector<8x384xf32> -> vector<8x384xf32>
    %492 = arith.addf %491, %310 : vector<8x384xf32>
    %493 = vector.extract_strided_slice %490 {offsets = [0, 0], sizes = [8, 128], strides = [1, 1]} : vector<8x384xf32> to vector<8x128xf32>
    %494 = vector.extract_strided_slice %492 {offsets = [0, 0], sizes = [8, 128], strides = [1, 1]} : vector<8x384xf32> to vector<8x128xf32>
    %495 = arith.addf %493, %494 : vector<8x128xf32>
    %496 = arith.negf %495 : vector<8x128xf32>
    %497 = math.exp %496 : vector<8x128xf32>
    %cst_149 = arith.constant 1.000000e+00 : f32
    %498 = vector.broadcast %cst_149 : f32 to vector<8x128xf32>
    %499 = arith.addf %498, %497 : vector<8x128xf32>
    %500 = arith.divf %498, %499 : vector<8x128xf32>
    %501 = vector.extract_strided_slice %490 {offsets = [0, 128], sizes = [8, 128], strides = [1, 1]} : vector<8x384xf32> to vector<8x128xf32>
    %502 = vector.extract_strided_slice %492 {offsets = [0, 128], sizes = [8, 128], strides = [1, 1]} : vector<8x384xf32> to vector<8x128xf32>
    %503 = arith.addf %501, %502 : vector<8x128xf32>
    %504 = arith.negf %503 : vector<8x128xf32>
    %505 = math.exp %504 : vector<8x128xf32>
    %cst_150 = arith.constant 1.000000e+00 : f32
    %506 = vector.broadcast %cst_150 : f32 to vector<8x128xf32>
    %507 = arith.addf %506, %505 : vector<8x128xf32>
    %508 = arith.divf %506, %507 : vector<8x128xf32>
    %509 = vector.extract_strided_slice %490 {offsets = [0, 256], sizes = [8, 128], strides = [1, 1]} : vector<8x384xf32> to vector<8x128xf32>
    %510 = vector.extract_strided_slice %492 {offsets = [0, 256], sizes = [8, 128], strides = [1, 1]} : vector<8x384xf32> to vector<8x128xf32>
    %511 = arith.mulf %500, %510 : vector<8x128xf32>
    %512 = arith.addf %509, %511 : vector<8x128xf32>
    %513 = math.tanh %512 : vector<8x128xf32>
    %cst_151 = arith.constant 1.000000e+00 : f32
    %514 = vector.broadcast %cst_151 : f32 to vector<8x128xf32>
    %515 = arith.subf %514, %508 : vector<8x128xf32>
    %516 = arith.mulf %515, %513 : vector<8x128xf32>
    %517 = arith.mulf %508, %483 : vector<8x128xf32>
    %518 = arith.addf %516, %517 : vector<8x128xf32>
    %519 = arith.index_cast %c5_i32_145 : i32 to index
    %c0_152 = arith.constant 0 : index
    %c0_153 = arith.constant 0 : index
    %520 = vector.load %arg11[%519, %c0_152, %c0_153] : memref<8x8x128xf32, #tpu.memory_space<vmem>>, vector<1x8x128xf32>
    %521 = vector.shape_cast %520 : vector<1x8x128xf32> to vector<8x128xf32>
    %522 = vector.shape_cast %518 : vector<8x128xf32> to vector<1x8x128xf32>
    tpu.vector_store %arg11[%519, %c0_152, %c0_153], %522 {strides = array<i32>} : memref<8x8x128xf32, #tpu.memory_space<vmem>>, vector<1x8x128xf32>,
    %c6_i32_154 = arith.constant 6 : i32
    %523 = arith.index_cast %c6_i32_154 : i32 to index
    %c0_155 = arith.constant 0 : index
    %c0_156 = arith.constant 0 : index
    %524 = vector.load %arg13[%523, %c0_155, %c0_156] : memref<8x8x384xf32, #tpu.memory_space<vmem>>, vector<1x8x384xf32>
    %525 = vector.shape_cast %524 : vector<1x8x384xf32> to vector<8x384xf32>
    %cst_157 = arith.constant dense<0.000000e+00> : vector<8x384xf32>
    %526 = tpu.matmul %518, %307, %cst_157 {dimension_numbers = #tpu.dot_dimension_numbers<[1], [0], [0], [1], [0, 0, 1, 1], [], []>} : vector<8x128xf32>, vector<128x384xf32>, vector<8x384xf32> -> vector<8x384xf32>
    %527 = arith.addf %526, %310 : vector<8x384xf32>
    %528 = vector.extract_strided_slice %525 {offsets = [0, 0], sizes = [8, 128], strides = [1, 1]} : vector<8x384xf32> to vector<8x128xf32>
    %529 = vector.extract_strided_slice %527 {offsets = [0, 0], sizes = [8, 128], strides = [1, 1]} : vector<8x384xf32> to vector<8x128xf32>
    %530 = arith.addf %528, %529 : vector<8x128xf32>
    %531 = arith.negf %530 : vector<8x128xf32>
    %532 = math.exp %531 : vector<8x128xf32>
    %cst_158 = arith.constant 1.000000e+00 : f32
    %533 = vector.broadcast %cst_158 : f32 to vector<8x128xf32>
    %534 = arith.addf %533, %532 : vector<8x128xf32>
    %535 = arith.divf %533, %534 : vector<8x128xf32>
    %536 = vector.extract_strided_slice %525 {offsets = [0, 128], sizes = [8, 128], strides = [1, 1]} : vector<8x384xf32> to vector<8x128xf32>
    %537 = vector.extract_strided_slice %527 {offsets = [0, 128], sizes = [8, 128], strides = [1, 1]} : vector<8x384xf32> to vector<8x128xf32>
    %538 = arith.addf %536, %537 : vector<8x128xf32>
    %539 = arith.negf %538 : vector<8x128xf32>
    %540 = math.exp %539 : vector<8x128xf32>
    %cst_159 = arith.constant 1.000000e+00 : f32
    %541 = vector.broadcast %cst_159 : f32 to vector<8x128xf32>
    %542 = arith.addf %541, %540 : vector<8x128xf32>
    %543 = arith.divf %541, %542 : vector<8x128xf32>
    %544 = vector.extract_strided_slice %525 {offsets = [0, 256], sizes = [8, 128], strides = [1, 1]} : vector<8x384xf32> to vector<8x128xf32>
    %545 = vector.extract_strided_slice %527 {offsets = [0, 256], sizes = [8, 128], strides = [1, 1]} : vector<8x384xf32> to vector<8x128xf32>
    %546 = arith.mulf %535, %545 : vector<8x128xf32>
    %547 = arith.addf %544, %546 : vector<8x128xf32>
    %548 = math.tanh %547 : vector<8x128xf32>
    %cst_160 = arith.constant 1.000000e+00 : f32
    %549 = vector.broadcast %cst_160 : f32 to vector<8x128xf32>
    %550 = arith.subf %549, %543 : vector<8x128xf32>
    %551 = arith.mulf %550, %548 : vector<8x128xf32>
    %552 = arith.mulf %543, %518 : vector<8x128xf32>
    %553 = arith.addf %551, %552 : vector<8x128xf32>
    %554 = arith.index_cast %c6_i32_154 : i32 to index
    %c0_161 = arith.constant 0 : index
    %c0_162 = arith.constant 0 : index
    %555 = vector.load %arg11[%554, %c0_161, %c0_162] : memref<8x8x128xf32, #tpu.memory_space<vmem>>, vector<1x8x128xf32>
    %556 = vector.shape_cast %555 : vector<1x8x128xf32> to vector<8x128xf32>
    %557 = vector.shape_cast %553 : vector<8x128xf32> to vector<1x8x128xf32>
    tpu.vector_store %arg11[%554, %c0_161, %c0_162], %557 {strides = array<i32>} : memref<8x8x128xf32, #tpu.memory_space<vmem>>, vector<1x8x128xf32>,
    %c7_i32_163 = arith.constant 7 : i32
    %558 = arith.index_cast %c7_i32_163 : i32 to index
    %c0_164 = arith.constant 0 : index
    %c0_165 = arith.constant 0 : index
    %559 = vector.load %arg13[%558, %c0_164, %c0_165] : memref<8x8x384xf32, #tpu.memory_space<vmem>>, vector<1x8x384xf32>
    %560 = vector.shape_cast %559 : vector<1x8x384xf32> to vector<8x384xf32>
    %cst_166 = arith.constant dense<0.000000e+00> : vector<8x384xf32>
    %561 = tpu.matmul %553, %307, %cst_166 {dimension_numbers = #tpu.dot_dimension_numbers<[1], [0], [0], [1], [0, 0, 1, 1], [], []>} : vector<8x128xf32>, vector<128x384xf32>, vector<8x384xf32> -> vector<8x384xf32>
    %562 = arith.addf %561, %310 : vector<8x384xf32>
    %563 = vector.extract_strided_slice %560 {offsets = [0, 0], sizes = [8, 128], strides = [1, 1]} : vector<8x384xf32> to vector<8x128xf32>
    %564 = vector.extract_strided_slice %562 {offsets = [0, 0], sizes = [8, 128], strides = [1, 1]} : vector<8x384xf32> to vector<8x128xf32>
    %565 = arith.addf %563, %564 : vector<8x128xf32>
    %566 = arith.negf %565 : vector<8x128xf32>
    %567 = math.exp %566 : vector<8x128xf32>
    %cst_167 = arith.constant 1.000000e+00 : f32
    %568 = vector.broadcast %cst_167 : f32 to vector<8x128xf32>
    %569 = arith.addf %568, %567 : vector<8x128xf32>
    %570 = arith.divf %568, %569 : vector<8x128xf32>
    %571 = vector.extract_strided_slice %560 {offsets = [0, 128], sizes = [8, 128], strides = [1, 1]} : vector<8x384xf32> to vector<8x128xf32>
    %572 = vector.extract_strided_slice %562 {offsets = [0, 128], sizes = [8, 128], strides = [1, 1]} : vector<8x384xf32> to vector<8x128xf32>
    %573 = arith.addf %571, %572 : vector<8x128xf32>
    %574 = arith.negf %573 : vector<8x128xf32>
    %575 = math.exp %574 : vector<8x128xf32>
    %cst_168 = arith.constant 1.000000e+00 : f32
    %576 = vector.broadcast %cst_168 : f32 to vector<8x128xf32>
    %577 = arith.addf %576, %575 : vector<8x128xf32>
    %578 = arith.divf %576, %577 : vector<8x128xf32>
    %579 = vector.extract_strided_slice %560 {offsets = [0, 256], sizes = [8, 128], strides = [1, 1]} : vector<8x384xf32> to vector<8x128xf32>
    %580 = vector.extract_strided_slice %562 {offsets = [0, 256], sizes = [8, 128], strides = [1, 1]} : vector<8x384xf32> to vector<8x128xf32>
    %581 = arith.mulf %570, %580 : vector<8x128xf32>
    %582 = arith.addf %579, %581 : vector<8x128xf32>
    %583 = math.tanh %582 : vector<8x128xf32>
    %cst_169 = arith.constant 1.000000e+00 : f32
    %584 = vector.broadcast %cst_169 : f32 to vector<8x128xf32>
    %585 = arith.subf %584, %578 : vector<8x128xf32>
    %586 = arith.mulf %585, %583 : vector<8x128xf32>
    %587 = arith.mulf %578, %553 : vector<8x128xf32>
    %588 = arith.addf %586, %587 : vector<8x128xf32>
    %589 = arith.index_cast %c7_i32_163 : i32 to index
    %c0_170 = arith.constant 0 : index
    %c0_171 = arith.constant 0 : index
    %590 = vector.load %arg11[%589, %c0_170, %c0_171] : memref<8x8x128xf32, #tpu.memory_space<vmem>>, vector<1x8x128xf32>
    %591 = vector.shape_cast %590 : vector<1x8x128xf32> to vector<8x128xf32>
    %592 = vector.shape_cast %588 : vector<8x128xf32> to vector<1x8x128xf32>
    tpu.vector_store %arg11[%589, %c0_170, %c0_171], %592 {strides = array<i32>} : memref<8x8x128xf32, #tpu.memory_space<vmem>>, vector<1x8x128xf32>,
    %c8_i32_172 = arith.constant 8 : i32
    %c1_173 = arith.constant 1 : index
    %c0_174 = arith.constant 0 : index
    %c0_175 = arith.constant 0 : index
    %593 = vector.load %arg12[%c1_173, %c0_174, %c0_175] : memref<2x8x128xf32, #tpu.memory_space<vmem>>, vector<1x8x128xf32>
    %594 = vector.shape_cast %593 : vector<1x8x128xf32> to vector<8x128xf32>
    %595 = vector.shape_cast %588 : vector<8x128xf32> to vector<1x8x128xf32>
    tpu.vector_store %arg12[%c1_173, %c0_174, %c0_175], %595 {strides = array<i32>} : memref<2x8x128xf32, #tpu.memory_space<vmem>>, vector<1x8x128xf32>,
    return
  }
  func.func @transform_0(%arg0: i32) -> (i32, i32, i32) {
    %c0_i32 = arith.constant 0 : i32
    %c0_i32_0 = arith.constant 0 : i32
    %c0_i32_1 = arith.constant 0 : i32
    %c0_i32_2 = arith.constant 0 : i32
    return %c0_i32, %c0_i32_0, %c0_i32_1 : i32, i32, i32
  }
  func.func @transform_1(%arg0: i32) -> (i32, i32, i32) {
    %c0_i32 = arith.constant 0 : i32
    %c0_i32_0 = arith.constant 0 : i32
    %c0_i32_1 = arith.constant 0 : i32
    %c0_i32_2 = arith.constant 0 : i32
    return %c0_i32, %c0_i32_0, %c0_i32_1 : i32, i32, i32
  }
  func.func @transform_2(%arg0: i32) -> (i32, i32) {
    %c0_i32 = arith.constant 0 : i32
    %c0_i32_0 = arith.constant 0 : i32
    %c0_i32_1 = arith.constant 0 : i32
    return %c0_i32, %c0_i32_0 : i32, i32
  }
  func.func @transform_3(%arg0: i32) -> (i32, i32) {
    %c0_i32 = arith.constant 0 : i32
    %c0_i32_0 = arith.constant 0 : i32
    %c0_i32_1 = arith.constant 0 : i32
    return %c0_i32, %c0_i32_0 : i32, i32
  }
  func.func @transform_4(%arg0: i32) -> (i32, i32) {
    %c0_i32 = arith.constant 0 : i32
    %c0_i32_0 = arith.constant 0 : i32
    %c0_i32_1 = arith.constant 0 : i32
    return %c0_i32, %c0_i32_0 : i32, i32
  }
  func.func @transform_5(%arg0: i32) -> (i32, i32) {
    %c0_i32 = arith.constant 0 : i32
    %c0_i32_0 = arith.constant 0 : i32
    %c0_i32_1 = arith.constant 0 : i32
    return %c0_i32, %c0_i32_0 : i32, i32
  }
  func.func @transform_6(%arg0: i32) -> (i32, i32) {
    %c0_i32 = arith.constant 0 : i32
    %c0_i32_0 = arith.constant 0 : i32
    %c0_i32_1 = arith.constant 0 : i32
    return %c0_i32, %c0_i32_0 : i32, i32
  }
  func.func @transform_7(%arg0: i32) -> (i32, i32) {
    %c0_i32 = arith.constant 0 : i32
    %c0_i32_0 = arith.constant 0 : i32
    %c0_i32_1 = arith.constant 0 : i32
    return %c0_i32, %c0_i32_0 : i32, i32
  }
  func.func @transform_8(%arg0: i32) -> (i32, i32) {
    %c0_i32 = arith.constant 0 : i32
    %c0_i32_0 = arith.constant 0 : i32
    %c0_i32_1 = arith.constant 0 : i32
    return %c0_i32, %c0_i32_0 : i32, i32
  }
  func.func @transform_9(%arg0: i32) -> (i32, i32) {
    %c0_i32 = arith.constant 0 : i32
    %c0_i32_0 = arith.constant 0 : i32
    %c0_i32_1 = arith.constant 0 : i32
    return %c0_i32, %c0_i32_0 : i32, i32
  }
  func.func @transform_10(%arg0: i32) -> (i32, i32, i32) {
    %c0_i32 = arith.constant 0 : i32
    %c0_i32_0 = arith.constant 0 : i32
    %c0_i32_1 = arith.constant 0 : i32
    %c0_i32_2 = arith.constant 0 : i32
    return %c0_i32, %c0_i32_0, %c0_i32_1 : i32, i32, i32
  }
  func.func @transform_11(%arg0: i32) -> (i32, i32, i32) {
    %c0_i32 = arith.constant 0 : i32
    %c0_i32_0 = arith.constant 0 : i32
    %c0_i32_1 = arith.constant 0 : i32
    %c0_i32_2 = arith.constant 0 : i32
    return %c0_i32, %c0_i32_0, %c0_i32_1 : i32, i32, i32
  }
}

module attributes {stable_mosaic.version = 11 : i64} {
  func.func @kernel(%arg0: i32, %arg1: memref<7x8x128xf32, #tpu.memory_space<vmem>>, %arg2: memref<2x8x128xf32, #tpu.memory_space<vmem>>, %arg3: memref<128x384xf32, #tpu.memory_space<vmem>>, %arg4: memref<128x384xf32, #tpu.memory_space<vmem>>, %arg5: memref<1x384xf32, #tpu.memory_space<vmem>>, %arg6: memref<1x384xf32, #tpu.memory_space<vmem>>, %arg7: memref<128x384xf32, #tpu.memory_space<vmem>>, %arg8: memref<128x384xf32, #tpu.memory_space<vmem>>, %arg9: memref<1x384xf32, #tpu.memory_space<vmem>>, %arg10: memref<1x384xf32, #tpu.memory_space<vmem>>, %arg11: memref<128x128xf32, #tpu.memory_space<vmem>>, %arg12: memref<1x128xf32, #tpu.memory_space<vmem>>, %arg13: memref<7x8x128xf32, #tpu.memory_space<vmem>>, %arg14: memref<2x8x128xf32, #tpu.memory_space<vmem>>, %arg15: memref<7x8x384xf32, #tpu.memory_space<vmem>>, %arg16: memref<7x8x128xf32, #tpu.memory_space<vmem>>) attributes {dimension_semantics = [#tpu.dimension_semantics<arbitrary>], iteration_bounds = array<i64: 1>, scalar_prefetch = 0 : i64, scratch_operands = 2 : i64, tpu.core_type = #tpu.core_type<tc>, window_params = [{pipeline_mode = #tpu.pipeline_mode<synchronous>, transform_indices = @transform_0, window_bounds = array<i64: 7, 8, 128>}, {pipeline_mode = #tpu.pipeline_mode<synchronous>, transform_indices = @transform_1, window_bounds = array<i64: 2, 8, 128>}, {pipeline_mode = #tpu.pipeline_mode<synchronous>, transform_indices = @transform_2, window_bounds = array<i64: 128, 384>}, {pipeline_mode = #tpu.pipeline_mode<synchronous>, transform_indices = @transform_3, window_bounds = array<i64: 128, 384>}, {pipeline_mode = #tpu.pipeline_mode<synchronous>, transform_indices = @transform_4, window_bounds = array<i64: 1, 384>}, {pipeline_mode = #tpu.pipeline_mode<synchronous>, transform_indices = @transform_5, window_bounds = array<i64: 1, 384>}, {pipeline_mode = #tpu.pipeline_mode<synchronous>, transform_indices = @transform_6, window_bounds = array<i64: 128, 384>}, {pipeline_mode = #tpu.pipeline_mode<synchronous>, transform_indices = @transform_7, window_bounds = array<i64: 128, 384>}, {pipeline_mode = #tpu.pipeline_mode<synchronous>, transform_indices = @transform_8, window_bounds = array<i64: 1, 384>}, {pipeline_mode = #tpu.pipeline_mode<synchronous>, transform_indices = @transform_9, window_bounds = array<i64: 1, 384>}, {pipeline_mode = #tpu.pipeline_mode<synchronous>, transform_indices = @transform_10, window_bounds = array<i64: 128, 128>}, {pipeline_mode = #tpu.pipeline_mode<synchronous>, transform_indices = @transform_11, window_bounds = array<i64: 1, 128>}, {pipeline_mode = #tpu.pipeline_mode<synchronous>, transform_indices = @transform_12, window_bounds = array<i64: 7, 8, 128>}, {pipeline_mode = #tpu.pipeline_mode<synchronous>, transform_indices = @transform_13, window_bounds = array<i64: 2, 8, 128>}]} {
    %c0 = arith.constant 0 : index
    %c0_0 = arith.constant 0 : index
    %c0_1 = arith.constant 0 : index
    %0 = vector.load %arg1[%c0, %c0_0, %c0_1] : memref<7x8x128xf32, #tpu.memory_space<vmem>>, vector<7x8x128xf32>
    %1 = vector.shape_cast %0 : vector<7x8x128xf32> to vector<56x128xf32>
    %c0_2 = arith.constant 0 : index
    %c0_3 = arith.constant 0 : index
    %2 = vector.load %arg3[%c0_2, %c0_3] : memref<128x384xf32, #tpu.memory_space<vmem>>, vector<128x384xf32>
    %cst = arith.constant dense<0.000000e+00> : vector<56x384xf32>
    %3 = tpu.matmul %1, %2, %cst {dimension_numbers = #tpu.dot_dimension_numbers<[1], [0], [0], [1], [0, 0, 1, 1], [], []>} : vector<56x128xf32>, vector<128x384xf32>, vector<56x384xf32> -> vector<56x384xf32>
    %c0_4 = arith.constant 0 : index
    %c0_5 = arith.constant 0 : index
    %4 = vector.load %arg5[%c0_4, %c0_5] : memref<1x384xf32, #tpu.memory_space<vmem>>, vector<1x384xf32>
    %5 = vector.broadcast %4 : vector<1x384xf32> to vector<56x384xf32>
    %6 = arith.addf %3, %5 : vector<56x384xf32>
    %7 = vector.shape_cast %6 : vector<56x384xf32> to vector<7x8x384xf32>
    %c0_6 = arith.constant 0 : index
    %c0_7 = arith.constant 0 : index
    %c0_8 = arith.constant 0 : index
    %8 = vector.load %arg15[%c0_6, %c0_7, %c0_8] : memref<7x8x384xf32, #tpu.memory_space<vmem>>, vector<7x8x384xf32>
    tpu.vector_store %arg15[%c0_6, %c0_7, %c0_8], %7 {strides = array<i32>} : memref<7x8x384xf32, #tpu.memory_space<vmem>>, vector<7x8x384xf32>,
    %c0_9 = arith.constant 0 : index
    %c0_10 = arith.constant 0 : index
    %9 = vector.load %arg4[%c0_9, %c0_10] : memref<128x384xf32, #tpu.memory_space<vmem>>, vector<128x384xf32>
    %c0_11 = arith.constant 0 : index
    %c0_12 = arith.constant 0 : index
    %10 = vector.load %arg6[%c0_11, %c0_12] : memref<1x384xf32, #tpu.memory_space<vmem>>, vector<1x384xf32>
    %11 = vector.shape_cast %10 : vector<1x384xf32> to vector<1x384xf32>
    %12 = vector.broadcast %11 : vector<1x384xf32> to vector<8x384xf32>
    %c0_13 = arith.constant 0 : index
    %c0_14 = arith.constant 0 : index
    %c0_15 = arith.constant 0 : index
    %13 = vector.load %arg2[%c0_13, %c0_14, %c0_15] : memref<2x8x128xf32, #tpu.memory_space<vmem>>, vector<1x8x128xf32>
    %14 = vector.shape_cast %13 : vector<1x8x128xf32> to vector<8x128xf32>
    %c0_i32 = arith.constant 0 : i32
    %15 = arith.index_cast %c0_i32 : i32 to index
    %c0_16 = arith.constant 0 : index
    %c0_17 = arith.constant 0 : index
    %16 = vector.load %arg15[%15, %c0_16, %c0_17] : memref<7x8x384xf32, #tpu.memory_space<vmem>>, vector<1x8x384xf32>
    %17 = vector.shape_cast %16 : vector<1x8x384xf32> to vector<8x384xf32>
    %cst_18 = arith.constant dense<0.000000e+00> : vector<8x384xf32>
    %18 = tpu.matmul %14, %9, %cst_18 {dimension_numbers = #tpu.dot_dimension_numbers<[1], [0], [0], [1], [0, 0, 1, 1], [], []>} : vector<8x128xf32>, vector<128x384xf32>, vector<8x384xf32> -> vector<8x384xf32>
    %19 = arith.addf %18, %12 : vector<8x384xf32>
    %20 = vector.extract_strided_slice %17 {offsets = [0, 0], sizes = [8, 128], strides = [1, 1]} : vector<8x384xf32> to vector<8x128xf32>
    %21 = vector.extract_strided_slice %19 {offsets = [0, 0], sizes = [8, 128], strides = [1, 1]} : vector<8x384xf32> to vector<8x128xf32>
    %22 = arith.addf %20, %21 : vector<8x128xf32>
    %23 = arith.negf %22 : vector<8x128xf32>
    %24 = math.exp %23 : vector<8x128xf32>
    %cst_19 = arith.constant 1.000000e+00 : f32
    %25 = vector.broadcast %cst_19 : f32 to vector<8x128xf32>
    %26 = arith.addf %25, %24 : vector<8x128xf32>
    %27 = arith.divf %25, %26 : vector<8x128xf32>
    %28 = vector.extract_strided_slice %17 {offsets = [0, 128], sizes = [8, 128], strides = [1, 1]} : vector<8x384xf32> to vector<8x128xf32>
    %29 = vector.extract_strided_slice %19 {offsets = [0, 128], sizes = [8, 128], strides = [1, 1]} : vector<8x384xf32> to vector<8x128xf32>
    %30 = arith.addf %28, %29 : vector<8x128xf32>
    %31 = arith.negf %30 : vector<8x128xf32>
    %32 = math.exp %31 : vector<8x128xf32>
    %cst_20 = arith.constant 1.000000e+00 : f32
    %33 = vector.broadcast %cst_20 : f32 to vector<8x128xf32>
    %34 = arith.addf %33, %32 : vector<8x128xf32>
    %35 = arith.divf %33, %34 : vector<8x128xf32>
    %36 = vector.extract_strided_slice %17 {offsets = [0, 256], sizes = [8, 128], strides = [1, 1]} : vector<8x384xf32> to vector<8x128xf32>
    %37 = vector.extract_strided_slice %19 {offsets = [0, 256], sizes = [8, 128], strides = [1, 1]} : vector<8x384xf32> to vector<8x128xf32>
    %38 = arith.mulf %27, %37 : vector<8x128xf32>
    %39 = arith.addf %36, %38 : vector<8x128xf32>
    %40 = math.tanh %39 : vector<8x128xf32>
    %cst_21 = arith.constant 1.000000e+00 : f32
    %41 = vector.broadcast %cst_21 : f32 to vector<8x128xf32>
    %42 = arith.subf %41, %35 : vector<8x128xf32>
    %43 = arith.mulf %42, %40 : vector<8x128xf32>
    %44 = arith.mulf %35, %14 : vector<8x128xf32>
    %45 = arith.addf %43, %44 : vector<8x128xf32>
    %46 = arith.index_cast %c0_i32 : i32 to index
    %c0_22 = arith.constant 0 : index
    %c0_23 = arith.constant 0 : index
    %47 = vector.load %arg16[%46, %c0_22, %c0_23] : memref<7x8x128xf32, #tpu.memory_space<vmem>>, vector<1x8x128xf32>
    %48 = vector.shape_cast %47 : vector<1x8x128xf32> to vector<8x128xf32>
    %49 = vector.shape_cast %45 : vector<8x128xf32> to vector<1x8x128xf32>
    tpu.vector_store %arg16[%46, %c0_22, %c0_23], %49 {strides = array<i32>} : memref<7x8x128xf32, #tpu.memory_space<vmem>>, vector<1x8x128xf32>,
    %c1_i32 = arith.constant 1 : i32
    %50 = arith.index_cast %c1_i32 : i32 to index
    %c0_24 = arith.constant 0 : index
    %c0_25 = arith.constant 0 : index
    %51 = vector.load %arg15[%50, %c0_24, %c0_25] : memref<7x8x384xf32, #tpu.memory_space<vmem>>, vector<1x8x384xf32>
    %52 = vector.shape_cast %51 : vector<1x8x384xf32> to vector<8x384xf32>
    %cst_26 = arith.constant dense<0.000000e+00> : vector<8x384xf32>
    %53 = tpu.matmul %45, %9, %cst_26 {dimension_numbers = #tpu.dot_dimension_numbers<[1], [0], [0], [1], [0, 0, 1, 1], [], []>} : vector<8x128xf32>, vector<128x384xf32>, vector<8x384xf32> -> vector<8x384xf32>
    %54 = arith.addf %53, %12 : vector<8x384xf32>
    %55 = vector.extract_strided_slice %52 {offsets = [0, 0], sizes = [8, 128], strides = [1, 1]} : vector<8x384xf32> to vector<8x128xf32>
    %56 = vector.extract_strided_slice %54 {offsets = [0, 0], sizes = [8, 128], strides = [1, 1]} : vector<8x384xf32> to vector<8x128xf32>
    %57 = arith.addf %55, %56 : vector<8x128xf32>
    %58 = arith.negf %57 : vector<8x128xf32>
    %59 = math.exp %58 : vector<8x128xf32>
    %cst_27 = arith.constant 1.000000e+00 : f32
    %60 = vector.broadcast %cst_27 : f32 to vector<8x128xf32>
    %61 = arith.addf %60, %59 : vector<8x128xf32>
    %62 = arith.divf %60, %61 : vector<8x128xf32>
    %63 = vector.extract_strided_slice %52 {offsets = [0, 128], sizes = [8, 128], strides = [1, 1]} : vector<8x384xf32> to vector<8x128xf32>
    %64 = vector.extract_strided_slice %54 {offsets = [0, 128], sizes = [8, 128], strides = [1, 1]} : vector<8x384xf32> to vector<8x128xf32>
    %65 = arith.addf %63, %64 : vector<8x128xf32>
    %66 = arith.negf %65 : vector<8x128xf32>
    %67 = math.exp %66 : vector<8x128xf32>
    %cst_28 = arith.constant 1.000000e+00 : f32
    %68 = vector.broadcast %cst_28 : f32 to vector<8x128xf32>
    %69 = arith.addf %68, %67 : vector<8x128xf32>
    %70 = arith.divf %68, %69 : vector<8x128xf32>
    %71 = vector.extract_strided_slice %52 {offsets = [0, 256], sizes = [8, 128], strides = [1, 1]} : vector<8x384xf32> to vector<8x128xf32>
    %72 = vector.extract_strided_slice %54 {offsets = [0, 256], sizes = [8, 128], strides = [1, 1]} : vector<8x384xf32> to vector<8x128xf32>
    %73 = arith.mulf %62, %72 : vector<8x128xf32>
    %74 = arith.addf %71, %73 : vector<8x128xf32>
    %75 = math.tanh %74 : vector<8x128xf32>
    %cst_29 = arith.constant 1.000000e+00 : f32
    %76 = vector.broadcast %cst_29 : f32 to vector<8x128xf32>
    %77 = arith.subf %76, %70 : vector<8x128xf32>
    %78 = arith.mulf %77, %75 : vector<8x128xf32>
    %79 = arith.mulf %70, %45 : vector<8x128xf32>
    %80 = arith.addf %78, %79 : vector<8x128xf32>
    %81 = arith.index_cast %c1_i32 : i32 to index
    %c0_30 = arith.constant 0 : index
    %c0_31 = arith.constant 0 : index
    %82 = vector.load %arg16[%81, %c0_30, %c0_31] : memref<7x8x128xf32, #tpu.memory_space<vmem>>, vector<1x8x128xf32>
    %83 = vector.shape_cast %82 : vector<1x8x128xf32> to vector<8x128xf32>
    %84 = vector.shape_cast %80 : vector<8x128xf32> to vector<1x8x128xf32>
    tpu.vector_store %arg16[%81, %c0_30, %c0_31], %84 {strides = array<i32>} : memref<7x8x128xf32, #tpu.memory_space<vmem>>, vector<1x8x128xf32>,
    %c2_i32 = arith.constant 2 : i32
    %85 = arith.index_cast %c2_i32 : i32 to index
    %c0_32 = arith.constant 0 : index
    %c0_33 = arith.constant 0 : index
    %86 = vector.load %arg15[%85, %c0_32, %c0_33] : memref<7x8x384xf32, #tpu.memory_space<vmem>>, vector<1x8x384xf32>
    %87 = vector.shape_cast %86 : vector<1x8x384xf32> to vector<8x384xf32>
    %cst_34 = arith.constant dense<0.000000e+00> : vector<8x384xf32>
    %88 = tpu.matmul %80, %9, %cst_34 {dimension_numbers = #tpu.dot_dimension_numbers<[1], [0], [0], [1], [0, 0, 1, 1], [], []>} : vector<8x128xf32>, vector<128x384xf32>, vector<8x384xf32> -> vector<8x384xf32>
    %89 = arith.addf %88, %12 : vector<8x384xf32>
    %90 = vector.extract_strided_slice %87 {offsets = [0, 0], sizes = [8, 128], strides = [1, 1]} : vector<8x384xf32> to vector<8x128xf32>
    %91 = vector.extract_strided_slice %89 {offsets = [0, 0], sizes = [8, 128], strides = [1, 1]} : vector<8x384xf32> to vector<8x128xf32>
    %92 = arith.addf %90, %91 : vector<8x128xf32>
    %93 = arith.negf %92 : vector<8x128xf32>
    %94 = math.exp %93 : vector<8x128xf32>
    %cst_35 = arith.constant 1.000000e+00 : f32
    %95 = vector.broadcast %cst_35 : f32 to vector<8x128xf32>
    %96 = arith.addf %95, %94 : vector<8x128xf32>
    %97 = arith.divf %95, %96 : vector<8x128xf32>
    %98 = vector.extract_strided_slice %87 {offsets = [0, 128], sizes = [8, 128], strides = [1, 1]} : vector<8x384xf32> to vector<8x128xf32>
    %99 = vector.extract_strided_slice %89 {offsets = [0, 128], sizes = [8, 128], strides = [1, 1]} : vector<8x384xf32> to vector<8x128xf32>
    %100 = arith.addf %98, %99 : vector<8x128xf32>
    %101 = arith.negf %100 : vector<8x128xf32>
    %102 = math.exp %101 : vector<8x128xf32>
    %cst_36 = arith.constant 1.000000e+00 : f32
    %103 = vector.broadcast %cst_36 : f32 to vector<8x128xf32>
    %104 = arith.addf %103, %102 : vector<8x128xf32>
    %105 = arith.divf %103, %104 : vector<8x128xf32>
    %106 = vector.extract_strided_slice %87 {offsets = [0, 256], sizes = [8, 128], strides = [1, 1]} : vector<8x384xf32> to vector<8x128xf32>
    %107 = vector.extract_strided_slice %89 {offsets = [0, 256], sizes = [8, 128], strides = [1, 1]} : vector<8x384xf32> to vector<8x128xf32>
    %108 = arith.mulf %97, %107 : vector<8x128xf32>
    %109 = arith.addf %106, %108 : vector<8x128xf32>
    %110 = math.tanh %109 : vector<8x128xf32>
    %cst_37 = arith.constant 1.000000e+00 : f32
    %111 = vector.broadcast %cst_37 : f32 to vector<8x128xf32>
    %112 = arith.subf %111, %105 : vector<8x128xf32>
    %113 = arith.mulf %112, %110 : vector<8x128xf32>
    %114 = arith.mulf %105, %80 : vector<8x128xf32>
    %115 = arith.addf %113, %114 : vector<8x128xf32>
    %116 = arith.index_cast %c2_i32 : i32 to index
    %c0_38 = arith.constant 0 : index
    %c0_39 = arith.constant 0 : index
    %117 = vector.load %arg16[%116, %c0_38, %c0_39] : memref<7x8x128xf32, #tpu.memory_space<vmem>>, vector<1x8x128xf32>
    %118 = vector.shape_cast %117 : vector<1x8x128xf32> to vector<8x128xf32>
    %119 = vector.shape_cast %115 : vector<8x128xf32> to vector<1x8x128xf32>
    tpu.vector_store %arg16[%116, %c0_38, %c0_39], %119 {strides = array<i32>} : memref<7x8x128xf32, #tpu.memory_space<vmem>>, vector<1x8x128xf32>,
    %c3_i32 = arith.constant 3 : i32
    %120 = arith.index_cast %c3_i32 : i32 to index
    %c0_40 = arith.constant 0 : index
    %c0_41 = arith.constant 0 : index
    %121 = vector.load %arg15[%120, %c0_40, %c0_41] : memref<7x8x384xf32, #tpu.memory_space<vmem>>, vector<1x8x384xf32>
    %122 = vector.shape_cast %121 : vector<1x8x384xf32> to vector<8x384xf32>
    %cst_42 = arith.constant dense<0.000000e+00> : vector<8x384xf32>
    %123 = tpu.matmul %115, %9, %cst_42 {dimension_numbers = #tpu.dot_dimension_numbers<[1], [0], [0], [1], [0, 0, 1, 1], [], []>} : vector<8x128xf32>, vector<128x384xf32>, vector<8x384xf32> -> vector<8x384xf32>
    %124 = arith.addf %123, %12 : vector<8x384xf32>
    %125 = vector.extract_strided_slice %122 {offsets = [0, 0], sizes = [8, 128], strides = [1, 1]} : vector<8x384xf32> to vector<8x128xf32>
    %126 = vector.extract_strided_slice %124 {offsets = [0, 0], sizes = [8, 128], strides = [1, 1]} : vector<8x384xf32> to vector<8x128xf32>
    %127 = arith.addf %125, %126 : vector<8x128xf32>
    %128 = arith.negf %127 : vector<8x128xf32>
    %129 = math.exp %128 : vector<8x128xf32>
    %cst_43 = arith.constant 1.000000e+00 : f32
    %130 = vector.broadcast %cst_43 : f32 to vector<8x128xf32>
    %131 = arith.addf %130, %129 : vector<8x128xf32>
    %132 = arith.divf %130, %131 : vector<8x128xf32>
    %133 = vector.extract_strided_slice %122 {offsets = [0, 128], sizes = [8, 128], strides = [1, 1]} : vector<8x384xf32> to vector<8x128xf32>
    %134 = vector.extract_strided_slice %124 {offsets = [0, 128], sizes = [8, 128], strides = [1, 1]} : vector<8x384xf32> to vector<8x128xf32>
    %135 = arith.addf %133, %134 : vector<8x128xf32>
    %136 = arith.negf %135 : vector<8x128xf32>
    %137 = math.exp %136 : vector<8x128xf32>
    %cst_44 = arith.constant 1.000000e+00 : f32
    %138 = vector.broadcast %cst_44 : f32 to vector<8x128xf32>
    %139 = arith.addf %138, %137 : vector<8x128xf32>
    %140 = arith.divf %138, %139 : vector<8x128xf32>
    %141 = vector.extract_strided_slice %122 {offsets = [0, 256], sizes = [8, 128], strides = [1, 1]} : vector<8x384xf32> to vector<8x128xf32>
    %142 = vector.extract_strided_slice %124 {offsets = [0, 256], sizes = [8, 128], strides = [1, 1]} : vector<8x384xf32> to vector<8x128xf32>
    %143 = arith.mulf %132, %142 : vector<8x128xf32>
    %144 = arith.addf %141, %143 : vector<8x128xf32>
    %145 = math.tanh %144 : vector<8x128xf32>
    %cst_45 = arith.constant 1.000000e+00 : f32
    %146 = vector.broadcast %cst_45 : f32 to vector<8x128xf32>
    %147 = arith.subf %146, %140 : vector<8x128xf32>
    %148 = arith.mulf %147, %145 : vector<8x128xf32>
    %149 = arith.mulf %140, %115 : vector<8x128xf32>
    %150 = arith.addf %148, %149 : vector<8x128xf32>
    %151 = arith.index_cast %c3_i32 : i32 to index
    %c0_46 = arith.constant 0 : index
    %c0_47 = arith.constant 0 : index
    %152 = vector.load %arg16[%151, %c0_46, %c0_47] : memref<7x8x128xf32, #tpu.memory_space<vmem>>, vector<1x8x128xf32>
    %153 = vector.shape_cast %152 : vector<1x8x128xf32> to vector<8x128xf32>
    %154 = vector.shape_cast %150 : vector<8x128xf32> to vector<1x8x128xf32>
    tpu.vector_store %arg16[%151, %c0_46, %c0_47], %154 {strides = array<i32>} : memref<7x8x128xf32, #tpu.memory_space<vmem>>, vector<1x8x128xf32>,
    %c4_i32 = arith.constant 4 : i32
    %155 = arith.index_cast %c4_i32 : i32 to index
    %c0_48 = arith.constant 0 : index
    %c0_49 = arith.constant 0 : index
    %156 = vector.load %arg15[%155, %c0_48, %c0_49] : memref<7x8x384xf32, #tpu.memory_space<vmem>>, vector<1x8x384xf32>
    %157 = vector.shape_cast %156 : vector<1x8x384xf32> to vector<8x384xf32>
    %cst_50 = arith.constant dense<0.000000e+00> : vector<8x384xf32>
    %158 = tpu.matmul %150, %9, %cst_50 {dimension_numbers = #tpu.dot_dimension_numbers<[1], [0], [0], [1], [0, 0, 1, 1], [], []>} : vector<8x128xf32>, vector<128x384xf32>, vector<8x384xf32> -> vector<8x384xf32>
    %159 = arith.addf %158, %12 : vector<8x384xf32>
    %160 = vector.extract_strided_slice %157 {offsets = [0, 0], sizes = [8, 128], strides = [1, 1]} : vector<8x384xf32> to vector<8x128xf32>
    %161 = vector.extract_strided_slice %159 {offsets = [0, 0], sizes = [8, 128], strides = [1, 1]} : vector<8x384xf32> to vector<8x128xf32>
    %162 = arith.addf %160, %161 : vector<8x128xf32>
    %163 = arith.negf %162 : vector<8x128xf32>
    %164 = math.exp %163 : vector<8x128xf32>
    %cst_51 = arith.constant 1.000000e+00 : f32
    %165 = vector.broadcast %cst_51 : f32 to vector<8x128xf32>
    %166 = arith.addf %165, %164 : vector<8x128xf32>
    %167 = arith.divf %165, %166 : vector<8x128xf32>
    %168 = vector.extract_strided_slice %157 {offsets = [0, 128], sizes = [8, 128], strides = [1, 1]} : vector<8x384xf32> to vector<8x128xf32>
    %169 = vector.extract_strided_slice %159 {offsets = [0, 128], sizes = [8, 128], strides = [1, 1]} : vector<8x384xf32> to vector<8x128xf32>
    %170 = arith.addf %168, %169 : vector<8x128xf32>
    %171 = arith.negf %170 : vector<8x128xf32>
    %172 = math.exp %171 : vector<8x128xf32>
    %cst_52 = arith.constant 1.000000e+00 : f32
    %173 = vector.broadcast %cst_52 : f32 to vector<8x128xf32>
    %174 = arith.addf %173, %172 : vector<8x128xf32>
    %175 = arith.divf %173, %174 : vector<8x128xf32>
    %176 = vector.extract_strided_slice %157 {offsets = [0, 256], sizes = [8, 128], strides = [1, 1]} : vector<8x384xf32> to vector<8x128xf32>
    %177 = vector.extract_strided_slice %159 {offsets = [0, 256], sizes = [8, 128], strides = [1, 1]} : vector<8x384xf32> to vector<8x128xf32>
    %178 = arith.mulf %167, %177 : vector<8x128xf32>
    %179 = arith.addf %176, %178 : vector<8x128xf32>
    %180 = math.tanh %179 : vector<8x128xf32>
    %cst_53 = arith.constant 1.000000e+00 : f32
    %181 = vector.broadcast %cst_53 : f32 to vector<8x128xf32>
    %182 = arith.subf %181, %175 : vector<8x128xf32>
    %183 = arith.mulf %182, %180 : vector<8x128xf32>
    %184 = arith.mulf %175, %150 : vector<8x128xf32>
    %185 = arith.addf %183, %184 : vector<8x128xf32>
    %186 = arith.index_cast %c4_i32 : i32 to index
    %c0_54 = arith.constant 0 : index
    %c0_55 = arith.constant 0 : index
    %187 = vector.load %arg16[%186, %c0_54, %c0_55] : memref<7x8x128xf32, #tpu.memory_space<vmem>>, vector<1x8x128xf32>
    %188 = vector.shape_cast %187 : vector<1x8x128xf32> to vector<8x128xf32>
    %189 = vector.shape_cast %185 : vector<8x128xf32> to vector<1x8x128xf32>
    tpu.vector_store %arg16[%186, %c0_54, %c0_55], %189 {strides = array<i32>} : memref<7x8x128xf32, #tpu.memory_space<vmem>>, vector<1x8x128xf32>,
    %c5_i32 = arith.constant 5 : i32
    %190 = arith.index_cast %c5_i32 : i32 to index
    %c0_56 = arith.constant 0 : index
    %c0_57 = arith.constant 0 : index
    %191 = vector.load %arg15[%190, %c0_56, %c0_57] : memref<7x8x384xf32, #tpu.memory_space<vmem>>, vector<1x8x384xf32>
    %192 = vector.shape_cast %191 : vector<1x8x384xf32> to vector<8x384xf32>
    %cst_58 = arith.constant dense<0.000000e+00> : vector<8x384xf32>
    %193 = tpu.matmul %185, %9, %cst_58 {dimension_numbers = #tpu.dot_dimension_numbers<[1], [0], [0], [1], [0, 0, 1, 1], [], []>} : vector<8x128xf32>, vector<128x384xf32>, vector<8x384xf32> -> vector<8x384xf32>
    %194 = arith.addf %193, %12 : vector<8x384xf32>
    %195 = vector.extract_strided_slice %192 {offsets = [0, 0], sizes = [8, 128], strides = [1, 1]} : vector<8x384xf32> to vector<8x128xf32>
    %196 = vector.extract_strided_slice %194 {offsets = [0, 0], sizes = [8, 128], strides = [1, 1]} : vector<8x384xf32> to vector<8x128xf32>
    %197 = arith.addf %195, %196 : vector<8x128xf32>
    %198 = arith.negf %197 : vector<8x128xf32>
    %199 = math.exp %198 : vector<8x128xf32>
    %cst_59 = arith.constant 1.000000e+00 : f32
    %200 = vector.broadcast %cst_59 : f32 to vector<8x128xf32>
    %201 = arith.addf %200, %199 : vector<8x128xf32>
    %202 = arith.divf %200, %201 : vector<8x128xf32>
    %203 = vector.extract_strided_slice %192 {offsets = [0, 128], sizes = [8, 128], strides = [1, 1]} : vector<8x384xf32> to vector<8x128xf32>
    %204 = vector.extract_strided_slice %194 {offsets = [0, 128], sizes = [8, 128], strides = [1, 1]} : vector<8x384xf32> to vector<8x128xf32>
    %205 = arith.addf %203, %204 : vector<8x128xf32>
    %206 = arith.negf %205 : vector<8x128xf32>
    %207 = math.exp %206 : vector<8x128xf32>
    %cst_60 = arith.constant 1.000000e+00 : f32
    %208 = vector.broadcast %cst_60 : f32 to vector<8x128xf32>
    %209 = arith.addf %208, %207 : vector<8x128xf32>
    %210 = arith.divf %208, %209 : vector<8x128xf32>
    %211 = vector.extract_strided_slice %192 {offsets = [0, 256], sizes = [8, 128], strides = [1, 1]} : vector<8x384xf32> to vector<8x128xf32>
    %212 = vector.extract_strided_slice %194 {offsets = [0, 256], sizes = [8, 128], strides = [1, 1]} : vector<8x384xf32> to vector<8x128xf32>
    %213 = arith.mulf %202, %212 : vector<8x128xf32>
    %214 = arith.addf %211, %213 : vector<8x128xf32>
    %215 = math.tanh %214 : vector<8x128xf32>
    %cst_61 = arith.constant 1.000000e+00 : f32
    %216 = vector.broadcast %cst_61 : f32 to vector<8x128xf32>
    %217 = arith.subf %216, %210 : vector<8x128xf32>
    %218 = arith.mulf %217, %215 : vector<8x128xf32>
    %219 = arith.mulf %210, %185 : vector<8x128xf32>
    %220 = arith.addf %218, %219 : vector<8x128xf32>
    %221 = arith.index_cast %c5_i32 : i32 to index
    %c0_62 = arith.constant 0 : index
    %c0_63 = arith.constant 0 : index
    %222 = vector.load %arg16[%221, %c0_62, %c0_63] : memref<7x8x128xf32, #tpu.memory_space<vmem>>, vector<1x8x128xf32>
    %223 = vector.shape_cast %222 : vector<1x8x128xf32> to vector<8x128xf32>
    %224 = vector.shape_cast %220 : vector<8x128xf32> to vector<1x8x128xf32>
    tpu.vector_store %arg16[%221, %c0_62, %c0_63], %224 {strides = array<i32>} : memref<7x8x128xf32, #tpu.memory_space<vmem>>, vector<1x8x128xf32>,
    %c6_i32 = arith.constant 6 : i32
    %225 = arith.index_cast %c6_i32 : i32 to index
    %c0_64 = arith.constant 0 : index
    %c0_65 = arith.constant 0 : index
    %226 = vector.load %arg15[%225, %c0_64, %c0_65] : memref<7x8x384xf32, #tpu.memory_space<vmem>>, vector<1x8x384xf32>
    %227 = vector.shape_cast %226 : vector<1x8x384xf32> to vector<8x384xf32>
    %cst_66 = arith.constant dense<0.000000e+00> : vector<8x384xf32>
    %228 = tpu.matmul %220, %9, %cst_66 {dimension_numbers = #tpu.dot_dimension_numbers<[1], [0], [0], [1], [0, 0, 1, 1], [], []>} : vector<8x128xf32>, vector<128x384xf32>, vector<8x384xf32> -> vector<8x384xf32>
    %229 = arith.addf %228, %12 : vector<8x384xf32>
    %230 = vector.extract_strided_slice %227 {offsets = [0, 0], sizes = [8, 128], strides = [1, 1]} : vector<8x384xf32> to vector<8x128xf32>
    %231 = vector.extract_strided_slice %229 {offsets = [0, 0], sizes = [8, 128], strides = [1, 1]} : vector<8x384xf32> to vector<8x128xf32>
    %232 = arith.addf %230, %231 : vector<8x128xf32>
    %233 = arith.negf %232 : vector<8x128xf32>
    %234 = math.exp %233 : vector<8x128xf32>
    %cst_67 = arith.constant 1.000000e+00 : f32
    %235 = vector.broadcast %cst_67 : f32 to vector<8x128xf32>
    %236 = arith.addf %235, %234 : vector<8x128xf32>
    %237 = arith.divf %235, %236 : vector<8x128xf32>
    %238 = vector.extract_strided_slice %227 {offsets = [0, 128], sizes = [8, 128], strides = [1, 1]} : vector<8x384xf32> to vector<8x128xf32>
    %239 = vector.extract_strided_slice %229 {offsets = [0, 128], sizes = [8, 128], strides = [1, 1]} : vector<8x384xf32> to vector<8x128xf32>
    %240 = arith.addf %238, %239 : vector<8x128xf32>
    %241 = arith.negf %240 : vector<8x128xf32>
    %242 = math.exp %241 : vector<8x128xf32>
    %cst_68 = arith.constant 1.000000e+00 : f32
    %243 = vector.broadcast %cst_68 : f32 to vector<8x128xf32>
    %244 = arith.addf %243, %242 : vector<8x128xf32>
    %245 = arith.divf %243, %244 : vector<8x128xf32>
    %246 = vector.extract_strided_slice %227 {offsets = [0, 256], sizes = [8, 128], strides = [1, 1]} : vector<8x384xf32> to vector<8x128xf32>
    %247 = vector.extract_strided_slice %229 {offsets = [0, 256], sizes = [8, 128], strides = [1, 1]} : vector<8x384xf32> to vector<8x128xf32>
    %248 = arith.mulf %237, %247 : vector<8x128xf32>
    %249 = arith.addf %246, %248 : vector<8x128xf32>
    %250 = math.tanh %249 : vector<8x128xf32>
    %cst_69 = arith.constant 1.000000e+00 : f32
    %251 = vector.broadcast %cst_69 : f32 to vector<8x128xf32>
    %252 = arith.subf %251, %245 : vector<8x128xf32>
    %253 = arith.mulf %252, %250 : vector<8x128xf32>
    %254 = arith.mulf %245, %220 : vector<8x128xf32>
    %255 = arith.addf %253, %254 : vector<8x128xf32>
    %256 = arith.index_cast %c6_i32 : i32 to index
    %c0_70 = arith.constant 0 : index
    %c0_71 = arith.constant 0 : index
    %257 = vector.load %arg16[%256, %c0_70, %c0_71] : memref<7x8x128xf32, #tpu.memory_space<vmem>>, vector<1x8x128xf32>
    %258 = vector.shape_cast %257 : vector<1x8x128xf32> to vector<8x128xf32>
    %259 = vector.shape_cast %255 : vector<8x128xf32> to vector<1x8x128xf32>
    tpu.vector_store %arg16[%256, %c0_70, %c0_71], %259 {strides = array<i32>} : memref<7x8x128xf32, #tpu.memory_space<vmem>>, vector<1x8x128xf32>,
    %c7_i32 = arith.constant 7 : i32
    %c0_72 = arith.constant 0 : index
    %c0_73 = arith.constant 0 : index
    %c0_74 = arith.constant 0 : index
    %260 = vector.load %arg14[%c0_72, %c0_73, %c0_74] : memref<2x8x128xf32, #tpu.memory_space<vmem>>, vector<1x8x128xf32>
    %261 = vector.shape_cast %260 : vector<1x8x128xf32> to vector<8x128xf32>
    %262 = vector.shape_cast %255 : vector<8x128xf32> to vector<1x8x128xf32>
    tpu.vector_store %arg14[%c0_72, %c0_73, %c0_74], %262 {strides = array<i32>} : memref<2x8x128xf32, #tpu.memory_space<vmem>>, vector<1x8x128xf32>,
    %c0_75 = arith.constant 0 : index
    %c0_76 = arith.constant 0 : index
    %c0_77 = arith.constant 0 : index
    %263 = vector.load %arg16[%c0_75, %c0_76, %c0_77] : memref<7x8x128xf32, #tpu.memory_space<vmem>>, vector<7x8x128xf32>
    %264 = vector.shape_cast %263 : vector<7x8x128xf32> to vector<56x128xf32>
    %c0_78 = arith.constant 0 : index
    %c0_79 = arith.constant 0 : index
    %265 = vector.load %arg7[%c0_78, %c0_79] : memref<128x384xf32, #tpu.memory_space<vmem>>, vector<128x384xf32>
    %cst_80 = arith.constant dense<0.000000e+00> : vector<56x384xf32>
    %266 = tpu.matmul %264, %265, %cst_80 {dimension_numbers = #tpu.dot_dimension_numbers<[1], [0], [0], [1], [0, 0, 1, 1], [], []>} : vector<56x128xf32>, vector<128x384xf32>, vector<56x384xf32> -> vector<56x384xf32>
    %c0_81 = arith.constant 0 : index
    %c0_82 = arith.constant 0 : index
    %267 = vector.load %arg9[%c0_81, %c0_82] : memref<1x384xf32, #tpu.memory_space<vmem>>, vector<1x384xf32>
    %268 = vector.broadcast %267 : vector<1x384xf32> to vector<56x384xf32>
    %269 = arith.addf %266, %268 : vector<56x384xf32>
    %270 = vector.shape_cast %269 : vector<56x384xf32> to vector<7x8x384xf32>
    %c0_83 = arith.constant 0 : index
    %c0_84 = arith.constant 0 : index
    %c0_85 = arith.constant 0 : index
    %271 = vector.load %arg15[%c0_83, %c0_84, %c0_85] : memref<7x8x384xf32, #tpu.memory_space<vmem>>, vector<7x8x384xf32>
    tpu.vector_store %arg15[%c0_83, %c0_84, %c0_85], %270 {strides = array<i32>} : memref<7x8x384xf32, #tpu.memory_space<vmem>>, vector<7x8x384xf32>,
    %c0_86 = arith.constant 0 : index
    %c0_87 = arith.constant 0 : index
    %272 = vector.load %arg8[%c0_86, %c0_87] : memref<128x384xf32, #tpu.memory_space<vmem>>, vector<128x384xf32>
    %c0_88 = arith.constant 0 : index
    %c0_89 = arith.constant 0 : index
    %273 = vector.load %arg10[%c0_88, %c0_89] : memref<1x384xf32, #tpu.memory_space<vmem>>, vector<1x384xf32>
    %274 = vector.shape_cast %273 : vector<1x384xf32> to vector<1x384xf32>
    %275 = vector.broadcast %274 : vector<1x384xf32> to vector<8x384xf32>
    %c1 = arith.constant 1 : index
    %c0_90 = arith.constant 0 : index
    %c0_91 = arith.constant 0 : index
    %276 = vector.load %arg2[%c1, %c0_90, %c0_91] : memref<2x8x128xf32, #tpu.memory_space<vmem>>, vector<1x8x128xf32>
    %277 = vector.shape_cast %276 : vector<1x8x128xf32> to vector<8x128xf32>
    %c0_i32_92 = arith.constant 0 : i32
    %278 = arith.index_cast %c0_i32_92 : i32 to index
    %c0_93 = arith.constant 0 : index
    %c0_94 = arith.constant 0 : index
    %279 = vector.load %arg15[%278, %c0_93, %c0_94] : memref<7x8x384xf32, #tpu.memory_space<vmem>>, vector<1x8x384xf32>
    %280 = vector.shape_cast %279 : vector<1x8x384xf32> to vector<8x384xf32>
    %cst_95 = arith.constant dense<0.000000e+00> : vector<8x384xf32>
    %281 = tpu.matmul %277, %272, %cst_95 {dimension_numbers = #tpu.dot_dimension_numbers<[1], [0], [0], [1], [0, 0, 1, 1], [], []>} : vector<8x128xf32>, vector<128x384xf32>, vector<8x384xf32> -> vector<8x384xf32>
    %282 = arith.addf %281, %275 : vector<8x384xf32>
    %283 = vector.extract_strided_slice %280 {offsets = [0, 0], sizes = [8, 128], strides = [1, 1]} : vector<8x384xf32> to vector<8x128xf32>
    %284 = vector.extract_strided_slice %282 {offsets = [0, 0], sizes = [8, 128], strides = [1, 1]} : vector<8x384xf32> to vector<8x128xf32>
    %285 = arith.addf %283, %284 : vector<8x128xf32>
    %286 = arith.negf %285 : vector<8x128xf32>
    %287 = math.exp %286 : vector<8x128xf32>
    %cst_96 = arith.constant 1.000000e+00 : f32
    %288 = vector.broadcast %cst_96 : f32 to vector<8x128xf32>
    %289 = arith.addf %288, %287 : vector<8x128xf32>
    %290 = arith.divf %288, %289 : vector<8x128xf32>
    %291 = vector.extract_strided_slice %280 {offsets = [0, 128], sizes = [8, 128], strides = [1, 1]} : vector<8x384xf32> to vector<8x128xf32>
    %292 = vector.extract_strided_slice %282 {offsets = [0, 128], sizes = [8, 128], strides = [1, 1]} : vector<8x384xf32> to vector<8x128xf32>
    %293 = arith.addf %291, %292 : vector<8x128xf32>
    %294 = arith.negf %293 : vector<8x128xf32>
    %295 = math.exp %294 : vector<8x128xf32>
    %cst_97 = arith.constant 1.000000e+00 : f32
    %296 = vector.broadcast %cst_97 : f32 to vector<8x128xf32>
    %297 = arith.addf %296, %295 : vector<8x128xf32>
    %298 = arith.divf %296, %297 : vector<8x128xf32>
    %299 = vector.extract_strided_slice %280 {offsets = [0, 256], sizes = [8, 128], strides = [1, 1]} : vector<8x384xf32> to vector<8x128xf32>
    %300 = vector.extract_strided_slice %282 {offsets = [0, 256], sizes = [8, 128], strides = [1, 1]} : vector<8x384xf32> to vector<8x128xf32>
    %301 = arith.mulf %290, %300 : vector<8x128xf32>
    %302 = arith.addf %299, %301 : vector<8x128xf32>
    %303 = math.tanh %302 : vector<8x128xf32>
    %cst_98 = arith.constant 1.000000e+00 : f32
    %304 = vector.broadcast %cst_98 : f32 to vector<8x128xf32>
    %305 = arith.subf %304, %298 : vector<8x128xf32>
    %306 = arith.mulf %305, %303 : vector<8x128xf32>
    %307 = arith.mulf %298, %277 : vector<8x128xf32>
    %308 = arith.addf %306, %307 : vector<8x128xf32>
    %309 = arith.index_cast %c0_i32_92 : i32 to index
    %c0_99 = arith.constant 0 : index
    %c0_100 = arith.constant 0 : index
    %310 = vector.load %arg16[%309, %c0_99, %c0_100] : memref<7x8x128xf32, #tpu.memory_space<vmem>>, vector<1x8x128xf32>
    %311 = vector.shape_cast %310 : vector<1x8x128xf32> to vector<8x128xf32>
    %312 = vector.shape_cast %308 : vector<8x128xf32> to vector<1x8x128xf32>
    tpu.vector_store %arg16[%309, %c0_99, %c0_100], %312 {strides = array<i32>} : memref<7x8x128xf32, #tpu.memory_space<vmem>>, vector<1x8x128xf32>,
    %c1_i32_101 = arith.constant 1 : i32
    %313 = arith.index_cast %c1_i32_101 : i32 to index
    %c0_102 = arith.constant 0 : index
    %c0_103 = arith.constant 0 : index
    %314 = vector.load %arg15[%313, %c0_102, %c0_103] : memref<7x8x384xf32, #tpu.memory_space<vmem>>, vector<1x8x384xf32>
    %315 = vector.shape_cast %314 : vector<1x8x384xf32> to vector<8x384xf32>
    %cst_104 = arith.constant dense<0.000000e+00> : vector<8x384xf32>
    %316 = tpu.matmul %308, %272, %cst_104 {dimension_numbers = #tpu.dot_dimension_numbers<[1], [0], [0], [1], [0, 0, 1, 1], [], []>} : vector<8x128xf32>, vector<128x384xf32>, vector<8x384xf32> -> vector<8x384xf32>
    %317 = arith.addf %316, %275 : vector<8x384xf32>
    %318 = vector.extract_strided_slice %315 {offsets = [0, 0], sizes = [8, 128], strides = [1, 1]} : vector<8x384xf32> to vector<8x128xf32>
    %319 = vector.extract_strided_slice %317 {offsets = [0, 0], sizes = [8, 128], strides = [1, 1]} : vector<8x384xf32> to vector<8x128xf32>
    %320 = arith.addf %318, %319 : vector<8x128xf32>
    %321 = arith.negf %320 : vector<8x128xf32>
    %322 = math.exp %321 : vector<8x128xf32>
    %cst_105 = arith.constant 1.000000e+00 : f32
    %323 = vector.broadcast %cst_105 : f32 to vector<8x128xf32>
    %324 = arith.addf %323, %322 : vector<8x128xf32>
    %325 = arith.divf %323, %324 : vector<8x128xf32>
    %326 = vector.extract_strided_slice %315 {offsets = [0, 128], sizes = [8, 128], strides = [1, 1]} : vector<8x384xf32> to vector<8x128xf32>
    %327 = vector.extract_strided_slice %317 {offsets = [0, 128], sizes = [8, 128], strides = [1, 1]} : vector<8x384xf32> to vector<8x128xf32>
    %328 = arith.addf %326, %327 : vector<8x128xf32>
    %329 = arith.negf %328 : vector<8x128xf32>
    %330 = math.exp %329 : vector<8x128xf32>
    %cst_106 = arith.constant 1.000000e+00 : f32
    %331 = vector.broadcast %cst_106 : f32 to vector<8x128xf32>
    %332 = arith.addf %331, %330 : vector<8x128xf32>
    %333 = arith.divf %331, %332 : vector<8x128xf32>
    %334 = vector.extract_strided_slice %315 {offsets = [0, 256], sizes = [8, 128], strides = [1, 1]} : vector<8x384xf32> to vector<8x128xf32>
    %335 = vector.extract_strided_slice %317 {offsets = [0, 256], sizes = [8, 128], strides = [1, 1]} : vector<8x384xf32> to vector<8x128xf32>
    %336 = arith.mulf %325, %335 : vector<8x128xf32>
    %337 = arith.addf %334, %336 : vector<8x128xf32>
    %338 = math.tanh %337 : vector<8x128xf32>
    %cst_107 = arith.constant 1.000000e+00 : f32
    %339 = vector.broadcast %cst_107 : f32 to vector<8x128xf32>
    %340 = arith.subf %339, %333 : vector<8x128xf32>
    %341 = arith.mulf %340, %338 : vector<8x128xf32>
    %342 = arith.mulf %333, %308 : vector<8x128xf32>
    %343 = arith.addf %341, %342 : vector<8x128xf32>
    %344 = arith.index_cast %c1_i32_101 : i32 to index
    %c0_108 = arith.constant 0 : index
    %c0_109 = arith.constant 0 : index
    %345 = vector.load %arg16[%344, %c0_108, %c0_109] : memref<7x8x128xf32, #tpu.memory_space<vmem>>, vector<1x8x128xf32>
    %346 = vector.shape_cast %345 : vector<1x8x128xf32> to vector<8x128xf32>
    %347 = vector.shape_cast %343 : vector<8x128xf32> to vector<1x8x128xf32>
    tpu.vector_store %arg16[%344, %c0_108, %c0_109], %347 {strides = array<i32>} : memref<7x8x128xf32, #tpu.memory_space<vmem>>, vector<1x8x128xf32>,
    %c2_i32_110 = arith.constant 2 : i32
    %348 = arith.index_cast %c2_i32_110 : i32 to index
    %c0_111 = arith.constant 0 : index
    %c0_112 = arith.constant 0 : index
    %349 = vector.load %arg15[%348, %c0_111, %c0_112] : memref<7x8x384xf32, #tpu.memory_space<vmem>>, vector<1x8x384xf32>
    %350 = vector.shape_cast %349 : vector<1x8x384xf32> to vector<8x384xf32>
    %cst_113 = arith.constant dense<0.000000e+00> : vector<8x384xf32>
    %351 = tpu.matmul %343, %272, %cst_113 {dimension_numbers = #tpu.dot_dimension_numbers<[1], [0], [0], [1], [0, 0, 1, 1], [], []>} : vector<8x128xf32>, vector<128x384xf32>, vector<8x384xf32> -> vector<8x384xf32>
    %352 = arith.addf %351, %275 : vector<8x384xf32>
    %353 = vector.extract_strided_slice %350 {offsets = [0, 0], sizes = [8, 128], strides = [1, 1]} : vector<8x384xf32> to vector<8x128xf32>
    %354 = vector.extract_strided_slice %352 {offsets = [0, 0], sizes = [8, 128], strides = [1, 1]} : vector<8x384xf32> to vector<8x128xf32>
    %355 = arith.addf %353, %354 : vector<8x128xf32>
    %356 = arith.negf %355 : vector<8x128xf32>
    %357 = math.exp %356 : vector<8x128xf32>
    %cst_114 = arith.constant 1.000000e+00 : f32
    %358 = vector.broadcast %cst_114 : f32 to vector<8x128xf32>
    %359 = arith.addf %358, %357 : vector<8x128xf32>
    %360 = arith.divf %358, %359 : vector<8x128xf32>
    %361 = vector.extract_strided_slice %350 {offsets = [0, 128], sizes = [8, 128], strides = [1, 1]} : vector<8x384xf32> to vector<8x128xf32>
    %362 = vector.extract_strided_slice %352 {offsets = [0, 128], sizes = [8, 128], strides = [1, 1]} : vector<8x384xf32> to vector<8x128xf32>
    %363 = arith.addf %361, %362 : vector<8x128xf32>
    %364 = arith.negf %363 : vector<8x128xf32>
    %365 = math.exp %364 : vector<8x128xf32>
    %cst_115 = arith.constant 1.000000e+00 : f32
    %366 = vector.broadcast %cst_115 : f32 to vector<8x128xf32>
    %367 = arith.addf %366, %365 : vector<8x128xf32>
    %368 = arith.divf %366, %367 : vector<8x128xf32>
    %369 = vector.extract_strided_slice %350 {offsets = [0, 256], sizes = [8, 128], strides = [1, 1]} : vector<8x384xf32> to vector<8x128xf32>
    %370 = vector.extract_strided_slice %352 {offsets = [0, 256], sizes = [8, 128], strides = [1, 1]} : vector<8x384xf32> to vector<8x128xf32>
    %371 = arith.mulf %360, %370 : vector<8x128xf32>
    %372 = arith.addf %369, %371 : vector<8x128xf32>
    %373 = math.tanh %372 : vector<8x128xf32>
    %cst_116 = arith.constant 1.000000e+00 : f32
    %374 = vector.broadcast %cst_116 : f32 to vector<8x128xf32>
    %375 = arith.subf %374, %368 : vector<8x128xf32>
    %376 = arith.mulf %375, %373 : vector<8x128xf32>
    %377 = arith.mulf %368, %343 : vector<8x128xf32>
    %378 = arith.addf %376, %377 : vector<8x128xf32>
    %379 = arith.index_cast %c2_i32_110 : i32 to index
    %c0_117 = arith.constant 0 : index
    %c0_118 = arith.constant 0 : index
    %380 = vector.load %arg16[%379, %c0_117, %c0_118] : memref<7x8x128xf32, #tpu.memory_space<vmem>>, vector<1x8x128xf32>
    %381 = vector.shape_cast %380 : vector<1x8x128xf32> to vector<8x128xf32>
    %382 = vector.shape_cast %378 : vector<8x128xf32> to vector<1x8x128xf32>
    tpu.vector_store %arg16[%379, %c0_117, %c0_118], %382 {strides = array<i32>} : memref<7x8x128xf32, #tpu.memory_space<vmem>>, vector<1x8x128xf32>,
    %c3_i32_119 = arith.constant 3 : i32
    %383 = arith.index_cast %c3_i32_119 : i32 to index
    %c0_120 = arith.constant 0 : index
    %c0_121 = arith.constant 0 : index
    %384 = vector.load %arg15[%383, %c0_120, %c0_121] : memref<7x8x384xf32, #tpu.memory_space<vmem>>, vector<1x8x384xf32>
    %385 = vector.shape_cast %384 : vector<1x8x384xf32> to vector<8x384xf32>
    %cst_122 = arith.constant dense<0.000000e+00> : vector<8x384xf32>
    %386 = tpu.matmul %378, %272, %cst_122 {dimension_numbers = #tpu.dot_dimension_numbers<[1], [0], [0], [1], [0, 0, 1, 1], [], []>} : vector<8x128xf32>, vector<128x384xf32>, vector<8x384xf32> -> vector<8x384xf32>
    %387 = arith.addf %386, %275 : vector<8x384xf32>
    %388 = vector.extract_strided_slice %385 {offsets = [0, 0], sizes = [8, 128], strides = [1, 1]} : vector<8x384xf32> to vector<8x128xf32>
    %389 = vector.extract_strided_slice %387 {offsets = [0, 0], sizes = [8, 128], strides = [1, 1]} : vector<8x384xf32> to vector<8x128xf32>
    %390 = arith.addf %388, %389 : vector<8x128xf32>
    %391 = arith.negf %390 : vector<8x128xf32>
    %392 = math.exp %391 : vector<8x128xf32>
    %cst_123 = arith.constant 1.000000e+00 : f32
    %393 = vector.broadcast %cst_123 : f32 to vector<8x128xf32>
    %394 = arith.addf %393, %392 : vector<8x128xf32>
    %395 = arith.divf %393, %394 : vector<8x128xf32>
    %396 = vector.extract_strided_slice %385 {offsets = [0, 128], sizes = [8, 128], strides = [1, 1]} : vector<8x384xf32> to vector<8x128xf32>
    %397 = vector.extract_strided_slice %387 {offsets = [0, 128], sizes = [8, 128], strides = [1, 1]} : vector<8x384xf32> to vector<8x128xf32>
    %398 = arith.addf %396, %397 : vector<8x128xf32>
    %399 = arith.negf %398 : vector<8x128xf32>
    %400 = math.exp %399 : vector<8x128xf32>
    %cst_124 = arith.constant 1.000000e+00 : f32
    %401 = vector.broadcast %cst_124 : f32 to vector<8x128xf32>
    %402 = arith.addf %401, %400 : vector<8x128xf32>
    %403 = arith.divf %401, %402 : vector<8x128xf32>
    %404 = vector.extract_strided_slice %385 {offsets = [0, 256], sizes = [8, 128], strides = [1, 1]} : vector<8x384xf32> to vector<8x128xf32>
    %405 = vector.extract_strided_slice %387 {offsets = [0, 256], sizes = [8, 128], strides = [1, 1]} : vector<8x384xf32> to vector<8x128xf32>
    %406 = arith.mulf %395, %405 : vector<8x128xf32>
    %407 = arith.addf %404, %406 : vector<8x128xf32>
    %408 = math.tanh %407 : vector<8x128xf32>
    %cst_125 = arith.constant 1.000000e+00 : f32
    %409 = vector.broadcast %cst_125 : f32 to vector<8x128xf32>
    %410 = arith.subf %409, %403 : vector<8x128xf32>
    %411 = arith.mulf %410, %408 : vector<8x128xf32>
    %412 = arith.mulf %403, %378 : vector<8x128xf32>
    %413 = arith.addf %411, %412 : vector<8x128xf32>
    %414 = arith.index_cast %c3_i32_119 : i32 to index
    %c0_126 = arith.constant 0 : index
    %c0_127 = arith.constant 0 : index
    %415 = vector.load %arg16[%414, %c0_126, %c0_127] : memref<7x8x128xf32, #tpu.memory_space<vmem>>, vector<1x8x128xf32>
    %416 = vector.shape_cast %415 : vector<1x8x128xf32> to vector<8x128xf32>
    %417 = vector.shape_cast %413 : vector<8x128xf32> to vector<1x8x128xf32>
    tpu.vector_store %arg16[%414, %c0_126, %c0_127], %417 {strides = array<i32>} : memref<7x8x128xf32, #tpu.memory_space<vmem>>, vector<1x8x128xf32>,
    %c4_i32_128 = arith.constant 4 : i32
    %418 = arith.index_cast %c4_i32_128 : i32 to index
    %c0_129 = arith.constant 0 : index
    %c0_130 = arith.constant 0 : index
    %419 = vector.load %arg15[%418, %c0_129, %c0_130] : memref<7x8x384xf32, #tpu.memory_space<vmem>>, vector<1x8x384xf32>
    %420 = vector.shape_cast %419 : vector<1x8x384xf32> to vector<8x384xf32>
    %cst_131 = arith.constant dense<0.000000e+00> : vector<8x384xf32>
    %421 = tpu.matmul %413, %272, %cst_131 {dimension_numbers = #tpu.dot_dimension_numbers<[1], [0], [0], [1], [0, 0, 1, 1], [], []>} : vector<8x128xf32>, vector<128x384xf32>, vector<8x384xf32> -> vector<8x384xf32>
    %422 = arith.addf %421, %275 : vector<8x384xf32>
    %423 = vector.extract_strided_slice %420 {offsets = [0, 0], sizes = [8, 128], strides = [1, 1]} : vector<8x384xf32> to vector<8x128xf32>
    %424 = vector.extract_strided_slice %422 {offsets = [0, 0], sizes = [8, 128], strides = [1, 1]} : vector<8x384xf32> to vector<8x128xf32>
    %425 = arith.addf %423, %424 : vector<8x128xf32>
    %426 = arith.negf %425 : vector<8x128xf32>
    %427 = math.exp %426 : vector<8x128xf32>
    %cst_132 = arith.constant 1.000000e+00 : f32
    %428 = vector.broadcast %cst_132 : f32 to vector<8x128xf32>
    %429 = arith.addf %428, %427 : vector<8x128xf32>
    %430 = arith.divf %428, %429 : vector<8x128xf32>
    %431 = vector.extract_strided_slice %420 {offsets = [0, 128], sizes = [8, 128], strides = [1, 1]} : vector<8x384xf32> to vector<8x128xf32>
    %432 = vector.extract_strided_slice %422 {offsets = [0, 128], sizes = [8, 128], strides = [1, 1]} : vector<8x384xf32> to vector<8x128xf32>
    %433 = arith.addf %431, %432 : vector<8x128xf32>
    %434 = arith.negf %433 : vector<8x128xf32>
    %435 = math.exp %434 : vector<8x128xf32>
    %cst_133 = arith.constant 1.000000e+00 : f32
    %436 = vector.broadcast %cst_133 : f32 to vector<8x128xf32>
    %437 = arith.addf %436, %435 : vector<8x128xf32>
    %438 = arith.divf %436, %437 : vector<8x128xf32>
    %439 = vector.extract_strided_slice %420 {offsets = [0, 256], sizes = [8, 128], strides = [1, 1]} : vector<8x384xf32> to vector<8x128xf32>
    %440 = vector.extract_strided_slice %422 {offsets = [0, 256], sizes = [8, 128], strides = [1, 1]} : vector<8x384xf32> to vector<8x128xf32>
    %441 = arith.mulf %430, %440 : vector<8x128xf32>
    %442 = arith.addf %439, %441 : vector<8x128xf32>
    %443 = math.tanh %442 : vector<8x128xf32>
    %cst_134 = arith.constant 1.000000e+00 : f32
    %444 = vector.broadcast %cst_134 : f32 to vector<8x128xf32>
    %445 = arith.subf %444, %438 : vector<8x128xf32>
    %446 = arith.mulf %445, %443 : vector<8x128xf32>
    %447 = arith.mulf %438, %413 : vector<8x128xf32>
    %448 = arith.addf %446, %447 : vector<8x128xf32>
    %449 = arith.index_cast %c4_i32_128 : i32 to index
    %c0_135 = arith.constant 0 : index
    %c0_136 = arith.constant 0 : index
    %450 = vector.load %arg16[%449, %c0_135, %c0_136] : memref<7x8x128xf32, #tpu.memory_space<vmem>>, vector<1x8x128xf32>
    %451 = vector.shape_cast %450 : vector<1x8x128xf32> to vector<8x128xf32>
    %452 = vector.shape_cast %448 : vector<8x128xf32> to vector<1x8x128xf32>
    tpu.vector_store %arg16[%449, %c0_135, %c0_136], %452 {strides = array<i32>} : memref<7x8x128xf32, #tpu.memory_space<vmem>>, vector<1x8x128xf32>,
    %c5_i32_137 = arith.constant 5 : i32
    %453 = arith.index_cast %c5_i32_137 : i32 to index
    %c0_138 = arith.constant 0 : index
    %c0_139 = arith.constant 0 : index
    %454 = vector.load %arg15[%453, %c0_138, %c0_139] : memref<7x8x384xf32, #tpu.memory_space<vmem>>, vector<1x8x384xf32>
    %455 = vector.shape_cast %454 : vector<1x8x384xf32> to vector<8x384xf32>
    %cst_140 = arith.constant dense<0.000000e+00> : vector<8x384xf32>
    %456 = tpu.matmul %448, %272, %cst_140 {dimension_numbers = #tpu.dot_dimension_numbers<[1], [0], [0], [1], [0, 0, 1, 1], [], []>} : vector<8x128xf32>, vector<128x384xf32>, vector<8x384xf32> -> vector<8x384xf32>
    %457 = arith.addf %456, %275 : vector<8x384xf32>
    %458 = vector.extract_strided_slice %455 {offsets = [0, 0], sizes = [8, 128], strides = [1, 1]} : vector<8x384xf32> to vector<8x128xf32>
    %459 = vector.extract_strided_slice %457 {offsets = [0, 0], sizes = [8, 128], strides = [1, 1]} : vector<8x384xf32> to vector<8x128xf32>
    %460 = arith.addf %458, %459 : vector<8x128xf32>
    %461 = arith.negf %460 : vector<8x128xf32>
    %462 = math.exp %461 : vector<8x128xf32>
    %cst_141 = arith.constant 1.000000e+00 : f32
    %463 = vector.broadcast %cst_141 : f32 to vector<8x128xf32>
    %464 = arith.addf %463, %462 : vector<8x128xf32>
    %465 = arith.divf %463, %464 : vector<8x128xf32>
    %466 = vector.extract_strided_slice %455 {offsets = [0, 128], sizes = [8, 128], strides = [1, 1]} : vector<8x384xf32> to vector<8x128xf32>
    %467 = vector.extract_strided_slice %457 {offsets = [0, 128], sizes = [8, 128], strides = [1, 1]} : vector<8x384xf32> to vector<8x128xf32>
    %468 = arith.addf %466, %467 : vector<8x128xf32>
    %469 = arith.negf %468 : vector<8x128xf32>
    %470 = math.exp %469 : vector<8x128xf32>
    %cst_142 = arith.constant 1.000000e+00 : f32
    %471 = vector.broadcast %cst_142 : f32 to vector<8x128xf32>
    %472 = arith.addf %471, %470 : vector<8x128xf32>
    %473 = arith.divf %471, %472 : vector<8x128xf32>
    %474 = vector.extract_strided_slice %455 {offsets = [0, 256], sizes = [8, 128], strides = [1, 1]} : vector<8x384xf32> to vector<8x128xf32>
    %475 = vector.extract_strided_slice %457 {offsets = [0, 256], sizes = [8, 128], strides = [1, 1]} : vector<8x384xf32> to vector<8x128xf32>
    %476 = arith.mulf %465, %475 : vector<8x128xf32>
    %477 = arith.addf %474, %476 : vector<8x128xf32>
    %478 = math.tanh %477 : vector<8x128xf32>
    %cst_143 = arith.constant 1.000000e+00 : f32
    %479 = vector.broadcast %cst_143 : f32 to vector<8x128xf32>
    %480 = arith.subf %479, %473 : vector<8x128xf32>
    %481 = arith.mulf %480, %478 : vector<8x128xf32>
    %482 = arith.mulf %473, %448 : vector<8x128xf32>
    %483 = arith.addf %481, %482 : vector<8x128xf32>
    %484 = arith.index_cast %c5_i32_137 : i32 to index
    %c0_144 = arith.constant 0 : index
    %c0_145 = arith.constant 0 : index
    %485 = vector.load %arg16[%484, %c0_144, %c0_145] : memref<7x8x128xf32, #tpu.memory_space<vmem>>, vector<1x8x128xf32>
    %486 = vector.shape_cast %485 : vector<1x8x128xf32> to vector<8x128xf32>
    %487 = vector.shape_cast %483 : vector<8x128xf32> to vector<1x8x128xf32>
    tpu.vector_store %arg16[%484, %c0_144, %c0_145], %487 {strides = array<i32>} : memref<7x8x128xf32, #tpu.memory_space<vmem>>, vector<1x8x128xf32>,
    %c6_i32_146 = arith.constant 6 : i32
    %488 = arith.index_cast %c6_i32_146 : i32 to index
    %c0_147 = arith.constant 0 : index
    %c0_148 = arith.constant 0 : index
    %489 = vector.load %arg15[%488, %c0_147, %c0_148] : memref<7x8x384xf32, #tpu.memory_space<vmem>>, vector<1x8x384xf32>
    %490 = vector.shape_cast %489 : vector<1x8x384xf32> to vector<8x384xf32>
    %cst_149 = arith.constant dense<0.000000e+00> : vector<8x384xf32>
    %491 = tpu.matmul %483, %272, %cst_149 {dimension_numbers = #tpu.dot_dimension_numbers<[1], [0], [0], [1], [0, 0, 1, 1], [], []>} : vector<8x128xf32>, vector<128x384xf32>, vector<8x384xf32> -> vector<8x384xf32>
    %492 = arith.addf %491, %275 : vector<8x384xf32>
    %493 = vector.extract_strided_slice %490 {offsets = [0, 0], sizes = [8, 128], strides = [1, 1]} : vector<8x384xf32> to vector<8x128xf32>
    %494 = vector.extract_strided_slice %492 {offsets = [0, 0], sizes = [8, 128], strides = [1, 1]} : vector<8x384xf32> to vector<8x128xf32>
    %495 = arith.addf %493, %494 : vector<8x128xf32>
    %496 = arith.negf %495 : vector<8x128xf32>
    %497 = math.exp %496 : vector<8x128xf32>
    %cst_150 = arith.constant 1.000000e+00 : f32
    %498 = vector.broadcast %cst_150 : f32 to vector<8x128xf32>
    %499 = arith.addf %498, %497 : vector<8x128xf32>
    %500 = arith.divf %498, %499 : vector<8x128xf32>
    %501 = vector.extract_strided_slice %490 {offsets = [0, 128], sizes = [8, 128], strides = [1, 1]} : vector<8x384xf32> to vector<8x128xf32>
    %502 = vector.extract_strided_slice %492 {offsets = [0, 128], sizes = [8, 128], strides = [1, 1]} : vector<8x384xf32> to vector<8x128xf32>
    %503 = arith.addf %501, %502 : vector<8x128xf32>
    %504 = arith.negf %503 : vector<8x128xf32>
    %505 = math.exp %504 : vector<8x128xf32>
    %cst_151 = arith.constant 1.000000e+00 : f32
    %506 = vector.broadcast %cst_151 : f32 to vector<8x128xf32>
    %507 = arith.addf %506, %505 : vector<8x128xf32>
    %508 = arith.divf %506, %507 : vector<8x128xf32>
    %509 = vector.extract_strided_slice %490 {offsets = [0, 256], sizes = [8, 128], strides = [1, 1]} : vector<8x384xf32> to vector<8x128xf32>
    %510 = vector.extract_strided_slice %492 {offsets = [0, 256], sizes = [8, 128], strides = [1, 1]} : vector<8x384xf32> to vector<8x128xf32>
    %511 = arith.mulf %500, %510 : vector<8x128xf32>
    %512 = arith.addf %509, %511 : vector<8x128xf32>
    %513 = math.tanh %512 : vector<8x128xf32>
    %cst_152 = arith.constant 1.000000e+00 : f32
    %514 = vector.broadcast %cst_152 : f32 to vector<8x128xf32>
    %515 = arith.subf %514, %508 : vector<8x128xf32>
    %516 = arith.mulf %515, %513 : vector<8x128xf32>
    %517 = arith.mulf %508, %483 : vector<8x128xf32>
    %518 = arith.addf %516, %517 : vector<8x128xf32>
    %519 = arith.index_cast %c6_i32_146 : i32 to index
    %c0_153 = arith.constant 0 : index
    %c0_154 = arith.constant 0 : index
    %520 = vector.load %arg16[%519, %c0_153, %c0_154] : memref<7x8x128xf32, #tpu.memory_space<vmem>>, vector<1x8x128xf32>
    %521 = vector.shape_cast %520 : vector<1x8x128xf32> to vector<8x128xf32>
    %522 = vector.shape_cast %518 : vector<8x128xf32> to vector<1x8x128xf32>
    tpu.vector_store %arg16[%519, %c0_153, %c0_154], %522 {strides = array<i32>} : memref<7x8x128xf32, #tpu.memory_space<vmem>>, vector<1x8x128xf32>,
    %c7_i32_155 = arith.constant 7 : i32
    %c1_156 = arith.constant 1 : index
    %c0_157 = arith.constant 0 : index
    %c0_158 = arith.constant 0 : index
    %523 = vector.load %arg14[%c1_156, %c0_157, %c0_158] : memref<2x8x128xf32, #tpu.memory_space<vmem>>, vector<1x8x128xf32>
    %524 = vector.shape_cast %523 : vector<1x8x128xf32> to vector<8x128xf32>
    %525 = vector.shape_cast %518 : vector<8x128xf32> to vector<1x8x128xf32>
    tpu.vector_store %arg14[%c1_156, %c0_157, %c0_158], %525 {strides = array<i32>} : memref<2x8x128xf32, #tpu.memory_space<vmem>>, vector<1x8x128xf32>,
    %c0_159 = arith.constant 0 : index
    %c0_160 = arith.constant 0 : index
    %c0_161 = arith.constant 0 : index
    %526 = vector.load %arg16[%c0_159, %c0_160, %c0_161] : memref<7x8x128xf32, #tpu.memory_space<vmem>>, vector<7x8x128xf32>
    %527 = vector.shape_cast %526 : vector<7x8x128xf32> to vector<56x128xf32>
    %c0_162 = arith.constant 0 : index
    %c0_163 = arith.constant 0 : index
    %528 = vector.load %arg11[%c0_162, %c0_163] : memref<128x128xf32, #tpu.memory_space<vmem>>, vector<128x128xf32>
    %cst_164 = arith.constant dense<0.000000e+00> : vector<56x128xf32>
    %529 = tpu.matmul %527, %528, %cst_164 {dimension_numbers = #tpu.dot_dimension_numbers<[1], [0], [0], [1], [0, 0, 1, 1], [], []>} : vector<56x128xf32>, vector<128x128xf32>, vector<56x128xf32> -> vector<56x128xf32>
    %c0_165 = arith.constant 0 : index
    %c0_166 = arith.constant 0 : index
    %530 = vector.load %arg12[%c0_165, %c0_166] : memref<1x128xf32, #tpu.memory_space<vmem>>, vector<1x128xf32>
    %531 = vector.broadcast %530 : vector<1x128xf32> to vector<56x128xf32>
    %532 = arith.addf %529, %531 : vector<56x128xf32>
    %533 = vector.shape_cast %532 : vector<56x128xf32> to vector<7x8x128xf32>
    %c0_167 = arith.constant 0 : index
    %c0_168 = arith.constant 0 : index
    %c0_169 = arith.constant 0 : index
    %534 = vector.load %arg13[%c0_167, %c0_168, %c0_169] : memref<7x8x128xf32, #tpu.memory_space<vmem>>, vector<7x8x128xf32>
    tpu.vector_store %arg13[%c0_167, %c0_168, %c0_169], %533 {strides = array<i32>} : memref<7x8x128xf32, #tpu.memory_space<vmem>>, vector<7x8x128xf32>,
    return
  }
  func.func @transform_0(%arg0: i32) -> (i32, i32, i32) {
    %c0_i32 = arith.constant 0 : i32
    %c0_i32_0 = arith.constant 0 : i32
    %c0_i32_1 = arith.constant 0 : i32
    %c0_i32_2 = arith.constant 0 : i32
    return %c0_i32, %c0_i32_0, %c0_i32_1 : i32, i32, i32
  }
  func.func @transform_1(%arg0: i32) -> (i32, i32, i32) {
    %c0_i32 = arith.constant 0 : i32
    %c0_i32_0 = arith.constant 0 : i32
    %c0_i32_1 = arith.constant 0 : i32
    %c0_i32_2 = arith.constant 0 : i32
    return %c0_i32, %c0_i32_0, %c0_i32_1 : i32, i32, i32
  }
  func.func @transform_2(%arg0: i32) -> (i32, i32) {
    %c0_i32 = arith.constant 0 : i32
    %c0_i32_0 = arith.constant 0 : i32
    %c0_i32_1 = arith.constant 0 : i32
    return %c0_i32, %c0_i32_0 : i32, i32
  }
  func.func @transform_3(%arg0: i32) -> (i32, i32) {
    %c0_i32 = arith.constant 0 : i32
    %c0_i32_0 = arith.constant 0 : i32
    %c0_i32_1 = arith.constant 0 : i32
    return %c0_i32, %c0_i32_0 : i32, i32
  }
  func.func @transform_4(%arg0: i32) -> (i32, i32) {
    %c0_i32 = arith.constant 0 : i32
    %c0_i32_0 = arith.constant 0 : i32
    %c0_i32_1 = arith.constant 0 : i32
    return %c0_i32, %c0_i32_0 : i32, i32
  }
  func.func @transform_5(%arg0: i32) -> (i32, i32) {
    %c0_i32 = arith.constant 0 : i32
    %c0_i32_0 = arith.constant 0 : i32
    %c0_i32_1 = arith.constant 0 : i32
    return %c0_i32, %c0_i32_0 : i32, i32
  }
  func.func @transform_6(%arg0: i32) -> (i32, i32) {
    %c0_i32 = arith.constant 0 : i32
    %c0_i32_0 = arith.constant 0 : i32
    %c0_i32_1 = arith.constant 0 : i32
    return %c0_i32, %c0_i32_0 : i32, i32
  }
  func.func @transform_7(%arg0: i32) -> (i32, i32) {
    %c0_i32 = arith.constant 0 : i32
    %c0_i32_0 = arith.constant 0 : i32
    %c0_i32_1 = arith.constant 0 : i32
    return %c0_i32, %c0_i32_0 : i32, i32
  }
  func.func @transform_8(%arg0: i32) -> (i32, i32) {
    %c0_i32 = arith.constant 0 : i32
    %c0_i32_0 = arith.constant 0 : i32
    %c0_i32_1 = arith.constant 0 : i32
    return %c0_i32, %c0_i32_0 : i32, i32
  }
  func.func @transform_9(%arg0: i32) -> (i32, i32) {
    %c0_i32 = arith.constant 0 : i32
    %c0_i32_0 = arith.constant 0 : i32
    %c0_i32_1 = arith.constant 0 : i32
    return %c0_i32, %c0_i32_0 : i32, i32
  }
  func.func @transform_10(%arg0: i32) -> (i32, i32) {
    %c0_i32 = arith.constant 0 : i32
    %c0_i32_0 = arith.constant 0 : i32
    %c0_i32_1 = arith.constant 0 : i32
    return %c0_i32, %c0_i32_0 : i32, i32
  }
  func.func @transform_11(%arg0: i32) -> (i32, i32) {
    %c0_i32 = arith.constant 0 : i32
    %c0_i32_0 = arith.constant 0 : i32
    %c0_i32_1 = arith.constant 0 : i32
    return %c0_i32, %c0_i32_0 : i32, i32
  }
  func.func @transform_12(%arg0: i32) -> (i32, i32, i32) {
    %c0_i32 = arith.constant 0 : i32
    %c0_i32_0 = arith.constant 0 : i32
    %c0_i32_1 = arith.constant 0 : i32
    %c0_i32_2 = arith.constant 0 : i32
    return %c0_i32, %c0_i32_0, %c0_i32_1 : i32, i32, i32
  }
  func.func @transform_13(%arg0: i32) -> (i32, i32, i32) {
    %c0_i32 = arith.constant 0 : i32
    %c0_i32_0 = arith.constant 0 : i32
    %c0_i32_1 = arith.constant 0 : i32
    %c0_i32_2 = arith.constant 0 : i32
    return %c0_i32, %c0_i32_0, %c0_i32_1 : i32, i32, i32
  }
}

</mosaic_0001>

<bundles_post_ra>
// kernel: _lambda_.2
= control target key start
LH: loop header
LB: loop body
LE: loop exit
PB: predicated region body
PF: predicated region fallthrough
CT: control target
= control target key end

     0   :  { %17 = vsyncpa [#allocation4], 0  ;;  %s6902_s0 = inlined_call_operand.vmem [shape: f32[8,8,128], index: 0, kind: input, shape index: {}]   ;;  %s6903_s1 = inlined_call_operand.vmem [shape: f32[2,8,128], index: 1, kind: input, shape index: {}]   ;;  %s6904_s2 = inlined_call_operand.hbm [shape: f32[128,384], index: 2, kind: input, shape index: {}]   ;;  %s6905_s3 = inlined_call_operand.hbm [shape: f32[128,384], index: 3, kind: input, shape index: {}]   ;;  %s6906_s4 = inlined_call_operand.vmem [shape: f32[1,384], index: 4, kind: input, shape index: {}]   ;;  %s6907_s5 = inlined_call_operand.vmem [shape: f32[1,384], index: 5, kind: input, shape index: {}]   ;;  %s6908_s6 = inlined_call_operand.hbm [shape: f32[128,384], index: 6, kind: input, shape index: {}]   ;;  %s6909_s7 = inlined_call_operand.hbm [shape: f32[128,384], index: 7, kind: input, shape index: {}]   ;;  %s6910_s8 = inlined_call_operand.vmem [shape: f32[1,384], index: 8, kind: input, shape index: {}]   ;;  %s6911_s9 = inlined_call_operand.vmem [shape: f32[1,384], index: 9, kind: input, shape index: {}]   ;;  %s6912_s10 = inlined_call_operand.hbm [shape: f32[8,8,128], index: 10, kind: output, shape index: {0}]   ;;  %s6913_s11 = inlined_call_operand.vmem [shape: f32[2,8,128], index: 11, kind: output, shape index: {1}]  }
   0x1   :  { %18 = vsyncpa [#allocation7], 0 }
   0x2   :  { %19 = vsyncpa [#allocation10], 0 }
   0x3   :  { %20 = vsyncpa [#allocation5], 0  ;;  %s4929_s17 = smov [#allocation6]   ;;  %s4930_s19 = smov [#allocation3]  }
   0x4   :  { %s42_s18 = sshll.u32 %s4929_s17, 4  ;;  %s30_s20 = sshll.u32 %s4930_s19, 4  ;;  %s43_s18 = int_to_ptr.vmem [resolvable:$true] %s42_s18  ;;  %s31_s20 = int_to_ptr.vmem [resolvable:$true] %s30_s20 }
   0x5   :  { %s4829_s21 = scalar_lea.vmem %s43_s18, 6144  ;;  %p4834_p1 = scmp.lt.s32.totalorder %s43_s18, %s43_s18 }
   0x6   :  { %p4830_p0 = scmp.ne.s32.totalorder %s43_s18, %s4829_s21  ;;  %p4835_p2 = scmp.lt.s32.totalorder %s4829_s21, %s4829_s21 }
   0x8   :  { %p4836_p3 = por %p4835_p2, %p4834_p1 }
   0xa   :  { %p4837_p4 = pnand %p4836_p3, %p4830_p0 }
   0xc   :  { %4840 = shalt.err (!%p4837_p4)
}
   0xd   :  { %s4931_s22 = smov 384   ;;  %s4932_s23 = smov 24  }
   0xe   :  { %48 = dma.hbm_to_vmem [thread:$0]  %s6905_s3, 6144, %s43_s18, [#allocation7], %s4931_s22, %s4931_s22, %s4932_s23  }
   0xf   :  { %s4849_s26 = scalar_lea.vmem %s31_s20, 6144  ;;  %p4854_p6 = scmp.lt.s32.totalorder %s31_s20, %s31_s20 }
  0x10   :  { %p4850_p5 = scmp.ne.s32.totalorder %s31_s20, %s4849_s26  ;;  %p4855_p7 = scmp.lt.s32.totalorder %s4849_s26, %s4849_s26 }
  0x12   :  { %p4856_p8 = por %p4855_p7, %p4854_p6 }
  0x14   :  { %p4857_p9 = pnand %p4856_p8, %p4850_p5 }
  0x16   :  { %4860 = shalt.err (!%p4857_p9)
}
  0x17   :  { %36 = dma.hbm_to_vmem [thread:$0]  %s6904_s2, 6144, %s31_s20, [#allocation4], %s4931_s22, %s4931_s22, %s4932_s23  }
  0x18   :  { %s4933_s29 = smov [#allocation8]   ;;  %s4934_s12 = smov [#allocation9]  }
  0x19   :  { %s58_s30 = sshll.u32 %s4933_s29, 4  ;;  %s70_s13 = sshll.u32 %s4934_s12, 4  ;;  %s59_s30 = int_to_ptr.vmem [resolvable:$true] %s58_s30  ;;  %s71_s13 = int_to_ptr.vmem [resolvable:$true] %s70_s13 }
  0x1a   :  { %s4869_s3 = scalar_lea.vmem %s59_s30, 6144  ;;  %p4874_p11 = scmp.lt.s32.totalorder %s59_s30, %s59_s30 }
  0x1b   :  { %p4870_p10 = scmp.ne.s32.totalorder %s59_s30, %s4869_s3  ;;  %p4875_p12 = scmp.lt.s32.totalorder %s4869_s3, %s4869_s3 }
  0x1d   :  { %p4876_p13 = por %p4875_p12, %p4874_p11 }
  0x1f   :  { %p4877_p0 = pnand %p4876_p13, %p4870_p10 }
  0x21   :  { %4880 = shalt.err (!%p4877_p0)
}
  0x22   :  { %64 = dma.hbm_to_vmem [thread:$0]  %s6908_s6, 6144, %s59_s30, [#allocation7], %s4931_s22, %s4931_s22, %s4932_s23  }
  0x23   :  { %s4889_s2 = scalar_lea.vmem %s71_s13, 6144  ;;  %p4894_p2 = scmp.lt.s32.totalorder %s71_s13, %s71_s13 }
  0x24   :  { %p4890_p1 = scmp.ne.s32.totalorder %s71_s13, %s4889_s2  ;;  %p4895_p3 = scmp.lt.s32.totalorder %s4889_s2, %s4889_s2 }
  0x26   :  { %p4896_p4 = por %p4895_p3, %p4894_p2 }
  0x28   :  { %p4897_p5 = pnand %p4896_p4, %p4890_p1 }
  0x2a   :  { %4900 = shalt.err (!%p4897_p5)
}
  0x2b   :  { %76 = dma.hbm_to_vmem [thread:$0]  %s6909_s7, 6144, %s71_s13, [#allocation10], %s4931_s22, %s4931_s22, %s4932_s23  }
  0x2c   :  { %4921 = dma.done.wait [#allocation4], 6144  }
  0x2d   :  { %4922 = vsyncadd [#allocation4], 4294961152 }
  0x2e   :  { %4923 = dma.done.wait [#allocation7], 12288  }
  0x2f   :  { %4924 = vsyncadd [#allocation7], 4294955008 }
  0x30   :  { %4925 = dma.done.wait [#allocation10], 6144  }
  0x31   :  { %4926 = vsyncadd [#allocation10], 4294961152  ;;  %v6914_v0 = vmov 0.0   ;;  %v147_v1 = vld [vmem:[#allocation3 + $0x170] sm:$0xff]  ;;  %v146_v2 = vld [vmem:[#allocation3 + $0x168] sm:$0xff]  ;;  %vm4936_vm0 = vmmov 0  }
  0x32   :  { %230 = vmatprep.mubr.f32.mxu0 %v6914_v0  ;;  %v144_v3 = vld [vmem:[#allocation3 + $0x158] sm:$0xff]  ;;  %166 = vmatprep.subr.mxu0 %v147_v1  ;;  %v143_v4 = vld [vmem:[#allocation3 + $0x150] sm:$0xff]  ;;  %v141_v5 = vld [vmem:[#allocation3 + $0x140] sm:$0xff] }
  0x33   :  { %167 = vmatpush1.msra.mxu0 %v146_v2  ;;  %v140_v6 = vld [vmem:[#allocation3 + $0x138] sm:$0xff]  ;;  %v138_v7 = vld [vmem:[#allocation3 + $0x128] sm:$0xff]  ;;  %v137_v8 = vld [vmem:[#allocation3 + $0x120] sm:$0xff] }
  0x34   :  { %168 = vmatprep.subr.mxu0 %v144_v3  ;;  %v135_v9 = vld [vmem:[#allocation3 + $0x110] sm:$0xff]  ;;  %v134_v10 = vld [vmem:[#allocation3 + $0x108] sm:$0xff]  ;;  %v132_v11 = vld [vmem:[#allocation3 + $0xf8] sm:$0xff] }
  0x35   :  { %169 = vmatpush1.msra.mxu0 %v143_v4  ;;  %v131_v12 = vld [vmem:[#allocation3 + $0xf0] sm:$0xff]  ;;  %v129_v13 = vld [vmem:[#allocation3 + $0xe0] sm:$0xff]  ;;  %v128_v15 = vld [vmem:[#allocation3 + $0xd8] sm:$0xff] }
  0x36   :  { %170 = vmatprep.subr.mxu0 %v141_v5  ;;  %v5028_v14 = vld [vmem:[%s6902_s0] sm:$0xff]  ;;  %v148_v16 = vld [vmem:[#allocation3 + $0x178] sm:$0xff]  ;;  %v126_v17 = vld [vmem:[#allocation3 + $0xc8] sm:$0xff] }
  0x37   :  { %171 = vmatpush1.msra.mxu0 %v140_v6  ;;  %3938 = vmatprep.mubr.f32.mxu1 %v5028_v14  ;;  %v145_v18 = vld [vmem:[#allocation3 + $0x160] sm:$0xff]  ;;  %v142_v20 = vld [vmem:[#allocation3 + $0x148] sm:$0xff]  ;;  %v123_v21 = vld [vmem:[#allocation3 + $0xb0] sm:$0xff] }
  0x38   :  { %172 = vmatprep.subr.mxu0 %v138_v7  ;;  %3906 = vmatprep.subr.mxu1 %v148_v16  ;;  %v125_v19 = vld [vmem:[#allocation3 + $0xc0] sm:$0xff]  ;;  %v122_v22 = vld [vmem:[#allocation3 + $0xa8] sm:$0xff]  ;;  %v139_v23 = vld [vmem:[#allocation3 + $0x130] sm:$0xff] }
  0x39   :  { %173 = vmatpush1.msra.mxu0 %v137_v8  ;;  %3907 = vmatpush3.msra.mxu1 %v148_v16  ;;  %v120_v24 = vld [vmem:[#allocation3 + $0x98] sm:$0xff]  ;;  %v119_v25 = vld [vmem:[#allocation3 + $0x90] sm:$0xff]  ;;  %v117_v27 = vld [vmem:[#allocation3 + $0x80] sm:$0xff] }
  0x3a   :  { %174 = vmatprep.subr.mxu0 %v135_v9  ;;  %3908 = vmatprep.subr.mxu1 %v145_v18  ;;  %v136_v26 = vld [vmem:[#allocation3 + $0x118] sm:$0xff]  ;;  %v133_v29 = vld [vmem:[#allocation3 + $0x100] sm:$0xff]  ;;  %v114_v30 = vld [vmem:[#allocation3 + $0x68] sm:$0xff] }
  0x3b   :  { %175 = vmatpush1.msra.mxu0 %v134_v10  ;;  %3909 = vmatpush3.msra.mxu1 %v145_v18  ;;  %v116_v28 = vld [vmem:[#allocation3 + $0x78] sm:$0xff]  ;;  %v113_v31 = vld [vmem:[#allocation3 + $0x60] sm:$0xff]  ;;  %v130_v32 = vld [vmem:[#allocation3 + $0xe8] sm:$0xff] }
  0x3c   :  { %176 = vmatprep.subr.mxu0 %v132_v11  ;;  %3910 = vmatprep.subr.mxu1 %v142_v20  ;;  %v111_v33 = vld [vmem:[#allocation3 + $0x50] sm:$0xff]  ;;  %v110_v34 = vld [vmem:[#allocation3 + $0x48] sm:$0xff]  ;;  %v108_v36 = vld [vmem:[#allocation3 + $0x38] sm:$0xff] }
  0x3d   :  { %177 = vmatpush1.msra.mxu0 %v131_v12  ;;  %3911 = vmatpush3.msra.mxu1 %v142_v20  ;;  %v127_v35 = vld [vmem:[#allocation3 + $0xd0] sm:$0xff]  ;;  %v124_v38 = vld [vmem:[#allocation3 + $0xb8] sm:$0xff]  ;;  %v105_v39 = vld [vmem:[#allocation3 + $0x20] sm:$0xff] }
  0x3e   :  { %178 = vmatprep.subr.mxu0 %v129_v13  ;;  %3912 = vmatprep.subr.mxu1 %v139_v23  ;;  %v107_v37 = vld [vmem:[#allocation3 + $0x30] sm:$0xff]  ;;  %v104_v40 = vld [vmem:[#allocation3 + $0x18] sm:$0xff]  ;;  %v121_v41 = vld [vmem:[#allocation3 + $0xa0] sm:$0xff] }
  0x3f   :  { %179 = vmatpush1.msra.mxu0 %v128_v15  ;;  %3913 = vmatpush3.msra.mxu1 %v139_v23  ;;  %v102_v42 = vld [vmem:[#allocation3 + $0x8] sm:$0xff]  ;;  %v101_v43 = vld [vmem:[#allocation3] sm:$0xff]  ;;  %v5031_v45 = vld [vmem:[#allocation6 + $0x170] sm:$0xff] }
  0x40   :  { %180 = vmatprep.subr.mxu0 %v126_v17  ;;  %3914 = vmatprep.subr.mxu1 %v136_v26  ;;  %v118_v44 = vld [vmem:[#allocation3 + $0x88] sm:$0xff]  ;;  %6994 = vst [vmem:[#allocation16_spill] sm:$0xff] %v5031_v45  ;;  %v5035_v47 = vld [vmem:[#allocation6 + $0x158] sm:$0xff]  ;;  %v5039_v48 = vld [vmem:[#allocation6 + $0x150] sm:$0xff] }
  0x41   :  { %181 = vmatpush1.msra.mxu0 %v125_v19  ;;  %3915 = vmatpush3.msra.mxu1 %v136_v26  ;;  %v5033_v46 = vld [vmem:[#allocation6 + $0x168] sm:$0xff]  ;;  %v115_v49 = vld [vmem:[#allocation3 + $0x70] sm:$0xff]  ;;  %v5048_v51 = vld [vmem:[#allocation6 + $0x140] sm:$0xff] }
  0x42   :  { %182 = vmatprep.subr.mxu0 %v123_v21  ;;  %3916 = vmatprep.subr.mxu1 %v133_v29  ;;  %v5046_v50 = vld [vmem:[%s6902_s0 + $0x8] sm:$0xff]  ;;  %v5051_v52 = vld [vmem:[#allocation6 + $0x138] sm:$0xff]  ;;  %v5058_v54 = vld [vmem:[#allocation6 + $0x120] sm:$0xff] }
  0x43   :  { %183 = vmatpush1.msra.mxu0 %v122_v22  ;;  %3917 = vmatpush3.msra.mxu1 %v133_v29  ;;  %v5054_v53 = vld [vmem:[#allocation6 + $0x128] sm:$0xff]  ;;  %v112_v55 = vld [vmem:[#allocation3 + $0x58] sm:$0xff]  ;;  %v5065_v56 = vld [vmem:[%s6902_s0 + $0x10] sm:$0xff] }
  0x44   :  { %184 = vmatprep.subr.mxu0 %v120_v24  ;;  %3918 = vmatprep.subr.mxu1 %v130_v32  ;;  %v5067_v57 = vld [vmem:[#allocation6 + $0x110] sm:$0xff]  ;;  %v5070_v58 = vld [vmem:[#allocation6 + $0x108] sm:$0xff]  ;;  %v5073_v59 = vld [vmem:[#allocation6 + $0xf8] sm:$0xff] }
  0x45   :  { %185 = vmatpush1.msra.mxu0 %v119_v25  ;;  %3919 = vmatpush3.msra.mxu1 %v130_v32  ;;  %v5077_v60 = vld [vmem:[#allocation6 + $0xf0] sm:$0xff]  ;;  %v109_v61 = vld [vmem:[#allocation3 + $0x40] sm:$0xff]  ;;  %v5084_v62 = vld [vmem:[%s6902_s0 + $0x18] sm:$0xff] }
  0x46   :  { %186 = vmatprep.subr.mxu0 %v117_v27  ;;  %3920 = vmatprep.subr.mxu1 %v127_v35  ;;  %v5086_v63 = vld [vmem:[#allocation6 + $0xe0] sm:$0xff]  ;;  %v5089_v1 = vld [vmem:[#allocation6 + $0xd8] sm:$0xff]  ;;  %v5092_v2 = vld [vmem:[#allocation6 + $0xc8] sm:$0xff] }
  0x47   :  { %187 = vmatpush1.msra.mxu0 %v116_v28  ;;  %3921 = vmatpush3.msra.mxu1 %v127_v35  ;;  %v5096_v3 = vld [vmem:[#allocation6 + $0xc0] sm:$0xff]  ;;  %v106_v4 = vld [vmem:[#allocation3 + $0x28] sm:$0xff]  ;;  %v5105_v6 = vld [vmem:[#allocation6 + $0xb0] sm:$0xff] }
  0x48   :  { %188 = vmatprep.subr.mxu0 %v114_v30  ;;  %3922 = vmatprep.subr.mxu1 %v124_v38  ;;  %v5103_v5 = vld [vmem:[%s6902_s0 + $0x20] sm:$0xff]  ;;  %v5108_v7 = vld [vmem:[#allocation6 + $0xa8] sm:$0xff]  ;;  %v5111_v8 = vld [vmem:[#allocation6 + $0x98] sm:$0xff] }
  0x49   :  { %189 = vmatpush1.msra.mxu0 %v113_v31  ;;  %3923 = vmatpush3.msra.mxu1 %v124_v38  ;;  %v5115_v9 = vld [vmem:[#allocation6 + $0x90] sm:$0xff]  ;;  %v5122_v11 = vld [vmem:[%s6902_s0 + $0x28] sm:$0xff]  ;;  %v5124_v12 = vld [vmem:[#allocation6 + $0x80] sm:$0xff] }
  0x4a   :  { %190 = vmatprep.subr.mxu0 %v111_v33  ;;  %3924 = vmatprep.subr.mxu1 %v121_v41  ;;  %v103_v10 = vld [vmem:[#allocation3 + $0x10] sm:$0xff]  ;;  %v5127_v13 = vld [vmem:[#allocation6 + $0x78] sm:$0xff]  ;;  %v5134_v15 = vld [vmem:[#allocation6 + $0x60] sm:$0xff] }
  0x4b   :  { %191 = vmatpush1.msra.mxu0 %v110_v34  ;;  %3925 = vmatpush3.msra.mxu1 %v121_v41  ;;  %v99_v16 = vld [vmem:[%s6902_s0 + $0x30] sm:$0xff]  ;;  %v5144_v18 = vld [vmem:[#allocation6 + $0x48] sm:$0xff]  ;;  %v5147_v19 = vld [vmem:[#allocation6 + $0x38] sm:$0xff] }
  0x4c   :  { %192 = vmatprep.subr.mxu0 %v108_v36  ;;  %3926 = vmatprep.subr.mxu1 %v118_v44  ;;  %v5141_v17 = vld [vmem:[#allocation6 + $0x50] sm:$0xff]  ;;  %6995 = vst [vmem:[#allocation17_spill] sm:$0xff] %v5147_v19  ;;  %v5153_v21 = vld [vmem:[#allocation6 + $0x178] sm:$0xff]  ;;  %v5160_v23 = vld [vmem:[#allocation6 + $0x20] sm:$0xff] }
  0x4d   :  { %193 = vmatpush1.msra.mxu0 %v107_v37  ;;  %3927 = vmatpush3.msra.mxu1 %v118_v44  ;;  %v5151_v20 = vld [vmem:[#allocation6 + $0x30] sm:$0xff]  ;;  %v100_v22 = vld [vmem:[%s6902_s0 + $0x38] sm:$0xff]  ;;  %6997 = vst [vmem:[#allocation19_spill] sm:$0xff] %v5160_v23  ;;  %v5167_v25 = vld [vmem:[#allocation6 + $0x8] sm:$0xff] }
  0x4e   :  { %194 = vmatprep.subr.mxu0 %v105_v39  ;;  %3928 = vmatprep.subr.mxu1 %v115_v49  ;;  %6996 = vst [vmem:[#allocation18_spill] sm:$0xff] %v5151_v20  ;;  %v5163_v24 = vld [vmem:[#allocation6 + $0x18] sm:$0xff]  ;;  %6999 = vst [vmem:[#allocation21_spill] sm:$0xff] %v5167_v25  ;;  %v5171_v26 = vld [vmem:[#allocation6] sm:$0xff] }
  0x4f   :  { %195 = vmatpush1.msra.mxu0 %v104_v40  ;;  %3929 = vmatpush3.msra.mxu1 %v115_v49  ;;  %6998 = vst [vmem:[#allocation20_spill] sm:$0xff] %v5163_v24  ;;  %7000 = vst [vmem:[#allocation22_spill] sm:$0xff] %v5171_v26  ;;  %v5173_v27 = vld [vmem:[#allocation6 + $0x160] sm:$0xff]  ;;  %v5184_v29 = vld [vmem:[#allocation6 + $0x148] sm:$0xff] }
  0x50   :  { %196 = vmatprep.subr.mxu0 %v102_v42  ;;  %3930 = vmatprep.subr.mxu1 %v112_v55  ;;  %v5180_v28 = vld [vmem:[%s6903_s1] sm:$0xff]  ;;  %v5190_v30 = vld [vmem:[#allocation6 + $0x130] sm:$0xff]  ;;  %v5195_v31 = vld [vmem:[#allocation6 + $0x118] sm:$0xff] }
  0x51   :  { %197 = vmatpush1.msra.mxu0 %v101_v43  ;;  %3931 = vmatpush3.msra.mxu1 %v112_v55  ;;  %v5201_v32 = vld [vmem:[#allocation6 + $0x100] sm:$0xff]  ;;  %v5207_v33 = vld [vmem:[#allocation6 + $0xe8] sm:$0xff]  ;;  %v5212_v34 = vld [vmem:[#allocation6 + $0xd0] sm:$0xff]  ;;  %v151_v43 = vlaneseq }
  0x52   :  { %231 = vmatmul.mubr.f32.vlgmr.msra.gmra.mxu0 %v5028_v14  ;;  %477 = vmatprep.subr.mxu0 %v5031_v45  ;;  %v5130_v14 = vld [vmem:[#allocation6 + $0x68] sm:$0xff]  ;;  %v5218_v35 = vld [vmem:[#allocation6 + $0xb8] sm:$0xff]  ;;  %v5224_v36 = vld [vmem:[#allocation6 + $0xa0] sm:$0xff] }
  0x53   :  { %478 = vmatpush1.msra.mxu0 %v5033_v46  ;;  %236 = vmatprep.mubr.f32.mxu0 %v6914_v0  ;;  %v5230_v37 = vld [vmem:[#allocation6 + $0x88] sm:$0xff]  ;;  %v5236_v38 = vld [vmem:[#allocation6 + $0x70] sm:$0xff]  ;;  %v5242_v39 = vld [vmem:[#allocation6 + $0x58] sm:$0xff]  ;;  %v152_v44 = vshrl.u32 %v151_v43, 7 }
  0x54   :  { %479 = vmatprep.subr.mxu0 %v5035_v47  ;;  %3932 = vmatprep.subr.mxu1 %v109_v61  ;;  %v5248_v40 = vld [vmem:[#allocation6 + $0x40] sm:$0xff]  ;;  %v5254_v41 = vld [vmem:[#allocation6 + $0x28] sm:$0xff]  ;;  %v5260_v42 = vld [vmem:[#allocation6 + $0x10] sm:$0xff] }
  0x55   :  { %480 = vmatpush1.msra.mxu0 %v5039_v48  ;;  %3933 = vmatpush3.msra.mxu1 %v109_v61  ;;  %7001 = vst [vmem:[#allocation23_spill] sm:$0xff] %v5248_v40  ;;  %7002 = vst [vmem:[#allocation24_spill] sm:$0xff] %v5254_v41  ;;  %v5319_v49 = vsub.s32 0, %v152_v44 }
  0x56   :  { %237 = vmatmul.mubr.f32.gmra.mxu0 %v5046_v50  ;;  %481 = vmatprep.subr.mxu0 %v5048_v51  ;;  %7003 = vst [vmem:[#allocation25_spill] sm:$0xff] %v5260_v42 }
  0x57   :  { %482 = vmatpush1.msra.mxu0 %v5051_v52  ;;  %242 = vmatprep.mubr.f32.mxu0 %v6914_v0  ;;  %7004 = vst [vmem:[#allocation26_spill] sm:$0xff] %v5319_v49 }
  0x58   :  { %483 = vmatprep.subr.mxu0 %v5054_v53  ;;  %3934 = vmatprep.subr.mxu1 %v106_v4 }
  0x59   :  { %484 = vmatpush1.msra.mxu0 %v5058_v54  ;;  %3935 = vmatpush3.msra.mxu1 %v106_v4 }
  0x5a   :  { %243 = vmatmul.mubr.f32.gmra.mxu0 %v5065_v56  ;;  %485 = vmatprep.subr.mxu0 %v5067_v57 }
  0x5b   :  { %486 = vmatpush1.msra.mxu0 %v5070_v58  ;;  %248 = vmatprep.mubr.f32.mxu0 %v6914_v0 }
  0x5c   :  { %487 = vmatprep.subr.mxu0 %v5073_v59  ;;  %3936 = vmatprep.subr.mxu1 %v103_v10 }
  0x5d   :  { %488 = vmatpush1.msra.mxu0 %v5077_v60  ;;  %3937 = vmatpush3.msra.mxu1 %v103_v10 }
  0x5e   :  { %249 = vmatmul.mubr.f32.gmra.mxu0 %v5084_v62  ;;  %489 = vmatprep.subr.mxu0 %v5086_v63 }
  0x5f   :  { %490 = vmatpush1.msra.mxu0 %v5089_v1  ;;  %254 = vmatprep.mubr.f32.mxu0 %v6914_v0 }
  0x60   :  { %491 = vmatprep.subr.mxu0 %v5092_v2  ;;  %3950 = vmatprep.subr.mxu1 %v6914_v0 }
  0x61   :  { %492 = vmatpush1.msra.mxu0 %v5096_v3  ;;  %3939 = vmatmul.mubr.f32.vlgmr.msra.gmra.mxu1 %v5046_v50  ;;  %v149_v50 = vld [vmem:[%s6906_s4] sm:$0x7] }
  0x62   :  { %255 = vmatmul.mubr.f32.gmra.mxu0 %v5103_v5  ;;  %493 = vmatprep.subr.mxu0 %v5105_v6 }
  0x63   :  { %494 = vmatpush1.msra.mxu0 %v5108_v7  ;;  %260 = vmatprep.mubr.f32.mxu0 %v6914_v0 }
  0x64   :  { %495 = vmatprep.subr.mxu0 %v5111_v8  ;;  %3951 = vmatpush3.msra.mxu1 %v5153_v21 }
  0x65   :  { %496 = vmatpush1.msra.mxu0 %v5115_v9  ;;  %3952 = vmatprep.subr.mxu1 %v6914_v0 }
  0x66   :  { %261 = vmatmul.mubr.f32.gmra.mxu0 %v5122_v11  ;;  %497 = vmatprep.subr.mxu0 %v5124_v12 }
  0x67   :  { %498 = vmatpush1.msra.mxu0 %v5127_v13  ;;  %266 = vmatprep.mubr.f32.mxu0 %v6914_v0 }
  0x68   :  { %499 = vmatprep.subr.mxu0 %v5130_v14  ;;  %3953 = vmatpush3.msra.mxu1 %v5173_v27 }
  0x69   :  { %500 = vmatpush1.msra.mxu0 %v5134_v15  ;;  %3954 = vmatprep.subr.mxu1 %v6914_v0 }
  0x6a   :  { %267 = vmatmul.mubr.f32.gmra.mxu0 %v99_v16  ;;  %501 = vmatprep.subr.mxu0 %v5141_v17 }
  0x6b   :  { %502 = vmatpush1.msra.mxu0 %v5144_v18  ;;  %272 = vmatprep.mubr.f32.mxu0 %v6914_v0 }
  0x6c   :  { %503 = vmatprep.subr.mxu0 %v5147_v19  ;;  %3955 = vmatpush3.msra.mxu1 %v5184_v29 }
  0x6d   :  { %504 = vmatpush1.msra.mxu0 %v5151_v20  ;;  %3941 = vmatprep.mubr.f32.mxu1 %v5065_v56  ;;  %v5324_v56 = vsub.s32 1, %v152_v44 }
  0x6e   :  { %273 = vmatmul.mubr.f32.gmra.mxu0 %v100_v22  ;;  %505 = vmatprep.subr.mxu0 %v5160_v23 }
  0x6f   :  { %506 = vmatpush1.msra.mxu0 %v5163_v24  ;;  %541 = vmatprep.mubr.f32.mxu0 %v6914_v0  ;;  %7005 = vst [vmem:[#allocation27_spill] sm:$0xff] %v5324_v56 }
  0x70   :  { %507 = vmatprep.subr.mxu0 %v5167_v25  ;;  %3956 = vmatprep.subr.mxu1 %v6914_v0 }
  0x71   :  { %508 = vmatpush1.msra.mxu0 %v5171_v26  ;;  %3942 = vmatmul.mubr.f32.gmra.mxu1 %v5084_v62  ;;  %v154_v62 = vrot.slane %v149_v50, %v5319_v49 }
  0x72   :  { %542 = vmatmul.mubr.f32.vlgmr.msra.gmra.mxu0 %v5180_v28  ;;  %3957 = vmatpush3.msra.mxu1 %v5190_v30 }
  0x73   :  { %3944 = vmatprep.mubr.f32.mxu1 %v5103_v5  ;;  %3958 = vmatprep.subr.mxu1 %v6914_v0  ;;  %v158_v5 = vrot.slane %v149_v50, %v5324_v56 }
  0x74   :  { %644 = vmatprep.subr.mxu0 %v5031_v45  ;;  %3959 = vmatpush3.msra.mxu1 %v5195_v31 }
  0x75   :  { %645 = vmatpush1.msra.mxu0 %v5033_v46  ;;  %3960 = vmatprep.subr.mxu1 %v6914_v0 }
  0x76   :  { %3945 = vmatmul.mubr.f32.gmra.mxu1 %v5122_v11  ;;  %646 = vmatprep.subr.mxu0 %v5035_v47 }
  0x77   :  { %3961 = vmatpush3.msra.mxu1 %v5201_v32  ;;  %3947 = vmatprep.mubr.f32.mxu1 %v99_v16 }
  0x78   :  { %3962 = vmatprep.subr.mxu1 %v6914_v0  ;;  %647 = vmatpush1.msra.mxu0 %v5039_v48 }
  0x79   :  { %3963 = vmatpush3.msra.mxu1 %v5207_v33  ;;  %648 = vmatprep.subr.mxu0 %v5048_v51 }
  0x7a   :  { %3964 = vmatprep.subr.mxu1 %v6914_v0  ;;  %3948 = vmatmul.mubr.f32.gmra.mxu1 %v100_v22 }
  0x7b   :  { %3965 = vmatpush3.msra.mxu1 %v5212_v34  ;;  %3982 = vmatprep.mubr.msk.f32.mxu1 %vm4936_vm0, %v6914_v0 }
  0x7c   :  { %3966 = vmatprep.subr.mxu1 %v6914_v0  ;;  %649 = vmatpush1.msra.mxu0 %v5051_v52 }
  0x7d   :  { %3967 = vmatpush3.msra.mxu1 %v5218_v35  ;;  %650 = vmatprep.subr.mxu0 %v5054_v53 }
  0x7e   :  { %3968 = vmatprep.subr.mxu1 %v6914_v0  ;;  %651 = vmatpush1.msra.mxu0 %v5058_v54 }
  0x7f   :  { %3969 = vmatpush3.msra.mxu1 %v5224_v36  ;;  %652 = vmatprep.subr.mxu0 %v5067_v57 }
  0x80   :  { %3970 = vmatprep.subr.mxu1 %v6914_v0  ;;  %653 = vmatpush1.msra.mxu0 %v5070_v58 }
  0x81   :  { %3971 = vmatpush3.msra.mxu1 %v5230_v37  ;;  %654 = vmatprep.subr.mxu0 %v5073_v59 }
  0x82   :  { %3972 = vmatprep.subr.mxu1 %v6914_v0  ;;  %655 = vmatpush1.msra.mxu0 %v5077_v60 }
  0x83   :  { %3973 = vmatpush3.msra.mxu1 %v5236_v38  ;;  %656 = vmatprep.subr.mxu0 %v5086_v63 }
  0x84   :  { %3974 = vmatprep.subr.mxu1 %v6914_v0  ;;  %657 = vmatpush1.msra.mxu0 %v5089_v1 }
  0x85   :  { %3975 = vmatpush3.msra.mxu1 %v5242_v39  ;;  %658 = vmatprep.subr.mxu0 %v5092_v2 }
  0x86   :  { %3976 = vmatprep.subr.mxu1 %v6914_v0  ;;  %659 = vmatpush1.msra.mxu0 %v5096_v3 }
  0x87   :  { %3977 = vmatpush3.msra.mxu1 %v5248_v40  ;;  %660 = vmatprep.subr.mxu0 %v5105_v6 }
  0x88   :  { %3978 = vmatprep.subr.mxu1 %v6914_v0  ;;  %661 = vmatpush1.msra.mxu0 %v5108_v7 }
  0x89   :  { %3979 = vmatpush3.msra.mxu1 %v5254_v41  ;;  %662 = vmatprep.subr.mxu0 %v5111_v8 }
  0x8a   :  { %3980 = vmatprep.subr.mxu1 %v6914_v0  ;;  %663 = vmatpush1.msra.mxu0 %v5115_v9 }
  0x8b   :  { %3981 = vmatpush3.msra.mxu1 %v5260_v42  ;;  %664 = vmatprep.subr.mxu0 %v5124_v12 }
  0x8c   :  { %3983 = vmatmul.mubr.f32.vlgmr.msra.gmra.mxu1 %v5180_v28  ;;  %3985 = vmatprep.subr.mxu1 %v6914_v0 }
  0x8d   :  { %3986 = vmatpush3.msra.mxu1 %v5153_v21  ;;  %665 = vmatpush1.msra.mxu0 %v5127_v13 }
  0x8e   :  { %3987 = vmatprep.subr.mxu1 %v6914_v0  ;;  %666 = vmatprep.subr.mxu0 %v5130_v14 }
  0x8f   :  { %3988 = vmatpush3.msra.mxu1 %v5173_v27  ;;  %667 = vmatpush1.msra.mxu0 %v5134_v15 }
  0x90   :  { %3989 = vmatprep.subr.mxu1 %v6914_v0  ;;  %668 = vmatprep.subr.mxu0 %v5141_v17 }
  0x91   :  { %3990 = vmatpush3.msra.mxu1 %v5184_v29  ;;  %669 = vmatpush1.msra.mxu0 %v5144_v18 }
  0x92   :  { %3991 = vmatprep.subr.mxu1 %v6914_v0  ;;  %670 = vmatprep.subr.mxu0 %v5147_v19 }
  0x93   :  { %3992 = vmatpush3.msra.mxu1 %v5190_v30  ;;  %671 = vmatpush1.msra.mxu0 %v5151_v20 }
  0x94   :  { %3993 = vmatprep.subr.mxu1 %v6914_v0  ;;  %672 = vmatprep.subr.mxu0 %v5160_v23 }
  0x95   :  { %3994 = vmatpush3.msra.mxu1 %v5195_v31  ;;  %673 = vmatpush1.msra.mxu0 %v5163_v24 }
  0x96   :  { %3995 = vmatprep.subr.mxu1 %v6914_v0  ;;  %674 = vmatprep.subr.mxu0 %v5167_v25 }
  0x97   :  { %3996 = vmatpush3.msra.mxu1 %v5201_v32  ;;  %675 = vmatpush1.msra.mxu0 %v5171_v26 }
  0x98   :  { %3997 = vmatprep.subr.mxu1 %v6914_v0  ;;  %708 = vmatprep.mubr.f32.mxu0 %v6914_v0 }
  0x99   :  { %3998 = vmatpush3.msra.mxu1 %v5207_v33  ;;  %4017 = vmatprep.mubr.msk.f32.mxu1 %vm4936_vm0, %v6914_v0 }
  0x9a   :  { %3999 = vmatprep.subr.mxu1 %v6914_v0  ;;  %812 = vmatprep.subr.mxu0 %v5031_v45 }
  0x9b   :  { %4000 = vmatpush3.msra.mxu1 %v5212_v34 }
  0x9c   :  { %4001 = vmatprep.subr.mxu1 %v6914_v0 }
  0x9d   :  { %4002 = vmatpush3.msra.mxu1 %v5218_v35 }
  0x9e   :  { %4003 = vmatprep.subr.mxu1 %v6914_v0 }
  0x9f   :  { %4004 = vmatpush3.msra.mxu1 %v5224_v36 }
  0xa0   :  { %4005 = vmatprep.subr.mxu1 %v6914_v0 }
  0xa1   :  { %4006 = vmatpush3.msra.mxu1 %v5230_v37 }
  0xa2   :  { %4007 = vmatprep.subr.mxu1 %v6914_v0 }
  0xa3   :  { %4008 = vmatpush3.msra.mxu1 %v5236_v38 }
  0xa4   :  { %4009 = vmatprep.subr.mxu1 %v6914_v0 }
  0xa5   :  { %4010 = vmatpush3.msra.mxu1 %v5242_v39 }
  0xa6   :  { %4011 = vmatprep.subr.mxu1 %v6914_v0 }
  0xa7   :  { %4012 = vmatpush3.msra.mxu1 %v5248_v40 }
  0xa8   :  { %4013 = vmatprep.subr.mxu1 %v6914_v0 }
  0xa9   :  { %4014 = vmatpush3.msra.mxu1 %v5254_v41 }
  0xaa   :  { %4015 = vmatprep.subr.mxu1 %v6914_v0 }
  0xab   :  { %4016 = vmatpush3.msra.mxu1 %v5260_v42 }
  0xac   :  { %4020 = vmatprep.subr.mxu1 %v6914_v0 }
 0x112   :  { %v232_v55 = vpop.f32.mrf.mxu0 }
 0x114   :  { %v234_v61 = vpop.f32.mrf.mxu0 }
 0x116   :  { %v238_v4 = vpop.f32.mrf.mxu0 }
 0x117   :  { %v5328_v10 = vadd.f32 %v238_v4, %v154_v62 }
 0x118   :  { %v240_v11 = vpop.f32.mrf.mxu0 }
 0x119   :  { %7006 = vst [vmem:[#allocation28_spill] sm:$0xff] %v5328_v10  ;;  %v5330_v16 = vadd.f32 %v240_v11, %v158_v5  ;;  %v5344_v11 = vsub.s32 2, %v152_v44 }
 0x11a   :  { %v244_v22 = vpop.f32.mrf.mxu0 }
 0x11b   :  { %7007 = vst [vmem:[#allocation29_spill] sm:$0xff] %v5330_v16  ;;  %v5332_v43 = vadd.f32 %v244_v22, %v154_v62  ;;  %7014 = vst [vmem:[#allocation36_spill] sm:$0xff] %v5344_v11 }
 0x11c   :  { %v246_v0 = vpop.f32.mrf.mxu0 }
 0x11d   :  { %7008 = vst [vmem:[#allocation30_spill] sm:$0xff] %v5332_v43  ;;  %v5334_v45 = vadd.f32 %v246_v0, %v158_v5 }
 0x11e   :  { %v250_v42 = vpop.f32.mrf.mxu0 }
 0x11f   :  { %7009 = vst [vmem:[#allocation31_spill] sm:$0xff] %v5334_v45  ;;  %v5336_v26 = vadd.f32 %v250_v42, %v154_v62  ;;  %v162_v42 = vrot.slane %v149_v50, %v5344_v11 }
 0x120   :  { %v252_v25 = vpop.f32.mrf.mxu0 }
 0x121   :  { %7010 = vst [vmem:[#allocation32_spill] sm:$0xff] %v5336_v26  ;;  %v5338_v41 = vadd.f32 %v252_v25, %v158_v5 }
 0x122   :  { %v256_v24 = vpop.f32.mrf.mxu0 }
 0x123   :  { %7011 = vst [vmem:[#allocation33_spill] sm:$0xff] %v5338_v41  ;;  %v5340_v23 = vadd.f32 %v256_v24, %v154_v62  ;;  %v456_v24 = vld [vmem:[%s6907_s5] sm:$0x7] }
 0x124   :  { %v258_v4 = vpop.f32.mrf.mxu0  ;;  %v5369_v40 = vrot.slane %v456_v24, %v5324_v56 }
 0x125   :  { %7012 = vst [vmem:[#allocation34_spill] sm:$0xff] %v5340_v23  ;;  %v5342_v10 = vadd.f32 %v258_v4, %v158_v5  ;;  %v3940_v4 = vpop.f32.mrf.mxu1  ;;  %v233_v23 = vadd.f32 %v232_v55, %v154_v62 }
 0x126   :  { %v262_v16 = vpop.f32.mrf.mxu0  ;;  %v5358_v44 = vadd.f32 %v3940_v4, %v162_v42 }
 0x127   :  { %7013 = vst [vmem:[#allocation35_spill] sm:$0xff] %v5342_v10  ;;  %v5346_v22 = vadd.f32 %v262_v16, %v154_v62 }
 0x128   :  { %v264_v43 = vpop.f32.mrf.mxu0  ;;  %7019 = vst [vmem:[#allocation41_spill] sm:$0xff] %v5358_v44 }
 0x129   :  { %7015 = vst [vmem:[#allocation37_spill] sm:$0xff] %v5346_v22  ;;  %v5348_v0 = vadd.f32 %v264_v43, %v158_v5  ;;  %v5363_v43 = vrot.slane %v456_v24, %v5319_v49 }
 0x12a   :  { %v268_v26 = vpop.f32.mrf.mxu0 }
 0x12b   :  { %7016 = vst [vmem:[#allocation38_spill] sm:$0xff] %v5348_v0  ;;  %v5351_v45 = vadd.f32 %v268_v26, %v154_v62  ;;  %7021 = vst [vmem:[#allocation43_spill] sm:$0xff] %v5363_v43 }
 0x12c   :  { %v270_v25 = vpop.f32.mrf.mxu0 }
 0x12d   :  { %7017 = vst [vmem:[#allocation39_spill] sm:$0xff] %v5351_v45  ;;  %v5356_v10 = vadd.f32 %v270_v25, %v158_v5  ;;  %v345_v45 = vpop.f32.mrf.mxu1 }
 0x12e   :  { %v274_v16 = vpop.f32.mrf.mxu0 }
 0x12f   :  { %7018 = vst [vmem:[#allocation40_spill] sm:$0xff] %v5356_v10  ;;  %v5360_v22 = vadd.f32 %v274_v16, %v154_v62 }
 0x130   :  { %v276_v50 = vpop.f32.mrf.mxu0 }
 0x131   :  { %7020 = vst [vmem:[#allocation42_spill] sm:$0xff] %v5360_v22  ;;  %v5365_v0 = vadd.f32 %v276_v50, %v158_v5  ;;  %v3943_v4 = vpop.f32.mrf.mxu1 }
 0x132   :  { %v543_v26 = vpop.f32.mrf.mxu0  ;;  %v5371_v44 = vadd.f32 %v3943_v4, %v162_v42 }
 0x133   :  { %7022 = vst [vmem:[#allocation44_spill] sm:$0xff] %v5365_v0  ;;  %v544_v41 = vadd.f32 %v543_v26, %v5363_v43  ;;  %v355_v16 = vpop.f32.mrf.mxu1  ;;  %v235_v0 = vadd.f32 %v234_v61, %v158_v5  ;;  %v5385_v61 = vrot.slane %v456_v24, %v5344_v11  ;;  %v7033_v24 = vld [vmem:[#allocation19_spill] sm:$0xff] }
 0x134   :  { %v545_v25 = vpop.f32.mrf.mxu0  ;;  %7023 = vst [vmem:[#allocation45_spill] sm:$0xff] %v5371_v44  ;;  %v5374_v20 = vadd.f32 %v355_v16, %v162_v42  ;;  %v7042_v44 = vld [vmem:[#allocation29_spill] sm:$0xff] }
 0x135   :  { %v618_v10 = vadd.f32 %v544_v41, %v233_v23  ;;  %v546_v49 = vadd.f32 %v545_v25, %v5369_v40 }
 0x136   :  { %7024 = vst [vmem:[#allocation46_spill] sm:$0xff] %v5374_v20  ;;  %v3946_v50 = vpop.f32.mrf.mxu1 }
 0x137   :  { %v3552_v22 = vmul.f32 -1.442695, %v618_v10  ;;  %v5376_v55 = vadd.f32 %v3946_v50, %v162_v42  ;;  %v625_v26 = vadd.f32 %v546_v49, %v235_v0 }
 0x138   :  { %v365_v62 = vpop.f32.mrf.mxu1 }
 0x139   :  { %4565 = vpow2.f32 %v3552_v22  ;;  %7025 = vst [vmem:[#allocation47_spill] sm:$0xff] %v5376_v55  ;;  %v5378_v56 = vadd.f32 %v365_v62, %v162_v42  ;;  %v3553_v41 = vmul.f32 -1.442695, %v625_v26 }
 0x13a   :  { %v3949_v43 = vpop.f32.mrf.mxu1 }
 0x13b   :  { %7026 = vst [vmem:[#allocation48_spill] sm:$0xff] %v5378_v56  ;;  %v5380_v19 = vadd.f32 %v3949_v43, %v162_v42  ;;  %4567 = vpow2.f32 %v3553_v41  ;;  %v346_v43 = vadd.f32 %v345_v45, %v162_v42  ;;  %v7029_v45 = vmov 0.0  }
 0x13c   :  { %v375_v23 = vpop.f32.mrf.mxu1 }
 0x13d   :  { %7027 = vst [vmem:[#allocation49_spill] sm:$0xff] %v5380_v19  ;;  %v5382_v4 = vadd.f32 %v375_v23, %v162_v42  ;;  %v7032_v42 = vld [vmem:[#allocation23_spill] sm:$0xff] }
 0x13f   :  { %7028 = vst [vmem:[#allocation50_spill] sm:$0xff] %v5382_v4 }
 0x146   :  { %v4566_v10 = vpop.eup %4565 }
 0x147   :  { %v622_v25 = vadd.f32 1.0, %v4566_v10 }
 0x148   :  { %v4568_v5 = vpop.eup %4567 }
 0x149   :  { %4569 = vrcp.f32 %v622_v25  ;;  %v629_v49 = vadd.f32 1.0, %v4568_v5  ;;  %v7035_v5 = vld [vmem:[#allocation24_spill] sm:$0xff] }
 0x14b   :  { %4571 = vrcp.f32 %v629_v49  ;;  %v7037_v49 = vld [vmem:[#allocation22_spill] sm:$0xff] }
 0x14c   :  { %v614_v16 = vpop.f32.mrf.mxu1 }
 0x14d   :  { %v615_v0 = vadd.f32 %v614_v16, %v5385_v61  ;;  %v7034_v16 = vld [vmem:[#allocation20_spill] sm:$0xff] }
 0x14e   :  { %v3984_v22 = vpop.f32.mrf.mxu1 }
 0x14f   :  { %v7036_v22 = vld [vmem:[#allocation21_spill] sm:$0xff] }
 0x156   :  { %v4570_v50 = vpop.eup %4569 }
 0x157   :  { %v632_v62 = vmul.f32 %v4570_v50, %v615_v0  ;;  %v7038_v0 = vld [vmem:[#allocation25_spill] sm:$0xff]  ;;  %v7039_v50 = vld [vmem:[#allocation16_spill] sm:$0xff] }
 0x158   :  { %v4572_v23 = vpop.eup %4571 }
 0x159   :  { %v633_v26 = vadd.f32 %v632_v62, %v346_v43  ;;  %v635_v41 = vsub.f32 1.0, %v4572_v23  ;;  %v637_v25 = vmul.f32 %v4572_v23, %v5180_v28  ;;  %v7031_v28 = vld [vmem:[#allocation18_spill] sm:$0xff] }
 0x15b   :  { %4573 = vtanh.f32 %v633_v26  ;;  %v7040_v26 = vld [vmem:[#allocation43_spill] sm:$0xff] }
 0x168   :  { %v4574_v19 = vpop.eup %4573 }
 0x169   :  { %v636_v10 = vmul.f32 %v4574_v19, %v635_v41  ;;  %v7030_v19 = vld [vmem:[#allocation17_spill] sm:$0xff] }
 0x16b   :  { %v5389_v4 = vadd.f32 %v637_v25, %v636_v10  ;;  %v7041_v25 = vld [vmem:[#allocation28_spill] sm:$0xff] }
 0x16d   :  { %639 = vst [vmem:[#allocation11] sm:$0xff] %v5389_v4  ;;  %709 = vmatmul.mubr.f32.vlgmr.msra.gmra.mxu0 %v5389_v4  ;;  %4018 = vmatmul.mubr.f32.vlgmr.msra.gmra.mxu1 %v5389_v4 }
 0x16e   :  { %813 = vmatpush1.msra.mxu0 %v5033_v46  ;;  %4021 = vmatpush3.msra.mxu1 %v5153_v21 }
 0x16f   :  { %814 = vmatprep.subr.mxu0 %v5035_v47  ;;  %4022 = vmatprep.subr.mxu1 %v7029_v45 }
 0x170   :  { %815 = vmatpush1.msra.mxu0 %v5039_v48  ;;  %4023 = vmatpush3.msra.mxu1 %v5173_v27 }
 0x171   :  { %816 = vmatprep.subr.mxu0 %v5048_v51  ;;  %4024 = vmatprep.subr.mxu1 %v7029_v45 }
 0x172   :  { %817 = vmatpush1.msra.mxu0 %v5051_v52  ;;  %4025 = vmatpush3.msra.mxu1 %v5184_v29 }
 0x173   :  { %818 = vmatprep.subr.mxu0 %v5054_v53  ;;  %4026 = vmatprep.subr.mxu1 %v7029_v45 }
 0x174   :  { %819 = vmatpush1.msra.mxu0 %v5058_v54  ;;  %4027 = vmatpush3.msra.mxu1 %v5190_v30 }
 0x175   :  { %820 = vmatprep.subr.mxu0 %v5067_v57  ;;  %4028 = vmatprep.subr.mxu1 %v7029_v45 }
 0x176   :  { %821 = vmatpush1.msra.mxu0 %v5070_v58  ;;  %4029 = vmatpush3.msra.mxu1 %v5195_v31 }
 0x177   :  { %822 = vmatprep.subr.mxu0 %v5073_v59  ;;  %4030 = vmatprep.subr.mxu1 %v7029_v45 }
 0x178   :  { %823 = vmatpush1.msra.mxu0 %v5077_v60  ;;  %4031 = vmatpush3.msra.mxu1 %v5201_v32 }
 0x179   :  { %824 = vmatprep.subr.mxu0 %v5086_v63  ;;  %4032 = vmatprep.subr.mxu1 %v7029_v45 }
 0x17a   :  { %825 = vmatpush1.msra.mxu0 %v5089_v1  ;;  %4033 = vmatpush3.msra.mxu1 %v5207_v33 }
 0x17b   :  { %826 = vmatprep.subr.mxu0 %v5092_v2  ;;  %4034 = vmatprep.subr.mxu1 %v7029_v45 }
 0x17c   :  { %827 = vmatpush1.msra.mxu0 %v5096_v3  ;;  %4035 = vmatpush3.msra.mxu1 %v5212_v34 }
 0x17d   :  { %828 = vmatprep.subr.mxu0 %v5105_v6  ;;  %4036 = vmatprep.subr.mxu1 %v7029_v45 }
 0x17e   :  { %829 = vmatpush1.msra.mxu0 %v5108_v7  ;;  %4037 = vmatpush3.msra.mxu1 %v5218_v35 }
 0x17f   :  { %830 = vmatprep.subr.mxu0 %v5111_v8  ;;  %4038 = vmatprep.subr.mxu1 %v7029_v45 }
 0x180   :  { %831 = vmatpush1.msra.mxu0 %v5115_v9  ;;  %4039 = vmatpush3.msra.mxu1 %v5224_v36 }
 0x181   :  { %832 = vmatprep.subr.mxu0 %v5124_v12  ;;  %4040 = vmatprep.subr.mxu1 %v7029_v45 }
 0x182   :  { %833 = vmatpush1.msra.mxu0 %v5127_v13  ;;  %4041 = vmatpush3.msra.mxu1 %v5230_v37 }
 0x183   :  { %834 = vmatprep.subr.mxu0 %v5130_v14  ;;  %4042 = vmatprep.subr.mxu1 %v7029_v45 }
 0x184   :  { %835 = vmatpush1.msra.mxu0 %v5134_v15  ;;  %4043 = vmatpush3.msra.mxu1 %v5236_v38 }
 0x185   :  { %836 = vmatprep.subr.mxu0 %v5141_v17  ;;  %4044 = vmatprep.subr.mxu1 %v7029_v45 }
 0x186   :  { %837 = vmatpush1.msra.mxu0 %v5144_v18  ;;  %4045 = vmatpush3.msra.mxu1 %v5242_v39 }
 0x187   :  { %838 = vmatprep.subr.mxu0 %v7030_v19  ;;  %4046 = vmatprep.subr.mxu1 %v7029_v45 }
 0x188   :  { %839 = vmatpush1.msra.mxu0 %v7031_v28  ;;  %4047 = vmatpush3.msra.mxu1 %v7032_v42 }
 0x189   :  { %840 = vmatprep.subr.mxu0 %v7033_v24  ;;  %4048 = vmatprep.subr.mxu1 %v7029_v45 }
 0x18a   :  { %841 = vmatpush1.msra.mxu0 %v7034_v16  ;;  %4049 = vmatpush3.msra.mxu1 %v7035_v5 }
 0x18b   :  { %842 = vmatprep.subr.mxu0 %v7036_v22  ;;  %4050 = vmatprep.subr.mxu1 %v7029_v45 }
 0x18c   :  { %843 = vmatpush1.msra.mxu0 %v7037_v49  ;;  %876 = vmatprep.mubr.f32.mxu0 %v7029_v45 }
 0x18d   :  { %4051 = vmatpush3.msra.mxu1 %v7038_v0  ;;  %4052 = vmatprep.mubr.msk.f32.mxu1 %vm4936_vm0, %v7029_v45 }
 0x18e   :  { %980 = vmatprep.subr.mxu0 %v7039_v50  ;;  %4055 = vmatprep.subr.mxu1 %v7029_v45 }
 0x22d   :  { %v710_v43 = vpop.f32.mrf.mxu0  ;;  %v781_v62 = vpop.f32.mrf.mxu1 }
 0x22e   :  { %v711_v23 = vadd.f32 %v710_v43, %v7040_v26  ;;  %v782_v16 = vadd.f32 %v781_v62, %v5385_v61 }
 0x22f   :  { %v712_v41 = vpop.f32.mrf.mxu0  ;;  %v4019_v10 = vpop.f32.mrf.mxu1 }
 0x230   :  { %v785_v11 = vadd.f32 %v711_v23, %v7041_v25  ;;  %v713_v56 = vadd.f32 %v712_v41, %v5369_v40  ;;  %v7043_v10 = vld [vmem:[#allocation41_spill] sm:$0xff] }
 0x232   :  { %v3554_v55 = vmul.f32 -1.442695, %v785_v11  ;;  %v792_v20 = vadd.f32 %v713_v56, %v7042_v44 }
 0x234   :  { %4575 = vpow2.f32 %v3554_v55  ;;  %v3555_v0 = vmul.f32 -1.442695, %v792_v20 }
 0x236   :  { %4577 = vpow2.f32 %v3555_v0 }
 0x241   :  { %v4576_v49 = vpop.eup %4575 }
 0x242   :  { %v789_v50 = vadd.f32 1.0, %v4576_v49  ;;  %v7051_v49 = vld [vmem:[#allocation30_spill] sm:$0xff] }
 0x243   :  { %v4578_v22 = vpop.eup %4577 }
 0x244   :  { %4579 = vrcp.f32 %v789_v50  ;;  %v796_v5 = vadd.f32 1.0, %v4578_v22 }
 0x246   :  { %4581 = vrcp.f32 %v796_v5 }
 0x251   :  { %v4580_v43 = vpop.eup %4579 }
 0x252   :  { %v799_v26 = vmul.f32 %v4580_v43, %v782_v16 }
 0x253   :  { %v4582_v11 = vpop.eup %4581 }
 0x254   :  { %v800_v23 = vadd.f32 %v799_v26, %v7043_v10  ;;  %v802_v41 = vsub.f32 1.0, %v4582_v11  ;;  %v804_v20 = vmul.f32 %v4582_v11, %v5389_v4  ;;  %v7050_v4 = vld [vmem:[#allocation43_spill] sm:$0xff] }
 0x255   :  { %v7052_v26 = vld [vmem:[#allocation31_spill] sm:$0xff] }
 0x256   :  { %4583 = vtanh.f32 %v800_v23 }
 0x263   :  { %v4584_v55 = vpop.eup %4583 }
 0x264   :  { %v803_v25 = vmul.f32 %v4584_v55, %v802_v41 }
 0x266   :  { %v5468_v56 = vadd.f32 %v804_v20, %v803_v25 }
 0x268   :  { %807 = vst [vmem:[#allocation11 + $0x8] sm:$0xff] %v5468_v56  ;;  %877 = vmatmul.mubr.f32.vlgmr.msra.gmra.mxu0 %v5468_v56  ;;  %4053 = vmatmul.mubr.f32.vlgmr.msra.gmra.mxu1 %v5468_v56 }
 0x269   :  { %981 = vmatpush1.msra.mxu0 %v5033_v46  ;;  %4056 = vmatpush3.msra.mxu1 %v5153_v21  ;;  %v7044_v46 = vld [vmem:[#allocation20_spill] sm:$0xff] }
 0x26a   :  { %982 = vmatprep.subr.mxu0 %v5035_v47  ;;  %4057 = vmatprep.subr.mxu1 %v7029_v45  ;;  %v7045_v47 = vld [vmem:[#allocation24_spill] sm:$0xff] }
 0x26b   :  { %983 = vmatpush1.msra.mxu0 %v5039_v48  ;;  %4058 = vmatpush3.msra.mxu1 %v5173_v27  ;;  %v7046_v48 = vld [vmem:[#allocation21_spill] sm:$0xff] }
 0x26c   :  { %984 = vmatprep.subr.mxu0 %v5048_v51  ;;  %4059 = vmatprep.subr.mxu1 %v7029_v45  ;;  %v7047_v51 = vld [vmem:[#allocation22_spill] sm:$0xff] }
 0x26d   :  { %985 = vmatpush1.msra.mxu0 %v5051_v52  ;;  %4060 = vmatpush3.msra.mxu1 %v5184_v29  ;;  %v7048_v52 = vld [vmem:[#allocation25_spill] sm:$0xff] }
 0x26e   :  { %986 = vmatprep.subr.mxu0 %v5054_v53  ;;  %4061 = vmatprep.subr.mxu1 %v7029_v45  ;;  %v7049_v53 = vld [vmem:[#allocation16_spill] sm:$0xff] }
 0x26f   :  { %987 = vmatpush1.msra.mxu0 %v5058_v54  ;;  %4062 = vmatpush3.msra.mxu1 %v5190_v30 }
 0x270   :  { %988 = vmatprep.subr.mxu0 %v5067_v57  ;;  %4063 = vmatprep.subr.mxu1 %v7029_v45 }
 0x271   :  { %989 = vmatpush1.msra.mxu0 %v5070_v58  ;;  %4064 = vmatpush3.msra.mxu1 %v5195_v31 }
 0x272   :  { %990 = vmatprep.subr.mxu0 %v5073_v59  ;;  %4065 = vmatprep.subr.mxu1 %v7029_v45 }
 0x273   :  { %991 = vmatpush1.msra.mxu0 %v5077_v60  ;;  %4066 = vmatpush3.msra.mxu1 %v5201_v32 }
 0x274   :  { %992 = vmatprep.subr.mxu0 %v5086_v63  ;;  %4067 = vmatprep.subr.mxu1 %v7029_v45 }
 0x275   :  { %993 = vmatpush1.msra.mxu0 %v5089_v1  ;;  %4068 = vmatpush3.msra.mxu1 %v5207_v33 }
 0x276   :  { %994 = vmatprep.subr.mxu0 %v5092_v2  ;;  %4069 = vmatprep.subr.mxu1 %v7029_v45 }
 0x277   :  { %995 = vmatpush1.msra.mxu0 %v5096_v3  ;;  %4070 = vmatpush3.msra.mxu1 %v5212_v34 }
 0x278   :  { %996 = vmatprep.subr.mxu0 %v5105_v6  ;;  %4071 = vmatprep.subr.mxu1 %v7029_v45 }
 0x279   :  { %997 = vmatpush1.msra.mxu0 %v5108_v7  ;;  %4072 = vmatpush3.msra.mxu1 %v5218_v35 }
 0x27a   :  { %998 = vmatprep.subr.mxu0 %v5111_v8  ;;  %4073 = vmatprep.subr.mxu1 %v7029_v45 }
 0x27b   :  { %999 = vmatpush1.msra.mxu0 %v5115_v9  ;;  %4074 = vmatpush3.msra.mxu1 %v5224_v36 }
 0x27c   :  { %1000 = vmatprep.subr.mxu0 %v5124_v12  ;;  %4075 = vmatprep.subr.mxu1 %v7029_v45 }
 0x27d   :  { %1001 = vmatpush1.msra.mxu0 %v5127_v13  ;;  %4076 = vmatpush3.msra.mxu1 %v5230_v37 }
 0x27e   :  { %1002 = vmatprep.subr.mxu0 %v5130_v14  ;;  %4077 = vmatprep.subr.mxu1 %v7029_v45 }
 0x27f   :  { %1003 = vmatpush1.msra.mxu0 %v5134_v15  ;;  %4078 = vmatpush3.msra.mxu1 %v5236_v38 }
 0x280   :  { %1004 = vmatprep.subr.mxu0 %v5141_v17  ;;  %4079 = vmatprep.subr.mxu1 %v7029_v45 }
 0x281   :  { %1005 = vmatpush1.msra.mxu0 %v5144_v18  ;;  %4080 = vmatpush3.msra.mxu1 %v5242_v39 }
 0x282   :  { %1006 = vmatprep.subr.mxu0 %v7030_v19  ;;  %4081 = vmatprep.subr.mxu1 %v7029_v45 }
 0x283   :  { %1007 = vmatpush1.msra.mxu0 %v7031_v28  ;;  %4082 = vmatpush3.msra.mxu1 %v7032_v42 }
 0x284   :  { %1008 = vmatprep.subr.mxu0 %v7033_v24  ;;  %4083 = vmatprep.subr.mxu1 %v7029_v45 }
 0x285   :  { %1009 = vmatpush1.msra.mxu0 %v7044_v46  ;;  %4084 = vmatpush3.msra.mxu1 %v7045_v47 }
 0x286   :  { %1010 = vmatprep.subr.mxu0 %v7046_v48  ;;  %4085 = vmatprep.subr.mxu1 %v7029_v45 }
 0x287   :  { %1011 = vmatpush1.msra.mxu0 %v7047_v51  ;;  %1044 = vmatprep.mubr.f32.mxu0 %v7029_v45 }
 0x288   :  { %4086 = vmatpush3.msra.mxu1 %v7048_v52  ;;  %4087 = vmatprep.mubr.msk.f32.mxu1 %vm4936_vm0, %v7029_v45 }
 0x289   :  { %1148 = vmatprep.subr.mxu0 %v7049_v53  ;;  %4090 = vmatprep.subr.mxu1 %v7029_v45 }
 0x328   :  { %v878_v54 = vpop.f32.mrf.mxu0  ;;  %v949_v44 = vpop.f32.mrf.mxu1 }
 0x329   :  { %v879_v16 = vadd.f32 %v878_v54, %v7050_v4  ;;  %v950_v25 = vadd.f32 %v949_v44, %v5385_v61  ;;  %v7053_v54 = vld [vmem:[#allocation46_spill] sm:$0xff]  ;;  %v5555_v44 = vld [vmem:[#allocation6 + $0x158] sm:$0xff] }
 0x32a   :  { %v880_v5 = vpop.f32.mrf.mxu0  ;;  %v4054_v22 = vpop.f32.mrf.mxu1 }
 0x32b   :  { %v953_v0 = vadd.f32 %v879_v16, %v7051_v49  ;;  %v881_v62 = vadd.f32 %v880_v5, %v5369_v40 }
 0x32d   :  { %v3556_v50 = vmul.f32 -1.442695, %v953_v0  ;;  %v960_v43 = vadd.f32 %v881_v62, %v7052_v26  ;;  %v5551_v26 = vld [vmem:[#allocation6 + $0x168] sm:$0xff] }
 0x32f   :  { %4585 = vpow2.f32 %v3556_v50  ;;  %v3557_v10 = vmul.f32 -1.442695, %v960_v43  ;;  %v5559_v43 = vld [vmem:[#allocation6 + $0x150] sm:$0xff] }
 0x331   :  { %4587 = vpow2.f32 %v3557_v10  ;;  %v5567_v10 = vld [vmem:[#allocation6 + $0x138] sm:$0xff] }
 0x33c   :  { %v4586_v23 = vpop.eup %4585 }
 0x33d   :  { %v957_v11 = vadd.f32 1.0, %v4586_v23  ;;  %v5575_v23 = vld [vmem:[#allocation6 + $0x120] sm:$0xff] }
 0x33e   :  { %v4588_v41 = vpop.eup %4587 }
 0x33f   :  { %4589 = vrcp.f32 %v957_v11  ;;  %v964_v55 = vadd.f32 1.0, %v4588_v41  ;;  %v5664_v11 = vld [vmem:[#allocation6 + $0x130] sm:$0xff] }
 0x340   :  { %v5667_v41 = vld [vmem:[#allocation6 + $0x110] sm:$0xff] }
 0x341   :  { %4591 = vrcp.f32 %v964_v55  ;;  %v5671_v55 = vld [vmem:[#allocation6 + $0x108] sm:$0xff] }
 0x34c   :  { %v4590_v20 = vpop.eup %4589 }
 0x34d   :  { %v967_v53 = vmul.f32 %v4590_v20, %v950_v25  ;;  %v5674_v25 = vld [vmem:[#allocation6 + $0x118] sm:$0xff] }
 0x34e   :  { %v4592_v22 = vpop.eup %4591  ;;  %v5677_v20 = vld [vmem:[#allocation6 + $0xf8] sm:$0xff] }
 0x34f   :  { %v968_v16 = vadd.f32 %v967_v53, %v7053_v54  ;;  %v970_v5 = vsub.f32 1.0, %v4592_v22  ;;  %v972_v50 = vmul.f32 %v4592_v22, %v5468_v56  ;;  %v5563_v56 = vld [vmem:[#allocation6 + $0x140] sm:$0xff]  ;;  %v5681_v53 = vld [vmem:[#allocation6 + $0xf0] sm:$0xff]  ;;  %v5691_v22 = vld [vmem:[#allocation6 + $0xd8] sm:$0xff] }
 0x350   :  { %v5684_v54 = vld [vmem:[#allocation6 + $0x100] sm:$0xff] }
 0x351   :  { %4593 = vtanh.f32 %v968_v16  ;;  %v5687_v16 = vld [vmem:[#allocation6 + $0xe0] sm:$0xff] }
 0x35e   :  { %v4594_v49 = vpop.eup %4593 }
 0x35f   :  { %v971_v0 = vmul.f32 %v4594_v49, %v970_v5  ;;  %v5694_v5 = vld [vmem:[#allocation6 + $0xe8] sm:$0xff] }
 0x360   :  { %v5697_v49 = vld [vmem:[#allocation6 + $0xc8] sm:$0xff] }
 0x361   :  { %v5547_v62 = vadd.f32 %v972_v50, %v971_v0  ;;  %v5701_v0 = vld [vmem:[#allocation6 + $0xc0] sm:$0xff]  ;;  %v5704_v50 = vld [vmem:[#allocation6 + $0xd0] sm:$0xff] }
 0x363   :  { %7054 = vst [vmem:[#allocation17_spill] sm:$0xff] %v5547_v62  ;;  %1045 = vmatmul.mubr.f32.vlgmr.msra.gmra.mxu0 %v5547_v62  ;;  %4088 = vmatmul.mubr.f32.vlgmr.msra.gmra.mxu1 %v5547_v62 }
 0x364   :  { %1149 = vmatpush1.msra.mxu0 %v5551_v26  ;;  %4091 = vmatpush3.msra.mxu1 %v5153_v21  ;;  %v5571_v21 = vld [vmem:[#allocation6 + $0x128] sm:$0xff] }
 0x365   :  { %1150 = vmatprep.subr.mxu0 %v5555_v44  ;;  %4092 = vmatprep.subr.mxu1 %v7029_v45 }
 0x366   :  { %1151 = vmatpush1.msra.mxu0 %v5559_v43  ;;  %4093 = vmatpush3.msra.mxu1 %v5173_v27 }
 0x367   :  { %1152 = vmatprep.subr.mxu0 %v5563_v56  ;;  %4094 = vmatprep.subr.mxu1 %v7029_v45 }
 0x368   :  { %1153 = vmatpush1.msra.mxu0 %v5567_v10  ;;  %4095 = vmatpush3.msra.mxu1 %v5184_v29 }
 0x369   :  { %1154 = vmatprep.subr.mxu0 %v5571_v21  ;;  %4096 = vmatprep.subr.mxu1 %v7029_v45 }
 0x36a   :  { %1155 = vmatpush1.msra.mxu0 %v5575_v23  ;;  %4097 = vmatpush3.msra.mxu1 %v5190_v30  ;;  %v7057_v30 = vld [vmem:[#allocation45_spill] sm:$0xff] }
 0x36b   :  { %1156 = vmatprep.subr.mxu0 %v5067_v57  ;;  %4098 = vmatprep.subr.mxu1 %v7029_v45  ;;  %v5630_v57 = vld [vmem:[#allocation6 + $0x170] sm:$0xff] }
 0x36c   :  { %1157 = vmatpush1.msra.mxu0 %v5070_v58  ;;  %4099 = vmatpush3.msra.mxu1 %v5195_v31 }
 0x36d   :  { %1158 = vmatprep.subr.mxu0 %v5073_v59  ;;  %4100 = vmatprep.subr.mxu1 %v7029_v45 }
 0x36e   :  { %1159 = vmatpush1.msra.mxu0 %v5077_v60  ;;  %4101 = vmatpush3.msra.mxu1 %v5201_v32 }
 0x36f   :  { %1160 = vmatprep.subr.mxu0 %v5086_v63  ;;  %4102 = vmatprep.subr.mxu1 %v7029_v45 }
 0x370   :  { %1161 = vmatpush1.msra.mxu0 %v5089_v1  ;;  %4103 = vmatpush3.msra.mxu1 %v5207_v33 }
 0x371   :  { %1162 = vmatprep.subr.mxu0 %v5092_v2  ;;  %4104 = vmatprep.subr.mxu1 %v7029_v45  ;;  %v7055_v2 = vld [vmem:[#allocation32_spill] sm:$0xff] }
 0x372   :  { %1163 = vmatpush1.msra.mxu0 %v5096_v3  ;;  %4105 = vmatpush3.msra.mxu1 %v5212_v34 }
 0x373   :  { %1164 = vmatprep.subr.mxu0 %v5105_v6  ;;  %4106 = vmatprep.subr.mxu1 %v7029_v45 }
 0x374   :  { %1165 = vmatpush1.msra.mxu0 %v5108_v7  ;;  %4107 = vmatpush3.msra.mxu1 %v5218_v35 }
 0x375   :  { %1166 = vmatprep.subr.mxu0 %v5111_v8  ;;  %4108 = vmatprep.subr.mxu1 %v7029_v45  ;;  %v7056_v8 = vld [vmem:[#allocation33_spill] sm:$0xff] }
 0x376   :  { %1167 = vmatpush1.msra.mxu0 %v5115_v9  ;;  %4109 = vmatpush3.msra.mxu1 %v5224_v36 }
 0x377   :  { %1168 = vmatprep.subr.mxu0 %v5124_v12  ;;  %4110 = vmatprep.subr.mxu1 %v7029_v45 }
 0x378   :  { %1169 = vmatpush1.msra.mxu0 %v5127_v13  ;;  %4111 = vmatpush3.msra.mxu1 %v5230_v37 }
 0x379   :  { %1170 = vmatprep.subr.mxu0 %v5130_v14  ;;  %4112 = vmatprep.subr.mxu1 %v7029_v45 }
 0x37a   :  { %1171 = vmatpush1.msra.mxu0 %v5134_v15  ;;  %4113 = vmatpush3.msra.mxu1 %v5236_v38 }
 0x37b   :  { %1172 = vmatprep.subr.mxu0 %v5141_v17  ;;  %4114 = vmatprep.subr.mxu1 %v7029_v45 }
 0x37c   :  { %1173 = vmatpush1.msra.mxu0 %v5144_v18  ;;  %4115 = vmatpush3.msra.mxu1 %v5242_v39 }
 0x37d   :  { %1174 = vmatprep.subr.mxu0 %v7030_v19  ;;  %4116 = vmatprep.subr.mxu1 %v7029_v45 }
 0x37e   :  { %1175 = vmatpush1.msra.mxu0 %v7031_v28  ;;  %4117 = vmatpush3.msra.mxu1 %v7032_v42 }
 0x37f   :  { %1176 = vmatprep.subr.mxu0 %v7033_v24  ;;  %4118 = vmatprep.subr.mxu1 %v7029_v45 }
 0x380   :  { %1177 = vmatpush1.msra.mxu0 %v7044_v46  ;;  %4119 = vmatpush3.msra.mxu1 %v7045_v47  ;;  %v5646_v46 = vld [vmem:[#allocation6 + $0x178] sm:$0xff] }
 0x381   :  { %1178 = vmatprep.subr.mxu0 %v7046_v48  ;;  %4120 = vmatprep.subr.mxu1 %v7029_v45  ;;  %v5652_v48 = vld [vmem:[#allocation6 + $0x160] sm:$0xff] }
 0x382   :  { %1179 = vmatpush1.msra.mxu0 %v7047_v51  ;;  %1212 = vmatprep.mubr.f32.mxu0 %v7029_v45  ;;  %v5658_v51 = vld [vmem:[#allocation6 + $0x148] sm:$0xff] }
 0x383   :  { %4121 = vmatpush3.msra.mxu1 %v7048_v52  ;;  %4122 = vmatprep.mubr.msk.f32.mxu1 %vm4936_vm0, %v7029_v45 }
 0x384   :  { %1316 = vmatprep.subr.mxu0 %v5630_v57  ;;  %4125 = vmatprep.subr.mxu1 %v7029_v45 }
 0x423   :  { %v1046_v58 = vpop.f32.mrf.mxu0  ;;  %v1117_v59 = vpop.f32.mrf.mxu1 }
 0x424   :  { %v1047_v60 = vadd.f32 %v1046_v58, %v7050_v4  ;;  %v1118_v18 = vadd.f32 %v1117_v59, %v5385_v61  ;;  %v5707_v58 = vld [vmem:[#allocation6 + $0xb0] sm:$0xff]  ;;  %v5711_v59 = vld [vmem:[#allocation6 + $0xa8] sm:$0xff] }
 0x425   :  { %v1048_v63 = vpop.f32.mrf.mxu0  ;;  %v4089_v1 = vpop.f32.mrf.mxu1 }
 0x426   :  { %v1121_v3 = vadd.f32 %v1047_v60, %v7055_v2  ;;  %v1049_v7 = vadd.f32 %v1048_v63, %v5369_v40  ;;  %v5715_v60 = vld [vmem:[#allocation6 + $0x98] sm:$0xff]  ;;  %v5719_v63 = vld [vmem:[#allocation6 + $0x90] sm:$0xff]  ;;  %v5723_v1 = vld [vmem:[#allocation6 + $0x80] sm:$0xff] }
 0x427   :  { %v5727_v2 = vld [vmem:[#allocation6 + $0x78] sm:$0xff] }
 0x428   :  { %v3558_v6 = vmul.f32 -1.442695, %v1121_v3  ;;  %v1128_v9 = vadd.f32 %v1049_v7, %v7056_v8  ;;  %v5735_v3 = vld [vmem:[#allocation6 + $0x60] sm:$0xff]  ;;  %v5751_v7 = vld [vmem:[#allocation6 + $0x30] sm:$0xff]  ;;  %v5759_v8 = vld [vmem:[#allocation6 + $0x18] sm:$0xff] }
 0x429   :  { %7059 = vst [vmem:[#allocation23_spill] sm:$0xff] %v5759_v8 }
 0x42a   :  { %4595 = vpow2.f32 %v3558_v6  ;;  %v3559_v12 = vmul.f32 -1.442695, %v1128_v9  ;;  %v5743_v6 = vld [vmem:[#allocation6 + $0x48] sm:$0xff]  ;;  %v5767_v9 = vld [vmem:[#allocation6] sm:$0xff] }
 0x42b   :  { %7061 = vst [vmem:[#allocation28_spill] sm:$0xff] %v5767_v9 }
 0x42c   :  { %4597 = vpow2.f32 %v3559_v12 }
 0x437   :  { %v4596_v13 = vpop.eup %4595 }
 0x438   :  { %v1125_v14 = vadd.f32 1.0, %v4596_v13 }
 0x439   :  { %v4598_v15 = vpop.eup %4597 }
 0x43a   :  { %4599 = vrcp.f32 %v1125_v14  ;;  %v1132_v17 = vadd.f32 1.0, %v4598_v15  ;;  %v7062_v15 = vld [vmem:[#allocation34_spill] sm:$0xff] }
 0x43c   :  { %4601 = vrcp.f32 %v1132_v17 }
 0x447   :  { %v4600_v27 = vpop.eup %4599 }
 0x448   :  { %v1135_v29 = vmul.f32 %v4600_v27, %v1118_v18 }
 0x449   :  { %v4602_v32 = vpop.eup %4601 }
 0x44a   :  { %v1136_v31 = vadd.f32 %v1135_v29, %v7057_v30  ;;  %v1138_v33 = vsub.f32 1.0, %v4602_v32  ;;  %v1140_v28 = vmul.f32 %v4602_v32, %v5547_v62 }
 0x44c   :  { %4603 = vtanh.f32 %v1136_v31 }
 0x459   :  { %v4604_v34 = vpop.eup %4603 }
 0x45a   :  { %v1139_v19 = vmul.f32 %v4604_v34, %v1138_v33 }
 0x45c   :  { %v5641_v24 = vadd.f32 %v1140_v28, %v1139_v19 }
 0x45e   :  { %7058 = vst [vmem:[#allocation18_spill] sm:$0xff] %v5641_v24  ;;  %1213 = vmatmul.mubr.f32.vlgmr.msra.gmra.mxu0 %v5641_v24  ;;  %4123 = vmatmul.mubr.f32.vlgmr.msra.gmra.mxu1 %v5641_v24 }
 0x45f   :  { %1317 = vmatpush1.msra.mxu0 %v5551_v26  ;;  %4126 = vmatpush3.msra.mxu1 %v5646_v46 }
 0x460   :  { %1318 = vmatprep.subr.mxu0 %v5555_v44  ;;  %4127 = vmatprep.subr.mxu1 %v7029_v45 }
 0x461   :  { %1319 = vmatpush1.msra.mxu0 %v5559_v43  ;;  %4128 = vmatpush3.msra.mxu1 %v5652_v48 }
 0x462   :  { %1320 = vmatprep.subr.mxu0 %v5563_v56  ;;  %4129 = vmatprep.subr.mxu1 %v7029_v45 }
 0x463   :  { %1321 = vmatpush1.msra.mxu0 %v5567_v10  ;;  %4130 = vmatpush3.msra.mxu1 %v5658_v51 }
 0x464   :  { %1322 = vmatprep.subr.mxu0 %v5571_v21  ;;  %4131 = vmatprep.subr.mxu1 %v7029_v45 }
 0x465   :  { %1323 = vmatpush1.msra.mxu0 %v5575_v23  ;;  %4132 = vmatpush3.msra.mxu1 %v5664_v11 }
 0x466   :  { %1324 = vmatprep.subr.mxu0 %v5667_v41  ;;  %4133 = vmatprep.subr.mxu1 %v7029_v45 }
 0x467   :  { %1325 = vmatpush1.msra.mxu0 %v5671_v55  ;;  %4134 = vmatpush3.msra.mxu1 %v5674_v25 }
 0x468   :  { %1326 = vmatprep.subr.mxu0 %v5677_v20  ;;  %4135 = vmatprep.subr.mxu1 %v7029_v45 }
 0x469   :  { %1327 = vmatpush1.msra.mxu0 %v5681_v53  ;;  %4136 = vmatpush3.msra.mxu1 %v5684_v54 }
 0x46a   :  { %1328 = vmatprep.subr.mxu0 %v5687_v16  ;;  %4137 = vmatprep.subr.mxu1 %v7029_v45 }
 0x46b   :  { %1329 = vmatpush1.msra.mxu0 %v5691_v22  ;;  %4138 = vmatpush3.msra.mxu1 %v5694_v5 }
 0x46c   :  { %1330 = vmatprep.subr.mxu0 %v5697_v49  ;;  %4139 = vmatprep.subr.mxu1 %v7029_v45 }
 0x46d   :  { %1331 = vmatpush1.msra.mxu0 %v5701_v0  ;;  %4140 = vmatpush3.msra.mxu1 %v5704_v50 }
 0x46e   :  { %1332 = vmatprep.subr.mxu0 %v5707_v58  ;;  %4141 = vmatprep.subr.mxu1 %v7029_v45 }
 0x46f   :  { %1333 = vmatpush1.msra.mxu0 %v5711_v59  ;;  %4142 = vmatpush3.msra.mxu1 %v5218_v35  ;;  %v5731_v35 = vld [vmem:[#allocation6 + $0x68] sm:$0xff] }
 0x470   :  { %1334 = vmatprep.subr.mxu0 %v5715_v60  ;;  %4143 = vmatprep.subr.mxu1 %v7029_v45 }
 0x471   :  { %1335 = vmatpush1.msra.mxu0 %v5719_v63  ;;  %4144 = vmatpush3.msra.mxu1 %v5224_v36  ;;  %v5739_v36 = vld [vmem:[#allocation6 + $0x50] sm:$0xff] }
 0x472   :  { %1336 = vmatprep.subr.mxu0 %v5723_v1  ;;  %4145 = vmatprep.subr.mxu1 %v7029_v45 }
 0x473   :  { %1337 = vmatpush1.msra.mxu0 %v5727_v2  ;;  %4146 = vmatpush3.msra.mxu1 %v5230_v37  ;;  %v5747_v37 = vld [vmem:[#allocation6 + $0x38] sm:$0xff] }
 0x474   :  { %1338 = vmatprep.subr.mxu0 %v5731_v35  ;;  %4147 = vmatprep.subr.mxu1 %v7029_v45 }
 0x475   :  { %1339 = vmatpush1.msra.mxu0 %v5735_v3  ;;  %4148 = vmatpush3.msra.mxu1 %v5236_v38  ;;  %v5755_v38 = vld [vmem:[#allocation6 + $0x20] sm:$0xff] }
 0x476   :  { %1340 = vmatprep.subr.mxu0 %v5739_v36  ;;  %4149 = vmatprep.subr.mxu1 %v7029_v45 }
 0x477   :  { %1341 = vmatpush1.msra.mxu0 %v5743_v6  ;;  %4150 = vmatpush3.msra.mxu1 %v5242_v39  ;;  %v5763_v39 = vld [vmem:[#allocation6 + $0x8] sm:$0xff] }
 0x478   :  { %1342 = vmatprep.subr.mxu0 %v5747_v37  ;;  %4151 = vmatprep.subr.mxu1 %v7029_v45  ;;  %7060 = vst [vmem:[#allocation19_spill] sm:$0xff] %v5763_v39 }
 0x479   :  { %1343 = vmatpush1.msra.mxu0 %v5751_v7  ;;  %4152 = vmatpush3.msra.mxu1 %v7032_v42 }
 0x47a   :  { %1344 = vmatprep.subr.mxu0 %v5755_v38  ;;  %4153 = vmatprep.subr.mxu1 %v7029_v45 }
 0x47b   :  { %1345 = vmatpush1.msra.mxu0 %v5759_v8  ;;  %4154 = vmatpush3.msra.mxu1 %v7045_v47 }
 0x47c   :  { %1346 = vmatprep.subr.mxu0 %v5763_v39  ;;  %4155 = vmatprep.subr.mxu1 %v7029_v45 }
 0x47d   :  { %1347 = vmatpush1.msra.mxu0 %v5767_v9  ;;  %1380 = vmatprep.mubr.f32.mxu0 %v7029_v45 }
 0x47e   :  { %4156 = vmatpush3.msra.mxu1 %v7048_v52  ;;  %4157 = vmatprep.mubr.msk.f32.mxu1 %vm4936_vm0, %v7029_v45  ;;  %v7063_v52 = vld [vmem:[#allocation35_spill] sm:$0xff] }
 0x47f   :  { %1484 = vmatprep.subr.mxu0 %v5630_v57  ;;  %4160 = vmatprep.subr.mxu1 %v7029_v45 }
 0x51e   :  { %v1214_v42 = vpop.f32.mrf.mxu0  ;;  %v1285_v47 = vpop.f32.mrf.mxu1 }
 0x51f   :  { %v1215_v12 = vadd.f32 %v1214_v42, %v7050_v4  ;;  %v1286_v19 = vadd.f32 %v1285_v47, %v5385_v61  ;;  %v5820_v47 = vld [vmem:[#allocation6 + $0xb8] sm:$0xff] }
 0x520   :  { %v1216_v13 = vpop.f32.mrf.mxu0  ;;  %v4124_v14 = vpop.f32.mrf.mxu1 }
 0x521   :  { %v1289_v17 = vadd.f32 %v1215_v12, %v7062_v15  ;;  %v1217_v27 = vadd.f32 %v1216_v13, %v5369_v40  ;;  %v7064_v14 = vld [vmem:[#allocation48_spill] sm:$0xff] }
 0x523   :  { %v3560_v18 = vmul.f32 -1.442695, %v1289_v17  ;;  %v1296_v29 = vadd.f32 %v1217_v27, %v7063_v52 }
 0x525   :  { %4605 = vpow2.f32 %v3560_v18  ;;  %v3561_v30 = vmul.f32 -1.442695, %v1296_v29  ;;  %v5826_v29 = vld [vmem:[#allocation6 + $0xa0] sm:$0xff] }
 0x527   :  { %4607 = vpow2.f32 %v3561_v30  ;;  %v5832_v30 = vld [vmem:[#allocation6 + $0x88] sm:$0xff] }
 0x532   :  { %v4606_v31 = vpop.eup %4605 }
 0x533   :  { %v1293_v32 = vadd.f32 1.0, %v4606_v31  ;;  %v5838_v31 = vld [vmem:[#allocation6 + $0x70] sm:$0xff] }
 0x534   :  { %v4608_v33 = vpop.eup %4607 }
 0x535   :  { %4609 = vrcp.f32 %v1293_v32  ;;  %v1300_v34 = vadd.f32 1.0, %v4608_v33  ;;  %v5844_v32 = vld [vmem:[#allocation6 + $0x58] sm:$0xff]  ;;  %v5850_v33 = vld [vmem:[#allocation6 + $0x40] sm:$0xff] }
 0x537   :  { %4611 = vrcp.f32 %v1300_v34  ;;  %v5856_v34 = vld [vmem:[#allocation6 + $0x28] sm:$0xff] }
 0x538   :  { %7065 = vst [vmem:[#allocation29_spill] sm:$0xff] %v5856_v34 }
 0x542   :  { %v4610_v28 = vpop.eup %4609 }
 0x543   :  { %v1303_v42 = vmul.f32 %v4610_v28, %v1286_v19  ;;  %v5863_v19 = vld [vmem:[#allocation6 + $0x10] sm:$0xff] }
 0x544   :  { %v4612_v15 = vpop.eup %4611  ;;  %7066 = vst [vmem:[#allocation41_spill] sm:$0xff] %v5863_v19 }
 0x545   :  { %v1304_v12 = vadd.f32 %v1303_v42, %v7064_v14  ;;  %v1306_v13 = vsub.f32 1.0, %v4612_v15  ;;  %v1308_v27 = vmul.f32 %v4612_v15, %v5641_v24  ;;  %v7068_v24 = vld [vmem:[#allocation38_spill] sm:$0xff] }
 0x547   :  { %4613 = vtanh.f32 %v1304_v12 }
 0x554   :  { %v4614_v17 = vpop.eup %4613 }
 0x555   :  { %v1307_v18 = vmul.f32 %v4614_v17, %v1306_v13  ;;  %v7067_v13 = vld [vmem:[#allocation37_spill] sm:$0xff] }
 0x557   :  { %v5783_v52 = vadd.f32 %v1308_v27, %v1307_v18 }
 0x559   :  { %1381 = vmatmul.mubr.f32.vlgmr.msra.gmra.mxu0 %v5783_v52  ;;  %4158 = vmatmul.mubr.f32.vlgmr.msra.gmra.mxu1 %v5783_v52 }
 0x55a   :  { %1485 = vmatpush1.msra.mxu0 %v5551_v26  ;;  %4161 = vmatpush3.msra.mxu1 %v5646_v46 }
 0x55b   :  { %1486 = vmatprep.subr.mxu0 %v5555_v44  ;;  %4162 = vmatprep.subr.mxu1 %v7029_v45 }
 0x55c   :  { %1487 = vmatpush1.msra.mxu0 %v5559_v43  ;;  %4163 = vmatpush3.msra.mxu1 %v5652_v48 }
 0x55d   :  { %1488 = vmatprep.subr.mxu0 %v5563_v56  ;;  %4164 = vmatprep.subr.mxu1 %v7029_v45 }
 0x55e   :  { %1489 = vmatpush1.msra.mxu0 %v5567_v10  ;;  %4165 = vmatpush3.msra.mxu1 %v5658_v51 }
 0x55f   :  { %1490 = vmatprep.subr.mxu0 %v5571_v21  ;;  %4166 = vmatprep.subr.mxu1 %v7029_v45 }
 0x560   :  { %1491 = vmatpush1.msra.mxu0 %v5575_v23  ;;  %4167 = vmatpush3.msra.mxu1 %v5664_v11 }
 0x561   :  { %1492 = vmatprep.subr.mxu0 %v5667_v41  ;;  %4168 = vmatprep.subr.mxu1 %v7029_v45 }
 0x562   :  { %1493 = vmatpush1.msra.mxu0 %v5671_v55  ;;  %4169 = vmatpush3.msra.mxu1 %v5674_v25 }
 0x563   :  { %1494 = vmatprep.subr.mxu0 %v5677_v20  ;;  %4170 = vmatprep.subr.mxu1 %v7029_v45 }
 0x564   :  { %1495 = vmatpush1.msra.mxu0 %v5681_v53  ;;  %4171 = vmatpush3.msra.mxu1 %v5684_v54 }
 0x565   :  { %1496 = vmatprep.subr.mxu0 %v5687_v16  ;;  %4172 = vmatprep.subr.mxu1 %v7029_v45 }
 0x566   :  { %1497 = vmatpush1.msra.mxu0 %v5691_v22  ;;  %4173 = vmatpush3.msra.mxu1 %v5694_v5 }
 0x567   :  { %1498 = vmatprep.subr.mxu0 %v5697_v49  ;;  %4174 = vmatprep.subr.mxu1 %v7029_v45 }
 0x568   :  { %1499 = vmatpush1.msra.mxu0 %v5701_v0  ;;  %4175 = vmatpush3.msra.mxu1 %v5704_v50 }
 0x569   :  { %1500 = vmatprep.subr.mxu0 %v5707_v58  ;;  %4176 = vmatprep.subr.mxu1 %v7029_v45 }
 0x56a   :  { %1501 = vmatpush1.msra.mxu0 %v5711_v59  ;;  %4177 = vmatpush3.msra.mxu1 %v5820_v47 }
 0x56b   :  { %1502 = vmatprep.subr.mxu0 %v5715_v60  ;;  %4178 = vmatprep.subr.mxu1 %v7029_v45 }
 0x56c   :  { %1503 = vmatpush1.msra.mxu0 %v5719_v63  ;;  %4179 = vmatpush3.msra.mxu1 %v5826_v29 }
 0x56d   :  { %1504 = vmatprep.subr.mxu0 %v5723_v1  ;;  %4180 = vmatprep.subr.mxu1 %v7029_v45 }
 0x56e   :  { %1505 = vmatpush1.msra.mxu0 %v5727_v2  ;;  %4181 = vmatpush3.msra.mxu1 %v5832_v30 }
 0x56f   :  { %1506 = vmatprep.subr.mxu0 %v5731_v35  ;;  %4182 = vmatprep.subr.mxu1 %v7029_v45 }
 0x570   :  { %1507 = vmatpush1.msra.mxu0 %v5735_v3  ;;  %4183 = vmatpush3.msra.mxu1 %v5838_v31 }
 0x571   :  { %1508 = vmatprep.subr.mxu0 %v5739_v36  ;;  %4184 = vmatprep.subr.mxu1 %v7029_v45 }
 0x572   :  { %1509 = vmatpush1.msra.mxu0 %v5743_v6  ;;  %4185 = vmatpush3.msra.mxu1 %v5844_v32 }
 0x573   :  { %1510 = vmatprep.subr.mxu0 %v5747_v37  ;;  %4186 = vmatprep.subr.mxu1 %v7029_v45 }
 0x574   :  { %1511 = vmatpush1.msra.mxu0 %v5751_v7  ;;  %4187 = vmatpush3.msra.mxu1 %v5850_v33 }
 0x575   :  { %1512 = vmatprep.subr.mxu0 %v5755_v38  ;;  %4188 = vmatprep.subr.mxu1 %v7029_v45 }
 0x576   :  { %1513 = vmatpush1.msra.mxu0 %v5759_v8  ;;  %4189 = vmatpush3.msra.mxu1 %v5856_v34 }
 0x577   :  { %1514 = vmatprep.subr.mxu0 %v5763_v39  ;;  %4190 = vmatprep.subr.mxu1 %v7029_v45 }
 0x578   :  { %1515 = vmatpush1.msra.mxu0 %v5767_v9  ;;  %1548 = vmatprep.mubr.f32.mxu0 %v7029_v45 }
 0x579   :  { %4191 = vmatpush3.msra.mxu1 %v5863_v19  ;;  %4192 = vmatprep.mubr.msk.f32.mxu1 %vm4936_vm0, %v7029_v45 }
 0x57a   :  { %1652 = vmatprep.subr.mxu0 %v5630_v57  ;;  %4195 = vmatprep.subr.mxu1 %v7029_v45 }
 0x619   :  { %v1382_v28 = vpop.f32.mrf.mxu0  ;;  %v1453_v42 = vpop.f32.mrf.mxu1 }
 0x61a   :  { %v1383_v14 = vadd.f32 %v1382_v28, %v7050_v4  ;;  %v1454_v8 = vadd.f32 %v1453_v42, %v5385_v61  ;;  %v1858_v42 = vld [vmem:[#allocation8 + $0x108] sm:$0xff] }
 0x61b   :  { %v1384_v12 = vpop.f32.mrf.mxu0  ;;  %v4159_v15 = vpop.f32.mrf.mxu1 }
 0x61c   :  { %v1457_v17 = vadd.f32 %v1383_v14, %v7067_v13  ;;  %v1385_v27 = vadd.f32 %v1384_v12, %v5369_v40  ;;  %v7069_v15 = vld [vmem:[#allocation47_spill] sm:$0xff] }
 0x61e   :  { %v3562_v18 = vmul.f32 -1.442695, %v1457_v17  ;;  %v1464_v62 = vadd.f32 %v1385_v27, %v7068_v24  ;;  %v1856_v27 = vld [vmem:[#allocation8 + $0xf8] sm:$0xff] }
 0x620   :  { %4615 = vpow2.f32 %v3562_v18  ;;  %v3563_v19 = vmul.f32 -1.442695, %v1464_v62 }
 0x622   :  { %4617 = vpow2.f32 %v3563_v19  ;;  %v1860_v19 = vld [vmem:[#allocation8 + $0x118] sm:$0xff] }
 0x62d   :  { %v4616_v9 = vpop.eup %4615 }
 0x62e   :  { %v1461_v57 = vadd.f32 1.0, %v4616_v9  ;;  %v1865_v9 = vld [vmem:[#allocation8 + $0x140] sm:$0xff] }
 0x62f   :  { %v4618_v39 = vpop.eup %4617 }
 0x630   :  { %4619 = vrcp.f32 %v1461_v57  ;;  %v1468_v34 = vadd.f32 1.0, %v4618_v39  ;;  %v1867_v39 = vld [vmem:[#allocation8 + $0x150] sm:$0xff]  ;;  %v1857_v57 = vld [vmem:[#allocation8 + $0x100] sm:$0xff] }
 0x632   :  { %4621 = vrcp.f32 %v1468_v34  ;;  %v1859_v34 = vld [vmem:[#allocation8 + $0x110] sm:$0xff] }
 0x63d   :  { %v4620_v28 = vpop.eup %4619 }
 0x63e   :  { %v1471_v4 = vmul.f32 %v4620_v28, %v1454_v8  ;;  %v1869_v8 = vld [vmem:[#allocation8 + $0x160] sm:$0xff]  ;;  %v1855_v28 = vld [vmem:[#allocation8 + $0xf0] sm:$0xff] }
 0x63f   :  { %v4622_v13 = vpop.eup %4621 }
 0x640   :  { %v1472_v14 = vadd.f32 %v1471_v4, %v7069_v15  ;;  %v1474_v12 = vsub.f32 1.0, %v4622_v13  ;;  %v1476_v62 = vmul.f32 %v4622_v13, %v5783_v52  ;;  %v7070_v4 = vld [vmem:[#allocation23_spill] sm:$0xff]  ;;  %v1853_v15 = vld [vmem:[#allocation8 + $0xe0] sm:$0xff] }
 0x641   :  { %v1852_v13 = vld [vmem:[#allocation8 + $0xd8] sm:$0xff] }
 0x642   :  { %4623 = vtanh.f32 %v1472_v14  ;;  %v1854_v14 = vld [vmem:[#allocation8 + $0xe8] sm:$0xff] }
 0x64f   :  { %v4624_v17 = vpop.eup %4623 }
 0x650   :  { %v1475_v18 = vmul.f32 %v4624_v17, %v1474_v12  ;;  %v1850_v12 = vld [vmem:[#allocation8 + $0xc8] sm:$0xff]  ;;  %v1851_v17 = vld [vmem:[#allocation8 + $0xd0] sm:$0xff] }
 0x652   :  { %v5877_v24 = vadd.f32 %v1476_v62, %v1475_v18  ;;  %v1849_v18 = vld [vmem:[#allocation8 + $0xc0] sm:$0xff]  ;;  %v1847_v62 = vld [vmem:[#allocation8 + $0xb0] sm:$0xff] }
 0x654   :  { %1549 = vmatmul.mubr.f32.vlgmr.msra.gmra.mxu0 %v5877_v24  ;;  %4193 = vmatmul.mubr.f32.vlgmr.msra.gmra.mxu1 %v5877_v24 }
 0x655   :  { %1653 = vmatpush1.msra.mxu0 %v5551_v26  ;;  %4196 = vmatpush3.msra.mxu1 %v5646_v46  ;;  %v7071_v26 = vld [vmem:[#allocation29_spill] sm:$0xff] }
 0x656   :  { %1654 = vmatprep.subr.mxu0 %v5555_v44  ;;  %4197 = vmatprep.subr.mxu1 %v7029_v45  ;;  %v7072_v44 = vld [vmem:[#allocation19_spill] sm:$0xff] }
 0x657   :  { %1655 = vmatpush1.msra.mxu0 %v5559_v43  ;;  %4198 = vmatpush3.msra.mxu1 %v5652_v48  ;;  %v7073_v43 = vld [vmem:[#allocation28_spill] sm:$0xff]  ;;  %v7075_v48 = vld [vmem:[#allocation43_spill] sm:$0xff] }
 0x658   :  { %1656 = vmatprep.subr.mxu0 %v5563_v56  ;;  %4199 = vmatprep.subr.mxu1 %v7029_v45  ;;  %v7074_v56 = vld [vmem:[#allocation41_spill] sm:$0xff] }
 0x659   :  { %1657 = vmatpush1.msra.mxu0 %v5567_v10  ;;  %4200 = vmatpush3.msra.mxu1 %v5658_v51  ;;  %v1871_v10 = vld [vmem:[#allocation8 + $0x170] sm:$0xff] }
 0x65a   :  { %1658 = vmatprep.subr.mxu0 %v5571_v21  ;;  %4201 = vmatprep.subr.mxu1 %v7029_v45  ;;  %v1872_v21 = vld [vmem:[#allocation8 + $0x178] sm:$0xff] }
 0x65b   :  { %1659 = vmatpush1.msra.mxu0 %v5575_v23  ;;  %4202 = vmatpush3.msra.mxu1 %v5664_v11 }
 0x65c   :  { %1660 = vmatprep.subr.mxu0 %v5667_v41  ;;  %4203 = vmatprep.subr.mxu1 %v7029_v45 }
 0x65d   :  { %1661 = vmatpush1.msra.mxu0 %v5671_v55  ;;  %4204 = vmatpush3.msra.mxu1 %v5674_v25  ;;  %v7076_v55 = vld [vmem:[#allocation39_spill] sm:$0xff] }
 0x65e   :  { %1662 = vmatprep.subr.mxu0 %v5677_v20  ;;  %4205 = vmatprep.subr.mxu1 %v7029_v45 }
 0x65f   :  { %1663 = vmatpush1.msra.mxu0 %v5681_v53  ;;  %4206 = vmatpush3.msra.mxu1 %v5684_v54  ;;  %v7077_v54 = vld [vmem:[#allocation40_spill] sm:$0xff] }
 0x660   :  { %1664 = vmatprep.subr.mxu0 %v5687_v16  ;;  %4207 = vmatprep.subr.mxu1 %v7029_v45 }
 0x661   :  { %1665 = vmatpush1.msra.mxu0 %v5691_v22  ;;  %4208 = vmatpush3.msra.mxu1 %v5694_v5 }
 0x662   :  { %1666 = vmatprep.subr.mxu0 %v5697_v49  ;;  %4209 = vmatprep.subr.mxu1 %v7029_v45 }
 0x663   :  { %1667 = vmatpush1.msra.mxu0 %v5701_v0  ;;  %4210 = vmatpush3.msra.mxu1 %v5704_v50 }
 0x664   :  { %1668 = vmatprep.subr.mxu0 %v5707_v58  ;;  %4211 = vmatprep.subr.mxu1 %v7029_v45 }
 0x665   :  { %1669 = vmatpush1.msra.mxu0 %v5711_v59  ;;  %4212 = vmatpush3.msra.mxu1 %v5820_v47  ;;  %v5957_v47 = vld [vmem:[#allocation11] sm:$0xff] }
 0x666   :  { %1670 = vmatprep.subr.mxu0 %v5715_v60  ;;  %4213 = vmatprep.subr.mxu1 %v7029_v45 }
 0x667   :  { %1671 = vmatpush1.msra.mxu0 %v5719_v63  ;;  %4214 = vmatpush3.msra.mxu1 %v5826_v29  ;;  %v7078_v63 = vld [vmem:[#allocation50_spill] sm:$0xff]  ;;  %v1866_v29 = vld [vmem:[#allocation8 + $0x148] sm:$0xff] }
 0x668   :  { %1672 = vmatprep.subr.mxu0 %v5723_v1  ;;  %4215 = vmatprep.subr.mxu1 %v7029_v45 }
 0x669   :  { %1673 = vmatpush1.msra.mxu0 %v5727_v2  ;;  %4216 = vmatpush3.msra.mxu1 %v5832_v30  ;;  %v1864_v30 = vld [vmem:[#allocation8 + $0x138] sm:$0xff] }
 0x66a   :  { %1674 = vmatprep.subr.mxu0 %v5731_v35  ;;  %4217 = vmatprep.subr.mxu1 %v7029_v45 }
 0x66b   :  { %1675 = vmatpush1.msra.mxu0 %v5735_v3  ;;  %4218 = vmatpush3.msra.mxu1 %v5838_v31  ;;  %v1862_v31 = vld [vmem:[#allocation8 + $0x128] sm:$0xff] }
 0x66c   :  { %1676 = vmatprep.subr.mxu0 %v5739_v36  ;;  %4219 = vmatprep.subr.mxu1 %v7029_v45 }
 0x66d   :  { %1677 = vmatpush1.msra.mxu0 %v5743_v6  ;;  %4220 = vmatpush3.msra.mxu1 %v5844_v32  ;;  %v1863_v32 = vld [vmem:[#allocation8 + $0x130] sm:$0xff] }
 0x66e   :  { %1678 = vmatprep.subr.mxu0 %v5747_v37  ;;  %4221 = vmatprep.subr.mxu1 %v7029_v45 }
 0x66f   :  { %1679 = vmatpush1.msra.mxu0 %v5751_v7  ;;  %4222 = vmatpush3.msra.mxu1 %v5850_v33  ;;  %v1870_v7 = vld [vmem:[#allocation8 + $0x168] sm:$0xff]  ;;  %v1861_v33 = vld [vmem:[#allocation8 + $0x120] sm:$0xff] }
 0x670   :  { %1680 = vmatprep.subr.mxu0 %v5755_v38  ;;  %4223 = vmatprep.subr.mxu1 %v7029_v45  ;;  %v1868_v38 = vld [vmem:[#allocation8 + $0x158] sm:$0xff] }
 0x671   :  { %1681 = vmatpush1.msra.mxu0 %v7070_v4  ;;  %4224 = vmatpush3.msra.mxu1 %v7071_v26  ;;  %v1848_v4 = vld [vmem:[#allocation8 + $0xb8] sm:$0xff]  ;;  %v1846_v26 = vld [vmem:[#allocation8 + $0xa8] sm:$0xff] }
 0x672   :  { %1682 = vmatprep.subr.mxu0 %v7072_v44  ;;  %4225 = vmatprep.subr.mxu1 %v7029_v45  ;;  %v1844_v44 = vld [vmem:[#allocation8 + $0x98] sm:$0xff] }
 0x673   :  { %1683 = vmatpush1.msra.mxu0 %v7073_v43  ;;  %4226 = vmatpush3.msra.mxu1 %v7074_v56  ;;  %v1845_v43 = vld [vmem:[#allocation8 + $0xa0] sm:$0xff]  ;;  %v1843_v56 = vld [vmem:[#allocation8 + $0x90] sm:$0xff] }
 0x674   :  { %1716 = vmatprep.mubr.f32.mxu0 %v7029_v45  ;;  %4227 = vmatprep.mubr.msk.f32.mxu1 %vm4936_vm0, %v7029_v45 }
 0x675   :  { %1890 = vmatprep.subr.mxu0 %v1871_v10  ;;  %4230 = vmatprep.subr.mxu1 %v1872_v21  ;;  %v1841_v10 = vld [vmem:[#allocation8 + $0x80] sm:$0xff] }
 0x714   :  { %v1550_v23 = vpop.f32.mrf.mxu0  ;;  %v1621_v46 = vpop.f32.mrf.mxu1 }
 0x715   :  { %v1551_v51 = vadd.f32 %v1550_v23, %v7075_v48  ;;  %v1622_v58 = vadd.f32 %v1621_v46, %v5385_v61  ;;  %v1840_v23 = vld [vmem:[#allocation8 + $0x78] sm:$0xff]  ;;  %v1838_v46 = vld [vmem:[#allocation8 + $0x68] sm:$0xff] }
 0x716   :  { %v1552_v11 = vpop.f32.mrf.mxu0  ;;  %v4194_v41 = vpop.f32.mrf.mxu1 }
 0x717   :  { %v1625_v25 = vadd.f32 %v1551_v51, %v7076_v55  ;;  %v1553_v53 = vadd.f32 %v1552_v11, %v5369_v40  ;;  %v1839_v51 = vld [vmem:[#allocation8 + $0x70] sm:$0xff]  ;;  %v1837_v11 = vld [vmem:[#allocation8 + $0x60] sm:$0xff]  ;;  %v1836_v55 = vld [vmem:[#allocation8 + $0x58] sm:$0xff] }
 0x718   :  { %v1835_v41 = vld [vmem:[#allocation8 + $0x50] sm:$0xff] }
 0x719   :  { %v3564_v20 = vmul.f32 -1.442695, %v1625_v25  ;;  %v1632_v16 = vadd.f32 %v1553_v53, %v7077_v54  ;;  %v1834_v25 = vld [vmem:[#allocation8 + $0x48] sm:$0xff]  ;;  %v1833_v53 = vld [vmem:[#allocation8 + $0x40] sm:$0xff]  ;;  %v1831_v54 = vld [vmem:[#allocation8 + $0x30] sm:$0xff] }
 0x71b   :  { %4625 = vpow2.f32 %v3564_v20  ;;  %v3565_v22 = vmul.f32 -1.442695, %v1632_v16  ;;  %v1832_v20 = vld [vmem:[#allocation8 + $0x38] sm:$0xff]  ;;  %v1829_v16 = vld [vmem:[#allocation8 + $0x20] sm:$0xff] }
 0x71d   :  { %4627 = vpow2.f32 %v3565_v22  ;;  %v1830_v22 = vld [vmem:[#allocation8 + $0x28] sm:$0xff] }
 0x728   :  { %v4626_v5 = vpop.eup %4625 }
 0x729   :  { %v1629_v49 = vadd.f32 1.0, %v4626_v5  ;;  %v1828_v5 = vld [vmem:[#allocation8 + $0x18] sm:$0xff] }
 0x72a   :  { %v4628_v0 = vpop.eup %4627 }
 0x72b   :  { %4629 = vrcp.f32 %v1629_v49  ;;  %v1636_v50 = vadd.f32 1.0, %v4628_v0  ;;  %v1826_v49 = vld [vmem:[#allocation8 + $0x8] sm:$0xff]  ;;  %v1827_v0 = vld [vmem:[#allocation8 + $0x10] sm:$0xff] }
 0x72d   :  { %4631 = vrcp.f32 %v1636_v50  ;;  %v1825_v50 = vld [vmem:[#allocation8] sm:$0xff] }
 0x738   :  { %v4630_v59 = vpop.eup %4629 }
 0x739   :  { %v1639_v60 = vmul.f32 %v4630_v59, %v1622_v58  ;;  %v1818_v58 = vld [vmem:[#allocation11 + $0x8] sm:$0xff] }
 0x73a   :  { %v4632_v2 = vpop.eup %4631  ;;  %v7079_v59 = vld [vmem:[#allocation17_spill] sm:$0xff] }
 0x73b   :  { %v1640_v1 = vadd.f32 %v1639_v60, %v7078_v63  ;;  %v1642_v35 = vsub.f32 1.0, %v4632_v2  ;;  %v1644_v6 = vmul.f32 %v4632_v2, %v5877_v24  ;;  %v7080_v60 = vld [vmem:[#allocation18_spill] sm:$0xff]  ;;  %v5986_v2 = vld [vmem:[#allocation9 + $0x158] sm:$0xff] }
 0x73c   :  { %v5980_v63 = vld [vmem:[#allocation9 + $0x170] sm:$0xff] }
 0x73d   :  { %4633 = vtanh.f32 %v1640_v1  ;;  %7081 = vst [vmem:[#allocation20_spill] sm:$0xff] %v5980_v63  ;;  %v5983_v1 = vld [vmem:[#allocation9 + $0x168] sm:$0xff] }
 0x74a   :  { %v4634_v3 = vpop.eup %4633 }
 0x74b   :  { %v1643_v36 = vmul.f32 %v4634_v3, %v1642_v35  ;;  %v5995_v35 = vld [vmem:[#allocation9 + $0x138] sm:$0xff]  ;;  %v5998_v3 = vld [vmem:[#allocation9 + $0x128] sm:$0xff] }
 0x74d   :  { %v5953_v37 = vadd.f32 %v1644_v6, %v1643_v36  ;;  %v6001_v36 = vld [vmem:[#allocation9 + $0x120] sm:$0xff]  ;;  %v6004_v6 = vld [vmem:[#allocation9 + $0x110] sm:$0xff] }
 0x74f   :  { %1717 = vmatmul.mubr.f32.vlgmr.msra.gmra.mxu0 %v5953_v37  ;;  %4228 = vmatmul.mubr.f32.vlgmr.msra.gmra.mxu1 %v5953_v37 }
 0x750   :  { %1891 = vmatpush1.msra.mxu0 %v1870_v7  ;;  %4231 = vmatpush3.msra.mxu1 %v1872_v21  ;;  %v1842_v21 = vld [vmem:[#allocation8 + $0x88] sm:$0xff] }
 0x751   :  { %1892 = vmatprep.subr.mxu0 %v1868_v38  ;;  %4232 = vmatprep.subr.mxu1 %v1869_v8  ;;  %v6007_v7 = vld [vmem:[#allocation9 + $0x108] sm:$0xff]  ;;  %v6010_v38 = vld [vmem:[#allocation9 + $0xf8] sm:$0xff] }
 0x752   :  { %4262 = vmatprep.mubr.f32.mxu1 %v5957_v47  ;;  %1893 = vmatpush1.msra.mxu0 %v1867_v39  ;;  %v6016_v39 = vld [vmem:[#allocation9 + $0xe0] sm:$0xff] }
 0x753   :  { %4233 = vmatpush3.msra.mxu1 %v1869_v8  ;;  %1894 = vmatprep.subr.mxu0 %v1865_v9  ;;  %v6013_v8 = vld [vmem:[#allocation9 + $0xf0] sm:$0xff]  ;;  %v6019_v9 = vld [vmem:[#allocation9 + $0xd8] sm:$0xff] }
 0x754   :  { %4234 = vmatprep.subr.mxu1 %v1866_v29  ;;  %1895 = vmatpush1.msra.mxu0 %v1864_v30  ;;  %v6028_v30 = vld [vmem:[#allocation9 + $0xb0] sm:$0xff] }
 0x755   :  { %4235 = vmatpush3.msra.mxu1 %v1866_v29  ;;  %1896 = vmatprep.subr.mxu0 %v1862_v31  ;;  %v6025_v29 = vld [vmem:[#allocation9 + $0xc0] sm:$0xff]  ;;  %v6031_v31 = vld [vmem:[#allocation9 + $0xa8] sm:$0xff] }
 0x756   :  { %4236 = vmatprep.subr.mxu1 %v1863_v32  ;;  %1897 = vmatpush1.msra.mxu0 %v1861_v33  ;;  %v6037_v33 = vld [vmem:[#allocation9 + $0x90] sm:$0xff] }
 0x757   :  { %4237 = vmatpush3.msra.mxu1 %v1863_v32  ;;  %1898 = vmatprep.subr.mxu0 %v1859_v34  ;;  %v6034_v32 = vld [vmem:[#allocation9 + $0x98] sm:$0xff]  ;;  %v6040_v34 = vld [vmem:[#allocation9 + $0x80] sm:$0xff] }
 0x758   :  { %4238 = vmatprep.subr.mxu1 %v1860_v19  ;;  %1899 = vmatpush1.msra.mxu0 %v1858_v42  ;;  %v6046_v42 = vld [vmem:[#allocation9 + $0x68] sm:$0xff] }
 0x759   :  { %4239 = vmatpush3.msra.mxu1 %v1860_v19  ;;  %1900 = vmatprep.subr.mxu0 %v1856_v27  ;;  %v6043_v19 = vld [vmem:[#allocation9 + $0x78] sm:$0xff]  ;;  %v6049_v27 = vld [vmem:[#allocation9 + $0x60] sm:$0xff] }
 0x75a   :  { %4240 = vmatprep.subr.mxu1 %v1857_v57  ;;  %1901 = vmatpush1.msra.mxu0 %v1855_v28  ;;  %v6055_v28 = vld [vmem:[#allocation9 + $0x48] sm:$0xff] }
 0x75b   :  { %4241 = vmatpush3.msra.mxu1 %v1857_v57  ;;  %1902 = vmatprep.subr.mxu0 %v1853_v15  ;;  %v6052_v57 = vld [vmem:[#allocation9 + $0x50] sm:$0xff]  ;;  %v6058_v15 = vld [vmem:[#allocation9 + $0x38] sm:$0xff] }
 0x75c   :  { %4242 = vmatprep.subr.mxu1 %v1854_v14  ;;  %1903 = vmatpush1.msra.mxu0 %v1852_v13  ;;  %v6064_v13 = vld [vmem:[#allocation9 + $0x20] sm:$0xff] }
 0x75d   :  { %4243 = vmatpush3.msra.mxu1 %v1854_v14  ;;  %1904 = vmatprep.subr.mxu0 %v1850_v12  ;;  %v6061_v14 = vld [vmem:[#allocation9 + $0x30] sm:$0xff]  ;;  %7083 = vst [vmem:[#allocation21_spill] sm:$0xff] %v6064_v13  ;;  %v6066_v12 = vld [vmem:[#allocation9 + $0x18] sm:$0xff] }
 0x75e   :  { %4244 = vmatprep.subr.mxu1 %v1851_v17  ;;  %1905 = vmatpush1.msra.mxu0 %v1849_v18  ;;  %7082 = vst [vmem:[#allocation24_spill] sm:$0xff] %v6061_v14  ;;  %7084 = vst [vmem:[#allocation22_spill] sm:$0xff] %v6066_v12  ;;  %v6071_v18 = vld [vmem:[#allocation9] sm:$0xff] }
 0x75f   :  { %4245 = vmatpush3.msra.mxu1 %v1851_v17  ;;  %1906 = vmatprep.subr.mxu0 %v1847_v62  ;;  %v6068_v17 = vld [vmem:[#allocation9 + $0x8] sm:$0xff]  ;;  %7086 = vst [vmem:[#allocation16_spill] sm:$0xff] %v6071_v18  ;;  %v6075_v62 = vld [vmem:[#allocation9 + $0x178] sm:$0xff] }
 0x760   :  { %4246 = vmatprep.subr.mxu1 %v1848_v4  ;;  %1907 = vmatpush1.msra.mxu0 %v1846_v26  ;;  %7085 = vst [vmem:[#allocation25_spill] sm:$0xff] %v6068_v17  ;;  %v6082_v26 = vld [vmem:[#allocation9 + $0x148] sm:$0xff] }
 0x761   :  { %4247 = vmatpush3.msra.mxu1 %v1848_v4  ;;  %1908 = vmatprep.subr.mxu0 %v1844_v44  ;;  %v6077_v4 = vld [vmem:[#allocation9 + $0x160] sm:$0xff]  ;;  %v6087_v44 = vld [vmem:[#allocation9 + $0x130] sm:$0xff] }
 0x762   :  { %4248 = vmatprep.subr.mxu1 %v1845_v43  ;;  %1909 = vmatpush1.msra.mxu0 %v1843_v56  ;;  %v6095_v56 = vld [vmem:[#allocation9 + $0x100] sm:$0xff] }
 0x763   :  { %4249 = vmatpush3.msra.mxu1 %v1845_v43  ;;  %1910 = vmatprep.subr.mxu0 %v1841_v10  ;;  %v6091_v43 = vld [vmem:[#allocation9 + $0x118] sm:$0xff]  ;;  %v6099_v10 = vld [vmem:[#allocation9 + $0xe8] sm:$0xff] }
 0x764   :  { %4250 = vmatprep.subr.mxu1 %v1842_v21  ;;  %1911 = vmatpush1.msra.mxu0 %v1840_v23  ;;  %v6107_v23 = vld [vmem:[#allocation9 + $0xb8] sm:$0xff] }
 0x765   :  { %4251 = vmatpush3.msra.mxu1 %v1842_v21  ;;  %1912 = vmatprep.subr.mxu0 %v1838_v46  ;;  %v6103_v21 = vld [vmem:[#allocation9 + $0xd0] sm:$0xff]  ;;  %v6111_v46 = vld [vmem:[#allocation9 + $0xa0] sm:$0xff] }
 0x766   :  { %4252 = vmatprep.subr.mxu1 %v1839_v51  ;;  %1913 = vmatpush1.msra.mxu0 %v1837_v11  ;;  %v6119_v11 = vld [vmem:[#allocation9 + $0x70] sm:$0xff] }
 0x767   :  { %4253 = vmatpush3.msra.mxu1 %v1839_v51  ;;  %1914 = vmatprep.subr.mxu0 %v1835_v41  ;;  %v6115_v51 = vld [vmem:[#allocation9 + $0x88] sm:$0xff]  ;;  %v6123_v41 = vld [vmem:[#allocation9 + $0x58] sm:$0xff] }
 0x768   :  { %4254 = vmatprep.subr.mxu1 %v1836_v55  ;;  %1915 = vmatpush1.msra.mxu0 %v1834_v25  ;;  %v6131_v25 = vld [vmem:[#allocation9 + $0x28] sm:$0xff] }
 0x769   :  { %4255 = vmatpush3.msra.mxu1 %v1836_v55  ;;  %1916 = vmatprep.subr.mxu0 %v1832_v20  ;;  %v6127_v55 = vld [vmem:[#allocation9 + $0x40] sm:$0xff]  ;;  %7088 = vst [vmem:[#allocation31_spill] sm:$0xff] %v6131_v25  ;;  %v6135_v20 = vld [vmem:[#allocation9 + $0x10] sm:$0xff] }
 0x76a   :  { %4256 = vmatprep.subr.mxu1 %v1833_v53  ;;  %1917 = vmatpush1.msra.mxu0 %v1831_v54  ;;  %7087 = vst [vmem:[#allocation30_spill] sm:$0xff] %v6127_v55  ;;  %7089 = vst [vmem:[#allocation46_spill] sm:$0xff] %v6135_v20 }
 0x76b   :  { %4257 = vmatpush3.msra.mxu1 %v1833_v53  ;;  %1918 = vmatprep.subr.mxu0 %v1829_v16 }
 0x76c   :  { %4258 = vmatprep.subr.mxu1 %v1830_v22  ;;  %1919 = vmatpush1.msra.mxu0 %v1828_v5 }
 0x76d   :  { %4259 = vmatpush3.msra.mxu1 %v1830_v22  ;;  %1920 = vmatprep.subr.mxu0 %v1826_v49  ;;  %v7090_v49 = vld [vmem:[#allocation42_spill] sm:$0xff] }
 0x76e   :  { %4260 = vmatprep.subr.mxu1 %v1827_v0  ;;  %1921 = vmatpush1.msra.mxu0 %v1825_v50 }
 0x76f   :  { %1954 = vmatprep.mubr.f32.mxu0 %v7029_v45  ;;  %4261 = vmatpush3.msra.mxu1 %v1827_v0 }
 0x770   :  { %1955 = vmatmul.mubr.f32.vlgmr.msra.gmra.mxu0 %v5957_v47  ;;  %4263 = vmatmul.mubr.f32.vlgmr.msra.gmra.mxu1 %v1818_v58  ;;  %v6022_v47 = vld [vmem:[#allocation9 + $0xc8] sm:$0xff] }
 0x771   :  { %4265 = vmatprep.mubr.f32.mxu1 %v7079_v59  ;;  %1960 = vmatprep.mubr.f32.mxu0 %v7029_v45 }
 0x772   :  { %4274 = vmatprep.subr.mxu1 %v7029_v45  ;;  %2202 = vmatprep.subr.mxu0 %v5980_v63 }
 0x773   :  { %2203 = vmatpush1.msra.mxu0 %v5983_v1  ;;  %4275 = vmatpush3.msra.mxu1 %v6075_v62 }
 0x774   :  { %1961 = vmatmul.mubr.f32.gmra.mxu0 %v1818_v58  ;;  %4266 = vmatmul.mubr.f32.gmra.mxu1 %v7080_v60 }
 0x775   :  { %4268 = vmatprep.mubr.f32.mxu1 %v5783_v52  ;;  %1966 = vmatprep.mubr.f32.mxu0 %v7029_v45 }
 0x776   :  { %2204 = vmatprep.subr.mxu0 %v5986_v2  ;;  %4276 = vmatprep.subr.mxu1 %v7029_v45 }
 0x777   :  { %4277 = vmatpush3.msra.mxu1 %v6077_v4 }
 0x778   :  { %1967 = vmatmul.mubr.f32.gmra.mxu0 %v7079_v59  ;;  %4269 = vmatmul.mubr.f32.gmra.mxu1 %v5877_v24  ;;  %v7091_v59 = vld [vmem:[#allocation44_spill] sm:$0xff] }
 0x779   :  { %4271 = vmatprep.mubr.f32.mxu1 %v5953_v37  ;;  %1972 = vmatprep.mubr.f32.mxu0 %v7029_v45 }
 0x77a   :  { %4278 = vmatprep.subr.mxu1 %v7029_v45 }
 0x77b   :  { %4279 = vmatpush3.msra.mxu1 %v6082_v26 }
 0x77c   :  { %1973 = vmatmul.mubr.f32.gmra.mxu0 %v7080_v60  ;;  %4280 = vmatprep.subr.mxu1 %v7029_v45 }
 0x77d   :  { %1978 = vmatprep.mubr.f32.mxu0 %v7029_v45  ;;  %4281 = vmatpush3.msra.mxu1 %v6087_v44 }
 0x77e   :  { %4282 = vmatprep.subr.mxu1 %v7029_v45 }
 0x77f   :  { %4283 = vmatpush3.msra.mxu1 %v6091_v43 }
 0x780   :  { %1979 = vmatmul.mubr.f32.gmra.mxu0 %v5783_v52  ;;  %v5989_v52 = vld [vmem:[#allocation9 + $0x150] sm:$0xff]  ;;  %4284 = vmatprep.subr.mxu1 %v7029_v45 }
 0x781   :  { %1984 = vmatprep.mubr.f32.mxu0 %v7029_v45  ;;  %2205 = vmatpush1.msra.mxu0 %v5989_v52 }
 0x782   :  { %4285 = vmatpush3.msra.mxu1 %v6095_v56 }
 0x783   :  { %4286 = vmatprep.subr.mxu1 %v7029_v45 }
 0x784   :  { %1985 = vmatmul.mubr.f32.gmra.mxu0 %v5877_v24  ;;  %v5992_v24 = vld [vmem:[#allocation9 + $0x140] sm:$0xff]  ;;  %4287 = vmatpush3.msra.mxu1 %v6099_v10 }
 0x785   :  { %1990 = vmatprep.mubr.f32.mxu0 %v7029_v45  ;;  %2206 = vmatprep.subr.mxu0 %v5992_v24 }
 0x786   :  { %2207 = vmatpush1.msra.mxu0 %v5995_v35  ;;  %4288 = vmatprep.subr.mxu1 %v7029_v45 }
 0x787   :  { %2208 = vmatprep.subr.mxu0 %v5998_v3  ;;  %4289 = vmatpush3.msra.mxu1 %v6103_v21 }
 0x788   :  { %1991 = vmatmul.mubr.f32.gmra.mxu0 %v5953_v37  ;;  %4290 = vmatprep.subr.mxu1 %v7029_v45 }
 0x789   :  { %1996 = vmatprep.mubr.f32.mxu0 %v7029_v45  ;;  %2209 = vmatpush1.msra.mxu0 %v6001_v36 }
 0x78a   :  { %2210 = vmatprep.subr.mxu0 %v6004_v6  ;;  %4291 = vmatpush3.msra.mxu1 %v6107_v23 }
 0x78b   :  { %2211 = vmatpush1.msra.mxu0 %v6007_v7  ;;  %4292 = vmatprep.subr.mxu1 %v7029_v45 }
 0x78c   :  { %2212 = vmatprep.subr.mxu0 %v6010_v38  ;;  %4293 = vmatpush3.msra.mxu1 %v6111_v46 }
 0x78d   :  { %2213 = vmatpush1.msra.mxu0 %v6013_v8  ;;  %4294 = vmatprep.subr.mxu1 %v7029_v45 }
 0x78e   :  { %2214 = vmatprep.subr.mxu0 %v6016_v39  ;;  %4295 = vmatpush3.msra.mxu1 %v6115_v51 }
 0x78f   :  { %2215 = vmatpush1.msra.mxu0 %v6019_v9  ;;  %4296 = vmatprep.subr.mxu1 %v7029_v45 }
 0x790   :  { %2216 = vmatprep.subr.mxu0 %v6022_v47  ;;  %4297 = vmatpush3.msra.mxu1 %v6119_v11 }
 0x791   :  { %2217 = vmatpush1.msra.mxu0 %v6025_v29  ;;  %4298 = vmatprep.subr.mxu1 %v7029_v45 }
 0x792   :  { %2218 = vmatprep.subr.mxu0 %v6028_v30  ;;  %4299 = vmatpush3.msra.mxu1 %v6123_v41 }
 0x793   :  { %2219 = vmatpush1.msra.mxu0 %v6031_v31  ;;  %4300 = vmatprep.subr.mxu1 %v7029_v45 }
 0x794   :  { %2220 = vmatprep.subr.mxu0 %v6034_v32  ;;  %4301 = vmatpush3.msra.mxu1 %v6127_v55 }
 0x795   :  { %2221 = vmatpush1.msra.mxu0 %v6037_v33  ;;  %4302 = vmatprep.subr.mxu1 %v7029_v45 }
 0x796   :  { %2222 = vmatprep.subr.mxu0 %v6040_v34  ;;  %4303 = vmatpush3.msra.mxu1 %v6131_v25 }
 0x797   :  { %2223 = vmatpush1.msra.mxu0 %v6043_v19  ;;  %4304 = vmatprep.subr.mxu1 %v7029_v45 }
 0x798   :  { %2224 = vmatprep.subr.mxu0 %v6046_v42  ;;  %4305 = vmatpush3.msra.mxu1 %v6135_v20 }
 0x799   :  { %2225 = vmatpush1.msra.mxu0 %v6049_v27  ;;  %4309 = vmatprep.subr.mxu1 %v7029_v45 }
 0x79a   :  { %2226 = vmatprep.subr.mxu0 %v6052_v57 }
 0x79b   :  { %2227 = vmatpush1.msra.mxu0 %v6055_v28 }
 0x79c   :  { %2228 = vmatprep.subr.mxu0 %v6058_v15 }
 0x79d   :  { %2229 = vmatpush1.msra.mxu0 %v6061_v14 }
 0x79e   :  { %2230 = vmatprep.subr.mxu0 %v6064_v13 }
 0x79f   :  { %2231 = vmatpush1.msra.mxu0 %v6066_v12 }
 0x7a0   :  { %2232 = vmatprep.subr.mxu0 %v6068_v17 }
 0x7a1   :  { %2233 = vmatpush1.msra.mxu0 %v6071_v18 }
 0x7a2   :  { %2368 = vmatprep.subr.mxu0 %v5980_v63 }
 0x80f   :  { %v1718_v53 = vpop.f32.mrf.mxu0  ;;  %v1789_v54 = vpop.f32.mrf.mxu1 }
 0x810   :  { %v1719_v16 = vadd.f32 %v1718_v53, %v7075_v48  ;;  %v1790_v12 = vadd.f32 %v1789_v54, %v5385_v61  ;;  %v6155_v61 = vld [vmem:[%s6903_s1 + $0x8] sm:$0xff] }
 0x811   :  { %v1720_v22 = vpop.f32.mrf.mxu0  ;;  %v4229_v5 = vpop.f32.mrf.mxu1 }
 0x812   :  { %v1793_v0 = vadd.f32 %v1719_v16, %v7090_v49  ;;  %v1721_v58 = vadd.f32 %v1720_v22, %v5369_v40  ;;  %v7092_v5 = vld [vmem:[#allocation49_spill] sm:$0xff] }
 0x814   :  { %v3566_v50 = vmul.f32 -1.442695, %v1793_v0  ;;  %v1800_v60 = vadd.f32 %v1721_v58, %v7091_v59 }
 0x816   :  { %4635 = vpow2.f32 %v3566_v50  ;;  %v3567_v63 = vmul.f32 -1.442695, %v1800_v60 }
 0x818   :  { %4637 = vpow2.f32 %v3567_v63 }
 0x823   :  { %v4636_v18 = vpop.eup %4635 }
 0x824   :  { %v1797_v20 = vadd.f32 1.0, %v4636_v18  ;;  %v7096_v18 = vld [vmem:[#allocation16_spill] sm:$0xff] }
 0x825   :  { %v4638_v17 = vpop.eup %4637 }
 0x826   :  { %4639 = vrcp.f32 %v1797_v20  ;;  %v1804_v25 = vadd.f32 1.0, %v4638_v17  ;;  %v7095_v17 = vld [vmem:[#allocation25_spill] sm:$0xff]  ;;  %v7098_v20 = vld [vmem:[#allocation20_spill] sm:$0xff] }
 0x828   :  { %4641 = vrcp.f32 %v1804_v25  ;;  %v7097_v25 = vld [vmem:[#allocation46_spill] sm:$0xff] }
 0x830   :  { %v1956_v54 = vpop.f32.mrf.mxu0 }
 0x832   :  { %v1958_v58 = vpop.f32.mrf.mxu0 }
 0x833   :  { %v4640_v48 = vpop.eup %4639 }
 0x834   :  { %v1807_v53 = vmul.f32 %v4640_v48, %v1790_v12  ;;  %v7094_v12 = vld [vmem:[#allocation31_spill] sm:$0xff]  ;;  %v6228_v59 = vpop.f32.mrf.mxu0 }
 0x835   :  { %v4642_v49 = vpop.eup %4641  ;;  %7099 = vst [vmem:[#allocation32_spill] sm:$0xff] %v6228_v59 }
 0x836   :  { %v1808_v16 = vadd.f32 %v1807_v53, %v7092_v5  ;;  %v1810_v40 = vsub.f32 1.0, %v4642_v49  ;;  %v1812_v50 = vmul.f32 %v4642_v49, %v5953_v37  ;;  %v7093_v37 = vld [vmem:[#allocation22_spill] sm:$0xff]  ;;  %v6230_v60 = vpop.f32.mrf.mxu0  ;;  %v6240_v49 = vpop.f32.mrf.mxu1 }
 0x837   :  { %7100 = vst [vmem:[#allocation33_spill] sm:$0xff] %v6230_v60  ;;  %7105 = vst [vmem:[#allocation37_spill] sm:$0xff] %v6240_v49 }
 0x838   :  { %4643 = vtanh.f32 %v1808_v16  ;;  %v6232_v48 = vpop.f32.mrf.mxu0 }
 0x839   :  { %7101 = vst [vmem:[#allocation45_spill] sm:$0xff] %v6232_v48 }
 0x83a   :  { %v6234_v53 = vpop.f32.mrf.mxu0 }
 0x83b   :  { %7102 = vst [vmem:[#allocation34_spill] sm:$0xff] %v6234_v53 }
 0x83c   :  { %v6236_v5 = vpop.f32.mrf.mxu0 }
 0x83d   :  { %7103 = vst [vmem:[#allocation35_spill] sm:$0xff] %v6236_v5 }
 0x83e   :  { %v6238_v16 = vpop.f32.mrf.mxu0 }
 0x83f   :  { %7104 = vst [vmem:[#allocation48_spill] sm:$0xff] %v6238_v16  ;;  %v1873_v16 = vld [vmem:[%s6910_s8] sm:$0x7]  ;;  %s4937_s8 = smov [#allocation11]  }
 0x845   :  { %v4644_v22 = vpop.eup %4643 }
 0x846   :  { %v1811_v0 = vmul.f32 %v4644_v22, %v1810_v40  ;;  %v6242_v40 = vpop.f32.mrf.mxu0  ;;  %v2069_v22 = vpop.f32.mrf.mxu1 }
 0x847   :  { %7106 = vst [vmem:[#allocation38_spill] sm:$0xff] %v6242_v40 }
 0x848   :  { %v1813_v63 = vadd.f32 %v1812_v50, %v1811_v0  ;;  %v6244_v0 = vpop.f32.mrf.mxu0  ;;  %v6246_v50 = vpop.f32.mrf.mxu1 }
 0x849   :  { %7107 = vst [vmem:[#allocation47_spill] sm:$0xff] %v6244_v0  ;;  %7108 = vst [vmem:[#allocation23_spill] sm:$0xff] %v6246_v50 }
 0x84a   :  { %1816 = vst [vmem:[%s6913_s11] sm:$0xff] %v1813_v63  ;;  %1997 = vmatmul.mubr.f32.gmra.mxu0 %v1813_v63  ;;  %4272 = vmatmul.mubr.f32.gmra.mxu1 %v1813_v63  ;;  %v6248_v63 = vpop.f32.mrf.mxu0  ;;  %v6250_v60 = vpop.f32.mrf.mxu1 }
 0x84b   :  { %2266 = vmatprep.mubr.f32.mxu0 %v7029_v45  ;;  %4306 = vmatprep.mubr.msk.f32.mxu1 %vm4936_vm0, %v7029_v45  ;;  %7109 = vst [vmem:[#allocation29_spill] sm:$0xff] %v6248_v63  ;;  %7110 = vst [vmem:[#allocation19_spill] sm:$0xff] %v6250_v60  ;;  %v2180_v63 = vld [vmem:[%s6911_s9] sm:$0x7]  ;;  %s3534_s9 = sshll.u32 %s4937_s8, 4  ;;  %s3535_s9 = int_to_ptr.vmem [resolvable:$true] %s3534_s9 }
 0x84c   :  { %v6252_v48 = vpop.f32.mrf.mxu0  ;;  %v6254_v53 = vpop.f32.mrf.mxu1  ;;  %s4901_s21 = scalar_lea.vmem %s3535_s9, 1024  ;;  %p4906_p7 = scmp.lt.s32.totalorder %s3535_s9, %s3535_s9 }
 0x84d   :  { %7111 = vst [vmem:[#allocation28_spill] sm:$0xff] %v6252_v48  ;;  %7112 = vst [vmem:[#allocation41_spill] sm:$0xff] %v6254_v53  ;;  %v7118_v48 = vld [vmem:[#allocation26_spill] sm:$0xff]  ;;  %p4902_p6 = scmp.ne.s32.totalorder %s3535_s9, %s4901_s21  ;;  %p4907_p8 = scmp.lt.s32.totalorder %s4901_s21, %s4901_s21 }
 0x84e   :  { %2267 = vmatmul.mubr.f32.vlgmr.msra.gmra.mxu0 %v6155_v61  ;;  %4307 = vmatmul.mubr.f32.vlgmr.msra.gmra.mxu1 %v6155_v61  ;;  %v6256_v5 = vpop.f32.mrf.mxu0  ;;  %v6261_v40 = vpop.f32.mrf.mxu1  ;;  %v6273_v53 = vrot.slane %v1873_v16, %v7118_v48 }
 0x84f   :  { %2369 = vmatpush1.msra.mxu0 %v5983_v1  ;;  %4310 = vmatpush3.msra.mxu1 %v6075_v62  ;;  %7113 = vst [vmem:[#allocation43_spill] sm:$0xff] %v6256_v5  ;;  %7114 = vst [vmem:[#allocation39_spill] sm:$0xff] %v6261_v40  ;;  %v6276_v5 = vrot.slane %v2180_v63, %v7118_v48  ;;  %p4908_p9 = por %p4907_p8, %p4906_p7 }
 0x850   :  { %2370 = vmatprep.subr.mxu0 %v5986_v2  ;;  %4311 = vmatprep.subr.mxu1 %v7029_v45  ;;  %v6263_v49 = vpop.f32.mrf.mxu0  ;;  %7119 = vst [vmem:[#allocation18_spill] sm:$0xff] %v6273_v53 }
 0x851   :  { %2371 = vmatpush1.msra.mxu0 %v5989_v52  ;;  %4312 = vmatpush3.msra.mxu1 %v6077_v4  ;;  %7115 = vst [vmem:[#allocation40_spill] sm:$0xff] %v6263_v49  ;;  %7120 = vst [vmem:[#allocation42_spill] sm:$0xff] %v6276_v5  ;;  %p4909_p10 = pnand %p4908_p9, %p4902_p6 }
 0x852   :  { %2372 = vmatprep.subr.mxu0 %v5992_v24  ;;  %4313 = vmatprep.subr.mxu1 %v7029_v45 }
 0x853   :  { %2373 = vmatpush1.msra.mxu0 %v5995_v35  ;;  %4314 = vmatpush3.msra.mxu1 %v6082_v26 }
 0x854   :  { %2374 = vmatprep.subr.mxu0 %v5998_v3  ;;  %4315 = vmatprep.subr.mxu1 %v7029_v45 }
 0x855   :  { %2375 = vmatpush1.msra.mxu0 %v6001_v36  ;;  %4316 = vmatpush3.msra.mxu1 %v6087_v44 }
 0x856   :  { %2376 = vmatprep.subr.mxu0 %v6004_v6  ;;  %4317 = vmatprep.subr.mxu1 %v7029_v45 }
 0x857   :  { %2377 = vmatpush1.msra.mxu0 %v6007_v7  ;;  %4318 = vmatpush3.msra.mxu1 %v6091_v43 }
 0x858   :  { %2378 = vmatprep.subr.mxu0 %v6010_v38  ;;  %4319 = vmatprep.subr.mxu1 %v7029_v45 }
 0x859   :  { %2379 = vmatpush1.msra.mxu0 %v6013_v8  ;;  %4320 = vmatpush3.msra.mxu1 %v6095_v56 }
 0x85a   :  { %2380 = vmatprep.subr.mxu0 %v6016_v39  ;;  %4321 = vmatprep.subr.mxu1 %v7029_v45 }
 0x85b   :  { %2381 = vmatpush1.msra.mxu0 %v6019_v9  ;;  %4322 = vmatpush3.msra.mxu1 %v6099_v10 }
 0x85c   :  { %2382 = vmatprep.subr.mxu0 %v6022_v47  ;;  %4323 = vmatprep.subr.mxu1 %v7029_v45 }
 0x85d   :  { %2383 = vmatpush1.msra.mxu0 %v6025_v29  ;;  %4324 = vmatpush3.msra.mxu1 %v6103_v21 }
 0x85e   :  { %2384 = vmatprep.subr.mxu0 %v6028_v30  ;;  %4325 = vmatprep.subr.mxu1 %v7029_v45 }
 0x85f   :  { %2385 = vmatpush1.msra.mxu0 %v6031_v31  ;;  %4326 = vmatpush3.msra.mxu1 %v6107_v23 }
 0x860   :  { %2386 = vmatprep.subr.mxu0 %v6034_v32  ;;  %4327 = vmatprep.subr.mxu1 %v7029_v45 }
 0x861   :  { %2387 = vmatpush1.msra.mxu0 %v6037_v33  ;;  %4328 = vmatpush3.msra.mxu1 %v6111_v46 }
 0x862   :  { %2388 = vmatprep.subr.mxu0 %v6040_v34  ;;  %4329 = vmatprep.subr.mxu1 %v7029_v45 }
 0x863   :  { %2389 = vmatpush1.msra.mxu0 %v6043_v19  ;;  %4330 = vmatpush3.msra.mxu1 %v6115_v51 }
 0x864   :  { %2390 = vmatprep.subr.mxu0 %v6046_v42  ;;  %4331 = vmatprep.subr.mxu1 %v7029_v45 }
 0x865   :  { %2391 = vmatpush1.msra.mxu0 %v6049_v27  ;;  %4332 = vmatpush3.msra.mxu1 %v6119_v11 }
 0x866   :  { %2392 = vmatprep.subr.mxu0 %v6052_v57  ;;  %4333 = vmatprep.subr.mxu1 %v7029_v45 }
 0x867   :  { %2393 = vmatpush1.msra.mxu0 %v6055_v28  ;;  %4334 = vmatpush3.msra.mxu1 %v6123_v41 }
 0x868   :  { %2394 = vmatprep.subr.mxu0 %v6058_v15  ;;  %4335 = vmatprep.subr.mxu1 %v7029_v45 }
 0x869   :  { %2395 = vmatpush1.msra.mxu0 %v6061_v14  ;;  %4336 = vmatpush3.msra.mxu1 %v6127_v55 }
 0x86a   :  { %2396 = vmatprep.subr.mxu0 %v6064_v13  ;;  %4337 = vmatprep.subr.mxu1 %v7029_v45 }
 0x86b   :  { %2397 = vmatpush1.msra.mxu0 %v7093_v37  ;;  %4338 = vmatpush3.msra.mxu1 %v7094_v12 }
 0x86c   :  { %2398 = vmatprep.subr.mxu0 %v7095_v17  ;;  %4339 = vmatprep.subr.mxu1 %v7029_v45 }
 0x86d   :  { %2399 = vmatpush1.msra.mxu0 %v7096_v18  ;;  %2432 = vmatprep.mubr.f32.mxu0 %v7029_v45  ;;  %v7123_v18 = vld [vmem:[#allocation27_spill] sm:$0xff] }
 0x86e   :  { %4340 = vmatpush3.msra.mxu1 %v7097_v25  ;;  %4341 = vmatprep.mubr.msk.f32.mxu1 %vm4936_vm0, %v7029_v45  ;;  %v6288_v12 = vrot.slane %v1873_v16, %v7123_v18 }
 0x86f   :  { %2534 = vmatprep.subr.mxu0 %v7098_v20  ;;  %4344 = vmatprep.subr.mxu1 %v7029_v45  ;;  %v1957_v20 = vadd.f32 %v1956_v54, %v6273_v53 }
 0x90a   :  { %v6268_v0 = vpop.f32.mrf.mxu0  ;;  %v6270_v50 = vpop.f32.mrf.mxu1 }
 0x90b   :  { %7116 = vst [vmem:[#allocation50_spill] sm:$0xff] %v6268_v0  ;;  %7117 = vst [vmem:[#allocation17_spill] sm:$0xff] %v6270_v50  ;;  %v6285_v0 = vrot.slane %v2180_v63, %v7123_v18 }
 0x90c   :  { %v6278_v60 = vpop.f32.mrf.mxu0  ;;  %v6280_v59 = vpop.f32.mrf.mxu1 }
 0x90d   :  { %7121 = vst [vmem:[#allocation44_spill] sm:$0xff] %v6278_v60  ;;  %7122 = vst [vmem:[#allocation49_spill] sm:$0xff] %v6280_v59  ;;  %v1959_v59 = vadd.f32 %v1958_v58, %v6288_v12 }
 0x90e   :  { %v2268_v40 = vpop.f32.mrf.mxu0  ;;  %v2339_v49 = vpop.f32.mrf.mxu1 }
 0x90f   :  { %v2269_v25 = vadd.f32 %v2268_v40, %v6276_v5  ;;  %v7124_v5 = vld [vmem:[#allocation36_spill] sm:$0xff] }
 0x910   :  { %v2270_v50 = vpop.f32.mrf.mxu0  ;;  %v4308_v17 = vpop.f32.mrf.mxu1  ;;  %v6293_v53 = vrot.slane %v2180_v63, %v7124_v5 }
 0x911   :  { %v2343_v48 = vadd.f32 %v2269_v25, %v1957_v20  ;;  %v2271_v60 = vadd.f32 %v2270_v50, %v6285_v0  ;;  %v6297_v25 = vrot.slane %v1873_v16, %v7124_v5  ;;  %v7127_v5 = vld [vmem:[#allocation21_spill] sm:$0xff]  ;;  %v7128_v16 = vld [vmem:[#allocation22_spill] sm:$0xff] }
 0x912   :  { %v2340_v18 = vadd.f32 %v2339_v49, %v6293_v53  ;;  %v7129_v49 = vld [vmem:[#allocation31_spill] sm:$0xff] }
 0x913   :  { %v3569_v37 = vmul.f32 -1.442695, %v2343_v48  ;;  %v2350_v13 = vadd.f32 %v2271_v60, %v1959_v59  ;;  %v2070_v58 = vadd.f32 %v2069_v22, %v6297_v25  ;;  %v7130_v22 = vld [vmem:[#allocation25_spill] sm:$0xff] }
 0x915   :  { %4645 = vpow2.f32 %v3569_v37  ;;  %v3570_v55 = vmul.f32 -1.442695, %v2350_v13 }
 0x917   :  { %4647 = vpow2.f32 %v3570_v55 }
 0x922   :  { %v4646_v54 = vpop.eup %4645 }
 0x923   :  { %v2347_v40 = vadd.f32 1.0, %v4646_v54  ;;  %v7131_v54 = vld [vmem:[#allocation16_spill] sm:$0xff] }
 0x924   :  { %v4648_v17 = vpop.eup %4647 }
 0x925   :  { %4649 = vrcp.f32 %v2347_v40  ;;  %v2354_v14 = vadd.f32 1.0, %v4648_v17  ;;  %v7132_v40 = vld [vmem:[#allocation46_spill] sm:$0xff]  ;;  %v7133_v17 = vld [vmem:[#allocation20_spill] sm:$0xff] }
 0x927   :  { %4651 = vrcp.f32 %v2354_v14  ;;  %v7125_v14 = vld [vmem:[#allocation24_spill] sm:$0xff] }
 0x932   :  { %v4650_v20 = vpop.eup %4649 }
 0x933   :  { %v2357_v37 = vmul.f32 %v4650_v20, %v2340_v18 }
 0x934   :  { %v4652_v55 = vpop.eup %4651 }
 0x935   :  { %v2358_v13 = vadd.f32 %v2357_v37, %v2070_v58  ;;  %v2360_v59 = vsub.f32 1.0, %v4652_v55  ;;  %v2362_v63 = vmul.f32 %v4652_v55, %v6155_v61  ;;  %v7126_v61 = vld [vmem:[#allocation30_spill] sm:$0xff]  ;;  %v7135_v37 = vld [vmem:[#allocation32_spill] sm:$0xff] }
 0x936   :  { %v7134_v58 = vld [vmem:[#allocation18_spill] sm:$0xff] }
 0x937   :  { %4653 = vtanh.f32 %v2358_v13  ;;  %v1963_v13 = vadd.f32 %v7135_v37, %v7134_v58  ;;  %v7136_v55 = vld [vmem:[#allocation42_spill] sm:$0xff] }
 0x944   :  { %v4654_v60 = vpop.eup %4653 }
 0x945   :  { %v2361_v50 = vmul.f32 %v4654_v60, %v2360_v59 }
 0x947   :  { %v6301_v48 = vadd.f32 %v2362_v63, %v2361_v50 }
 0x949   :  { %2364 = vst [vmem:[#allocation11] sm:$0xff] %v6301_v48  ;;  %2433 = vmatmul.mubr.f32.vlgmr.msra.gmra.mxu0 %v6301_v48  ;;  %4342 = vmatmul.mubr.f32.vlgmr.msra.gmra.mxu1 %v6301_v48 }
 0x94a   :  { %2535 = vmatpush1.msra.mxu0 %v5983_v1  ;;  %4345 = vmatpush3.msra.mxu1 %v6075_v62 }
 0x94b   :  { %2536 = vmatprep.subr.mxu0 %v5986_v2  ;;  %4346 = vmatprep.subr.mxu1 %v7029_v45 }
 0x94c   :  { %2537 = vmatpush1.msra.mxu0 %v5989_v52  ;;  %4347 = vmatpush3.msra.mxu1 %v6077_v4 }
 0x94d   :  { %2538 = vmatprep.subr.mxu0 %v5992_v24  ;;  %4348 = vmatprep.subr.mxu1 %v7029_v45 }
 0x94e   :  { %2539 = vmatpush1.msra.mxu0 %v5995_v35  ;;  %4349 = vmatpush3.msra.mxu1 %v6082_v26 }
 0x94f   :  { %2540 = vmatprep.subr.mxu0 %v5998_v3  ;;  %4350 = vmatprep.subr.mxu1 %v7029_v45 }
 0x950   :  { %2541 = vmatpush1.msra.mxu0 %v6001_v36  ;;  %4351 = vmatpush3.msra.mxu1 %v6087_v44 }
 0x951   :  { %2542 = vmatprep.subr.mxu0 %v6004_v6  ;;  %4352 = vmatprep.subr.mxu1 %v7029_v45 }
 0x952   :  { %2543 = vmatpush1.msra.mxu0 %v6007_v7  ;;  %4353 = vmatpush3.msra.mxu1 %v6091_v43 }
 0x953   :  { %2544 = vmatprep.subr.mxu0 %v6010_v38  ;;  %4354 = vmatprep.subr.mxu1 %v7029_v45 }
 0x954   :  { %2545 = vmatpush1.msra.mxu0 %v6013_v8  ;;  %4355 = vmatpush3.msra.mxu1 %v6095_v56 }
 0x955   :  { %2546 = vmatprep.subr.mxu0 %v6016_v39  ;;  %4356 = vmatprep.subr.mxu1 %v7029_v45 }
 0x956   :  { %2547 = vmatpush1.msra.mxu0 %v6019_v9  ;;  %4357 = vmatpush3.msra.mxu1 %v6099_v10 }
 0x957   :  { %2548 = vmatprep.subr.mxu0 %v6022_v47  ;;  %4358 = vmatprep.subr.mxu1 %v7029_v45 }
 0x958   :  { %2549 = vmatpush1.msra.mxu0 %v6025_v29  ;;  %4359 = vmatpush3.msra.mxu1 %v6103_v21 }
 0x959   :  { %2550 = vmatprep.subr.mxu0 %v6028_v30  ;;  %4360 = vmatprep.subr.mxu1 %v7029_v45 }
 0x95a   :  { %2551 = vmatpush1.msra.mxu0 %v6031_v31  ;;  %4361 = vmatpush3.msra.mxu1 %v6107_v23 }
 0x95b   :  { %2552 = vmatprep.subr.mxu0 %v6034_v32  ;;  %4362 = vmatprep.subr.mxu1 %v7029_v45 }
 0x95c   :  { %2553 = vmatpush1.msra.mxu0 %v6037_v33  ;;  %4363 = vmatpush3.msra.mxu1 %v6111_v46 }
 0x95d   :  { %2554 = vmatprep.subr.mxu0 %v6040_v34  ;;  %4364 = vmatprep.subr.mxu1 %v7029_v45 }
 0x95e   :  { %2555 = vmatpush1.msra.mxu0 %v6043_v19  ;;  %4365 = vmatpush3.msra.mxu1 %v6115_v51 }
 0x95f   :  { %2556 = vmatprep.subr.mxu0 %v6046_v42  ;;  %4366 = vmatprep.subr.mxu1 %v7029_v45 }
 0x960   :  { %2557 = vmatpush1.msra.mxu0 %v6049_v27  ;;  %4367 = vmatpush3.msra.mxu1 %v6119_v11 }
 0x961   :  { %2558 = vmatprep.subr.mxu0 %v6052_v57  ;;  %4368 = vmatprep.subr.mxu1 %v7029_v45 }
 0x962   :  { %2559 = vmatpush1.msra.mxu0 %v6055_v28  ;;  %4369 = vmatpush3.msra.mxu1 %v6123_v41 }
 0x963   :  { %2560 = vmatprep.subr.mxu0 %v6058_v15  ;;  %4370 = vmatprep.subr.mxu1 %v7029_v45 }
 0x964   :  { %2561 = vmatpush1.msra.mxu0 %v7125_v14  ;;  %4371 = vmatpush3.msra.mxu1 %v7126_v61 }
 0x965   :  { %2562 = vmatprep.subr.mxu0 %v7127_v5  ;;  %4372 = vmatprep.subr.mxu1 %v7029_v45 }
 0x966   :  { %2563 = vmatpush1.msra.mxu0 %v7128_v16  ;;  %4373 = vmatpush3.msra.mxu1 %v7129_v49 }
 0x967   :  { %2564 = vmatprep.subr.mxu0 %v7130_v22  ;;  %4374 = vmatprep.subr.mxu1 %v7029_v45  ;;  %v7137_v22 = vld [vmem:[#allocation33_spill] sm:$0xff] }
 0x968   :  { %2565 = vmatpush1.msra.mxu0 %v7131_v54  ;;  %2598 = vmatprep.mubr.f32.mxu0 %v7029_v45  ;;  %v1965_v49 = vadd.f32 %v7137_v22, %v6288_v12 }
 0x969   :  { %4375 = vmatpush3.msra.mxu1 %v7132_v40  ;;  %4376 = vmatprep.mubr.msk.f32.mxu1 %vm4936_vm0, %v7029_v45 }
 0x96a   :  { %2700 = vmatprep.subr.mxu0 %v7133_v17  ;;  %4379 = vmatprep.subr.mxu1 %v7029_v45 }
 0xa09   :  { %v2434_v18 = vpop.f32.mrf.mxu0  ;;  %v2505_v20 = vpop.f32.mrf.mxu1 }
 0xa0a   :  { %v2435_v59 = vadd.f32 %v2434_v18, %v7136_v55  ;;  %v2506_v18 = vadd.f32 %v2505_v20, %v6293_v53  ;;  %v7143_v20 = vld [vmem:[#allocation31_spill] sm:$0xff] }
 0xa0b   :  { %v2436_v60 = vpop.f32.mrf.mxu0  ;;  %v4343_v50 = vpop.f32.mrf.mxu1 }
 0xa0c   :  { %v2509_v63 = vadd.f32 %v2435_v59, %v1963_v13  ;;  %v2437_v40 = vadd.f32 %v2436_v60, %v6285_v0  ;;  %v7138_v13 = vld [vmem:[#allocation37_spill] sm:$0xff] }
 0xa0d   :  { %v2075_v59 = vadd.f32 %v7138_v13, %v6297_v25 }
 0xa0e   :  { %v3571_v54 = vmul.f32 -1.442695, %v2509_v63  ;;  %v2516_v17 = vadd.f32 %v2437_v40, %v1965_v49  ;;  %v7145_v63 = vld [vmem:[#allocation16_spill] sm:$0xff] }
 0xa10   :  { %4655 = vpow2.f32 %v3571_v54  ;;  %v3572_v16 = vmul.f32 -1.442695, %v2516_v17  ;;  %v7142_v17 = vld [vmem:[#allocation22_spill] sm:$0xff] }
 0xa12   :  { %4657 = vpow2.f32 %v3572_v16 }
 0xa1d   :  { %v4656_v5 = vpop.eup %4655 }
 0xa1e   :  { %v2513_v61 = vadd.f32 1.0, %v4656_v5 }
 0xa1f   :  { %v4658_v14 = vpop.eup %4657 }
 0xa20   :  { %4659 = vrcp.f32 %v2513_v61  ;;  %v2520_v37 = vadd.f32 1.0, %v4658_v14  ;;  %v7140_v14 = vld [vmem:[#allocation30_spill] sm:$0xff]  ;;  %v7141_v61 = vld [vmem:[#allocation21_spill] sm:$0xff] }
 0xa22   :  { %4661 = vrcp.f32 %v2520_v37  ;;  %v7146_v37 = vld [vmem:[#allocation46_spill] sm:$0xff] }
 0xa2d   :  { %v4660_v55 = vpop.eup %4659 }
 0xa2e   :  { %v2523_v50 = vmul.f32 %v4660_v55, %v2506_v18  ;;  %v7144_v55 = vld [vmem:[#allocation25_spill] sm:$0xff]  ;;  %v7147_v18 = vld [vmem:[#allocation20_spill] sm:$0xff] }
 0xa2f   :  { %v4662_v22 = vpop.eup %4661 }
 0xa30   :  { %v2524_v60 = vadd.f32 %v2523_v50, %v2075_v59  ;;  %v2526_v54 = vsub.f32 1.0, %v4662_v22  ;;  %v2528_v16 = vmul.f32 %v4662_v22, %v6301_v48  ;;  %v7139_v48 = vld [vmem:[#allocation24_spill] sm:$0xff]  ;;  %v7148_v50 = vld [vmem:[#allocation45_spill] sm:$0xff]  ;;  %v7149_v22 = vld [vmem:[#allocation42_spill] sm:$0xff] }
 0xa32   :  { %4663 = vtanh.f32 %v2524_v60  ;;  %v1969_v60 = vadd.f32 %v7148_v50, %v7134_v58 }
 0xa3f   :  { %v4664_v49 = vpop.eup %4663 }
 0xa40   :  { %v2527_v40 = vmul.f32 %v4664_v49, %v2526_v54 }
 0xa42   :  { %v6383_v5 = vadd.f32 %v2528_v16, %v2527_v40 }
 0xa44   :  { %2530 = vst [vmem:[#allocation11 + $0x8] sm:$0xff] %v6383_v5  ;;  %2599 = vmatmul.mubr.f32.vlgmr.msra.gmra.mxu0 %v6383_v5  ;;  %4377 = vmatmul.mubr.f32.vlgmr.msra.gmra.mxu1 %v6383_v5 }
 0xa45   :  { %2701 = vmatpush1.msra.mxu0 %v5983_v1  ;;  %4380 = vmatpush3.msra.mxu1 %v6075_v62 }
 0xa46   :  { %2702 = vmatprep.subr.mxu0 %v5986_v2  ;;  %4381 = vmatprep.subr.mxu1 %v7029_v45 }
 0xa47   :  { %2703 = vmatpush1.msra.mxu0 %v5989_v52  ;;  %4382 = vmatpush3.msra.mxu1 %v6077_v4 }
 0xa48   :  { %2704 = vmatprep.subr.mxu0 %v5992_v24  ;;  %4383 = vmatprep.subr.mxu1 %v7029_v45 }
 0xa49   :  { %2705 = vmatpush1.msra.mxu0 %v5995_v35  ;;  %4384 = vmatpush3.msra.mxu1 %v6082_v26 }
 0xa4a   :  { %2706 = vmatprep.subr.mxu0 %v5998_v3  ;;  %4385 = vmatprep.subr.mxu1 %v7029_v45 }
 0xa4b   :  { %2707 = vmatpush1.msra.mxu0 %v6001_v36  ;;  %4386 = vmatpush3.msra.mxu1 %v6087_v44 }
 0xa4c   :  { %2708 = vmatprep.subr.mxu0 %v6004_v6  ;;  %4387 = vmatprep.subr.mxu1 %v7029_v45 }
 0xa4d   :  { %2709 = vmatpush1.msra.mxu0 %v6007_v7  ;;  %4388 = vmatpush3.msra.mxu1 %v6091_v43 }
 0xa4e   :  { %2710 = vmatprep.subr.mxu0 %v6010_v38  ;;  %4389 = vmatprep.subr.mxu1 %v7029_v45 }
 0xa4f   :  { %2711 = vmatpush1.msra.mxu0 %v6013_v8  ;;  %4390 = vmatpush3.msra.mxu1 %v6095_v56 }
 0xa50   :  { %2712 = vmatprep.subr.mxu0 %v6016_v39  ;;  %4391 = vmatprep.subr.mxu1 %v7029_v45 }
 0xa51   :  { %2713 = vmatpush1.msra.mxu0 %v6019_v9  ;;  %4392 = vmatpush3.msra.mxu1 %v6099_v10 }
 0xa52   :  { %2714 = vmatprep.subr.mxu0 %v6022_v47  ;;  %4393 = vmatprep.subr.mxu1 %v7029_v45 }
 0xa53   :  { %2715 = vmatpush1.msra.mxu0 %v6025_v29  ;;  %4394 = vmatpush3.msra.mxu1 %v6103_v21 }
 0xa54   :  { %2716 = vmatprep.subr.mxu0 %v6028_v30  ;;  %4395 = vmatprep.subr.mxu1 %v7029_v45 }
 0xa55   :  { %2717 = vmatpush1.msra.mxu0 %v6031_v31  ;;  %4396 = vmatpush3.msra.mxu1 %v6107_v23 }
 0xa56   :  { %2718 = vmatprep.subr.mxu0 %v6034_v32  ;;  %4397 = vmatprep.subr.mxu1 %v7029_v45 }
 0xa57   :  { %2719 = vmatpush1.msra.mxu0 %v6037_v33  ;;  %4398 = vmatpush3.msra.mxu1 %v6111_v46 }
 0xa58   :  { %2720 = vmatprep.subr.mxu0 %v6040_v34  ;;  %4399 = vmatprep.subr.mxu1 %v7029_v45 }
 0xa59   :  { %2721 = vmatpush1.msra.mxu0 %v6043_v19  ;;  %4400 = vmatpush3.msra.mxu1 %v6115_v51 }
 0xa5a   :  { %2722 = vmatprep.subr.mxu0 %v6046_v42  ;;  %4401 = vmatprep.subr.mxu1 %v7029_v45 }
 0xa5b   :  { %2723 = vmatpush1.msra.mxu0 %v6049_v27  ;;  %4402 = vmatpush3.msra.mxu1 %v6119_v11 }
 0xa5c   :  { %2724 = vmatprep.subr.mxu0 %v6052_v57  ;;  %4403 = vmatprep.subr.mxu1 %v7029_v45 }
 0xa5d   :  { %2725 = vmatpush1.msra.mxu0 %v6055_v28  ;;  %4404 = vmatpush3.msra.mxu1 %v6123_v41 }
 0xa5e   :  { %2726 = vmatprep.subr.mxu0 %v6058_v15  ;;  %4405 = vmatprep.subr.mxu1 %v7029_v45 }
 0xa5f   :  { %2727 = vmatpush1.msra.mxu0 %v7139_v48  ;;  %4406 = vmatpush3.msra.mxu1 %v7140_v14 }
 0xa60   :  { %2728 = vmatprep.subr.mxu0 %v7141_v61  ;;  %4407 = vmatprep.subr.mxu1 %v7029_v45 }
 0xa61   :  { %2729 = vmatpush1.msra.mxu0 %v7142_v17  ;;  %4408 = vmatpush3.msra.mxu1 %v7143_v20 }
 0xa62   :  { %2730 = vmatprep.subr.mxu0 %v7144_v55  ;;  %4409 = vmatprep.subr.mxu1 %v7029_v45  ;;  %v7150_v55 = vld [vmem:[#allocation34_spill] sm:$0xff] }
 0xa63   :  { %2731 = vmatpush1.msra.mxu0 %v7145_v63  ;;  %2764 = vmatprep.mubr.f32.mxu0 %v7029_v45  ;;  %v1971_v20 = vadd.f32 %v7150_v55, %v6288_v12 }
 0xa64   :  { %4410 = vmatpush3.msra.mxu1 %v7146_v37  ;;  %4411 = vmatprep.mubr.msk.f32.mxu1 %vm4936_vm0, %v7029_v45 }
 0xa65   :  { %2866 = vmatprep.subr.mxu0 %v7147_v18  ;;  %4414 = vmatprep.subr.mxu1 %v7029_v45 }
 0xb04   :  { %v2600_v13 = vpop.f32.mrf.mxu0  ;;  %v2671_v59 = vpop.f32.mrf.mxu1 }
 0xb05   :  { %v2601_v54 = vadd.f32 %v2600_v13, %v7149_v22  ;;  %v2672_v13 = vadd.f32 %v2671_v59, %v6293_v53  ;;  %v6560_v59 = vld [vmem:[#allocation9 + $0x158] sm:$0xff] }
 0xb06   :  { %v2602_v49 = vpop.f32.mrf.mxu0  ;;  %v4378_v40 = vpop.f32.mrf.mxu1 }
 0xb07   :  { %v2675_v16 = vadd.f32 %v2601_v54, %v1969_v60  ;;  %v2603_v37 = vadd.f32 %v2602_v49, %v6285_v0  ;;  %v7151_v60 = vld [vmem:[#allocation19_spill] sm:$0xff] }
 0xb08   :  { %v2080_v54 = vadd.f32 %v7151_v60, %v6297_v25  ;;  %v6580_v60 = vld [vmem:[#allocation9 + $0x128] sm:$0xff] }
 0xb09   :  { %v3573_v63 = vmul.f32 -1.442695, %v2675_v16  ;;  %v2682_v18 = vadd.f32 %v2603_v37, %v1971_v20  ;;  %v6567_v16 = vld [vmem:[#allocation9 + $0x160] sm:$0xff] }
 0xb0b   :  { %4665 = vpow2.f32 %v3573_v63  ;;  %v3574_v17 = vmul.f32 -1.442695, %v2682_v18  ;;  %v6570_v18 = vld [vmem:[#allocation9 + $0x140] sm:$0xff] }
 0xb0d   :  { %4667 = vpow2.f32 %v3574_v17 }
 0xb18   :  { %v4666_v61 = vpop.eup %4665 }
 0xb19   :  { %v2679_v14 = vadd.f32 1.0, %v4666_v61 }
 0xb1a   :  { %v4668_v48 = vpop.eup %4667 }
 0xb1b   :  { %4669 = vrcp.f32 %v2679_v14  ;;  %v2686_v50 = vadd.f32 1.0, %v4668_v48  ;;  %v6554_v48 = vld [vmem:[#allocation9 + $0x168] sm:$0xff]  ;;  %v6557_v14 = vld [vmem:[#allocation9 + $0x178] sm:$0xff] }
 0xb1d   :  { %4671 = vrcp.f32 %v2686_v50  ;;  %v6574_v50 = vld [vmem:[#allocation9 + $0x138] sm:$0xff] }
 0xb28   :  { %v4670_v22 = vpop.eup %4669 }
 0xb29   :  { %v2689_v40 = vmul.f32 %v4670_v22, %v2672_v13  ;;  %v6564_v22 = vld [vmem:[#allocation9 + $0x150] sm:$0xff]  ;;  %v6577_v13 = vld [vmem:[#allocation9 + $0x148] sm:$0xff] }
 0xb2a   :  { %v4672_v55 = vpop.eup %4671 }
 0xb2b   :  { %v2690_v49 = vadd.f32 %v2689_v40, %v2080_v54  ;;  %v2692_v63 = vsub.f32 1.0, %v4672_v55  ;;  %v2694_v17 = vmul.f32 %v4672_v55, %v6383_v5  ;;  %v6584_v54 = vld [vmem:[#allocation9 + $0x120] sm:$0xff]  ;;  %v6587_v40 = vld [vmem:[#allocation9 + $0x130] sm:$0xff]  ;;  %v6594_v55 = vld [vmem:[#allocation9 + $0x108] sm:$0xff] }
 0xb2d   :  { %4673 = vtanh.f32 %v2690_v49  ;;  %v6590_v49 = vld [vmem:[#allocation9 + $0x110] sm:$0xff] }
 0xb3a   :  { %v4674_v20 = vpop.eup %4673 }
 0xb3b   :  { %v2693_v37 = vmul.f32 %v4674_v20, %v2692_v63  ;;  %v6597_v63 = vld [vmem:[#allocation9 + $0x118] sm:$0xff] }
 0xb3c   :  { %v6600_v20 = vld [vmem:[#allocation9 + $0xf8] sm:$0xff] }
 0xb3d   :  { %v6465_v61 = vadd.f32 %v2694_v17, %v2693_v37  ;;  %v6604_v37 = vld [vmem:[#allocation9 + $0xf0] sm:$0xff]  ;;  %v6607_v17 = vld [vmem:[#allocation9 + $0x100] sm:$0xff] }
 0xb3f   :  { %2696 = vst [vmem:[#allocation11 + $0x10] sm:$0xff] %v6465_v61  ;;  %2765 = vmatmul.mubr.f32.vlgmr.msra.gmra.mxu0 %v6465_v61  ;;  %4412 = vmatmul.mubr.f32.vlgmr.msra.gmra.mxu1 %v6465_v61 }
 0xb40   :  { %2867 = vmatpush1.msra.mxu0 %v5983_v1  ;;  %4415 = vmatpush3.msra.mxu1 %v6075_v62  ;;  %v7152_v1 = vld [vmem:[#allocation24_spill] sm:$0xff] }
 0xb41   :  { %2868 = vmatprep.subr.mxu0 %v5986_v2  ;;  %4416 = vmatprep.subr.mxu1 %v7029_v45  ;;  %v7153_v2 = vld [vmem:[#allocation30_spill] sm:$0xff] }
 0xb42   :  { %2869 = vmatpush1.msra.mxu0 %v5989_v52  ;;  %4417 = vmatpush3.msra.mxu1 %v6077_v4  ;;  %v7154_v52 = vld [vmem:[#allocation21_spill] sm:$0xff] }
 0xb43   :  { %2870 = vmatprep.subr.mxu0 %v5992_v24  ;;  %4418 = vmatprep.subr.mxu1 %v7029_v45  ;;  %v7155_v24 = vld [vmem:[#allocation22_spill] sm:$0xff] }
 0xb44   :  { %2871 = vmatpush1.msra.mxu0 %v5995_v35  ;;  %4419 = vmatpush3.msra.mxu1 %v6082_v26  ;;  %v7156_v35 = vld [vmem:[#allocation31_spill] sm:$0xff] }
 0xb45   :  { %2872 = vmatprep.subr.mxu0 %v5998_v3  ;;  %4420 = vmatprep.subr.mxu1 %v7029_v45  ;;  %v7157_v3 = vld [vmem:[#allocation25_spill] sm:$0xff] }
 0xb46   :  { %2873 = vmatpush1.msra.mxu0 %v6001_v36  ;;  %4421 = vmatpush3.msra.mxu1 %v6087_v44  ;;  %v7158_v36 = vld [vmem:[#allocation16_spill] sm:$0xff] }
 0xb47   :  { %2874 = vmatprep.subr.mxu0 %v6004_v6  ;;  %4422 = vmatprep.subr.mxu1 %v7029_v45  ;;  %v7159_v6 = vld [vmem:[#allocation46_spill] sm:$0xff] }
 0xb48   :  { %2875 = vmatpush1.msra.mxu0 %v6007_v7  ;;  %4423 = vmatpush3.msra.mxu1 %v6091_v43  ;;  %v6535_v7 = vld [vmem:[#allocation9 + $0x170] sm:$0xff]  ;;  %v7164_v43 = vld [vmem:[#allocation23_spill] sm:$0xff] }
 0xb49   :  { %2876 = vmatprep.subr.mxu0 %v6010_v38  ;;  %4424 = vmatprep.subr.mxu1 %v7029_v45  ;;  %7160 = vst [vmem:[#allocation26_spill] sm:$0xff] %v6535_v7 }
 0xb4a   :  { %2877 = vmatpush1.msra.mxu0 %v6013_v8  ;;  %4425 = vmatpush3.msra.mxu1 %v6095_v56  ;;  %v2085_v56 = vadd.f32 %v7164_v43, %v6297_v25  ;;  %v6708_v43 = vld [vmem:[#allocation9 + $0x10] sm:$0xff] }
 0xb4b   :  { %2878 = vmatprep.subr.mxu0 %v6016_v39  ;;  %4426 = vmatprep.subr.mxu1 %v7029_v45  ;;  %v7161_v39 = vld [vmem:[#allocation35_spill] sm:$0xff]  ;;  %7172 = vst [vmem:[#allocation45_spill] sm:$0xff] %v6708_v43 }
 0xb4c   :  { %2879 = vmatpush1.msra.mxu0 %v6019_v9  ;;  %4427 = vmatpush3.msra.mxu1 %v6099_v10  ;;  %v1975_v9 = vadd.f32 %v7161_v39, %v7134_v58  ;;  %v6647_v39 = vld [vmem:[#allocation9 + $0xa0] sm:$0xff] }
 0xb4d   :  { %2880 = vmatprep.subr.mxu0 %v6022_v47  ;;  %4428 = vmatprep.subr.mxu1 %v7029_v45  ;;  %v7162_v47 = vld [vmem:[#allocation42_spill] sm:$0xff] }
 0xb4e   :  { %2881 = vmatpush1.msra.mxu0 %v6025_v29  ;;  %4429 = vmatpush3.msra.mxu1 %v6103_v21 }
 0xb4f   :  { %2882 = vmatprep.subr.mxu0 %v6028_v30  ;;  %4430 = vmatprep.subr.mxu1 %v7029_v45 }
 0xb50   :  { %2883 = vmatpush1.msra.mxu0 %v6031_v31  ;;  %4431 = vmatpush3.msra.mxu1 %v6107_v23 }
 0xb51   :  { %2884 = vmatprep.subr.mxu0 %v6034_v32  ;;  %4432 = vmatprep.subr.mxu1 %v7029_v45 }
 0xb52   :  { %2885 = vmatpush1.msra.mxu0 %v6037_v33  ;;  %4433 = vmatpush3.msra.mxu1 %v6111_v46 }
 0xb53   :  { %2886 = vmatprep.subr.mxu0 %v6040_v34  ;;  %4434 = vmatprep.subr.mxu1 %v7029_v45 }
 0xb54   :  { %2887 = vmatpush1.msra.mxu0 %v6043_v19  ;;  %4435 = vmatpush3.msra.mxu1 %v6115_v51  ;;  %v7163_v19 = vld [vmem:[#allocation48_spill] sm:$0xff] }
 0xb55   :  { %2888 = vmatprep.subr.mxu0 %v6046_v42  ;;  %4436 = vmatprep.subr.mxu1 %v7029_v45  ;;  %v1977_v42 = vadd.f32 %v7163_v19, %v6288_v12  ;;  %v6674_v19 = vld [vmem:[#allocation9 + $0x48] sm:$0xff] }
 0xb56   :  { %2889 = vmatpush1.msra.mxu0 %v6049_v27  ;;  %4437 = vmatpush3.msra.mxu1 %v6119_v11 }
 0xb57   :  { %2890 = vmatprep.subr.mxu0 %v6052_v57  ;;  %4438 = vmatprep.subr.mxu1 %v7029_v45 }
 0xb58   :  { %2891 = vmatpush1.msra.mxu0 %v6055_v28  ;;  %4439 = vmatpush3.msra.mxu1 %v6123_v41 }
 0xb59   :  { %2892 = vmatprep.subr.mxu0 %v6058_v15  ;;  %4440 = vmatprep.subr.mxu1 %v7029_v45 }
 0xb5a   :  { %2893 = vmatpush1.msra.mxu0 %v7152_v1  ;;  %4441 = vmatpush3.msra.mxu1 %v7153_v2  ;;  %v6614_v1 = vld [vmem:[#allocation9 + $0xd8] sm:$0xff]  ;;  %v6617_v2 = vld [vmem:[#allocation9 + $0xe8] sm:$0xff] }
 0xb5b   :  { %2894 = vmatprep.subr.mxu0 %v7154_v52  ;;  %4442 = vmatprep.subr.mxu1 %v7029_v45  ;;  %v6620_v52 = vld [vmem:[#allocation9 + $0xc8] sm:$0xff] }
 0xb5c   :  { %2895 = vmatpush1.msra.mxu0 %v7155_v24  ;;  %4443 = vmatpush3.msra.mxu1 %v7156_v35  ;;  %v6624_v24 = vld [vmem:[#allocation9 + $0xc0] sm:$0xff]  ;;  %v6627_v35 = vld [vmem:[#allocation9 + $0xd0] sm:$0xff] }
 0xb5d   :  { %2896 = vmatprep.subr.mxu0 %v7157_v3  ;;  %4444 = vmatprep.subr.mxu1 %v7029_v45  ;;  %v6630_v3 = vld [vmem:[#allocation9 + $0xb0] sm:$0xff] }
 0xb5e   :  { %2897 = vmatpush1.msra.mxu0 %v7158_v36  ;;  %2930 = vmatprep.mubr.f32.mxu0 %v7029_v45  ;;  %v6634_v36 = vld [vmem:[#allocation9 + $0xa8] sm:$0xff] }
 0xb5f   :  { %4445 = vmatpush3.msra.mxu1 %v7159_v6  ;;  %4446 = vmatprep.mubr.msk.f32.mxu1 %vm4936_vm0, %v7029_v45  ;;  %v6637_v6 = vld [vmem:[#allocation9 + $0xb8] sm:$0xff] }
 0xb60   :  { %3032 = vmatprep.subr.mxu0 %v6535_v7  ;;  %4449 = vmatprep.subr.mxu1 %v7029_v45 }
 0xbff   :  { %v2766_v38 = vpop.f32.mrf.mxu0  ;;  %v2837_v8 = vpop.f32.mrf.mxu1 }
 0xc00   :  { %v2767_v29 = vadd.f32 %v2766_v38, %v7162_v47  ;;  %v2838_v26 = vadd.f32 %v2837_v8, %v6293_v53  ;;  %v6640_v38 = vld [vmem:[#allocation9 + $0x98] sm:$0xff]  ;;  %v6644_v8 = vld [vmem:[#allocation9 + $0x90] sm:$0xff] }
 0xc01   :  { %v2768_v30 = vpop.f32.mrf.mxu0  ;;  %v4413_v31 = vpop.f32.mrf.mxu1 }
 0xc02   :  { %v2841_v32 = vadd.f32 %v2767_v29, %v1975_v9  ;;  %v2769_v34 = vadd.f32 %v2768_v30, %v6285_v0  ;;  %v6650_v9 = vld [vmem:[#allocation9 + $0x80] sm:$0xff]  ;;  %v6654_v29 = vld [vmem:[#allocation9 + $0x78] sm:$0xff]  ;;  %v6657_v30 = vld [vmem:[#allocation9 + $0x88] sm:$0xff] }
 0xc03   :  { %v6660_v31 = vld [vmem:[#allocation9 + $0x68] sm:$0xff] }
 0xc04   :  { %v3575_v33 = vmul.f32 -1.442695, %v2841_v32  ;;  %v2848_v27 = vadd.f32 %v2769_v34, %v1977_v42  ;;  %v6664_v32 = vld [vmem:[#allocation9 + $0x60] sm:$0xff]  ;;  %v6670_v34 = vld [vmem:[#allocation9 + $0x50] sm:$0xff]  ;;  %v6677_v42 = vld [vmem:[#allocation9 + $0x58] sm:$0xff] }
 0xc06   :  { %4675 = vpow2.f32 %v3575_v33  ;;  %v3576_v57 = vmul.f32 -1.442695, %v2848_v27  ;;  %v6667_v33 = vld [vmem:[#allocation9 + $0x70] sm:$0xff]  ;;  %v6680_v27 = vld [vmem:[#allocation9 + $0x38] sm:$0xff] }
 0xc08   :  { %4677 = vpow2.f32 %v3576_v57  ;;  %v6684_v57 = vld [vmem:[#allocation9 + $0x30] sm:$0xff] }
 0xc09   :  { %7165 = vst [vmem:[#allocation27_spill] sm:$0xff] %v6684_v57 }
 0xc13   :  { %v4676_v28 = vpop.eup %4675 }
 0xc14   :  { %v2845_v15 = vadd.f32 1.0, %v4676_v28  ;;  %v6687_v28 = vld [vmem:[#allocation9 + $0x40] sm:$0xff] }
 0xc15   :  { %v4678_v62 = vpop.eup %4677  ;;  %7166 = vst [vmem:[#allocation36_spill] sm:$0xff] %v6687_v28 }
 0xc16   :  { %4679 = vrcp.f32 %v2845_v15  ;;  %v2852_v4 = vadd.f32 1.0, %v4678_v62  ;;  %v6690_v15 = vld [vmem:[#allocation9 + $0x20] sm:$0xff]  ;;  %v6694_v62 = vld [vmem:[#allocation9 + $0x18] sm:$0xff] }
 0xc17   :  { %7167 = vst [vmem:[#allocation18_spill] sm:$0xff] %v6690_v15  ;;  %7168 = vst [vmem:[#allocation32_spill] sm:$0xff] %v6694_v62 }
 0xc18   :  { %4681 = vrcp.f32 %v2852_v4  ;;  %v6697_v4 = vld [vmem:[#allocation9 + $0x28] sm:$0xff] }
 0xc19   :  { %7169 = vst [vmem:[#allocation33_spill] sm:$0xff] %v6697_v4 }
 0xc23   :  { %v4680_v44 = vpop.eup %4679 }
 0xc24   :  { %v2855_v10 = vmul.f32 %v4680_v44, %v2838_v26  ;;  %v6700_v26 = vld [vmem:[#allocation9 + $0x8] sm:$0xff]  ;;  %v6704_v44 = vld [vmem:[#allocation9] sm:$0xff] }
 0xc25   :  { %v4682_v23 = vpop.eup %4681  ;;  %7170 = vst [vmem:[#allocation37_spill] sm:$0xff] %v6700_v26  ;;  %7171 = vst [vmem:[#allocation20_spill] sm:$0xff] %v6704_v44 }
 0xc26   :  { %v2856_v21 = vadd.f32 %v2855_v10, %v2085_v56  ;;  %v2858_v46 = vsub.f32 1.0, %v4682_v23  ;;  %v2860_v41 = vmul.f32 %v4682_v23, %v6465_v61  ;;  %v6610_v61 = vld [vmem:[#allocation9 + $0xe0] sm:$0xff] }
 0xc28   :  { %4683 = vtanh.f32 %v2856_v21  ;;  %v7173_v21 = vld [vmem:[#allocation38_spill] sm:$0xff] }
 0xc29   :  { %v1981_v23 = vadd.f32 %v7173_v21, %v7134_v58 }
 0xc35   :  { %v4684_v51 = vpop.eup %4683 }
 0xc36   :  { %v2859_v11 = vmul.f32 %v4684_v51, %v2858_v46 }
 0xc38   :  { %v6549_v5 = vadd.f32 %v2860_v41, %v2859_v11 }
 0xc3a   :  { %2862 = vst [vmem:[#allocation11 + $0x18] sm:$0xff] %v6549_v5  ;;  %2931 = vmatmul.mubr.f32.vlgmr.msra.gmra.mxu0 %v6549_v5  ;;  %4447 = vmatmul.mubr.f32.vlgmr.msra.gmra.mxu1 %v6549_v5 }
 0xc3b   :  { %3033 = vmatpush1.msra.mxu0 %v6554_v48  ;;  %4450 = vmatpush3.msra.mxu1 %v6557_v14 }
 0xc3c   :  { %3034 = vmatprep.subr.mxu0 %v6560_v59  ;;  %4451 = vmatprep.subr.mxu1 %v7029_v45 }
 0xc3d   :  { %3035 = vmatpush1.msra.mxu0 %v6564_v22  ;;  %4452 = vmatpush3.msra.mxu1 %v6567_v16 }
 0xc3e   :  { %3036 = vmatprep.subr.mxu0 %v6570_v18  ;;  %4453 = vmatprep.subr.mxu1 %v7029_v45 }
 0xc3f   :  { %3037 = vmatpush1.msra.mxu0 %v6574_v50  ;;  %4454 = vmatpush3.msra.mxu1 %v6577_v13 }
 0xc40   :  { %3038 = vmatprep.subr.mxu0 %v6580_v60  ;;  %4455 = vmatprep.subr.mxu1 %v7029_v45 }
 0xc41   :  { %3039 = vmatpush1.msra.mxu0 %v6584_v54  ;;  %4456 = vmatpush3.msra.mxu1 %v6587_v40 }
 0xc42   :  { %3040 = vmatprep.subr.mxu0 %v6590_v49  ;;  %4457 = vmatprep.subr.mxu1 %v7029_v45 }
 0xc43   :  { %3041 = vmatpush1.msra.mxu0 %v6594_v55  ;;  %4458 = vmatpush3.msra.mxu1 %v6597_v63 }
 0xc44   :  { %3042 = vmatprep.subr.mxu0 %v6600_v20  ;;  %4459 = vmatprep.subr.mxu1 %v7029_v45 }
 0xc45   :  { %3043 = vmatpush1.msra.mxu0 %v6604_v37  ;;  %4460 = vmatpush3.msra.mxu1 %v6607_v17 }
 0xc46   :  { %3044 = vmatprep.subr.mxu0 %v6610_v61  ;;  %4461 = vmatprep.subr.mxu1 %v7029_v45 }
 0xc47   :  { %3045 = vmatpush1.msra.mxu0 %v6614_v1  ;;  %4462 = vmatpush3.msra.mxu1 %v6617_v2 }
 0xc48   :  { %3046 = vmatprep.subr.mxu0 %v6620_v52  ;;  %4463 = vmatprep.subr.mxu1 %v7029_v45 }
 0xc49   :  { %3047 = vmatpush1.msra.mxu0 %v6624_v24  ;;  %4464 = vmatpush3.msra.mxu1 %v6627_v35 }
 0xc4a   :  { %3048 = vmatprep.subr.mxu0 %v6630_v3  ;;  %4465 = vmatprep.subr.mxu1 %v7029_v45 }
 0xc4b   :  { %3049 = vmatpush1.msra.mxu0 %v6634_v36  ;;  %4466 = vmatpush3.msra.mxu1 %v6637_v6 }
 0xc4c   :  { %3050 = vmatprep.subr.mxu0 %v6640_v38  ;;  %4467 = vmatprep.subr.mxu1 %v7029_v45 }
 0xc4d   :  { %3051 = vmatpush1.msra.mxu0 %v6644_v8  ;;  %4468 = vmatpush3.msra.mxu1 %v6647_v39 }
 0xc4e   :  { %3052 = vmatprep.subr.mxu0 %v6650_v9  ;;  %4469 = vmatprep.subr.mxu1 %v7029_v45 }
 0xc4f   :  { %3053 = vmatpush1.msra.mxu0 %v6654_v29  ;;  %4470 = vmatpush3.msra.mxu1 %v6657_v30 }
 0xc50   :  { %3054 = vmatprep.subr.mxu0 %v6660_v31  ;;  %4471 = vmatprep.subr.mxu1 %v7029_v45 }
 0xc51   :  { %3055 = vmatpush1.msra.mxu0 %v6664_v32  ;;  %4472 = vmatpush3.msra.mxu1 %v6667_v33 }
 0xc52   :  { %3056 = vmatprep.subr.mxu0 %v6670_v34  ;;  %4473 = vmatprep.subr.mxu1 %v7029_v45 }
 0xc53   :  { %3057 = vmatpush1.msra.mxu0 %v6674_v19  ;;  %4474 = vmatpush3.msra.mxu1 %v6677_v42 }
 0xc54   :  { %3058 = vmatprep.subr.mxu0 %v6680_v27  ;;  %4475 = vmatprep.subr.mxu1 %v7029_v45 }
 0xc55   :  { %3059 = vmatpush1.msra.mxu0 %v6684_v57  ;;  %4476 = vmatpush3.msra.mxu1 %v6687_v28 }
 0xc56   :  { %3060 = vmatprep.subr.mxu0 %v6690_v15  ;;  %4477 = vmatprep.subr.mxu1 %v7029_v45 }
 0xc57   :  { %3061 = vmatpush1.msra.mxu0 %v6694_v62  ;;  %4478 = vmatpush3.msra.mxu1 %v6697_v4 }
 0xc58   :  { %3062 = vmatprep.subr.mxu0 %v6700_v26  ;;  %4479 = vmatprep.subr.mxu1 %v7029_v45  ;;  %v7174_v26 = vld [vmem:[#allocation47_spill] sm:$0xff] }
 0xc59   :  { %3063 = vmatpush1.msra.mxu0 %v6704_v44  ;;  %3096 = vmatprep.mubr.f32.mxu0 %v7029_v45  ;;  %v1983_v4 = vadd.f32 %v7174_v26, %v6288_v12 }
 0xc5a   :  { %4480 = vmatpush3.msra.mxu1 %v6708_v43  ;;  %4481 = vmatprep.mubr.msk.f32.mxu1 %vm4936_vm0, %v7029_v45 }
 0xc5b   :  { %3198 = vmatprep.subr.mxu0 %v6535_v7  ;;  %4484 = vmatprep.subr.mxu1 %v7029_v45 }
 0xcfa   :  { %v2932_v56 = vpop.f32.mrf.mxu0  ;;  %v3003_v10 = vpop.f32.mrf.mxu1 }
 0xcfb   :  { %v2933_v46 = vadd.f32 %v2932_v56, %v7162_v47  ;;  %v3004_v56 = vadd.f32 %v3003_v10, %v6293_v53  ;;  %v7181_v10 = vld [vmem:[#allocation37_spill] sm:$0xff] }
 0xcfc   :  { %v2934_v51 = vpop.f32.mrf.mxu0  ;;  %v4448_v11 = vpop.f32.mrf.mxu1 }
 0xcfd   :  { %v3007_v41 = vadd.f32 %v2933_v46, %v1981_v23  ;;  %v2935_v43 = vadd.f32 %v2934_v51, %v6285_v0  ;;  %v7175_v23 = vld [vmem:[#allocation39_spill] sm:$0xff] }
 0xcfe   :  { %v2090_v46 = vadd.f32 %v7175_v23, %v6297_v25 }
 0xcff   :  { %v3577_v44 = vmul.f32 -1.442695, %v3007_v41  ;;  %v3014_v7 = vadd.f32 %v2935_v43, %v1983_v4  ;;  %v7180_v43 = vld [vmem:[#allocation33_spill] sm:$0xff]  ;;  %v7182_v41 = vld [vmem:[#allocation20_spill] sm:$0xff] }
 0xd01   :  { %4685 = vpow2.f32 %v3577_v44  ;;  %v3578_v62 = vmul.f32 -1.442695, %v3014_v7 }
 0xd03   :  { %4687 = vpow2.f32 %v3578_v62 }
 0xd0e   :  { %v4686_v15 = vpop.eup %4685 }
 0xd0f   :  { %v3011_v28 = vadd.f32 1.0, %v4686_v15 }
 0xd10   :  { %v4688_v57 = vpop.eup %4687 }
 0xd11   :  { %4689 = vrcp.f32 %v3011_v28  ;;  %v3018_v21 = vadd.f32 1.0, %v4688_v57  ;;  %v7178_v57 = vld [vmem:[#allocation18_spill] sm:$0xff]  ;;  %v7179_v28 = vld [vmem:[#allocation32_spill] sm:$0xff] }
 0xd13   :  { %4691 = vrcp.f32 %v3018_v21  ;;  %v7183_v21 = vld [vmem:[#allocation45_spill] sm:$0xff] }
 0xd1e   :  { %v4690_v47 = vpop.eup %4689 }
 0xd1f   :  { %v3021_v11 = vmul.f32 %v4690_v47, %v3004_v56  ;;  %v7176_v47 = vld [vmem:[#allocation27_spill] sm:$0xff]  ;;  %v7184_v56 = vld [vmem:[#allocation26_spill] sm:$0xff] }
 0xd20   :  { %v4692_v26 = vpop.eup %4691 }
 0xd21   :  { %v3022_v51 = vadd.f32 %v3021_v11, %v2090_v46  ;;  %v3024_v44 = vsub.f32 1.0, %v4692_v26  ;;  %v3026_v62 = vmul.f32 %v4692_v26, %v6549_v5  ;;  %v7177_v5 = vld [vmem:[#allocation36_spill] sm:$0xff]  ;;  %v7185_v11 = vld [vmem:[#allocation29_spill] sm:$0xff]  ;;  %v7186_v26 = vld [vmem:[#allocation42_spill] sm:$0xff] }
 0xd23   :  { %4693 = vtanh.f32 %v3022_v51  ;;  %v1987_v51 = vadd.f32 %v7185_v11, %v7134_v58 }
 0xd30   :  { %v4694_v4 = vpop.eup %4693 }
 0xd31   :  { %v3025_v7 = vmul.f32 %v4694_v4, %v3024_v44 }
 0xd33   :  { %v6725_v15 = vadd.f32 %v3026_v62, %v3025_v7 }
 0xd35   :  { %3028 = vst [vmem:[#allocation11 + $0x20] sm:$0xff] %v6725_v15  ;;  %3097 = vmatmul.mubr.f32.vlgmr.msra.gmra.mxu0 %v6725_v15  ;;  %4482 = vmatmul.mubr.f32.vlgmr.msra.gmra.mxu1 %v6725_v15 }
 0xd36   :  { %3199 = vmatpush1.msra.mxu0 %v6554_v48  ;;  %4485 = vmatpush3.msra.mxu1 %v6557_v14 }
 0xd37   :  { %3200 = vmatprep.subr.mxu0 %v6560_v59  ;;  %4486 = vmatprep.subr.mxu1 %v7029_v45 }
 0xd38   :  { %3201 = vmatpush1.msra.mxu0 %v6564_v22  ;;  %4487 = vmatpush3.msra.mxu1 %v6567_v16 }
 0xd39   :  { %3202 = vmatprep.subr.mxu0 %v6570_v18  ;;  %4488 = vmatprep.subr.mxu1 %v7029_v45 }
 0xd3a   :  { %3203 = vmatpush1.msra.mxu0 %v6574_v50  ;;  %4489 = vmatpush3.msra.mxu1 %v6577_v13 }
 0xd3b   :  { %3204 = vmatprep.subr.mxu0 %v6580_v60  ;;  %4490 = vmatprep.subr.mxu1 %v7029_v45 }
 0xd3c   :  { %3205 = vmatpush1.msra.mxu0 %v6584_v54  ;;  %4491 = vmatpush3.msra.mxu1 %v6587_v40 }
 0xd3d   :  { %3206 = vmatprep.subr.mxu0 %v6590_v49  ;;  %4492 = vmatprep.subr.mxu1 %v7029_v45 }
 0xd3e   :  { %3207 = vmatpush1.msra.mxu0 %v6594_v55  ;;  %4493 = vmatpush3.msra.mxu1 %v6597_v63 }
 0xd3f   :  { %3208 = vmatprep.subr.mxu0 %v6600_v20  ;;  %4494 = vmatprep.subr.mxu1 %v7029_v45 }
 0xd40   :  { %3209 = vmatpush1.msra.mxu0 %v6604_v37  ;;  %4495 = vmatpush3.msra.mxu1 %v6607_v17 }
 0xd41   :  { %3210 = vmatprep.subr.mxu0 %v6610_v61  ;;  %4496 = vmatprep.subr.mxu1 %v7029_v45 }
 0xd42   :  { %3211 = vmatpush1.msra.mxu0 %v6614_v1  ;;  %4497 = vmatpush3.msra.mxu1 %v6617_v2 }
 0xd43   :  { %3212 = vmatprep.subr.mxu0 %v6620_v52  ;;  %4498 = vmatprep.subr.mxu1 %v7029_v45 }
 0xd44   :  { %3213 = vmatpush1.msra.mxu0 %v6624_v24  ;;  %4499 = vmatpush3.msra.mxu1 %v6627_v35 }
 0xd45   :  { %3214 = vmatprep.subr.mxu0 %v6630_v3  ;;  %4500 = vmatprep.subr.mxu1 %v7029_v45 }
 0xd46   :  { %3215 = vmatpush1.msra.mxu0 %v6634_v36  ;;  %4501 = vmatpush3.msra.mxu1 %v6637_v6 }
 0xd47   :  { %3216 = vmatprep.subr.mxu0 %v6640_v38  ;;  %4502 = vmatprep.subr.mxu1 %v7029_v45 }
 0xd48   :  { %3217 = vmatpush1.msra.mxu0 %v6644_v8  ;;  %4503 = vmatpush3.msra.mxu1 %v6647_v39 }
 0xd49   :  { %3218 = vmatprep.subr.mxu0 %v6650_v9  ;;  %4504 = vmatprep.subr.mxu1 %v7029_v45 }
 0xd4a   :  { %3219 = vmatpush1.msra.mxu0 %v6654_v29  ;;  %4505 = vmatpush3.msra.mxu1 %v6657_v30 }
 0xd4b   :  { %3220 = vmatprep.subr.mxu0 %v6660_v31  ;;  %4506 = vmatprep.subr.mxu1 %v7029_v45 }
 0xd4c   :  { %3221 = vmatpush1.msra.mxu0 %v6664_v32  ;;  %4507 = vmatpush3.msra.mxu1 %v6667_v33 }
 0xd4d   :  { %3222 = vmatprep.subr.mxu0 %v6670_v34  ;;  %4508 = vmatprep.subr.mxu1 %v7029_v45 }
 0xd4e   :  { %3223 = vmatpush1.msra.mxu0 %v6674_v19  ;;  %4509 = vmatpush3.msra.mxu1 %v6677_v42 }
 0xd4f   :  { %3224 = vmatprep.subr.mxu0 %v6680_v27  ;;  %4510 = vmatprep.subr.mxu1 %v7029_v45 }
 0xd50   :  { %3225 = vmatpush1.msra.mxu0 %v7176_v47  ;;  %4511 = vmatpush3.msra.mxu1 %v7177_v5 }
 0xd51   :  { %3226 = vmatprep.subr.mxu0 %v7178_v57  ;;  %4512 = vmatprep.subr.mxu1 %v7029_v45 }
 0xd52   :  { %3227 = vmatpush1.msra.mxu0 %v7179_v28  ;;  %4513 = vmatpush3.msra.mxu1 %v7180_v43 }
 0xd53   :  { %3228 = vmatprep.subr.mxu0 %v7181_v10  ;;  %4514 = vmatprep.subr.mxu1 %v7029_v45  ;;  %v7187_v10 = vld [vmem:[#allocation28_spill] sm:$0xff] }
 0xd54   :  { %3229 = vmatpush1.msra.mxu0 %v7182_v41  ;;  %3262 = vmatprep.mubr.f32.mxu0 %v7029_v45  ;;  %v1989_v43 = vadd.f32 %v7187_v10, %v6288_v12 }
 0xd55   :  { %4515 = vmatpush3.msra.mxu1 %v7183_v21  ;;  %4516 = vmatprep.mubr.msk.f32.mxu1 %vm4936_vm0, %v7029_v45 }
 0xd56   :  { %3364 = vmatprep.subr.mxu0 %v7184_v56  ;;  %4519 = vmatprep.subr.mxu1 %v7029_v45 }
 0xdf5   :  { %v3098_v23 = vpop.f32.mrf.mxu0  ;;  %v3169_v46 = vpop.f32.mrf.mxu1 }
 0xdf6   :  { %v3099_v44 = vadd.f32 %v3098_v23, %v7186_v26  ;;  %v3170_v23 = vadd.f32 %v3169_v46, %v6293_v53 }
 0xdf7   :  { %v3100_v4 = vpop.f32.mrf.mxu0  ;;  %v4483_v7 = vpop.f32.mrf.mxu1 }
 0xdf8   :  { %v3173_v62 = vadd.f32 %v3099_v44, %v1987_v51  ;;  %v3101_v21 = vadd.f32 %v3100_v4, %v6285_v0  ;;  %v7188_v51 = vld [vmem:[#allocation41_spill] sm:$0xff] }
 0xdf9   :  { %v2095_v44 = vadd.f32 %v7188_v51, %v6297_v25  ;;  %v7202_v51 = vld [vmem:[#allocation44_spill] sm:$0xff] }
 0xdfa   :  { %v3579_v41 = vmul.f32 -1.442695, %v3173_v62  ;;  %v3180_v56 = vadd.f32 %v3101_v21, %v1989_v43 }
 0xdfc   :  { %4695 = vpow2.f32 %v3579_v41  ;;  %v3580_v28 = vmul.f32 -1.442695, %v3180_v56 }
 0xdfe   :  { %4697 = vpow2.f32 %v3580_v28 }
 0xe09   :  { %v4696_v57 = vpop.eup %4695 }
 0xe0a   :  { %v3177_v5 = vadd.f32 1.0, %v4696_v57 }
 0xe0b   :  { %v4698_v47 = vpop.eup %4697 }
 0xe0c   :  { %4699 = vrcp.f32 %v3177_v5  ;;  %v3184_v11 = vadd.f32 1.0, %v4698_v47  ;;  %v7201_v47 = vld [vmem:[#allocation50_spill] sm:$0xff] }
 0xe0d   :  { %v1999_v5 = vadd.f32 %v7201_v47, %v7134_v58 }
 0xe0e   :  { %4701 = vrcp.f32 %v3184_v11 }
 0xe19   :  { %v4700_v26 = vpop.eup %4699 }
 0xe1a   :  { %v3187_v7 = vmul.f32 %v4700_v26, %v3170_v23 }
 0xe1b   :  { %v4702_v10 = vpop.eup %4701 }
 0xe1c   :  { %v3188_v4 = vadd.f32 %v3187_v7, %v2095_v44  ;;  %v3190_v41 = vsub.f32 1.0, %v4702_v10  ;;  %v3192_v28 = vmul.f32 %v4702_v10, %v6725_v15  ;;  %v2001_v44 = vadd.f32 %v7202_v51, %v6288_v12 }
 0xe1e   :  { %4703 = vtanh.f32 %v3188_v4 }
 0xe2b   :  { %v4704_v43 = vpop.eup %4703 }
 0xe2c   :  { %v3191_v21 = vmul.f32 %v4704_v43, %v3190_v41 }
 0xe2e   :  { %v6807_v57 = vadd.f32 %v3192_v28, %v3191_v21 }
 0xe30   :  { %3194 = vst [vmem:[#allocation11 + $0x28] sm:$0xff] %v6807_v57  ;;  %3263 = vmatmul.mubr.f32.vlgmr.msra.gmra.mxu0 %v6807_v57  ;;  %4517 = vmatmul.mubr.f32.vlgmr.msra.gmra.mxu1 %v6807_v57 }
 0xe31   :  { %3365 = vmatpush1.msra.mxu0 %v6554_v48  ;;  %4520 = vmatpush3.msra.mxu1 %v6557_v14  ;;  %v7189_v48 = vld [vmem:[#allocation27_spill] sm:$0xff]  ;;  %v7190_v14 = vld [vmem:[#allocation36_spill] sm:$0xff] }
 0xe32   :  { %3366 = vmatprep.subr.mxu0 %v6560_v59  ;;  %4521 = vmatprep.subr.mxu1 %v7029_v45  ;;  %v7191_v59 = vld [vmem:[#allocation18_spill] sm:$0xff] }
 0xe33   :  { %3367 = vmatpush1.msra.mxu0 %v6564_v22  ;;  %4522 = vmatpush3.msra.mxu1 %v6567_v16  ;;  %v7192_v22 = vld [vmem:[#allocation32_spill] sm:$0xff]  ;;  %v7193_v16 = vld [vmem:[#allocation33_spill] sm:$0xff] }
 0xe34   :  { %3368 = vmatprep.subr.mxu0 %v6570_v18  ;;  %4523 = vmatprep.subr.mxu1 %v7029_v45  ;;  %v7194_v18 = vld [vmem:[#allocation37_spill] sm:$0xff] }
 0xe35   :  { %3369 = vmatpush1.msra.mxu0 %v6574_v50  ;;  %4524 = vmatpush3.msra.mxu1 %v6577_v13  ;;  %v7195_v50 = vld [vmem:[#allocation20_spill] sm:$0xff]  ;;  %v7196_v13 = vld [vmem:[#allocation45_spill] sm:$0xff] }
 0xe36   :  { %3370 = vmatprep.subr.mxu0 %v6580_v60  ;;  %4525 = vmatprep.subr.mxu1 %v7029_v45 }
 0xe37   :  { %3371 = vmatpush1.msra.mxu0 %v6584_v54  ;;  %4526 = vmatpush3.msra.mxu1 %v6587_v40  ;;  %v7197_v40 = vld [vmem:[#allocation43_spill] sm:$0xff] }
 0xe38   :  { %3372 = vmatprep.subr.mxu0 %v6590_v49  ;;  %4527 = vmatprep.subr.mxu1 %v7029_v45  ;;  %v1993_v49 = vadd.f32 %v7197_v40, %v7134_v58 }
 0xe39   :  { %3373 = vmatpush1.msra.mxu0 %v6594_v55  ;;  %4528 = vmatpush3.msra.mxu1 %v6597_v63  ;;  %v7198_v55 = vld [vmem:[#allocation42_spill] sm:$0xff] }
 0xe3a   :  { %3374 = vmatprep.subr.mxu0 %v6600_v20  ;;  %4529 = vmatprep.subr.mxu1 %v7029_v45 }
 0xe3b   :  { %3375 = vmatpush1.msra.mxu0 %v6604_v37  ;;  %4530 = vmatpush3.msra.mxu1 %v6607_v17 }
 0xe3c   :  { %3376 = vmatprep.subr.mxu0 %v6610_v61  ;;  %4531 = vmatprep.subr.mxu1 %v7029_v45 }
 0xe3d   :  { %3377 = vmatpush1.msra.mxu0 %v6614_v1  ;;  %4532 = vmatpush3.msra.mxu1 %v6617_v2  ;;  %v7199_v2 = vld [vmem:[#allocation40_spill] sm:$0xff] }
 0xe3e   :  { %3378 = vmatprep.subr.mxu0 %v6620_v52  ;;  %4533 = vmatprep.subr.mxu1 %v7029_v45  ;;  %v1995_v52 = vadd.f32 %v7199_v2, %v6288_v12 }
 0xe3f   :  { %3379 = vmatpush1.msra.mxu0 %v6624_v24  ;;  %4534 = vmatpush3.msra.mxu1 %v6627_v35 }
 0xe40   :  { %3380 = vmatprep.subr.mxu0 %v6630_v3  ;;  %4535 = vmatprep.subr.mxu1 %v7029_v45 }
 0xe41   :  { %3381 = vmatpush1.msra.mxu0 %v6634_v36  ;;  %4536 = vmatpush3.msra.mxu1 %v6637_v6 }
 0xe42   :  { %3382 = vmatprep.subr.mxu0 %v6640_v38  ;;  %4537 = vmatprep.subr.mxu1 %v7029_v45 }
 0xe43   :  { %3383 = vmatpush1.msra.mxu0 %v6644_v8  ;;  %4538 = vmatpush3.msra.mxu1 %v6647_v39  ;;  %v7200_v39 = vld [vmem:[#allocation49_spill] sm:$0xff] }
 0xe44   :  { %3384 = vmatprep.subr.mxu0 %v6650_v9  ;;  %4539 = vmatprep.subr.mxu1 %v7029_v45  ;;  %v2100_v9 = vadd.f32 %v7200_v39, %v6297_v25 }
 0xe45   :  { %3385 = vmatpush1.msra.mxu0 %v6654_v29  ;;  %4540 = vmatpush3.msra.mxu1 %v6657_v30 }
 0xe46   :  { %3386 = vmatprep.subr.mxu0 %v6660_v31  ;;  %4541 = vmatprep.subr.mxu1 %v7029_v45 }
 0xe47   :  { %3387 = vmatpush1.msra.mxu0 %v6664_v32  ;;  %4542 = vmatpush3.msra.mxu1 %v6667_v33 }
 0xe48   :  { %3388 = vmatprep.subr.mxu0 %v6670_v34  ;;  %4543 = vmatprep.subr.mxu1 %v7029_v45 }
 0xe49   :  { %3389 = vmatpush1.msra.mxu0 %v6674_v19  ;;  %4544 = vmatpush3.msra.mxu1 %v6677_v42 }
 0xe4a   :  { %3390 = vmatprep.subr.mxu0 %v6680_v27  ;;  %4545 = vmatprep.subr.mxu1 %v7029_v45 }
 0xe4b   :  { %3391 = vmatpush1.msra.mxu0 %v7189_v48  ;;  %4546 = vmatpush3.msra.mxu1 %v7190_v14 }
 0xe4c   :  { %3392 = vmatprep.subr.mxu0 %v7191_v59  ;;  %4547 = vmatprep.subr.mxu1 %v7029_v45 }
 0xe4d   :  { %3393 = vmatpush1.msra.mxu0 %v7192_v22  ;;  %4548 = vmatpush3.msra.mxu1 %v7193_v16 }
 0xe4e   :  { %3394 = vmatprep.subr.mxu0 %v7194_v18  ;;  %4549 = vmatprep.subr.mxu1 %v7029_v45 }
 0xe4f   :  { %3395 = vmatpush1.msra.mxu0 %v7195_v50  ;;  %3428 = vmatprep.mubr.f32.mxu0 %v7029_v45 }
 0xe50   :  { %4550 = vmatpush3.msra.mxu1 %v7196_v13  ;;  %4551 = vmatprep.mubr.msk.f32.mxu1 %vm4936_vm0, %v7029_v45 }
 0xef0   :  { %v3264_v60 = vpop.f32.mrf.mxu0  ;;  %v3335_v54 = vpop.f32.mrf.mxu1 }
 0xef1   :  { %v3265_v63 = vadd.f32 %v3264_v60, %v7198_v55  ;;  %v3336_v38 = vadd.f32 %v3335_v54, %v6293_v53 }
 0xef2   :  { %v3266_v20 = vpop.f32.mrf.mxu0  ;;  %v4518_v37 = vpop.f32.mrf.mxu1 }
 0xef3   :  { %v3339_v17 = vadd.f32 %v3265_v63, %v1993_v49  ;;  %v3267_v1 = vadd.f32 %v3266_v20, %v6285_v0 }
 0xef5   :  { %v3581_v61 = vmul.f32 -1.442695, %v3339_v17  ;;  %v3346_v24 = vadd.f32 %v3267_v1, %v1995_v52 }
 0xef7   :  { %4705 = vpow2.f32 %v3581_v61  ;;  %v3582_v35 = vmul.f32 -1.442695, %v3346_v24 }
 0xef9   :  { %4707 = vpow2.f32 %v3582_v35 }
 0xf04   :  { %v4706_v45 = vpop.eup %4705 }
 0xf05   :  { %v3343_v3 = vadd.f32 1.0, %v4706_v45 }
 0xf06   :  { %v4708_v36 = vpop.eup %4707 }
 0xf07   :  { %4709 = vrcp.f32 %v3343_v3  ;;  %v3350_v6 = vadd.f32 1.0, %v4708_v36 }
 0xf09   :  { %4711 = vrcp.f32 %v3350_v6 }
 0xf14   :  { %v4710_v8 = vpop.eup %4709 }
 0xf15   :  { %v3353_v29 = vmul.f32 %v4710_v8, %v3336_v38 }
 0xf16   :  { %v4712_v31 = vpop.eup %4711 }
 0xf17   :  { %v3354_v30 = vadd.f32 %v3353_v29, %v2100_v9  ;;  %v3356_v32 = vsub.f32 1.0, %v4712_v31  ;;  %v3358_v19 = vmul.f32 %v4712_v31, %v6807_v57  ;;  %v7203_v57 = vld [vmem:[#allocation17_spill] sm:$0xff] }
 0xf18   :  { %v2105_v48 = vadd.f32 %v7203_v57, %v6297_v25 }
 0xf19   :  { %4713 = vtanh.f32 %v3354_v30 }
 0xf26   :  { %v4714_v33 = vpop.eup %4713 }
 0xf27   :  { %v3357_v34 = vmul.f32 %v4714_v33, %v3356_v32 }
 0xf29   :  { %v3359_v42 = vadd.f32 %v3358_v19, %v3357_v34 }
 0xf2b   :  { %3360 = vst [vmem:[#allocation11 + $0x30] sm:$0xff] %v3359_v42  ;;  %3429 = vmatmul.mubr.f32.vlgmr.msra.gmra.mxu0 %v3359_v42  ;;  %4552 = vmatmul.mubr.f32.vlgmr.msra.gmra.mxu1 %v3359_v42 }
 0xfeb   :  { %v3430_v27 = vpop.f32.mrf.mxu0  ;;  %v3501_v15 = vpop.f32.mrf.mxu1 }
 0xfec   :  { %v3431_v46 = vadd.f32 %v3430_v27, %v7198_v55  ;;  %v3502_v21 = vadd.f32 %v3501_v15, %v6293_v53 }
 0xfed   :  { %v3432_v26 = vpop.f32.mrf.mxu0  ;;  %v4553_v62 = vpop.f32.mrf.mxu1 }
 0xfee   :  { %v3505_v56 = vadd.f32 %v3431_v46, %v1999_v5  ;;  %v3433_v23 = vadd.f32 %v3432_v26, %v6285_v0 }
 0xff0   :  { %v3583_v11 = vmul.f32 -1.442695, %v3505_v56  ;;  %v3512_v7 = vadd.f32 %v3433_v23, %v2001_v44 }
 0xff2   :  { %4715 = vpow2.f32 %v3583_v11  ;;  %v3584_v4 = vmul.f32 -1.442695, %v3512_v7 }
 0xff4   :  { %4717 = vpow2.f32 %v3584_v4 }
 0xfff   :  { %v4716_v10 = vpop.eup %4715 }
0x1000   :  { %v3509_v41 = vadd.f32 1.0, %v4716_v10 }
0x1001   :  { %v4718_v43 = vpop.eup %4717 }
0x1002   :  { %4719 = vrcp.f32 %v3509_v41  ;;  %v3516_v58 = vadd.f32 1.0, %v4718_v43 }
0x1004   :  { %4721 = vrcp.f32 %v3516_v58 }
0x100f   :  { %v4720_v28 = vpop.eup %4719 }
0x1010   :  { %v3519_v14 = vmul.f32 %v4720_v28, %v3502_v21 }
0x1011   :  { %v4722_v12 = vpop.eup %4721 }
0x1012   :  { %v3520_v0 = vadd.f32 %v3519_v14, %v2105_v48  ;;  %v3522_v59 = vsub.f32 1.0, %v4722_v12  ;;  %v3524_v18 = vmul.f32 %v4722_v12, %v3359_v42 }
0x1014   :  { %4723 = vtanh.f32 %v3520_v0 }
0x1021   :  { %v4724_v22 = vpop.eup %4723 }
0x1022   :  { %v3523_v16 = vmul.f32 %v4724_v22, %v3522_v59 }
0x1024   :  { %v3525_v50 = vadd.f32 %v3524_v18, %v3523_v16 }
0x1026   :  { %3526 = vst [vmem:[#allocation11 + $0x38] sm:$0xff] %v3525_v50  ;;  %3585 = vst [vmem:[%s6913_s11 + $0x8] sm:$0xff] %v3525_v50 }
0x1027   :  { %4912 = shalt.err (!%p4909_p10)
}
0x1028   :  { %s4938_s22 = smov 128   ;;  %s4939_s23 = smov 8  }
0x1029   :  { %3540 = dma.vmem_to_hbm [thread:$0]  %s3535_s9, 1024, %s6912_s10, [#allocation5], %s4938_s22, %s4938_s22, %s4939_s23  }
0x102a   :  { %4927 = dma.done.wait [#allocation5], 1024  }
0x102b   :  { %4928 = vsyncadd [#allocation5], 4294966272 }
0x102c   :  { %3548 = vsyncpa [#allocation4], 1 }
0x102d   :  { %3549 = vsyncpa [#allocation7], 1 }
0x102e   :  { %3550 = vsyncpa [#allocation10], 1 }
0x102f   :  { %3551 = vsyncpa [#allocation5], 1 }

// kernel: _lambda_.3
= control target key start
LH: loop header
LB: loop body
LE: loop exit
PB: predicated region body
PF: predicated region fallthrough
CT: control target
= control target key end

     0   :  { %v7256_v3 = vmov 0.0   ;;  %vm4486_vm0 = vmmov 0   ;;  %s7242_s2 = inlined_call_operand.vmem [shape: f32[128,384], index: 2, kind: input, shape index: {}]   ;;  %s7243_s3 = inlined_call_operand.vmem [shape: f32[128,384], index: 3, kind: input, shape index: {}]   ;;  %s7244_s0 = inlined_call_operand.vmem [shape: f32[7,8,128], index: 0, kind: input, shape index: {}]   ;;  %s7245_s1 = inlined_call_operand.vmem [shape: f32[2,8,128], index: 1, kind: input, shape index: {}]   ;;  %s7246_s4 = inlined_call_operand.vmem [shape: f32[1,384], index: 4, kind: input, shape index: {}]   ;;  %s7247_s5 = inlined_call_operand.vmem [shape: f32[1,384], index: 5, kind: input, shape index: {}]   ;;  %s7248_s6 = inlined_call_operand.vmem [shape: f32[128,384], index: 6, kind: input, shape index: {}]   ;;  %s7249_s7 = inlined_call_operand.vmem [shape: f32[128,384], index: 7, kind: input, shape index: {}]   ;;  %s7250_s13 = inlined_call_operand.vmem [shape: f32[2,8,128], index: 13, kind: output, shape index: {1}]   ;;  %s7251_s8 = inlined_call_operand.vmem [shape: f32[1,384], index: 8, kind: input, shape index: {}]   ;;  %s7252_s9 = inlined_call_operand.vmem [shape: f32[1,384], index: 9, kind: input, shape index: {}]   ;;  %s7253_s10 = inlined_call_operand.vmem [shape: f32[128,128], index: 10, kind: input, shape index: {}]   ;;  %s7254_s11 = inlined_call_operand.vmem [shape: f32[1,128], index: 11, kind: input, shape index: {}]   ;;  %s7255_s12 = inlined_call_operand.vmem [shape: f32[7,8,128], index: 12, kind: output, shape index: {0}]  }
   0x1   :  { %v96_v0 = vld [vmem:[%s7242_s2 + $0x170] sm:$0xff]  ;;  %v95_v2 = vld [vmem:[%s7242_s2 + $0x168] sm:$0xff]  ;;  %179 = vmatprep.mubr.f32.mxu1 %v7256_v3  ;;  %476 = vmatprep.mubr.f32.mxu0 %v7256_v3  ;;  %v93_v5 = vld [vmem:[%s7242_s2 + $0x158] sm:$0xff] }
   0x2   :  { %v4563_v1 = vld [vmem:[%s7243_s3 + $0x170] sm:$0xff]  ;;  %115 = vmatprep.subr.mxu1 %v96_v0  ;;  %v4574_v4 = vld [vmem:[%s7243_s3 + $0x168] sm:$0xff]  ;;  %v4582_v6 = vld [vmem:[%s7243_s3 + $0x158] sm:$0xff] }
   0x3   :  { %7330 = vst [vmem:[#allocation4_spill] sm:$0xff] %v4563_v1  ;;  %412 = vmatprep.subr.mxu0 %v4563_v1  ;;  %116 = vmatpush1.msra.mxu1 %v95_v2  ;;  %v92_v7 = vld [vmem:[%s7242_s2 + $0x150] sm:$0xff]  ;;  %v90_v9 = vld [vmem:[%s7242_s2 + $0x140] sm:$0xff]  ;;  %v89_v11 = vld [vmem:[%s7242_s2 + $0x138] sm:$0xff] }
   0x4   :  { %413 = vmatpush1.msra.mxu0 %v4574_v4  ;;  %v4591_v8 = vld [vmem:[%s7243_s3 + $0x150] sm:$0xff]  ;;  %117 = vmatprep.subr.mxu1 %v93_v5  ;;  %v4600_v10 = vld [vmem:[%s7243_s3 + $0x140] sm:$0xff]  ;;  %v4608_v12 = vld [vmem:[%s7243_s3 + $0x138] sm:$0xff] }
   0x5   :  { %414 = vmatprep.subr.mxu0 %v4582_v6  ;;  %118 = vmatpush1.msra.mxu1 %v92_v7  ;;  %v87_v13 = vld [vmem:[%s7242_s2 + $0x128] sm:$0xff]  ;;  %v86_v15 = vld [vmem:[%s7242_s2 + $0x120] sm:$0xff]  ;;  %v84_v17 = vld [vmem:[%s7242_s2 + $0x110] sm:$0xff] }
   0x6   :  { %415 = vmatpush1.msra.mxu0 %v4591_v8  ;;  %v4617_v14 = vld [vmem:[%s7243_s3 + $0x128] sm:$0xff]  ;;  %119 = vmatprep.subr.mxu1 %v90_v9  ;;  %v4626_v16 = vld [vmem:[%s7243_s3 + $0x120] sm:$0xff]  ;;  %v4635_v18 = vld [vmem:[%s7243_s3 + $0x110] sm:$0xff] }
   0x7   :  { %416 = vmatprep.subr.mxu0 %v4600_v10  ;;  %120 = vmatpush1.msra.mxu1 %v89_v11  ;;  %v83_v19 = vld [vmem:[%s7242_s2 + $0x108] sm:$0xff]  ;;  %v81_v21 = vld [vmem:[%s7242_s2 + $0xf8] sm:$0xff]  ;;  %v80_v23 = vld [vmem:[%s7242_s2 + $0xf0] sm:$0xff] }
   0x8   :  { %417 = vmatpush1.msra.mxu0 %v4608_v12  ;;  %121 = vmatprep.subr.mxu1 %v87_v13  ;;  %v4644_v20 = vld [vmem:[%s7243_s3 + $0x108] sm:$0xff]  ;;  %v4653_v22 = vld [vmem:[%s7243_s3 + $0xf8] sm:$0xff]  ;;  %v4662_v24 = vld [vmem:[%s7243_s3 + $0xf0] sm:$0xff] }
   0x9   :  { %418 = vmatprep.subr.mxu0 %v4617_v14  ;;  %122 = vmatpush1.msra.mxu1 %v86_v15  ;;  %v78_v25 = vld [vmem:[%s7242_s2 + $0xe0] sm:$0xff]  ;;  %v77_v27 = vld [vmem:[%s7242_s2 + $0xd8] sm:$0xff]  ;;  %v75_v29 = vld [vmem:[%s7242_s2 + $0xc8] sm:$0xff] }
   0xa   :  { %419 = vmatpush1.msra.mxu0 %v4626_v16  ;;  %123 = vmatprep.subr.mxu1 %v84_v17  ;;  %v4671_v26 = vld [vmem:[%s7243_s3 + $0xe0] sm:$0xff]  ;;  %v4680_v28 = vld [vmem:[%s7243_s3 + $0xd8] sm:$0xff]  ;;  %v4689_v30 = vld [vmem:[%s7243_s3 + $0xc8] sm:$0xff] }
   0xb   :  { %420 = vmatprep.subr.mxu0 %v4635_v18  ;;  %124 = vmatpush1.msra.mxu1 %v83_v19  ;;  %v74_v31 = vld [vmem:[%s7242_s2 + $0xc0] sm:$0xff]  ;;  %v72_v33 = vld [vmem:[%s7242_s2 + $0xb0] sm:$0xff]  ;;  %v71_v35 = vld [vmem:[%s7242_s2 + $0xa8] sm:$0xff] }
   0xc   :  { %421 = vmatpush1.msra.mxu0 %v4644_v20  ;;  %125 = vmatprep.subr.mxu1 %v81_v21  ;;  %v4698_v32 = vld [vmem:[%s7243_s3 + $0xc0] sm:$0xff]  ;;  %v4707_v34 = vld [vmem:[%s7243_s3 + $0xb0] sm:$0xff]  ;;  %v4716_v36 = vld [vmem:[%s7243_s3 + $0xa8] sm:$0xff] }
   0xd   :  { %422 = vmatprep.subr.mxu0 %v4653_v22  ;;  %126 = vmatpush1.msra.mxu1 %v80_v23  ;;  %v69_v37 = vld [vmem:[%s7242_s2 + $0x98] sm:$0xff]  ;;  %v68_v39 = vld [vmem:[%s7242_s2 + $0x90] sm:$0xff]  ;;  %v66_v41 = vld [vmem:[%s7242_s2 + $0x80] sm:$0xff] }
   0xe   :  { %423 = vmatpush1.msra.mxu0 %v4662_v24  ;;  %127 = vmatprep.subr.mxu1 %v78_v25  ;;  %v4725_v38 = vld [vmem:[%s7243_s3 + $0x98] sm:$0xff]  ;;  %v4734_v40 = vld [vmem:[%s7243_s3 + $0x90] sm:$0xff]  ;;  %v4743_v42 = vld [vmem:[%s7243_s3 + $0x80] sm:$0xff] }
   0xf   :  { %424 = vmatprep.subr.mxu0 %v4671_v26  ;;  %128 = vmatpush1.msra.mxu1 %v77_v27  ;;  %v65_v43 = vld [vmem:[%s7242_s2 + $0x78] sm:$0xff]  ;;  %v63_v45 = vld [vmem:[%s7242_s2 + $0x68] sm:$0xff]  ;;  %v62_v47 = vld [vmem:[%s7242_s2 + $0x60] sm:$0xff] }
  0x10   :  { %425 = vmatpush1.msra.mxu0 %v4680_v28  ;;  %129 = vmatprep.subr.mxu1 %v75_v29  ;;  %v4752_v44 = vld [vmem:[%s7243_s3 + $0x78] sm:$0xff]  ;;  %v4761_v46 = vld [vmem:[%s7243_s3 + $0x68] sm:$0xff]  ;;  %v4770_v48 = vld [vmem:[%s7243_s3 + $0x60] sm:$0xff] }
  0x11   :  { %426 = vmatprep.subr.mxu0 %v4689_v30  ;;  %130 = vmatpush1.msra.mxu1 %v74_v31  ;;  %v60_v49 = vld [vmem:[%s7242_s2 + $0x50] sm:$0xff]  ;;  %v59_v51 = vld [vmem:[%s7242_s2 + $0x48] sm:$0xff]  ;;  %v57_v53 = vld [vmem:[%s7242_s2 + $0x38] sm:$0xff] }
  0x12   :  { %427 = vmatpush1.msra.mxu0 %v4698_v32  ;;  %131 = vmatprep.subr.mxu1 %v72_v33  ;;  %v4779_v50 = vld [vmem:[%s7243_s3 + $0x50] sm:$0xff]  ;;  %v4788_v52 = vld [vmem:[%s7243_s3 + $0x48] sm:$0xff]  ;;  %v4797_v54 = vld [vmem:[%s7243_s3 + $0x38] sm:$0xff] }
  0x13   :  { %428 = vmatprep.subr.mxu0 %v4707_v34  ;;  %132 = vmatpush1.msra.mxu1 %v71_v35  ;;  %v56_v55 = vld [vmem:[%s7242_s2 + $0x30] sm:$0xff]  ;;  %v54_v57 = vld [vmem:[%s7242_s2 + $0x20] sm:$0xff]  ;;  %v53_v59 = vld [vmem:[%s7242_s2 + $0x18] sm:$0xff] }
  0x14   :  { %429 = vmatpush1.msra.mxu0 %v4716_v36  ;;  %133 = vmatprep.subr.mxu1 %v69_v37  ;;  %v4806_v56 = vld [vmem:[%s7243_s3 + $0x30] sm:$0xff]  ;;  %v4815_v58 = vld [vmem:[%s7243_s3 + $0x20] sm:$0xff]  ;;  %v4824_v60 = vld [vmem:[%s7243_s3 + $0x18] sm:$0xff] }
  0x15   :  { %430 = vmatprep.subr.mxu0 %v4725_v38  ;;  %134 = vmatpush1.msra.mxu1 %v68_v39  ;;  %7331 = vst [vmem:[#allocation5_spill] sm:$0xff] %v4806_v56  ;;  %7332 = vst [vmem:[#allocation6_spill] sm:$0xff] %v4815_v58  ;;  %v51_v61 = vld [vmem:[%s7242_s2 + $0x8] sm:$0xff]  ;;  %v50_v63 = vld [vmem:[%s7242_s2] sm:$0xff] }
  0x16   :  { %431 = vmatpush1.msra.mxu0 %v4734_v40  ;;  %135 = vmatprep.subr.mxu1 %v66_v41  ;;  %7333 = vst [vmem:[#allocation7_spill] sm:$0xff] %v4824_v60  ;;  %v4833_v62 = vld [vmem:[%s7243_s3 + $0x8] sm:$0xff]  ;;  %v4842_v0 = vld [vmem:[%s7243_s3] sm:$0xff]  ;;  %v97_v7 = vld [vmem:[%s7242_s2 + $0x178] sm:$0xff] }
  0x17   :  { %432 = vmatprep.subr.mxu0 %v4743_v42  ;;  %136 = vmatpush1.msra.mxu1 %v65_v43  ;;  %7334 = vst [vmem:[#allocation8_spill] sm:$0xff] %v4833_v62  ;;  %7335 = vst [vmem:[#allocation9_spill] sm:$0xff] %v4842_v0  ;;  %v4848_v2 = vld [vmem:[%s7244_s0] sm:$0xff]  ;;  %v4869_v11 = vld [vmem:[%s7244_s0 + $0x8] sm:$0xff] }
  0x18   :  { %433 = vmatpush1.msra.mxu0 %v4752_v44  ;;  %137 = vmatprep.subr.mxu1 %v63_v45  ;;  %v4854_v5 = vld [vmem:[%s7245_s1] sm:$0xff]  ;;  %v91_v13 = vld [vmem:[%s7242_s2 + $0x148] sm:$0xff]  ;;  %v88_v15 = vld [vmem:[%s7242_s2 + $0x130] sm:$0xff] }
  0x19   :  { %434 = vmatprep.subr.mxu0 %v4761_v46  ;;  %138 = vmatpush1.msra.mxu1 %v62_v47  ;;  %v94_v9 = vld [vmem:[%s7242_s2 + $0x160] sm:$0xff]  ;;  %v4886_v17 = vld [vmem:[%s7244_s0 + $0x10] sm:$0xff]  ;;  %v85_v19 = vld [vmem:[%s7242_s2 + $0x118] sm:$0xff] }
  0x1a   :  { %435 = vmatpush1.msra.mxu0 %v4770_v48  ;;  %139 = vmatprep.subr.mxu1 %v60_v49  ;;  %v82_v21 = vld [vmem:[%s7242_s2 + $0x100] sm:$0xff]  ;;  %v4903_v23 = vld [vmem:[%s7244_s0 + $0x18] sm:$0xff]  ;;  %v79_v25 = vld [vmem:[%s7242_s2 + $0xe8] sm:$0xff] }
  0x1b   :  { %436 = vmatprep.subr.mxu0 %v4779_v50  ;;  %140 = vmatpush1.msra.mxu1 %v59_v51  ;;  %v76_v27 = vld [vmem:[%s7242_s2 + $0xd0] sm:$0xff]  ;;  %v4920_v29 = vld [vmem:[%s7244_s0 + $0x20] sm:$0xff]  ;;  %v73_v31 = vld [vmem:[%s7242_s2 + $0xb8] sm:$0xff] }
  0x1c   :  { %437 = vmatpush1.msra.mxu0 %v4788_v52  ;;  %141 = vmatprep.subr.mxu1 %v57_v53  ;;  %v70_v33 = vld [vmem:[%s7242_s2 + $0xa0] sm:$0xff]  ;;  %v4937_v35 = vld [vmem:[%s7244_s0 + $0x28] sm:$0xff]  ;;  %v64_v39 = vld [vmem:[%s7242_s2 + $0x70] sm:$0xff] }
  0x1d   :  { %438 = vmatprep.subr.mxu0 %v4797_v54  ;;  %142 = vmatpush1.msra.mxu1 %v56_v55  ;;  %v67_v37 = vld [vmem:[%s7242_s2 + $0x88] sm:$0xff]  ;;  %v4954_v41 = vld [vmem:[%s7244_s0 + $0x30] sm:$0xff]  ;;  %v61_v43 = vld [vmem:[%s7242_s2 + $0x58] sm:$0xff] }
  0x1e   :  { %439 = vmatpush1.msra.mxu0 %v4806_v56  ;;  %143 = vmatprep.subr.mxu1 %v54_v57  ;;  %v58_v45 = vld [vmem:[%s7242_s2 + $0x40] sm:$0xff]  ;;  %v55_v47 = vld [vmem:[%s7242_s2 + $0x28] sm:$0xff]  ;;  %v52_v49 = vld [vmem:[%s7242_s2 + $0x10] sm:$0xff] }
  0x1f   :  { %440 = vmatprep.subr.mxu0 %v4815_v58  ;;  %144 = vmatpush1.msra.mxu1 %v53_v59  ;;  %v4985_v51 = vld [vmem:[%s7243_s3 + $0x178] sm:$0xff]  ;;  %v4994_v53 = vld [vmem:[%s7243_s3 + $0x160] sm:$0xff]  ;;  %v5003_v55 = vld [vmem:[%s7243_s3 + $0x148] sm:$0xff] }
  0x20   :  { %441 = vmatpush1.msra.mxu0 %v4824_v60  ;;  %145 = vmatprep.subr.mxu1 %v51_v61  ;;  %v5013_v57 = vld [vmem:[%s7243_s3 + $0x130] sm:$0xff]  ;;  %v5022_v59 = vld [vmem:[%s7243_s3 + $0x118] sm:$0xff]  ;;  %v5032_v61 = vld [vmem:[%s7243_s3 + $0x100] sm:$0xff] }
  0x21   :  { %442 = vmatprep.subr.mxu0 %v4833_v62  ;;  %146 = vmatpush1.msra.mxu1 %v50_v63  ;;  %v5041_v63 = vld [vmem:[%s7243_s3 + $0xe8] sm:$0xff] }
  0x22   :  { %443 = vmatpush1.msra.mxu0 %v4842_v0  ;;  %180 = vmatmul.mubr.f32.vlgmr.msra.gmra.mxu1 %v4848_v2 }
  0x23   :  { %3598 = vmatprep.subr.mxu1 %v7256_v3  ;;  %477 = vmatmul.mubr.f32.vlgmr.msra.gmra.mxu0 %v4854_v5 }
  0x24   :  { %3599 = vmatpush3.msra.mxu1 %v97_v7  ;;  %185 = vmatprep.mubr.f32.mxu1 %v7256_v3  ;;  %v5060_v7 = vld [vmem:[%s7243_s3 + $0xb8] sm:$0xff] }
  0x25   :  { %3600 = vmatprep.subr.mxu1 %v7256_v3  ;;  %579 = vmatprep.subr.mxu0 %v4563_v1 }
  0x26   :  { %3601 = vmatpush3.msra.mxu1 %v94_v9  ;;  %580 = vmatpush1.msra.mxu0 %v4574_v4  ;;  %v5070_v9 = vld [vmem:[%s7243_s3 + $0xa0] sm:$0xff] }
  0x27   :  { %3602 = vmatprep.subr.mxu1 %v7256_v3  ;;  %186 = vmatmul.mubr.f32.gmra.mxu1 %v4869_v11 }
  0x28   :  { %3603 = vmatpush3.msra.mxu1 %v91_v13  ;;  %191 = vmatprep.mubr.f32.mxu1 %v7256_v3  ;;  %v5089_v13 = vld [vmem:[%s7243_s3 + $0x70] sm:$0xff] }
  0x29   :  { %3604 = vmatprep.subr.mxu1 %v7256_v3  ;;  %581 = vmatprep.subr.mxu0 %v4582_v6 }
  0x2a   :  { %3605 = vmatpush3.msra.mxu1 %v88_v15  ;;  %582 = vmatpush1.msra.mxu0 %v4591_v8  ;;  %v5098_v15 = vld [vmem:[%s7243_s3 + $0x58] sm:$0xff] }
  0x2b   :  { %3606 = vmatprep.subr.mxu1 %v7256_v3  ;;  %192 = vmatmul.mubr.f32.gmra.mxu1 %v4886_v17 }
  0x2c   :  { %3607 = vmatpush3.msra.mxu1 %v85_v19  ;;  %197 = vmatprep.mubr.f32.mxu1 %v7256_v3  ;;  %v5117_v19 = vld [vmem:[%s7243_s3 + $0x28] sm:$0xff] }
  0x2d   :  { %3608 = vmatprep.subr.mxu1 %v7256_v3  ;;  %583 = vmatprep.subr.mxu0 %v4600_v10  ;;  %7337 = vst [vmem:[#allocation11_spill] sm:$0xff] %v5117_v19 }
  0x2e   :  { %3609 = vmatpush3.msra.mxu1 %v82_v21  ;;  %584 = vmatpush1.msra.mxu0 %v4608_v12  ;;  %v5126_v21 = vld [vmem:[%s7243_s3 + $0x10] sm:$0xff] }
  0x2f   :  { %3610 = vmatprep.subr.mxu1 %v7256_v3  ;;  %198 = vmatmul.mubr.f32.gmra.mxu1 %v4903_v23  ;;  %7338 = vst [vmem:[#allocation12_spill] sm:$0xff] %v5126_v21 }
  0x30   :  { %3611 = vmatpush3.msra.mxu1 %v79_v25  ;;  %203 = vmatprep.mubr.f32.mxu1 %v7256_v3 }
  0x31   :  { %3612 = vmatprep.subr.mxu1 %v7256_v3  ;;  %585 = vmatprep.subr.mxu0 %v4617_v14 }
  0x32   :  { %3613 = vmatpush3.msra.mxu1 %v76_v27  ;;  %586 = vmatpush1.msra.mxu0 %v4626_v16 }
  0x33   :  { %3614 = vmatprep.subr.mxu1 %v7256_v3  ;;  %204 = vmatmul.mubr.f32.gmra.mxu1 %v4920_v29 }
  0x34   :  { %3615 = vmatpush3.msra.mxu1 %v73_v31  ;;  %209 = vmatprep.mubr.f32.mxu1 %v7256_v3 }
  0x35   :  { %3616 = vmatprep.subr.mxu1 %v7256_v3  ;;  %587 = vmatprep.subr.mxu0 %v4635_v18 }
  0x36   :  { %3617 = vmatpush3.msra.mxu1 %v70_v33  ;;  %588 = vmatpush1.msra.mxu0 %v4644_v20 }
  0x37   :  { %3618 = vmatprep.subr.mxu1 %v7256_v3  ;;  %210 = vmatmul.mubr.f32.gmra.mxu1 %v4937_v35 }
  0x38   :  { %3619 = vmatpush3.msra.mxu1 %v67_v37  ;;  %215 = vmatprep.mubr.f32.mxu1 %v7256_v3 }
  0x39   :  { %3620 = vmatprep.subr.mxu1 %v7256_v3  ;;  %589 = vmatprep.subr.mxu0 %v4653_v22 }
  0x3a   :  { %3621 = vmatpush3.msra.mxu1 %v64_v39  ;;  %590 = vmatpush1.msra.mxu0 %v4662_v24 }
  0x3b   :  { %3622 = vmatprep.subr.mxu1 %v7256_v3  ;;  %216 = vmatmul.mubr.f32.gmra.mxu1 %v4954_v41 }
  0x3c   :  { %3623 = vmatpush3.msra.mxu1 %v61_v43  ;;  %3630 = vmatprep.mubr.msk.f32.mxu1 %vm4486_vm0, %v7256_v3 }
  0x3d   :  { %3624 = vmatprep.subr.mxu1 %v7256_v3  ;;  %591 = vmatprep.subr.mxu0 %v4671_v26 }
  0x3e   :  { %3625 = vmatpush3.msra.mxu1 %v58_v45  ;;  %592 = vmatpush1.msra.mxu0 %v4680_v28 }
  0x3f   :  { %3626 = vmatprep.subr.mxu1 %v7256_v3  ;;  %593 = vmatprep.subr.mxu0 %v4689_v30 }
  0x40   :  { %3627 = vmatpush3.msra.mxu1 %v55_v47  ;;  %594 = vmatpush1.msra.mxu0 %v4698_v32 }
  0x41   :  { %3628 = vmatprep.subr.mxu1 %v7256_v3  ;;  %595 = vmatprep.subr.mxu0 %v4707_v34 }
  0x42   :  { %3629 = vmatpush3.msra.mxu1 %v52_v49  ;;  %596 = vmatpush1.msra.mxu0 %v4716_v36 }
  0x43   :  { %3631 = vmatmul.mubr.f32.vlgmr.msra.gmra.mxu1 %v4848_v2  ;;  %3651 = vmatprep.subr.mxu1 %v7256_v3  ;;  %v5051_v2 = vld [vmem:[%s7243_s3 + $0xd0] sm:$0xff] }
  0x44   :  { %3652 = vmatpush3.msra.mxu1 %v4985_v51  ;;  %3633 = vmatprep.mubr.msk.f32.mxu1 %vm4486_vm0, %v7256_v3 }
  0x45   :  { %3653 = vmatprep.subr.mxu1 %v7256_v3  ;;  %597 = vmatprep.subr.mxu0 %v4725_v38 }
  0x46   :  { %3654 = vmatpush3.msra.mxu1 %v4994_v53  ;;  %598 = vmatpush1.msra.mxu0 %v4734_v40 }
  0x47   :  { %3655 = vmatprep.subr.mxu1 %v7256_v3  ;;  %3634 = vmatmul.mubr.f32.gmra.mxu1 %v4869_v11  ;;  %v5079_v11 = vld [vmem:[%s7243_s3 + $0x88] sm:$0xff] }
  0x48   :  { %3656 = vmatpush3.msra.mxu1 %v5003_v55  ;;  %3636 = vmatprep.mubr.msk.f32.mxu1 %vm4486_vm0, %v7256_v3 }
  0x49   :  { %3657 = vmatprep.subr.mxu1 %v7256_v3  ;;  %599 = vmatprep.subr.mxu0 %v4743_v42 }
  0x4a   :  { %3658 = vmatpush3.msra.mxu1 %v5013_v57  ;;  %600 = vmatpush1.msra.mxu0 %v4752_v44 }
  0x4b   :  { %3659 = vmatprep.subr.mxu1 %v7256_v3  ;;  %3637 = vmatmul.mubr.f32.gmra.mxu1 %v4886_v17  ;;  %v5108_v17 = vld [vmem:[%s7243_s3 + $0x40] sm:$0xff] }
  0x4c   :  { %3660 = vmatpush3.msra.mxu1 %v5022_v59  ;;  %3639 = vmatprep.mubr.msk.f32.mxu1 %vm4486_vm0, %v7256_v3  ;;  %7336 = vst [vmem:[#allocation10_spill] sm:$0xff] %v5108_v17 }
  0x4d   :  { %3661 = vmatprep.subr.mxu1 %v7256_v3  ;;  %601 = vmatprep.subr.mxu0 %v4761_v46 }
  0x4e   :  { %3662 = vmatpush3.msra.mxu1 %v5032_v61  ;;  %602 = vmatpush1.msra.mxu0 %v4770_v48 }
  0x4f   :  { %3663 = vmatprep.subr.mxu1 %v7256_v3  ;;  %3640 = vmatmul.mubr.f32.gmra.mxu1 %v4903_v23  ;;  %v100_v23 = vlaneseq }
  0x50   :  { %3664 = vmatpush3.msra.mxu1 %v5041_v63  ;;  %3642 = vmatprep.mubr.msk.f32.mxu1 %vm4486_vm0, %v7256_v3 }
  0x51   :  { %3665 = vmatprep.subr.mxu1 %v7256_v3  ;;  %603 = vmatprep.subr.mxu0 %v4779_v50  ;;  %v101_v25 = vshrl.u32 %v100_v23, 7 }
  0x52   :  { %3666 = vmatpush3.msra.mxu1 %v5051_v2  ;;  %604 = vmatpush1.msra.mxu0 %v4788_v52 }
  0x53   :  { %3667 = vmatprep.subr.mxu1 %v7256_v3  ;;  %3643 = vmatmul.mubr.f32.gmra.mxu1 %v4920_v29  ;;  %v5170_v27 = vsub.s32 0, %v101_v25  ;;  %v98_v29 = vld [vmem:[%s7246_s4] sm:$0x7]  ;;  %v5175_v33 = vsub.s32 1, %v101_v25 }
  0x54   :  { %3668 = vmatpush3.msra.mxu1 %v5060_v7  ;;  %3645 = vmatprep.mubr.msk.f32.mxu1 %vm4486_vm0, %v7256_v3 }
  0x55   :  { %3669 = vmatprep.subr.mxu1 %v7256_v3  ;;  %605 = vmatprep.subr.mxu0 %v4797_v54  ;;  %7339 = vst [vmem:[#allocation13_spill] sm:$0xff] %v5170_v27  ;;  %7340 = vst [vmem:[#allocation14_spill] sm:$0xff] %v5175_v33  ;;  %v103_v37 = vrot.slane %v98_v29, %v5170_v27 }
  0x56   :  { %3670 = vmatpush3.msra.mxu1 %v5070_v9  ;;  %606 = vmatpush1.msra.mxu0 %v4806_v56 }
  0x57   :  { %3671 = vmatprep.subr.mxu1 %v7256_v3  ;;  %3646 = vmatmul.mubr.f32.gmra.mxu1 %v4937_v35 }
  0x58   :  { %3672 = vmatpush3.msra.mxu1 %v5079_v11  ;;  %3648 = vmatprep.mubr.msk.f32.mxu1 %vm4486_vm0, %v7256_v3 }
  0x59   :  { %3673 = vmatprep.subr.mxu1 %v7256_v3  ;;  %607 = vmatprep.subr.mxu0 %v4815_v58 }
  0x5a   :  { %3674 = vmatpush3.msra.mxu1 %v5089_v13  ;;  %608 = vmatpush1.msra.mxu0 %v4824_v60 }
  0x5b   :  { %3675 = vmatprep.subr.mxu1 %v7256_v3  ;;  %3649 = vmatmul.mubr.f32.gmra.mxu1 %v4954_v41  ;;  %v107_v41 = vrot.slane %v98_v29, %v5175_v33 }
  0x5c   :  { %3676 = vmatpush3.msra.mxu1 %v5098_v15  ;;  %3683 = vmatprep.mubr.msk.f32.mxu1 %vm4486_vm0, %v7256_v3 }
  0x5d   :  { %3677 = vmatprep.subr.mxu1 %v7256_v3  ;;  %609 = vmatprep.subr.mxu0 %v4833_v62  ;;  %v391_v62 = vld [vmem:[%s7247_s5] sm:$0x7] }
  0x5e   :  { %3678 = vmatpush3.msra.mxu1 %v5108_v17  ;;  %610 = vmatpush1.msra.mxu0 %v4842_v0 }
  0x5f   :  { %3679 = vmatprep.subr.mxu1 %v7256_v3  ;;  %643 = vmatprep.mubr.f32.mxu0 %v7256_v3 }
  0x60   :  { %3680 = vmatpush3.msra.mxu1 %v5117_v19  ;;  %747 = vmatprep.subr.mxu0 %v4563_v1 }
  0x61   :  { %3681 = vmatprep.subr.mxu1 %v7256_v3 }
  0x62   :  { %3682 = vmatpush3.msra.mxu1 %v5126_v21 }
  0x63   :  { %3684 = vmatmul.mubr.f32.vlgmr.msra.gmra.mxu1 %v4854_v5  ;;  %3686 = vmatprep.subr.mxu1 %v7256_v3 }
  0x64   :  { %3687 = vmatpush3.msra.mxu1 %v4985_v51  ;;  %3718 = vmatprep.mubr.msk.f32.mxu1 %vm4486_vm0, %v7256_v3 }
  0x65   :  { %3688 = vmatprep.subr.mxu1 %v7256_v3 }
  0x66   :  { %3689 = vmatpush3.msra.mxu1 %v4994_v53 }
  0x67   :  { %3690 = vmatprep.subr.mxu1 %v7256_v3 }
  0x68   :  { %3691 = vmatpush3.msra.mxu1 %v5003_v55 }
  0x69   :  { %3692 = vmatprep.subr.mxu1 %v7256_v3 }
  0x6a   :  { %3693 = vmatpush3.msra.mxu1 %v5013_v57 }
  0x6b   :  { %3694 = vmatprep.subr.mxu1 %v7256_v3 }
  0x6c   :  { %3695 = vmatpush3.msra.mxu1 %v5022_v59 }
  0x6d   :  { %3696 = vmatprep.subr.mxu1 %v7256_v3 }
  0x6e   :  { %3697 = vmatpush3.msra.mxu1 %v5032_v61 }
  0x6f   :  { %3698 = vmatprep.subr.mxu1 %v7256_v3 }
  0x70   :  { %3699 = vmatpush3.msra.mxu1 %v5041_v63 }
  0x71   :  { %3700 = vmatprep.subr.mxu1 %v7256_v3 }
  0x72   :  { %3701 = vmatpush3.msra.mxu1 %v5051_v2 }
  0x73   :  { %3702 = vmatprep.subr.mxu1 %v7256_v3 }
  0x74   :  { %3703 = vmatpush3.msra.mxu1 %v5060_v7 }
  0x75   :  { %3704 = vmatprep.subr.mxu1 %v7256_v3 }
  0x76   :  { %3705 = vmatpush3.msra.mxu1 %v5070_v9 }
  0x77   :  { %3706 = vmatprep.subr.mxu1 %v7256_v3 }
  0x78   :  { %3707 = vmatpush3.msra.mxu1 %v5079_v11 }
  0x79   :  { %3708 = vmatprep.subr.mxu1 %v7256_v3 }
  0x7a   :  { %3709 = vmatpush3.msra.mxu1 %v5089_v13 }
  0x7b   :  { %3710 = vmatprep.subr.mxu1 %v7256_v3 }
  0x7c   :  { %3711 = vmatpush3.msra.mxu1 %v5098_v15 }
  0x7d   :  { %3712 = vmatprep.subr.mxu1 %v7256_v3 }
  0x7e   :  { %3713 = vmatpush3.msra.mxu1 %v5108_v17 }
  0x7f   :  { %3714 = vmatprep.subr.mxu1 %v7256_v3 }
  0x80   :  { %3715 = vmatpush3.msra.mxu1 %v5117_v19 }
  0x81   :  { %3716 = vmatprep.subr.mxu1 %v7256_v3 }
  0x82   :  { %3717 = vmatpush3.msra.mxu1 %v5126_v21 }
  0x83   :  { %3721 = vmatprep.subr.mxu1 %v7256_v3 }
  0xe2   :  { %v181_v31 = vpop.f32.mrf.mxu1 }
  0xe4   :  { %v183_v35 = vpop.f32.mrf.mxu1 }
  0xe7   :  { %v187_v39 = vpop.f32.mrf.mxu1 }
  0xe8   :  { %v5179_v43 = vadd.f32 %v187_v39, %v103_v37 }
  0xe9   :  { %v189_v45 = vpop.f32.mrf.mxu1 }
  0xea   :  { %7341 = vst [vmem:[#allocation15_spill] sm:$0xff] %v5179_v43  ;;  %v5181_v47 = vadd.f32 %v189_v45, %v107_v41  ;;  %v5195_v45 = vrot.slane %v391_v62, %v5170_v27 }
  0xeb   :  { %v193_v49 = vpop.f32.mrf.mxu1 }
  0xec   :  { %7342 = vst [vmem:[#allocation16_spill] sm:$0xff] %v5181_v47  ;;  %v5183_v23 = vadd.f32 %v193_v49, %v103_v37  ;;  %7347 = vst [vmem:[#allocation21_spill] sm:$0xff] %v5195_v45  ;;  %v478_v49 = vpop.f32.mrf.mxu0 }
  0xed   :  { %v195_v3 = vpop.f32.mrf.mxu1 }
  0xee   :  { %7343 = vst [vmem:[#allocation17_spill] sm:$0xff] %v5183_v23  ;;  %v5185_v1 = vadd.f32 %v195_v3, %v107_v41 }
  0xef   :  { %v199_v21 = vpop.f32.mrf.mxu1 }
  0xf0   :  { %7344 = vst [vmem:[#allocation18_spill] sm:$0xff] %v5185_v1  ;;  %v5187_v0 = vadd.f32 %v199_v21, %v103_v37  ;;  %v182_v21 = vadd.f32 %v181_v31, %v103_v37  ;;  %v480_v31 = vpop.f32.mrf.mxu0 }
  0xf1   :  { %v201_v19 = vpop.f32.mrf.mxu1 }
  0xf2   :  { %7345 = vst [vmem:[#allocation19_spill] sm:$0xff] %v5187_v0  ;;  %v5192_v60 = vadd.f32 %v201_v19, %v107_v41  ;;  %v479_v0 = vadd.f32 %v478_v49, %v5195_v45 }
  0xf3   :  { %v205_v39 = vpop.f32.mrf.mxu1 }
  0xf4   :  { %7346 = vst [vmem:[#allocation20_spill] sm:$0xff] %v5192_v60  ;;  %v5197_v47 = vadd.f32 %v205_v39, %v103_v37  ;;  %v553_v60 = vadd.f32 %v479_v0, %v182_v21 }
  0xf5   :  { %v207_v23 = vpop.f32.mrf.mxu1 }
  0xf6   :  { %7348 = vst [vmem:[#allocation22_spill] sm:$0xff] %v5197_v47  ;;  %v5199_v3 = vadd.f32 %v207_v23, %v107_v41  ;;  %v3260_v47 = vmul.f32 -1.442695, %v553_v60  ;;  %v5211_v23 = vrot.slane %v391_v62, %v5175_v33 }
  0xf7   :  { %v211_v1 = vpop.f32.mrf.mxu1 }
  0xf8   :  { %7349 = vst [vmem:[#allocation23_spill] sm:$0xff] %v5199_v3  ;;  %v5202_v43 = vadd.f32 %v211_v1, %v103_v37  ;;  %v5213_v3 = vsub.s32 2, %v101_v25  ;;  %4249 = vpow2.f32 %v3260_v47 }
  0xf9   :  { %v213_v58 = vpop.f32.mrf.mxu1 }
  0xfa   :  { %7350 = vst [vmem:[#allocation24_spill] sm:$0xff] %v5202_v43  ;;  %v5204_v17 = vadd.f32 %v213_v58, %v107_v41  ;;  %7354 = vst [vmem:[#allocation28_spill] sm:$0xff] %v5213_v3  ;;  %v184_v43 = vadd.f32 %v183_v35, %v107_v41  ;;  %v481_v58 = vadd.f32 %v480_v31, %v5211_v23 }
  0xfb   :  { %v217_v19 = vpop.f32.mrf.mxu1  ;;  %v111_v0 = vrot.slane %v98_v29, %v5213_v3 }
  0xfc   :  { %7351 = vst [vmem:[#allocation25_spill] sm:$0xff] %v5204_v17  ;;  %v5206_v56 = vadd.f32 %v217_v19, %v103_v37  ;;  %v560_v19 = vadd.f32 %v481_v58, %v184_v43 }
  0xfd   :  { %v219_v27 = vpop.f32.mrf.mxu1 }
  0xfe   :  { %7352 = vst [vmem:[#allocation26_spill] sm:$0xff] %v5206_v56  ;;  %v5208_v39 = vadd.f32 %v219_v27, %v107_v41  ;;  %v3261_v25 = vmul.f32 -1.442695, %v560_v19 }
 0x100   :  { %7353 = vst [vmem:[#allocation27_spill] sm:$0xff] %v5208_v39  ;;  %4251 = vpow2.f32 %v3261_v25 }
 0x103   :  { %v288_v49 = vpop.f32.mrf.mxu1 }
 0x105   :  { %v3632_v1 = vpop.f32.mrf.mxu1  ;;  %v4250_v47 = vpop.eup %4249 }
 0x106   :  { %v557_v41 = vadd.f32 1.0, %v4250_v47 }
 0x107   :  { %v293_v37 = vpop.f32.mrf.mxu1 }
 0x108   :  { %v5217_v21 = vadd.f32 %v293_v37, %v111_v0  ;;  %4253 = vrcp.f32 %v557_v41 }
 0x109   :  { %v3635_v27 = vpop.f32.mrf.mxu1 }
 0x10b   :  { %v298_v60 = vpop.f32.mrf.mxu1 }
 0x10c   :  { %v5219_v39 = vadd.f32 %v298_v60, %v111_v0 }
 0x10d   :  { %v3638_v33 = vpop.f32.mrf.mxu1  ;;  %v4252_v19 = vpop.eup %4251 }
 0x10e   :  { %7355 = vst [vmem:[#allocation29_spill] sm:$0xff] %v5219_v39 }
 0x10f   :  { %v303_v56 = vpop.f32.mrf.mxu1 }
 0x110   :  { %v5221_v17 = vadd.f32 %v303_v56, %v111_v0  ;;  %v5230_v56 = vrot.slane %v391_v62, %v5213_v3  ;;  %v7361_v62 = vmov 0.0  }
 0x111   :  { %v3641_v1 = vpop.f32.mrf.mxu1 }
 0x112   :  { %7356 = vst [vmem:[#allocation30_spill] sm:$0xff] %v5221_v17  ;;  %v564_v1 = vadd.f32 1.0, %v4252_v19 }
 0x113   :  { %v308_v35 = vpop.f32.mrf.mxu1 }
 0x114   :  { %v5223_v31 = vadd.f32 %v308_v35, %v111_v0  ;;  %4255 = vrcp.f32 %v564_v1  ;;  %v7371_v1 = vld [vmem:[#allocation15_spill] sm:$0xff] }
 0x115   :  { %v3644_v29 = vpop.f32.mrf.mxu1  ;;  %v4254_v35 = vpop.eup %4253 }
 0x116   :  { %7357 = vst [vmem:[#allocation31_spill] sm:$0xff] %v5223_v31  ;;  %v289_v29 = vadd.f32 %v288_v49, %v111_v0  ;;  %v7370_v49 = vld [vmem:[#allocation4_spill] sm:$0xff] }
 0x117   :  { %v313_v37 = vpop.f32.mrf.mxu1 }
 0x118   :  { %v5225_v27 = vadd.f32 %v313_v37, %v111_v0 }
 0x119   :  { %v3647_v43 = vpop.f32.mrf.mxu1 }
 0x11a   :  { %7358 = vst [vmem:[#allocation32_spill] sm:$0xff] %v5225_v27 }
 0x11b   :  { %v318_v58 = vpop.f32.mrf.mxu1 }
 0x11c   :  { %v5227_v60 = vadd.f32 %v318_v58, %v111_v0 }
 0x11d   :  { %v3650_v33 = vpop.f32.mrf.mxu1 }
 0x11e   :  { %7359 = vst [vmem:[#allocation33_spill] sm:$0xff] %v5227_v60 }
 0x121   :  { %v4256_v43 = vpop.eup %4255 }
 0x122   :  { %v570_v27 = vsub.f32 1.0, %v4256_v43  ;;  %v572_v33 = vmul.f32 %v4256_v43, %v4854_v5  ;;  %v7369_v5 = vld [vmem:[#allocation12_spill] sm:$0xff] }
 0x123   :  { %v549_v25 = vpop.f32.mrf.mxu1 }
 0x124   :  { %v550_v47 = vadd.f32 %v549_v25, %v5230_v56 }
 0x125   :  { %v3685_v31 = vpop.f32.mrf.mxu1 }
 0x126   :  { %v567_v41 = vmul.f32 %v4254_v35, %v550_v47 }
 0x128   :  { %v568_v37 = vadd.f32 %v567_v41, %v289_v29  ;;  %v7372_v29 = vld [vmem:[#allocation16_spill] sm:$0xff] }
 0x12a   :  { %4257 = vtanh.f32 %v568_v37 }
 0x137   :  { %v4258_v58 = vpop.eup %4257 }
 0x138   :  { %v571_v60 = vmul.f32 %v4258_v58, %v570_v27 }
 0x13a   :  { %v5234_v17 = vadd.f32 %v572_v33, %v571_v60 }
 0x13c   :  { %7360 = vst [vmem:[#allocation34_spill] sm:$0xff] %v5234_v17  ;;  %644 = vmatmul.mubr.f32.vlgmr.msra.gmra.mxu0 %v5234_v17  ;;  %3719 = vmatmul.mubr.f32.vlgmr.msra.gmra.mxu1 %v5234_v17 }
 0x13d   :  { %748 = vmatpush1.msra.mxu0 %v4574_v4  ;;  %3722 = vmatpush3.msra.mxu1 %v4985_v51  ;;  %v7362_v4 = vld [vmem:[#allocation5_spill] sm:$0xff] }
 0x13e   :  { %749 = vmatprep.subr.mxu0 %v4582_v6  ;;  %3723 = vmatprep.subr.mxu1 %v7361_v62  ;;  %v7363_v6 = vld [vmem:[#allocation10_spill] sm:$0xff] }
 0x13f   :  { %750 = vmatpush1.msra.mxu0 %v4591_v8  ;;  %3724 = vmatpush3.msra.mxu1 %v4994_v53  ;;  %v7364_v8 = vld [vmem:[#allocation6_spill] sm:$0xff] }
 0x140   :  { %751 = vmatprep.subr.mxu0 %v4600_v10  ;;  %3725 = vmatprep.subr.mxu1 %v7361_v62  ;;  %v7365_v10 = vld [vmem:[#allocation7_spill] sm:$0xff] }
 0x141   :  { %752 = vmatpush1.msra.mxu0 %v4608_v12  ;;  %3726 = vmatpush3.msra.mxu1 %v5003_v55  ;;  %v7366_v12 = vld [vmem:[#allocation11_spill] sm:$0xff] }
 0x142   :  { %753 = vmatprep.subr.mxu0 %v4617_v14  ;;  %3727 = vmatprep.subr.mxu1 %v7361_v62  ;;  %v7367_v14 = vld [vmem:[#allocation8_spill] sm:$0xff] }
 0x143   :  { %754 = vmatpush1.msra.mxu0 %v4626_v16  ;;  %3728 = vmatpush3.msra.mxu1 %v5013_v57  ;;  %v7368_v16 = vld [vmem:[#allocation9_spill] sm:$0xff] }
 0x144   :  { %755 = vmatprep.subr.mxu0 %v4635_v18  ;;  %3729 = vmatprep.subr.mxu1 %v7361_v62 }
 0x145   :  { %756 = vmatpush1.msra.mxu0 %v4644_v20  ;;  %3730 = vmatpush3.msra.mxu1 %v5022_v59 }
 0x146   :  { %757 = vmatprep.subr.mxu0 %v4653_v22  ;;  %3731 = vmatprep.subr.mxu1 %v7361_v62 }
 0x147   :  { %758 = vmatpush1.msra.mxu0 %v4662_v24  ;;  %3732 = vmatpush3.msra.mxu1 %v5032_v61 }
 0x148   :  { %759 = vmatprep.subr.mxu0 %v4671_v26  ;;  %3733 = vmatprep.subr.mxu1 %v7361_v62 }
 0x149   :  { %760 = vmatpush1.msra.mxu0 %v4680_v28  ;;  %3734 = vmatpush3.msra.mxu1 %v5041_v63 }
 0x14a   :  { %761 = vmatprep.subr.mxu0 %v4689_v30  ;;  %3735 = vmatprep.subr.mxu1 %v7361_v62 }
 0x14b   :  { %762 = vmatpush1.msra.mxu0 %v4698_v32  ;;  %3736 = vmatpush3.msra.mxu1 %v5051_v2 }
 0x14c   :  { %763 = vmatprep.subr.mxu0 %v4707_v34  ;;  %3737 = vmatprep.subr.mxu1 %v7361_v62 }
 0x14d   :  { %764 = vmatpush1.msra.mxu0 %v4716_v36  ;;  %3738 = vmatpush3.msra.mxu1 %v5060_v7 }
 0x14e   :  { %765 = vmatprep.subr.mxu0 %v4725_v38  ;;  %3739 = vmatprep.subr.mxu1 %v7361_v62 }
 0x14f   :  { %766 = vmatpush1.msra.mxu0 %v4734_v40  ;;  %3740 = vmatpush3.msra.mxu1 %v5070_v9 }
 0x150   :  { %767 = vmatprep.subr.mxu0 %v4743_v42  ;;  %3741 = vmatprep.subr.mxu1 %v7361_v62 }
 0x151   :  { %768 = vmatpush1.msra.mxu0 %v4752_v44  ;;  %3742 = vmatpush3.msra.mxu1 %v5079_v11 }
 0x152   :  { %769 = vmatprep.subr.mxu0 %v4761_v46  ;;  %3743 = vmatprep.subr.mxu1 %v7361_v62 }
 0x153   :  { %770 = vmatpush1.msra.mxu0 %v4770_v48  ;;  %3744 = vmatpush3.msra.mxu1 %v5089_v13 }
 0x154   :  { %771 = vmatprep.subr.mxu0 %v4779_v50  ;;  %3745 = vmatprep.subr.mxu1 %v7361_v62 }
 0x155   :  { %772 = vmatpush1.msra.mxu0 %v4788_v52  ;;  %3746 = vmatpush3.msra.mxu1 %v5098_v15 }
 0x156   :  { %773 = vmatprep.subr.mxu0 %v4797_v54  ;;  %3747 = vmatprep.subr.mxu1 %v7361_v62 }
 0x157   :  { %774 = vmatpush1.msra.mxu0 %v7362_v4  ;;  %3748 = vmatpush3.msra.mxu1 %v7363_v6 }
 0x158   :  { %775 = vmatprep.subr.mxu0 %v7364_v8  ;;  %3749 = vmatprep.subr.mxu1 %v7361_v62 }
 0x159   :  { %776 = vmatpush1.msra.mxu0 %v7365_v10  ;;  %3750 = vmatpush3.msra.mxu1 %v7366_v12 }
 0x15a   :  { %777 = vmatprep.subr.mxu0 %v7367_v14  ;;  %3751 = vmatprep.subr.mxu1 %v7361_v62 }
 0x15b   :  { %778 = vmatpush1.msra.mxu0 %v7368_v16  ;;  %811 = vmatprep.mubr.f32.mxu0 %v7361_v62 }
 0x15c   :  { %3752 = vmatpush3.msra.mxu1 %v7369_v5  ;;  %3753 = vmatprep.mubr.msk.f32.mxu1 %vm4486_vm0, %v7361_v62 }
 0x15d   :  { %915 = vmatprep.subr.mxu0 %v7370_v49  ;;  %3756 = vmatprep.subr.mxu1 %v7361_v62 }
 0x1fc   :  { %v645_v0 = vpop.f32.mrf.mxu0  ;;  %v716_v31 = vpop.f32.mrf.mxu1 }
 0x1fd   :  { %v646_v27 = vadd.f32 %v645_v0, %v5195_v45  ;;  %v717_v3 = vadd.f32 %v716_v31, %v5230_v56  ;;  %v5340_v31 = vld [vmem:[%s7243_s3 + $0x140] sm:$0xff] }
 0x1fe   :  { %v647_v60 = vpop.f32.mrf.mxu0  ;;  %v3720_v19 = vpop.f32.mrf.mxu1 }
 0x1ff   :  { %v720_v25 = vadd.f32 %v646_v27, %v7371_v1  ;;  %v648_v35 = vadd.f32 %v647_v60, %v5211_v23 }
 0x201   :  { %v3262_v47 = vmul.f32 -1.442695, %v720_v25  ;;  %v727_v41 = vadd.f32 %v648_v35, %v7372_v29  ;;  %v5347_v29 = vld [vmem:[%s7243_s3 + $0x138] sm:$0xff] }
 0x203   :  { %4259 = vpow2.f32 %v3262_v47  ;;  %v3263_v37 = vmul.f32 -1.442695, %v727_v41  ;;  %v5354_v41 = vld [vmem:[%s7243_s3 + $0x128] sm:$0xff] }
 0x205   :  { %4261 = vpow2.f32 %v3263_v37  ;;  %v5361_v37 = vld [vmem:[%s7243_s3 + $0x120] sm:$0xff] }
 0x210   :  { %v4260_v43 = vpop.eup %4259 }
 0x211   :  { %v724_v58 = vadd.f32 1.0, %v4260_v43 }
 0x212   :  { %v4262_v33 = vpop.eup %4261 }
 0x213   :  { %4263 = vrcp.f32 %v724_v58  ;;  %v731_v49 = vadd.f32 1.0, %v4262_v33 }
 0x215   :  { %4265 = vrcp.f32 %v731_v49 }
 0x220   :  { %v4264_v0 = vpop.eup %4263 }
 0x221   :  { %v734_v39 = vmul.f32 %v4264_v0, %v717_v3  ;;  %v5319_v3 = vld [vmem:[%s7243_s3 + $0x168] sm:$0xff]  ;;  %v5451_v0 = vld [vmem:[%s7243_s3 + $0x110] sm:$0xff] }
 0x222   :  { %v4266_v19 = vpop.eup %4265 }
 0x223   :  { %v735_v27 = vadd.f32 %v734_v39, %v5217_v21  ;;  %v737_v60 = vsub.f32 1.0, %v4266_v19  ;;  %v739_v47 = vmul.f32 %v4266_v19, %v5234_v17  ;;  %v5326_v39 = vld [vmem:[%s7243_s3 + $0x158] sm:$0xff]  ;;  %v5333_v21 = vld [vmem:[%s7243_s3 + $0x150] sm:$0xff] }
 0x224   :  { %v5465_v19 = vld [vmem:[%s7243_s3 + $0xf8] sm:$0xff] }
 0x225   :  { %4267 = vtanh.f32 %v735_v27  ;;  %v5458_v27 = vld [vmem:[%s7243_s3 + $0x108] sm:$0xff] }
 0x232   :  { %v4268_v1 = vpop.eup %4267 }
 0x233   :  { %v738_v25 = vmul.f32 %v4268_v1, %v737_v60  ;;  %v5472_v60 = vld [vmem:[%s7243_s3 + $0xf0] sm:$0xff]  ;;  %v5479_v1 = vld [vmem:[%s7243_s3 + $0xe0] sm:$0xff] }
 0x235   :  { %v5312_v35 = vadd.f32 %v739_v47, %v738_v25  ;;  %v5486_v25 = vld [vmem:[%s7243_s3 + $0xd8] sm:$0xff]  ;;  %v5493_v47 = vld [vmem:[%s7243_s3 + $0xc8] sm:$0xff] }
 0x237   :  { %7373 = vst [vmem:[#allocation5_spill] sm:$0xff] %v5312_v35  ;;  %812 = vmatmul.mubr.f32.vlgmr.msra.gmra.mxu0 %v5312_v35  ;;  %3754 = vmatmul.mubr.f32.vlgmr.msra.gmra.mxu1 %v5312_v35 }
 0x238   :  { %916 = vmatpush1.msra.mxu0 %v5319_v3  ;;  %3757 = vmatpush3.msra.mxu1 %v4985_v51 }
 0x239   :  { %917 = vmatprep.subr.mxu0 %v5326_v39  ;;  %3758 = vmatprep.subr.mxu1 %v7361_v62 }
 0x23a   :  { %918 = vmatpush1.msra.mxu0 %v5333_v21  ;;  %3759 = vmatpush3.msra.mxu1 %v4994_v53 }
 0x23b   :  { %919 = vmatprep.subr.mxu0 %v5340_v31  ;;  %3760 = vmatprep.subr.mxu1 %v7361_v62 }
 0x23c   :  { %920 = vmatpush1.msra.mxu0 %v5347_v29  ;;  %3761 = vmatpush3.msra.mxu1 %v5003_v55 }
 0x23d   :  { %921 = vmatprep.subr.mxu0 %v5354_v41  ;;  %3762 = vmatprep.subr.mxu1 %v7361_v62 }
 0x23e   :  { %922 = vmatpush1.msra.mxu0 %v5361_v37  ;;  %3763 = vmatpush3.msra.mxu1 %v5013_v57 }
 0x23f   :  { %923 = vmatprep.subr.mxu0 %v4635_v18  ;;  %3764 = vmatprep.subr.mxu1 %v7361_v62  ;;  %v5419_v18 = vld [vmem:[%s7243_s3 + $0x170] sm:$0xff] }
 0x240   :  { %924 = vmatpush1.msra.mxu0 %v4644_v20  ;;  %3765 = vmatpush3.msra.mxu1 %v5022_v59  ;;  %7374 = vst [vmem:[#allocation10_spill] sm:$0xff] %v5419_v18 }
 0x241   :  { %925 = vmatprep.subr.mxu0 %v4653_v22  ;;  %3766 = vmatprep.subr.mxu1 %v7361_v62 }
 0x242   :  { %926 = vmatpush1.msra.mxu0 %v4662_v24  ;;  %3767 = vmatpush3.msra.mxu1 %v5032_v61 }
 0x243   :  { %927 = vmatprep.subr.mxu0 %v4671_v26  ;;  %3768 = vmatprep.subr.mxu1 %v7361_v62 }
 0x244   :  { %928 = vmatpush1.msra.mxu0 %v4680_v28  ;;  %3769 = vmatpush3.msra.mxu1 %v5041_v63 }
 0x245   :  { %929 = vmatprep.subr.mxu0 %v4689_v30  ;;  %3770 = vmatprep.subr.mxu1 %v7361_v62  ;;  %v7375_v30 = vld [vmem:[#allocation17_spill] sm:$0xff] }
 0x246   :  { %930 = vmatpush1.msra.mxu0 %v4698_v32  ;;  %3771 = vmatpush3.msra.mxu1 %v5051_v2 }
 0x247   :  { %931 = vmatprep.subr.mxu0 %v4707_v34  ;;  %3772 = vmatprep.subr.mxu1 %v7361_v62 }
 0x248   :  { %932 = vmatpush1.msra.mxu0 %v4716_v36  ;;  %3773 = vmatpush3.msra.mxu1 %v5060_v7 }
 0x249   :  { %933 = vmatprep.subr.mxu0 %v4725_v38  ;;  %3774 = vmatprep.subr.mxu1 %v7361_v62  ;;  %v7376_v38 = vld [vmem:[#allocation18_spill] sm:$0xff] }
 0x24a   :  { %934 = vmatpush1.msra.mxu0 %v4734_v40  ;;  %3775 = vmatpush3.msra.mxu1 %v5070_v9 }
 0x24b   :  { %935 = vmatprep.subr.mxu0 %v4743_v42  ;;  %3776 = vmatprep.subr.mxu1 %v7361_v62 }
 0x24c   :  { %936 = vmatpush1.msra.mxu0 %v4752_v44  ;;  %3777 = vmatpush3.msra.mxu1 %v5079_v11 }
 0x24d   :  { %937 = vmatprep.subr.mxu0 %v4761_v46  ;;  %3778 = vmatprep.subr.mxu1 %v7361_v62 }
 0x24e   :  { %938 = vmatpush1.msra.mxu0 %v4770_v48  ;;  %3779 = vmatpush3.msra.mxu1 %v5089_v13 }
 0x24f   :  { %939 = vmatprep.subr.mxu0 %v4779_v50  ;;  %3780 = vmatprep.subr.mxu1 %v7361_v62 }
 0x250   :  { %940 = vmatpush1.msra.mxu0 %v4788_v52  ;;  %3781 = vmatpush3.msra.mxu1 %v5098_v15 }
 0x251   :  { %941 = vmatprep.subr.mxu0 %v4797_v54  ;;  %3782 = vmatprep.subr.mxu1 %v7361_v62 }
 0x252   :  { %942 = vmatpush1.msra.mxu0 %v7362_v4  ;;  %3783 = vmatpush3.msra.mxu1 %v7363_v6 }
 0x253   :  { %943 = vmatprep.subr.mxu0 %v7364_v8  ;;  %3784 = vmatprep.subr.mxu1 %v7361_v62  ;;  %v7377_v8 = vld [vmem:[#allocation29_spill] sm:$0xff] }
 0x254   :  { %944 = vmatpush1.msra.mxu0 %v7365_v10  ;;  %3785 = vmatpush3.msra.mxu1 %v7366_v12 }
 0x255   :  { %945 = vmatprep.subr.mxu0 %v7367_v14  ;;  %3786 = vmatprep.subr.mxu1 %v7361_v62 }
 0x256   :  { %946 = vmatpush1.msra.mxu0 %v7368_v16  ;;  %979 = vmatprep.mubr.f32.mxu0 %v7361_v62 }
 0x257   :  { %3787 = vmatpush3.msra.mxu1 %v7369_v5  ;;  %3788 = vmatprep.mubr.msk.f32.mxu1 %vm4486_vm0, %v7361_v62 }
 0x258   :  { %1083 = vmatprep.subr.mxu0 %v5419_v18  ;;  %3791 = vmatprep.subr.mxu1 %v7361_v62 }
 0x2f7   :  { %v813_v20 = vpop.f32.mrf.mxu0  ;;  %v884_v22 = vpop.f32.mrf.mxu1 }
 0x2f8   :  { %v814_v24 = vadd.f32 %v813_v20, %v5195_v45  ;;  %v885_v52 = vadd.f32 %v884_v22, %v5230_v56  ;;  %v5500_v20 = vld [vmem:[%s7243_s3 + $0xc0] sm:$0xff]  ;;  %v5507_v22 = vld [vmem:[%s7243_s3 + $0xb0] sm:$0xff] }
 0x2f9   :  { %v815_v26 = vpop.f32.mrf.mxu0  ;;  %v3755_v28 = vpop.f32.mrf.mxu1 }
 0x2fa   :  { %v888_v32 = vadd.f32 %v814_v24, %v7375_v30  ;;  %v816_v36 = vadd.f32 %v815_v26, %v5211_v23  ;;  %v5514_v24 = vld [vmem:[%s7243_s3 + $0xa8] sm:$0xff]  ;;  %v5521_v26 = vld [vmem:[%s7243_s3 + $0x98] sm:$0xff]  ;;  %v5528_v28 = vld [vmem:[%s7243_s3 + $0x90] sm:$0xff] }
 0x2fb   :  { %v5535_v30 = vld [vmem:[%s7243_s3 + $0x80] sm:$0xff] }
 0x2fc   :  { %v3264_v34 = vmul.f32 -1.442695, %v888_v32  ;;  %v895_v40 = vadd.f32 %v816_v36, %v7376_v38  ;;  %v5542_v32 = vld [vmem:[%s7243_s3 + $0x78] sm:$0xff]  ;;  %v5556_v36 = vld [vmem:[%s7243_s3 + $0x60] sm:$0xff]  ;;  %v5563_v38 = vld [vmem:[%s7243_s3 + $0x50] sm:$0xff] }
 0x2fe   :  { %4269 = vpow2.f32 %v3264_v34  ;;  %v3265_v42 = vmul.f32 -1.442695, %v895_v40  ;;  %v5549_v34 = vld [vmem:[%s7243_s3 + $0x68] sm:$0xff] }
 0x2ff   :  { %v5570_v40 = vld [vmem:[%s7243_s3 + $0x48] sm:$0xff] }
 0x300   :  { %4271 = vpow2.f32 %v3265_v42  ;;  %v5577_v42 = vld [vmem:[%s7243_s3 + $0x38] sm:$0xff] }
 0x30b   :  { %v4270_v44 = vpop.eup %4269 }
 0x30c   :  { %v892_v46 = vadd.f32 1.0, %v4270_v44  ;;  %v5584_v44 = vld [vmem:[%s7243_s3 + $0x30] sm:$0xff] }
 0x30d   :  { %v4272_v48 = vpop.eup %4271 }
 0x30e   :  { %4273 = vrcp.f32 %v892_v46  ;;  %v899_v50 = vadd.f32 1.0, %v4272_v48  ;;  %v5591_v46 = vld [vmem:[%s7243_s3 + $0x20] sm:$0xff]  ;;  %v5598_v48 = vld [vmem:[%s7243_s3 + $0x18] sm:$0xff] }
 0x30f   :  { %7378 = vst [vmem:[#allocation6_spill] sm:$0xff] %v5598_v48 }
 0x310   :  { %4275 = vrcp.f32 %v899_v50  ;;  %v5605_v50 = vld [vmem:[%s7243_s3 + $0x8] sm:$0xff] }
 0x311   :  { %7379 = vst [vmem:[#allocation7_spill] sm:$0xff] %v5605_v50 }
 0x31b   :  { %v4274_v54 = vpop.eup %4273 }
 0x31c   :  { %v902_v4 = vmul.f32 %v4274_v54, %v885_v52  ;;  %v5612_v52 = vld [vmem:[%s7243_s3] sm:$0xff] }
 0x31d   :  { %v4276_v14 = vpop.eup %4275  ;;  %7380 = vst [vmem:[#allocation8_spill] sm:$0xff] %v5612_v52 }
 0x31e   :  { %v903_v10 = vadd.f32 %v902_v4, %v7377_v8  ;;  %v905_v16 = vsub.f32 1.0, %v4276_v14  ;;  %v907_v33 = vmul.f32 %v4276_v14, %v5312_v35  ;;  %v7382_v35 = vld [vmem:[#allocation20_spill] sm:$0xff] }
 0x320   :  { %4277 = vtanh.f32 %v903_v10 }
 0x32d   :  { %v4278_v43 = vpop.eup %4277 }
 0x32e   :  { %v906_v58 = vmul.f32 %v4278_v43, %v905_v16  ;;  %v7381_v16 = vld [vmem:[#allocation19_spill] sm:$0xff] }
 0x330   :  { %v5430_v49 = vadd.f32 %v907_v33, %v906_v58 }
 0x332   :  { %980 = vmatmul.mubr.f32.vlgmr.msra.gmra.mxu0 %v5430_v49  ;;  %3789 = vmatmul.mubr.f32.vlgmr.msra.gmra.mxu1 %v5430_v49 }
 0x333   :  { %1084 = vmatpush1.msra.mxu0 %v5319_v3  ;;  %3792 = vmatpush3.msra.mxu1 %v4985_v51 }
 0x334   :  { %1085 = vmatprep.subr.mxu0 %v5326_v39  ;;  %3793 = vmatprep.subr.mxu1 %v7361_v62 }
 0x335   :  { %1086 = vmatpush1.msra.mxu0 %v5333_v21  ;;  %3794 = vmatpush3.msra.mxu1 %v4994_v53 }
 0x336   :  { %1087 = vmatprep.subr.mxu0 %v5340_v31  ;;  %3795 = vmatprep.subr.mxu1 %v7361_v62 }
 0x337   :  { %1088 = vmatpush1.msra.mxu0 %v5347_v29  ;;  %3796 = vmatpush3.msra.mxu1 %v5003_v55 }
 0x338   :  { %1089 = vmatprep.subr.mxu0 %v5354_v41  ;;  %3797 = vmatprep.subr.mxu1 %v7361_v62 }
 0x339   :  { %1090 = vmatpush1.msra.mxu0 %v5361_v37  ;;  %3798 = vmatpush3.msra.mxu1 %v5013_v57 }
 0x33a   :  { %1091 = vmatprep.subr.mxu0 %v5451_v0  ;;  %3799 = vmatprep.subr.mxu1 %v7361_v62 }
 0x33b   :  { %1092 = vmatpush1.msra.mxu0 %v5458_v27  ;;  %3800 = vmatpush3.msra.mxu1 %v5022_v59 }
 0x33c   :  { %1093 = vmatprep.subr.mxu0 %v5465_v19  ;;  %3801 = vmatprep.subr.mxu1 %v7361_v62 }
 0x33d   :  { %1094 = vmatpush1.msra.mxu0 %v5472_v60  ;;  %3802 = vmatpush3.msra.mxu1 %v5032_v61 }
 0x33e   :  { %1095 = vmatprep.subr.mxu0 %v5479_v1  ;;  %3803 = vmatprep.subr.mxu1 %v7361_v62 }
 0x33f   :  { %1096 = vmatpush1.msra.mxu0 %v5486_v25  ;;  %3804 = vmatpush3.msra.mxu1 %v5041_v63 }
 0x340   :  { %1097 = vmatprep.subr.mxu0 %v5493_v47  ;;  %3805 = vmatprep.subr.mxu1 %v7361_v62 }
 0x341   :  { %1098 = vmatpush1.msra.mxu0 %v5500_v20  ;;  %3806 = vmatpush3.msra.mxu1 %v5051_v2 }
 0x342   :  { %1099 = vmatprep.subr.mxu0 %v5507_v22  ;;  %3807 = vmatprep.subr.mxu1 %v7361_v62 }
 0x343   :  { %1100 = vmatpush1.msra.mxu0 %v5514_v24  ;;  %3808 = vmatpush3.msra.mxu1 %v5060_v7 }
 0x344   :  { %1101 = vmatprep.subr.mxu0 %v5521_v26  ;;  %3809 = vmatprep.subr.mxu1 %v7361_v62 }
 0x345   :  { %1102 = vmatpush1.msra.mxu0 %v5528_v28  ;;  %3810 = vmatpush3.msra.mxu1 %v5070_v9 }
 0x346   :  { %1103 = vmatprep.subr.mxu0 %v5535_v30  ;;  %3811 = vmatprep.subr.mxu1 %v7361_v62 }
 0x347   :  { %1104 = vmatpush1.msra.mxu0 %v5542_v32  ;;  %3812 = vmatpush3.msra.mxu1 %v5079_v11 }
 0x348   :  { %1105 = vmatprep.subr.mxu0 %v5549_v34  ;;  %3813 = vmatprep.subr.mxu1 %v7361_v62 }
 0x349   :  { %1106 = vmatpush1.msra.mxu0 %v5556_v36  ;;  %3814 = vmatpush3.msra.mxu1 %v5089_v13 }
 0x34a   :  { %1107 = vmatprep.subr.mxu0 %v5563_v38  ;;  %3815 = vmatprep.subr.mxu1 %v7361_v62 }
 0x34b   :  { %1108 = vmatpush1.msra.mxu0 %v5570_v40  ;;  %3816 = vmatpush3.msra.mxu1 %v5098_v15 }
 0x34c   :  { %1109 = vmatprep.subr.mxu0 %v5577_v42  ;;  %3817 = vmatprep.subr.mxu1 %v7361_v62 }
 0x34d   :  { %1110 = vmatpush1.msra.mxu0 %v5584_v44  ;;  %3818 = vmatpush3.msra.mxu1 %v7363_v6 }
 0x34e   :  { %1111 = vmatprep.subr.mxu0 %v5591_v46  ;;  %3819 = vmatprep.subr.mxu1 %v7361_v62 }
 0x34f   :  { %1112 = vmatpush1.msra.mxu0 %v5598_v48  ;;  %3820 = vmatpush3.msra.mxu1 %v7366_v12 }
 0x350   :  { %1113 = vmatprep.subr.mxu0 %v5605_v50  ;;  %3821 = vmatprep.subr.mxu1 %v7361_v62 }
 0x351   :  { %1114 = vmatpush1.msra.mxu0 %v5612_v52  ;;  %1147 = vmatprep.mubr.f32.mxu0 %v7361_v62 }
 0x352   :  { %3822 = vmatpush3.msra.mxu1 %v7369_v5  ;;  %3823 = vmatprep.mubr.msk.f32.mxu1 %vm4486_vm0, %v7361_v62 }
 0x353   :  { %1251 = vmatprep.subr.mxu0 %v5419_v18  ;;  %3826 = vmatprep.subr.mxu1 %v7361_v62 }
 0x3f2   :  { %v981_v54 = vpop.f32.mrf.mxu0  ;;  %v1052_v4 = vpop.f32.mrf.mxu1 }
 0x3f3   :  { %v982_v8 = vadd.f32 %v981_v54, %v5195_v45  ;;  %v1053_v48 = vadd.f32 %v1052_v4, %v5230_v56 }
 0x3f4   :  { %v983_v10 = vpop.f32.mrf.mxu0  ;;  %v3790_v14 = vpop.f32.mrf.mxu1 }
 0x3f5   :  { %v1056_v43 = vadd.f32 %v982_v8, %v7381_v16  ;;  %v984_v33 = vadd.f32 %v983_v10, %v5211_v23  ;;  %v7383_v14 = vld [vmem:[#allocation30_spill] sm:$0xff] }
 0x3f7   :  { %v3266_v58 = vmul.f32 -1.442695, %v1056_v43  ;;  %v1063_v17 = vadd.f32 %v984_v33, %v7382_v35  ;;  %v7392_v35 = vld [vmem:[#allocation23_spill] sm:$0xff] }
 0x3f9   :  { %4279 = vpow2.f32 %v3266_v58  ;;  %v3267_v5 = vmul.f32 -1.442695, %v1063_v17 }
 0x3fb   :  { %4281 = vpow2.f32 %v3267_v5 }
 0x406   :  { %v4280_v52 = vpop.eup %4279 }
 0x407   :  { %v1060_v18 = vadd.f32 1.0, %v4280_v52 }
 0x408   :  { %v4282_v50 = vpop.eup %4281 }
 0x409   :  { %4283 = vrcp.f32 %v1060_v18  ;;  %v1067_v12 = vadd.f32 1.0, %v4282_v50 }
 0x40b   :  { %4285 = vrcp.f32 %v1067_v12 }
 0x416   :  { %v4284_v54 = vpop.eup %4283 }
 0x417   :  { %v1070_v45 = vmul.f32 %v4284_v54, %v1053_v48 }
 0x418   :  { %v4286_v16 = vpop.eup %4285 }
 0x419   :  { %v1071_v8 = vadd.f32 %v1070_v45, %v7383_v14  ;;  %v1073_v10 = vsub.f32 1.0, %v4286_v16  ;;  %v1075_v17 = vmul.f32 %v4286_v16, %v5430_v49  ;;  %v7393_v16 = vld [vmem:[#allocation31_spill] sm:$0xff] }
 0x41b   :  { %4287 = vtanh.f32 %v1071_v8 }
 0x428   :  { %v4288_v43 = vpop.eup %4287 }
 0x429   :  { %v1074_v58 = vmul.f32 %v4288_v43, %v1073_v10 }
 0x42b   :  { %v5628_v5 = vadd.f32 %v1075_v17, %v1074_v58 }
 0x42d   :  { %1148 = vmatmul.mubr.f32.vlgmr.msra.gmra.mxu0 %v5628_v5  ;;  %3824 = vmatmul.mubr.f32.vlgmr.msra.gmra.mxu1 %v5628_v5 }
 0x42e   :  { %1252 = vmatpush1.msra.mxu0 %v5319_v3  ;;  %3827 = vmatpush3.msra.mxu1 %v4985_v51  ;;  %v7384_v51 = vld [vmem:[#allocation6_spill] sm:$0xff] }
 0x42f   :  { %1253 = vmatprep.subr.mxu0 %v5326_v39  ;;  %3828 = vmatprep.subr.mxu1 %v7361_v62 }
 0x430   :  { %1254 = vmatpush1.msra.mxu0 %v5333_v21  ;;  %3829 = vmatpush3.msra.mxu1 %v4994_v53  ;;  %v7385_v53 = vld [vmem:[#allocation11_spill] sm:$0xff] }
 0x431   :  { %1255 = vmatprep.subr.mxu0 %v5340_v31  ;;  %3830 = vmatprep.subr.mxu1 %v7361_v62 }
 0x432   :  { %1256 = vmatpush1.msra.mxu0 %v5347_v29  ;;  %3831 = vmatpush3.msra.mxu1 %v5003_v55  ;;  %v7386_v55 = vld [vmem:[#allocation7_spill] sm:$0xff] }
 0x433   :  { %1257 = vmatprep.subr.mxu0 %v5354_v41  ;;  %3832 = vmatprep.subr.mxu1 %v7361_v62 }
 0x434   :  { %1258 = vmatpush1.msra.mxu0 %v5361_v37  ;;  %3833 = vmatpush3.msra.mxu1 %v5013_v57  ;;  %v7387_v57 = vld [vmem:[#allocation8_spill] sm:$0xff] }
 0x435   :  { %1259 = vmatprep.subr.mxu0 %v5451_v0  ;;  %3834 = vmatprep.subr.mxu1 %v7361_v62 }
 0x436   :  { %1260 = vmatpush1.msra.mxu0 %v5458_v27  ;;  %3835 = vmatpush3.msra.mxu1 %v5022_v59  ;;  %v7388_v59 = vld [vmem:[#allocation12_spill] sm:$0xff] }
 0x437   :  { %1261 = vmatprep.subr.mxu0 %v5465_v19  ;;  %3836 = vmatprep.subr.mxu1 %v7361_v62 }
 0x438   :  { %1262 = vmatpush1.msra.mxu0 %v5472_v60  ;;  %3837 = vmatpush3.msra.mxu1 %v5032_v61  ;;  %v7389_v61 = vld [vmem:[#allocation10_spill] sm:$0xff] }
 0x439   :  { %1263 = vmatprep.subr.mxu0 %v5479_v1  ;;  %3838 = vmatprep.subr.mxu1 %v7361_v62 }
 0x43a   :  { %1264 = vmatpush1.msra.mxu0 %v5486_v25  ;;  %3839 = vmatpush3.msra.mxu1 %v5041_v63 }
 0x43b   :  { %1265 = vmatprep.subr.mxu0 %v5493_v47  ;;  %3840 = vmatprep.subr.mxu1 %v7361_v62 }
 0x43c   :  { %1266 = vmatpush1.msra.mxu0 %v5500_v20  ;;  %3841 = vmatpush3.msra.mxu1 %v5051_v2 }
 0x43d   :  { %1267 = vmatprep.subr.mxu0 %v5507_v22  ;;  %3842 = vmatprep.subr.mxu1 %v7361_v62 }
 0x43e   :  { %1268 = vmatpush1.msra.mxu0 %v5514_v24  ;;  %3843 = vmatpush3.msra.mxu1 %v5060_v7  ;;  %v7390_v7 = vld [vmem:[#allocation21_spill] sm:$0xff] }
 0x43f   :  { %1269 = vmatprep.subr.mxu0 %v5521_v26  ;;  %3844 = vmatprep.subr.mxu1 %v7361_v62 }
 0x440   :  { %1270 = vmatpush1.msra.mxu0 %v5528_v28  ;;  %3845 = vmatpush3.msra.mxu1 %v5070_v9 }
 0x441   :  { %1271 = vmatprep.subr.mxu0 %v5535_v30  ;;  %3846 = vmatprep.subr.mxu1 %v7361_v62 }
 0x442   :  { %1272 = vmatpush1.msra.mxu0 %v5542_v32  ;;  %3847 = vmatpush3.msra.mxu1 %v5079_v11 }
 0x443   :  { %1273 = vmatprep.subr.mxu0 %v5549_v34  ;;  %3848 = vmatprep.subr.mxu1 %v7361_v62 }
 0x444   :  { %1274 = vmatpush1.msra.mxu0 %v5556_v36  ;;  %3849 = vmatpush3.msra.mxu1 %v5089_v13 }
 0x445   :  { %1275 = vmatprep.subr.mxu0 %v5563_v38  ;;  %3850 = vmatprep.subr.mxu1 %v7361_v62 }
 0x446   :  { %1276 = vmatpush1.msra.mxu0 %v5570_v40  ;;  %3851 = vmatpush3.msra.mxu1 %v5098_v15  ;;  %v7391_v15 = vld [vmem:[#allocation22_spill] sm:$0xff] }
 0x447   :  { %1277 = vmatprep.subr.mxu0 %v5577_v42  ;;  %3852 = vmatprep.subr.mxu1 %v7361_v62 }
 0x448   :  { %1278 = vmatpush1.msra.mxu0 %v5584_v44  ;;  %3853 = vmatpush3.msra.mxu1 %v7363_v6 }
 0x449   :  { %1279 = vmatprep.subr.mxu0 %v5591_v46  ;;  %3854 = vmatprep.subr.mxu1 %v7361_v62 }
 0x44a   :  { %1280 = vmatpush1.msra.mxu0 %v7384_v51  ;;  %3855 = vmatpush3.msra.mxu1 %v7385_v53 }
 0x44b   :  { %1281 = vmatprep.subr.mxu0 %v7386_v55  ;;  %3856 = vmatprep.subr.mxu1 %v7361_v62 }
 0x44c   :  { %1282 = vmatpush1.msra.mxu0 %v7387_v57  ;;  %1315 = vmatprep.mubr.f32.mxu0 %v7361_v62 }
 0x44d   :  { %3857 = vmatpush3.msra.mxu1 %v7388_v59  ;;  %3858 = vmatprep.mubr.msk.f32.mxu1 %vm4486_vm0, %v7361_v62 }
 0x44e   :  { %1419 = vmatprep.subr.mxu0 %v7389_v61  ;;  %3861 = vmatprep.subr.mxu1 %v7361_v62 }
 0x4ed   :  { %v1149_v63 = vpop.f32.mrf.mxu0  ;;  %v1220_v2 = vpop.f32.mrf.mxu1 }
 0x4ee   :  { %v1150_v9 = vadd.f32 %v1149_v63, %v7390_v7  ;;  %v1221_v54 = vadd.f32 %v1220_v2, %v5230_v56  ;;  %v4421_v63 = vld [vmem:[%s7243_s3 + $0x178] sm:$0xff]  ;;  %v4422_v2 = vld [vmem:[%s7243_s3 + $0x160] sm:$0xff] }
 0x4ef   :  { %v1151_v11 = vpop.f32.mrf.mxu0  ;;  %v3825_v13 = vpop.f32.mrf.mxu1 }
 0x4f0   :  { %v1224_v45 = vadd.f32 %v1150_v9, %v7391_v15  ;;  %v1152_v12 = vadd.f32 %v1151_v11, %v5211_v23  ;;  %v7396_v15 = vld [vmem:[#allocation32_spill] sm:$0xff] }
 0x4f2   :  { %v3268_v6 = vmul.f32 -1.442695, %v1224_v45  ;;  %v1231_v18 = vadd.f32 %v1152_v12, %v7392_v35 }
 0x4f4   :  { %4289 = vpow2.f32 %v3268_v6  ;;  %v3269_v48 = vmul.f32 -1.442695, %v1231_v18 }
 0x4f6   :  { %4291 = vpow2.f32 %v3269_v48 }
 0x501   :  { %v4290_v50 = vpop.eup %4289 }
 0x502   :  { %v1228_v52 = vadd.f32 1.0, %v4290_v50 }
 0x503   :  { %v4292_v4 = vpop.eup %4291 }
 0x504   :  { %4293 = vrcp.f32 %v1228_v52  ;;  %v1235_v33 = vadd.f32 1.0, %v4292_v4  ;;  %v1636_v52 = vld [vmem:[%s7248_s6 + $0x168] sm:$0xff]  ;;  %v1638_v4 = vld [vmem:[%s7248_s6 + $0x178] sm:$0xff] }
 0x506   :  { %4295 = vrcp.f32 %v1235_v33  ;;  %v1634_v33 = vld [vmem:[%s7248_s6 + $0x158] sm:$0xff] }
 0x511   :  { %v4294_v14 = vpop.eup %4293 }
 0x512   :  { %v1238_v8 = vmul.f32 %v4294_v14, %v1221_v54  ;;  %v1633_v54 = vld [vmem:[%s7248_s6 + $0x150] sm:$0xff]  ;;  %v1635_v14 = vld [vmem:[%s7248_s6 + $0x160] sm:$0xff] }
 0x513   :  { %v4296_v43 = vpop.eup %4295 }
 0x514   :  { %v1239_v10 = vadd.f32 %v1238_v8, %v7393_v16  ;;  %v1241_v58 = vsub.f32 1.0, %v4296_v43  ;;  %v1243_v59 = vmul.f32 %v4296_v43, %v5628_v5  ;;  %v1631_v8 = vld [vmem:[%s7248_s6 + $0x140] sm:$0xff]  ;;  %v1630_v16 = vld [vmem:[%s7248_s6 + $0x138] sm:$0xff]  ;;  %v1628_v43 = vld [vmem:[%s7248_s6 + $0x128] sm:$0xff] }
 0x516   :  { %4297 = vtanh.f32 %v1239_v10  ;;  %v1632_v10 = vld [vmem:[%s7248_s6 + $0x148] sm:$0xff] }
 0x523   :  { %v4298_v17 = vpop.eup %4297 }
 0x524   :  { %v1242_v53 = vmul.f32 %v4298_v17, %v1241_v58  ;;  %v1627_v58 = vld [vmem:[%s7248_s6 + $0x120] sm:$0xff]  ;;  %v1629_v17 = vld [vmem:[%s7248_s6 + $0x130] sm:$0xff] }
 0x526   :  { %v5706_v61 = vadd.f32 %v1243_v59, %v1242_v53  ;;  %v1625_v53 = vld [vmem:[%s7248_s6 + $0x110] sm:$0xff]  ;;  %v1624_v59 = vld [vmem:[%s7248_s6 + $0x108] sm:$0xff] }
 0x528   :  { %1316 = vmatmul.mubr.f32.vlgmr.msra.gmra.mxu0 %v5706_v61  ;;  %3859 = vmatmul.mubr.f32.vlgmr.msra.gmra.mxu1 %v5706_v61 }
 0x529   :  { %1420 = vmatpush1.msra.mxu0 %v5319_v3  ;;  %3862 = vmatpush3.msra.mxu1 %v4421_v63  ;;  %v4423_v3 = vld [vmem:[%s7243_s3 + $0x148] sm:$0xff]  ;;  %v1626_v63 = vld [vmem:[%s7248_s6 + $0x118] sm:$0xff] }
 0x52a   :  { %1421 = vmatprep.subr.mxu0 %v5326_v39  ;;  %3863 = vmatprep.subr.mxu1 %v7361_v62  ;;  %v4424_v39 = vld [vmem:[%s7243_s3 + $0x130] sm:$0xff] }
 0x52b   :  { %1422 = vmatpush1.msra.mxu0 %v5333_v21  ;;  %3864 = vmatpush3.msra.mxu1 %v4422_v2  ;;  %v4425_v21 = vld [vmem:[%s7243_s3 + $0x118] sm:$0xff] }
 0x52c   :  { %1423 = vmatprep.subr.mxu0 %v5340_v31  ;;  %3865 = vmatprep.subr.mxu1 %v7361_v62  ;;  %v4426_v31 = vld [vmem:[%s7243_s3 + $0x100] sm:$0xff]  ;;  %v1622_v2 = vld [vmem:[%s7248_s6 + $0xf8] sm:$0xff] }
 0x52d   :  { %1424 = vmatpush1.msra.mxu0 %v5347_v29  ;;  %3866 = vmatpush3.msra.mxu1 %v4423_v3  ;;  %v4427_v29 = vld [vmem:[%s7243_s3 + $0xe8] sm:$0xff]  ;;  %v1621_v3 = vld [vmem:[%s7248_s6 + $0xf0] sm:$0xff] }
 0x52e   :  { %1425 = vmatprep.subr.mxu0 %v5354_v41  ;;  %3867 = vmatprep.subr.mxu1 %v7361_v62  ;;  %v4428_v41 = vld [vmem:[%s7243_s3 + $0xd0] sm:$0xff] }
 0x52f   :  { %1426 = vmatpush1.msra.mxu0 %v5361_v37  ;;  %3868 = vmatpush3.msra.mxu1 %v4424_v39  ;;  %v4429_v37 = vld [vmem:[%s7243_s3 + $0xb8] sm:$0xff]  ;;  %v1623_v39 = vld [vmem:[%s7248_s6 + $0x100] sm:$0xff] }
 0x530   :  { %1427 = vmatprep.subr.mxu0 %v5451_v0  ;;  %3869 = vmatprep.subr.mxu1 %v7361_v62  ;;  %v4430_v0 = vld [vmem:[%s7243_s3 + $0xa0] sm:$0xff] }
 0x531   :  { %1428 = vmatpush1.msra.mxu0 %v5458_v27  ;;  %3870 = vmatpush3.msra.mxu1 %v4425_v21  ;;  %v4431_v27 = vld [vmem:[%s7243_s3 + $0x88] sm:$0xff]  ;;  %v1619_v21 = vld [vmem:[%s7248_s6 + $0xe0] sm:$0xff] }
 0x532   :  { %1429 = vmatprep.subr.mxu0 %v5465_v19  ;;  %3871 = vmatprep.subr.mxu1 %v7361_v62  ;;  %v4432_v19 = vld [vmem:[%s7243_s3 + $0x70] sm:$0xff] }
 0x533   :  { %1430 = vmatpush1.msra.mxu0 %v5472_v60  ;;  %3872 = vmatpush3.msra.mxu1 %v4426_v31  ;;  %v4433_v60 = vld [vmem:[%s7243_s3 + $0x58] sm:$0xff] }
 0x534   :  { %1431 = vmatprep.subr.mxu0 %v5479_v1  ;;  %3873 = vmatprep.subr.mxu1 %v7361_v62  ;;  %v4434_v1 = vld [vmem:[%s7243_s3 + $0x40] sm:$0xff]  ;;  %v1618_v31 = vld [vmem:[%s7248_s6 + $0xd8] sm:$0xff] }
 0x535   :  { %1432 = vmatpush1.msra.mxu0 %v5486_v25  ;;  %3874 = vmatpush3.msra.mxu1 %v4427_v29  ;;  %v4435_v25 = vld [vmem:[%s7243_s3 + $0x28] sm:$0xff] }
 0x536   :  { %1433 = vmatprep.subr.mxu0 %v5493_v47  ;;  %3875 = vmatprep.subr.mxu1 %v7361_v62  ;;  %v4436_v47 = vld [vmem:[%s7243_s3 + $0x10] sm:$0xff]  ;;  %v1620_v29 = vld [vmem:[%s7248_s6 + $0xe8] sm:$0xff] }
 0x537   :  { %1434 = vmatpush1.msra.mxu0 %v5500_v20  ;;  %3876 = vmatpush3.msra.mxu1 %v4428_v41  ;;  %v1637_v20 = vld [vmem:[%s7248_s6 + $0x170] sm:$0xff]  ;;  %v1616_v41 = vld [vmem:[%s7248_s6 + $0xc8] sm:$0xff] }
 0x538   :  { %1435 = vmatprep.subr.mxu0 %v5507_v22  ;;  %3877 = vmatprep.subr.mxu1 %v7361_v62 }
 0x539   :  { %1436 = vmatpush1.msra.mxu0 %v5514_v24  ;;  %3878 = vmatpush3.msra.mxu1 %v4429_v37  ;;  %v1615_v37 = vld [vmem:[%s7248_s6 + $0xc0] sm:$0xff] }
 0x53a   :  { %1437 = vmatprep.subr.mxu0 %v5521_v26  ;;  %3879 = vmatprep.subr.mxu1 %v7361_v62 }
 0x53b   :  { %1438 = vmatpush1.msra.mxu0 %v5528_v28  ;;  %3880 = vmatpush3.msra.mxu1 %v4430_v0  ;;  %v1617_v0 = vld [vmem:[%s7248_s6 + $0xd0] sm:$0xff] }
 0x53c   :  { %1439 = vmatprep.subr.mxu0 %v5535_v30  ;;  %3881 = vmatprep.subr.mxu1 %v7361_v62 }
 0x53d   :  { %1440 = vmatpush1.msra.mxu0 %v5542_v32  ;;  %3882 = vmatpush3.msra.mxu1 %v4431_v27  ;;  %v7394_v32 = vld [vmem:[#allocation24_spill] sm:$0xff]  ;;  %v1613_v27 = vld [vmem:[%s7248_s6 + $0xb0] sm:$0xff] }
 0x53e   :  { %1441 = vmatprep.subr.mxu0 %v5549_v34  ;;  %3883 = vmatprep.subr.mxu1 %v7361_v62 }
 0x53f   :  { %1442 = vmatpush1.msra.mxu0 %v5556_v36  ;;  %3884 = vmatpush3.msra.mxu1 %v4432_v19  ;;  %v1612_v19 = vld [vmem:[%s7248_s6 + $0xa8] sm:$0xff] }
 0x540   :  { %1443 = vmatprep.subr.mxu0 %v5563_v38  ;;  %3885 = vmatprep.subr.mxu1 %v7361_v62 }
 0x541   :  { %1444 = vmatpush1.msra.mxu0 %v5570_v40  ;;  %3886 = vmatpush3.msra.mxu1 %v4433_v60  ;;  %v7395_v40 = vld [vmem:[#allocation25_spill] sm:$0xff]  ;;  %v1614_v60 = vld [vmem:[%s7248_s6 + $0xb8] sm:$0xff] }
 0x542   :  { %1445 = vmatprep.subr.mxu0 %v5577_v42  ;;  %3887 = vmatprep.subr.mxu1 %v7361_v62 }
 0x543   :  { %1446 = vmatpush1.msra.mxu0 %v5584_v44  ;;  %3888 = vmatpush3.msra.mxu1 %v4434_v1  ;;  %v1610_v1 = vld [vmem:[%s7248_s6 + $0x98] sm:$0xff] }
 0x544   :  { %1447 = vmatprep.subr.mxu0 %v5591_v46  ;;  %3889 = vmatprep.subr.mxu1 %v7361_v62 }
 0x545   :  { %1448 = vmatpush1.msra.mxu0 %v7384_v51  ;;  %3890 = vmatpush3.msra.mxu1 %v4435_v25  ;;  %v1609_v25 = vld [vmem:[%s7248_s6 + $0x90] sm:$0xff] }
 0x546   :  { %1449 = vmatprep.subr.mxu0 %v7386_v55  ;;  %3891 = vmatprep.subr.mxu1 %v7361_v62 }
 0x547   :  { %1450 = vmatpush1.msra.mxu0 %v7387_v57  ;;  %3892 = vmatpush3.msra.mxu1 %v4436_v47  ;;  %v1611_v47 = vld [vmem:[%s7248_s6 + $0xa0] sm:$0xff] }
 0x548   :  { %1483 = vmatprep.mubr.f32.mxu0 %v7361_v62  ;;  %3893 = vmatprep.mubr.msk.f32.mxu1 %vm4486_vm0, %v7361_v62 }
 0x549   :  { %3896 = vmatprep.subr.mxu1 %v7361_v62  ;;  %1656 = vmatprep.subr.mxu0 %v1637_v20  ;;  %v1607_v20 = vld [vmem:[%s7248_s6 + $0x80] sm:$0xff] }
 0x5e8   :  { %v1317_v22 = vpop.f32.mrf.mxu0  ;;  %v1388_v24 = vpop.f32.mrf.mxu1 }
 0x5e9   :  { %v1318_v26 = vadd.f32 %v1317_v22, %v7390_v7  ;;  %v1389_v9 = vadd.f32 %v1388_v24, %v5230_v56  ;;  %v1606_v22 = vld [vmem:[%s7248_s6 + $0x78] sm:$0xff]  ;;  %v1608_v24 = vld [vmem:[%s7248_s6 + $0x88] sm:$0xff] }
 0x5ea   :  { %v1319_v28 = vpop.f32.mrf.mxu0  ;;  %v3860_v30 = vpop.f32.mrf.mxu1 }
 0x5eb   :  { %v1392_v34 = vadd.f32 %v1318_v26, %v7394_v32  ;;  %v1320_v38 = vadd.f32 %v1319_v28, %v5211_v23  ;;  %v1604_v26 = vld [vmem:[%s7248_s6 + $0x68] sm:$0xff]  ;;  %v1603_v28 = vld [vmem:[%s7248_s6 + $0x60] sm:$0xff]  ;;  %v1605_v30 = vld [vmem:[%s7248_s6 + $0x70] sm:$0xff] }
 0x5ec   :  { %v1601_v32 = vld [vmem:[%s7248_s6 + $0x50] sm:$0xff] }
 0x5ed   :  { %v3270_v36 = vmul.f32 -1.442695, %v1392_v34  ;;  %v1399_v42 = vadd.f32 %v1320_v38, %v7395_v40  ;;  %v1600_v34 = vld [vmem:[%s7248_s6 + $0x48] sm:$0xff]  ;;  %v1598_v38 = vld [vmem:[%s7248_s6 + $0x38] sm:$0xff]  ;;  %v1597_v40 = vld [vmem:[%s7248_s6 + $0x30] sm:$0xff] }
 0x5ef   :  { %4299 = vpow2.f32 %v3270_v36  ;;  %v3271_v44 = vmul.f32 -1.442695, %v1399_v42  ;;  %v1602_v36 = vld [vmem:[%s7248_s6 + $0x58] sm:$0xff]  ;;  %v1599_v42 = vld [vmem:[%s7248_s6 + $0x40] sm:$0xff] }
 0x5f1   :  { %4301 = vpow2.f32 %v3271_v44  ;;  %v1595_v44 = vld [vmem:[%s7248_s6 + $0x20] sm:$0xff] }
 0x5fc   :  { %v4300_v46 = vpop.eup %4299 }
 0x5fd   :  { %v1396_v51 = vadd.f32 1.0, %v4300_v46  ;;  %v1594_v46 = vld [vmem:[%s7248_s6 + $0x18] sm:$0xff] }
 0x5fe   :  { %v4302_v55 = vpop.eup %4301 }
 0x5ff   :  { %4303 = vrcp.f32 %v1396_v51  ;;  %v1403_v57 = vadd.f32 1.0, %v4302_v55  ;;  %v1596_v51 = vld [vmem:[%s7248_s6 + $0x28] sm:$0xff] }
 0x600   :  { %v1592_v55 = vld [vmem:[%s7248_s6 + $0x8] sm:$0xff] }
 0x601   :  { %4305 = vrcp.f32 %v1403_v57  ;;  %v1591_v57 = vld [vmem:[%s7248_s6] sm:$0xff] }
 0x60c   :  { %v4304_v11 = vpop.eup %4303 }
 0x60d   :  { %v1406_v13 = vmul.f32 %v4304_v11, %v1389_v9  ;;  %v1593_v9 = vld [vmem:[%s7248_s6 + $0x10] sm:$0xff] }
 0x60e   :  { %v4306_v6 = vpop.eup %4305  ;;  %v7397_v11 = vld [vmem:[#allocation34_spill] sm:$0xff] }
 0x60f   :  { %v1407_v45 = vadd.f32 %v1406_v13, %v7396_v15  ;;  %v1409_v12 = vsub.f32 1.0, %v4306_v6  ;;  %v1411_v48 = vmul.f32 %v4306_v6, %v5706_v61  ;;  %v7398_v13 = vld [vmem:[#allocation5_spill] sm:$0xff]  ;;  %v6033_v15 = vld [vmem:[%s7249_s7 + $0x150] sm:$0xff]  ;;  %v6045_v6 = vld [vmem:[%s7249_s7 + $0x138] sm:$0xff] }
 0x611   :  { %4307 = vtanh.f32 %v1407_v45  ;;  %v6039_v45 = vld [vmem:[%s7249_s7 + $0x140] sm:$0xff] }
 0x61e   :  { %v4308_v35 = vpop.eup %4307 }
 0x61f   :  { %v1410_v18 = vmul.f32 %v4308_v35, %v1409_v12  ;;  %v6051_v12 = vld [vmem:[%s7249_s7 + $0x128] sm:$0xff]  ;;  %v6057_v35 = vld [vmem:[%s7249_s7 + $0x120] sm:$0xff] }
 0x621   :  { %v5818_v50 = vadd.f32 %v1411_v48, %v1410_v18  ;;  %v6063_v18 = vld [vmem:[%s7249_s7 + $0x110] sm:$0xff]  ;;  %v6069_v48 = vld [vmem:[%s7249_s7 + $0x108] sm:$0xff] }
 0x623   :  { %1484 = vmatmul.mubr.f32.vlgmr.msra.gmra.mxu0 %v5818_v50  ;;  %3894 = vmatmul.mubr.f32.vlgmr.msra.gmra.mxu1 %v5818_v50 }
 0x624   :  { %1657 = vmatpush1.msra.mxu0 %v1636_v52  ;;  %3897 = vmatpush3.msra.mxu1 %v1638_v4  ;;  %v6075_v52 = vld [vmem:[%s7249_s7 + $0xf8] sm:$0xff]  ;;  %v6081_v4 = vld [vmem:[%s7249_s7 + $0xf0] sm:$0xff] }
 0x625   :  { %1658 = vmatprep.subr.mxu0 %v1634_v33  ;;  %3898 = vmatprep.subr.mxu1 %v7361_v62  ;;  %v6087_v33 = vld [vmem:[%s7249_s7 + $0xe0] sm:$0xff] }
 0x626   :  { %1659 = vmatpush1.msra.mxu0 %v1633_v54  ;;  %3899 = vmatpush3.msra.mxu1 %v1635_v14  ;;  %v6093_v54 = vld [vmem:[%s7249_s7 + $0xd8] sm:$0xff]  ;;  %v6099_v14 = vld [vmem:[%s7249_s7 + $0xc8] sm:$0xff] }
 0x627   :  { %1660 = vmatprep.subr.mxu0 %v1631_v8  ;;  %3900 = vmatprep.subr.mxu1 %v7361_v62  ;;  %v6105_v8 = vld [vmem:[%s7249_s7 + $0xc0] sm:$0xff] }
 0x628   :  { %1661 = vmatpush1.msra.mxu0 %v1630_v16  ;;  %3901 = vmatpush3.msra.mxu1 %v1632_v10  ;;  %v6111_v16 = vld [vmem:[%s7249_s7 + $0xb0] sm:$0xff]  ;;  %v6117_v10 = vld [vmem:[%s7249_s7 + $0xa8] sm:$0xff] }
 0x629   :  { %1662 = vmatprep.subr.mxu0 %v1628_v43  ;;  %3902 = vmatprep.subr.mxu1 %v7361_v62  ;;  %v6123_v43 = vld [vmem:[%s7249_s7 + $0x98] sm:$0xff] }
 0x62a   :  { %1663 = vmatpush1.msra.mxu0 %v1627_v58  ;;  %3903 = vmatpush3.msra.mxu1 %v1629_v17  ;;  %v6129_v58 = vld [vmem:[%s7249_s7 + $0x90] sm:$0xff]  ;;  %v6135_v17 = vld [vmem:[%s7249_s7 + $0x80] sm:$0xff] }
 0x62b   :  { %1664 = vmatprep.subr.mxu0 %v1625_v53  ;;  %3904 = vmatprep.subr.mxu1 %v7361_v62  ;;  %v6141_v53 = vld [vmem:[%s7249_s7 + $0x78] sm:$0xff] }
 0x62c   :  { %1665 = vmatpush1.msra.mxu0 %v1624_v59  ;;  %3905 = vmatpush3.msra.mxu1 %v1626_v63  ;;  %v6147_v59 = vld [vmem:[%s7249_s7 + $0x68] sm:$0xff]  ;;  %v6153_v63 = vld [vmem:[%s7249_s7 + $0x60] sm:$0xff] }
 0x62d   :  { %1666 = vmatprep.subr.mxu0 %v1622_v2  ;;  %3906 = vmatprep.subr.mxu1 %v7361_v62  ;;  %v6159_v2 = vld [vmem:[%s7249_s7 + $0x50] sm:$0xff] }
 0x62e   :  { %1667 = vmatpush1.msra.mxu0 %v1621_v3  ;;  %3907 = vmatpush3.msra.mxu1 %v1623_v39  ;;  %v6164_v3 = vld [vmem:[%s7249_s7 + $0x48] sm:$0xff]  ;;  %v6169_v39 = vld [vmem:[%s7249_s7 + $0x38] sm:$0xff] }
 0x62f   :  { %1668 = vmatprep.subr.mxu0 %v1619_v21  ;;  %3908 = vmatprep.subr.mxu1 %v7361_v62  ;;  %v6175_v21 = vld [vmem:[%s7249_s7 + $0x30] sm:$0xff] }
 0x630   :  { %1669 = vmatpush1.msra.mxu0 %v1618_v31  ;;  %3909 = vmatpush3.msra.mxu1 %v1620_v29  ;;  %7400 = vst [vmem:[#allocation4_spill] sm:$0xff] %v6175_v21  ;;  %v6182_v31 = vld [vmem:[%s7249_s7 + $0x20] sm:$0xff]  ;;  %v6187_v29 = vld [vmem:[%s7249_s7 + $0x18] sm:$0xff] }
 0x631   :  { %1670 = vmatprep.subr.mxu0 %v1616_v41  ;;  %3910 = vmatprep.subr.mxu1 %v7361_v62  ;;  %7401 = vst [vmem:[#allocation15_spill] sm:$0xff] %v6182_v31  ;;  %7402 = vst [vmem:[#allocation16_spill] sm:$0xff] %v6187_v29  ;;  %v6193_v41 = vld [vmem:[%s7249_s7 + $0x8] sm:$0xff] }
 0x632   :  { %1671 = vmatpush1.msra.mxu0 %v1615_v37  ;;  %3911 = vmatpush3.msra.mxu1 %v1617_v0  ;;  %7403 = vst [vmem:[#allocation17_spill] sm:$0xff] %v6193_v41  ;;  %v6199_v37 = vld [vmem:[%s7249_s7] sm:$0xff]  ;;  %v6206_v0 = vld [vmem:[%s7249_s7 + $0x178] sm:$0xff] }
 0x633   :  { %1672 = vmatprep.subr.mxu0 %v1613_v27  ;;  %3912 = vmatprep.subr.mxu1 %v7361_v62  ;;  %7404 = vst [vmem:[#allocation18_spill] sm:$0xff] %v6199_v37  ;;  %v6211_v27 = vld [vmem:[%s7249_s7 + $0x160] sm:$0xff] }
 0x634   :  { %1673 = vmatpush1.msra.mxu0 %v1612_v19  ;;  %3913 = vmatpush3.msra.mxu1 %v1614_v60  ;;  %v6219_v19 = vld [vmem:[%s7249_s7 + $0x148] sm:$0xff]  ;;  %v6227_v60 = vld [vmem:[%s7249_s7 + $0x130] sm:$0xff] }
 0x635   :  { %1674 = vmatprep.subr.mxu0 %v1610_v1  ;;  %3914 = vmatprep.subr.mxu1 %v7361_v62  ;;  %v6234_v1 = vld [vmem:[%s7249_s7 + $0x118] sm:$0xff] }
 0x636   :  { %1675 = vmatpush1.msra.mxu0 %v1609_v25  ;;  %3915 = vmatpush3.msra.mxu1 %v1611_v47  ;;  %v6241_v25 = vld [vmem:[%s7249_s7 + $0x100] sm:$0xff]  ;;  %v6248_v47 = vld [vmem:[%s7249_s7 + $0xe8] sm:$0xff] }
 0x637   :  { %1676 = vmatprep.subr.mxu0 %v1607_v20  ;;  %3916 = vmatprep.subr.mxu1 %v7361_v62  ;;  %v6255_v20 = vld [vmem:[%s7249_s7 + $0xd0] sm:$0xff] }
 0x638   :  { %1677 = vmatpush1.msra.mxu0 %v1606_v22  ;;  %3917 = vmatpush3.msra.mxu1 %v1608_v24  ;;  %v6262_v22 = vld [vmem:[%s7249_s7 + $0xb8] sm:$0xff]  ;;  %v6269_v24 = vld [vmem:[%s7249_s7 + $0xa0] sm:$0xff] }
 0x639   :  { %1678 = vmatprep.subr.mxu0 %v1604_v26  ;;  %3918 = vmatprep.subr.mxu1 %v7361_v62  ;;  %v6276_v26 = vld [vmem:[%s7249_s7 + $0x88] sm:$0xff] }
 0x63a   :  { %1679 = vmatpush1.msra.mxu0 %v1603_v28  ;;  %3919 = vmatpush3.msra.mxu1 %v1605_v30  ;;  %v6283_v28 = vld [vmem:[%s7249_s7 + $0x70] sm:$0xff]  ;;  %v6290_v30 = vld [vmem:[%s7249_s7 + $0x58] sm:$0xff] }
 0x63b   :  { %1680 = vmatprep.subr.mxu0 %v1601_v32  ;;  %3920 = vmatprep.subr.mxu1 %v7361_v62  ;;  %v6297_v32 = vld [vmem:[%s7249_s7 + $0x40] sm:$0xff] }
 0x63c   :  { %1681 = vmatpush1.msra.mxu0 %v1600_v34  ;;  %3921 = vmatpush3.msra.mxu1 %v1602_v36  ;;  %7405 = vst [vmem:[#allocation29_spill] sm:$0xff] %v6297_v32  ;;  %v6304_v34 = vld [vmem:[%s7249_s7 + $0x28] sm:$0xff]  ;;  %v6311_v36 = vld [vmem:[%s7249_s7 + $0x10] sm:$0xff] }
 0x63d   :  { %1682 = vmatprep.subr.mxu0 %v1598_v38  ;;  %3922 = vmatprep.subr.mxu1 %v7361_v62  ;;  %7406 = vst [vmem:[#allocation19_spill] sm:$0xff] %v6304_v34  ;;  %7407 = vst [vmem:[#allocation20_spill] sm:$0xff] %v6311_v36 }
 0x63e   :  { %1683 = vmatpush1.msra.mxu0 %v1597_v40  ;;  %3923 = vmatpush3.msra.mxu1 %v1599_v42 }
 0x63f   :  { %1684 = vmatprep.subr.mxu0 %v1595_v44  ;;  %3924 = vmatprep.subr.mxu1 %v7361_v62 }
 0x640   :  { %1685 = vmatpush1.msra.mxu0 %v1594_v46  ;;  %3925 = vmatpush3.msra.mxu1 %v1596_v51  ;;  %v7408_v51 = vld [vmem:[#allocation26_spill] sm:$0xff] }
 0x641   :  { %1686 = vmatprep.subr.mxu0 %v1592_v55  ;;  %3926 = vmatprep.subr.mxu1 %v7361_v62 }
 0x642   :  { %1687 = vmatpush1.msra.mxu0 %v1591_v57  ;;  %1720 = vmatprep.mubr.f32.mxu0 %v7361_v62 }
 0x643   :  { %3927 = vmatpush3.msra.mxu1 %v1593_v9  ;;  %3928 = vmatprep.mubr.msk.f32.mxu1 %vm4486_vm0, %v7361_v62 }
 0x644   :  { %1721 = vmatmul.mubr.f32.vlgmr.msra.gmra.mxu0 %v7397_v11  ;;  %3929 = vmatmul.mubr.f32.vlgmr.msra.gmra.mxu1 %v7397_v11  ;;  %v7409_v11 = vld [vmem:[#allocation27_spill] sm:$0xff] }
 0x645   :  { %1726 = vmatprep.mubr.f32.mxu0 %v7361_v62  ;;  %3931 = vmatprep.mubr.msk.f32.mxu1 %vm4486_vm0, %v7361_v62 }
 0x646   :  { %3949 = vmatprep.subr.mxu1 %v7361_v62 }
 0x647   :  { %3950 = vmatpush3.msra.mxu1 %v6206_v0 }
 0x648   :  { %1727 = vmatmul.mubr.f32.gmra.mxu0 %v7398_v13  ;;  %3932 = vmatmul.mubr.f32.gmra.mxu1 %v7398_v13 }
 0x649   :  { %1732 = vmatprep.mubr.f32.mxu0 %v7361_v62  ;;  %3934 = vmatprep.mubr.msk.f32.mxu1 %vm4486_vm0, %v7361_v62 }
 0x64a   :  { %3951 = vmatprep.subr.mxu1 %v7361_v62 }
 0x64b   :  { %3952 = vmatpush3.msra.mxu1 %v6211_v27 }
 0x64c   :  { %1733 = vmatmul.mubr.f32.gmra.mxu0 %v5430_v49  ;;  %3935 = vmatmul.mubr.f32.gmra.mxu1 %v5430_v49  ;;  %v6015_v49 = vld [vmem:[%s7249_s7 + $0x170] sm:$0xff] }
 0x64d   :  { %1738 = vmatprep.mubr.f32.mxu0 %v7361_v62  ;;  %3937 = vmatprep.mubr.msk.f32.mxu1 %vm4486_vm0, %v7361_v62  ;;  %7399 = vst [vmem:[#allocation9_spill] sm:$0xff] %v6015_v49 }
 0x64e   :  { %1954 = vmatprep.subr.mxu0 %v6015_v49  ;;  %3953 = vmatprep.subr.mxu1 %v7361_v62 }
 0x64f   :  { %3954 = vmatpush3.msra.mxu1 %v6219_v19 }
 0x650   :  { %1739 = vmatmul.mubr.f32.gmra.mxu0 %v5628_v5  ;;  %3938 = vmatmul.mubr.f32.gmra.mxu1 %v5628_v5  ;;  %v6021_v5 = vld [vmem:[%s7249_s7 + $0x168] sm:$0xff] }
 0x651   :  { %1744 = vmatprep.mubr.f32.mxu0 %v7361_v62  ;;  %3940 = vmatprep.mubr.msk.f32.mxu1 %vm4486_vm0, %v7361_v62 }
 0x652   :  { %1955 = vmatpush1.msra.mxu0 %v6021_v5  ;;  %3955 = vmatprep.subr.mxu1 %v7361_v62 }
 0x653   :  { %3956 = vmatpush3.msra.mxu1 %v6227_v60 }
 0x654   :  { %1745 = vmatmul.mubr.f32.gmra.mxu0 %v5706_v61  ;;  %3941 = vmatmul.mubr.f32.gmra.mxu1 %v5706_v61  ;;  %v6027_v61 = vld [vmem:[%s7249_s7 + $0x158] sm:$0xff] }
 0x655   :  { %1750 = vmatprep.mubr.f32.mxu0 %v7361_v62  ;;  %3943 = vmatprep.mubr.msk.f32.mxu1 %vm4486_vm0, %v7361_v62 }
 0x656   :  { %1956 = vmatprep.subr.mxu0 %v6027_v61  ;;  %3957 = vmatprep.subr.mxu1 %v7361_v62 }
 0x657   :  { %1957 = vmatpush1.msra.mxu0 %v6033_v15  ;;  %3958 = vmatpush3.msra.mxu1 %v6234_v1 }
 0x658   :  { %1751 = vmatmul.mubr.f32.gmra.mxu0 %v5818_v50  ;;  %3944 = vmatmul.mubr.f32.gmra.mxu1 %v5818_v50 }
 0x659   :  { %1756 = vmatprep.mubr.f32.mxu0 %v7361_v62  ;;  %3946 = vmatprep.mubr.msk.f32.mxu1 %vm4486_vm0, %v7361_v62 }
 0x65a   :  { %1958 = vmatprep.subr.mxu0 %v6039_v45  ;;  %3959 = vmatprep.subr.mxu1 %v7361_v62 }
 0x65b   :  { %1959 = vmatpush1.msra.mxu0 %v6045_v6  ;;  %3960 = vmatpush3.msra.mxu1 %v6241_v25 }
 0x65c   :  { %1960 = vmatprep.subr.mxu0 %v6051_v12  ;;  %3961 = vmatprep.subr.mxu1 %v7361_v62 }
 0x65d   :  { %1961 = vmatpush1.msra.mxu0 %v6057_v35  ;;  %3962 = vmatpush3.msra.mxu1 %v6248_v47 }
 0x65e   :  { %1962 = vmatprep.subr.mxu0 %v6063_v18  ;;  %3963 = vmatprep.subr.mxu1 %v7361_v62 }
 0x65f   :  { %1963 = vmatpush1.msra.mxu0 %v6069_v48  ;;  %3964 = vmatpush3.msra.mxu1 %v6255_v20 }
 0x660   :  { %1964 = vmatprep.subr.mxu0 %v6075_v52  ;;  %3965 = vmatprep.subr.mxu1 %v7361_v62 }
 0x661   :  { %1965 = vmatpush1.msra.mxu0 %v6081_v4  ;;  %3966 = vmatpush3.msra.mxu1 %v6262_v22 }
 0x662   :  { %1966 = vmatprep.subr.mxu0 %v6087_v33  ;;  %3967 = vmatprep.subr.mxu1 %v7361_v62 }
 0x663   :  { %1967 = vmatpush1.msra.mxu0 %v6093_v54  ;;  %3968 = vmatpush3.msra.mxu1 %v6269_v24 }
 0x664   :  { %1968 = vmatprep.subr.mxu0 %v6099_v14  ;;  %3969 = vmatprep.subr.mxu1 %v7361_v62 }
 0x665   :  { %1969 = vmatpush1.msra.mxu0 %v6105_v8  ;;  %3970 = vmatpush3.msra.mxu1 %v6276_v26 }
 0x666   :  { %1970 = vmatprep.subr.mxu0 %v6111_v16  ;;  %3971 = vmatprep.subr.mxu1 %v7361_v62 }
 0x667   :  { %1971 = vmatpush1.msra.mxu0 %v6117_v10  ;;  %3972 = vmatpush3.msra.mxu1 %v6283_v28 }
 0x668   :  { %1972 = vmatprep.subr.mxu0 %v6123_v43  ;;  %3973 = vmatprep.subr.mxu1 %v7361_v62 }
 0x669   :  { %1973 = vmatpush1.msra.mxu0 %v6129_v58  ;;  %3974 = vmatpush3.msra.mxu1 %v6290_v30 }
 0x66a   :  { %1974 = vmatprep.subr.mxu0 %v6135_v17  ;;  %3975 = vmatprep.subr.mxu1 %v7361_v62 }
 0x66b   :  { %1975 = vmatpush1.msra.mxu0 %v6141_v53  ;;  %3976 = vmatpush3.msra.mxu1 %v6297_v32 }
 0x66c   :  { %1976 = vmatprep.subr.mxu0 %v6147_v59  ;;  %3977 = vmatprep.subr.mxu1 %v7361_v62 }
 0x66d   :  { %1977 = vmatpush1.msra.mxu0 %v6153_v63  ;;  %3978 = vmatpush3.msra.mxu1 %v6304_v34 }
 0x66e   :  { %1978 = vmatprep.subr.mxu0 %v6159_v2  ;;  %3979 = vmatprep.subr.mxu1 %v7361_v62 }
 0x66f   :  { %1979 = vmatpush1.msra.mxu0 %v6164_v3  ;;  %3980 = vmatpush3.msra.mxu1 %v6311_v36 }
 0x670   :  { %1980 = vmatprep.subr.mxu0 %v6169_v39  ;;  %3984 = vmatprep.subr.mxu1 %v7361_v62 }
 0x671   :  { %1981 = vmatpush1.msra.mxu0 %v6175_v21 }
 0x672   :  { %1982 = vmatprep.subr.mxu0 %v6182_v31 }
 0x673   :  { %1983 = vmatpush1.msra.mxu0 %v6187_v29 }
 0x674   :  { %1984 = vmatprep.subr.mxu0 %v6193_v41 }
 0x675   :  { %1985 = vmatpush1.msra.mxu0 %v6199_v37 }
 0x676   :  { %2120 = vmatprep.subr.mxu0 %v6015_v49 }
 0x6e3   :  { %v1485_v38 = vpop.f32.mrf.mxu0  ;;  %v1556_v40 = vpop.f32.mrf.mxu1 }
 0x6e4   :  { %v1486_v42 = vadd.f32 %v1485_v38, %v7390_v7  ;;  %v1557_v7 = vadd.f32 %v1556_v40, %v5230_v56 }
 0x6e5   :  { %v1487_v44 = vpop.f32.mrf.mxu0  ;;  %v3895_v46 = vpop.f32.mrf.mxu1 }
 0x6e6   :  { %v1560_v55 = vadd.f32 %v1486_v42, %v7408_v51  ;;  %v1488_v9 = vadd.f32 %v1487_v44, %v5211_v23  ;;  %v7411_v23 = vld [vmem:[#allocation33_spill] sm:$0xff] }
 0x6e8   :  { %v3272_v57 = vmul.f32 -1.442695, %v1560_v55  ;;  %v1567_v13 = vadd.f32 %v1488_v9, %v7409_v11 }
 0x6ea   :  { %4309 = vpow2.f32 %v3272_v57  ;;  %v3273_v49 = vmul.f32 -1.442695, %v1567_v13 }
 0x6ec   :  { %4311 = vpow2.f32 %v3273_v49 }
 0x6f7   :  { %v4310_v37 = vpop.eup %4309 }
 0x6f8   :  { %v1564_v36 = vadd.f32 1.0, %v4310_v37 }
 0x6f9   :  { %v4312_v41 = vpop.eup %4311 }
 0x6fa   :  { %4313 = vrcp.f32 %v1564_v36  ;;  %v1571_v34 = vadd.f32 1.0, %v4312_v41 }
 0x6fc   :  { %4315 = vrcp.f32 %v1571_v34 }
 0x704   :  { %v6321_v29 = vpop.f32.mrf.mxu1 }
 0x706   :  { %v3930_v38 = vpop.f32.mrf.mxu1 }
 0x707   :  { %v4314_v46 = vpop.eup %4313 }
 0x708   :  { %v1574_v42 = vmul.f32 %v4314_v46, %v1557_v7  ;;  %v6324_v51 = vpop.f32.mrf.mxu1 }
 0x709   :  { %7410 = vst [vmem:[#allocation30_spill] sm:$0xff] %v6324_v51  ;;  %v4316_v9 = vpop.eup %4315 }
 0x70a   :  { %v1575_v44 = vadd.f32 %v1574_v42, %v7411_v23  ;;  %v3933_v55 = vpop.f32.mrf.mxu1  ;;  %v1577_v11 = vsub.f32 1.0, %v4316_v9  ;;  %v1579_v38 = vmul.f32 %v4316_v9, %v5818_v50  ;;  %v6342_v42 = vld [vmem:[%s7245_s1 + $0x8] sm:$0xff]  ;;  %v7416_v50 = vld [vmem:[#allocation16_spill] sm:$0xff]  ;;  %v7417_v23 = vld [vmem:[#allocation19_spill] sm:$0xff]  ;;  %v1722_v9 = vpop.f32.mrf.mxu0 }
 0x70b   :  { %v7419_v55 = vld [vmem:[#allocation18_spill] sm:$0xff] }
 0x70c   :  { %4317 = vtanh.f32 %v1575_v44  ;;  %v6327_v49 = vpop.f32.mrf.mxu1  ;;  %v7418_v44 = vld [vmem:[#allocation17_spill] sm:$0xff] }
 0x70d   :  { %7412 = vst [vmem:[#allocation6_spill] sm:$0xff] %v6327_v49  ;;  %v1639_v49 = vld [vmem:[%s7251_s8] sm:$0x7] }
 0x70e   :  { %v3936_v37 = vpop.f32.mrf.mxu1 }
 0x70f   :  { %v7420_v37 = vld [vmem:[#allocation20_spill] sm:$0xff] }
 0x710   :  { %v6329_v36 = vpop.f32.mrf.mxu1 }
 0x711   :  { %7413 = vst [vmem:[#allocation11_spill] sm:$0xff] %v6329_v36 }
 0x712   :  { %v3939_v41 = vpop.f32.mrf.mxu1 }
 0x713   :  { %v7421_v41 = vld [vmem:[#allocation9_spill] sm:$0xff] }
 0x714   :  { %v6331_v57 = vpop.f32.mrf.mxu1 }
 0x715   :  { %7414 = vst [vmem:[#allocation7_spill] sm:$0xff] %v6331_v57 }
 0x716   :  { %v3942_v56 = vpop.f32.mrf.mxu1 }
 0x717   :  { %v1724_v56 = vpop.f32.mrf.mxu0 }
 0x718   :  { %v6333_v40 = vpop.f32.mrf.mxu1 }
 0x719   :  { %7415 = vst [vmem:[#allocation8_spill] sm:$0xff] %v6333_v40  ;;  %v4318_v34 = vpop.eup %4317 }
 0x71a   :  { %v3945_v13 = vpop.f32.mrf.mxu1  ;;  %v1578_v7 = vmul.f32 %v4318_v34, %v1577_v11  ;;  %v6416_v11 = vpop.f32.mrf.mxu0 }
 0x71b   :  { %7422 = vst [vmem:[#allocation12_spill] sm:$0xff] %v6416_v11 }
 0x71c   :  { %v1580_v46 = vadd.f32 %v1579_v38, %v1578_v7  ;;  %v6418_v34 = vpop.f32.mrf.mxu0 }
 0x71d   :  { %7423 = vst [vmem:[#allocation10_spill] sm:$0xff] %v6418_v34 }
 0x71e   :  { %1757 = vmatmul.mubr.f32.gmra.mxu0 %v1580_v46  ;;  %3947 = vmatmul.mubr.f32.gmra.mxu1 %v1580_v46  ;;  %1583 = vst [vmem:[%s7250_s13] sm:$0xff] %v1580_v46  ;;  %v6420_v13 = vpop.f32.mrf.mxu0 }
 0x71f   :  { %2018 = vmatprep.mubr.f32.mxu0 %v7361_v62  ;;  %3981 = vmatprep.mubr.msk.f32.mxu1 %vm4486_vm0, %v7361_v62  ;;  %7424 = vst [vmem:[#allocation21_spill] sm:$0xff] %v6420_v13 }
 0x720   :  { %v6422_v7 = vpop.f32.mrf.mxu0 }
 0x721   :  { %7425 = vst [vmem:[#allocation22_spill] sm:$0xff] %v6422_v7  ;;  %v1932_v7 = vld [vmem:[%s7252_s9] sm:$0x7] }
 0x722   :  { %2019 = vmatmul.mubr.f32.vlgmr.msra.gmra.mxu0 %v6342_v42  ;;  %3982 = vmatmul.mubr.f32.vlgmr.msra.gmra.mxu1 %v6342_v42  ;;  %v6424_v38 = vpop.f32.mrf.mxu0 }
 0x723   :  { %2121 = vmatpush1.msra.mxu0 %v6021_v5  ;;  %3985 = vmatpush3.msra.mxu1 %v6206_v0  ;;  %7426 = vst [vmem:[#allocation23_spill] sm:$0xff] %v6424_v38 }
 0x724   :  { %2122 = vmatprep.subr.mxu0 %v6027_v61  ;;  %3986 = vmatprep.subr.mxu1 %v7361_v62  ;;  %v6426_v46 = vpop.f32.mrf.mxu0 }
 0x725   :  { %2123 = vmatpush1.msra.mxu0 %v6033_v15  ;;  %3987 = vmatpush3.msra.mxu1 %v6211_v27  ;;  %7427 = vst [vmem:[#allocation31_spill] sm:$0xff] %v6426_v46  ;;  %v7434_v46 = vld [vmem:[#allocation13_spill] sm:$0xff] }
 0x726   :  { %2124 = vmatprep.subr.mxu0 %v6039_v45  ;;  %3988 = vmatprep.subr.mxu1 %v7361_v62  ;;  %v6428_v40 = vpop.f32.mrf.mxu0 }
 0x727   :  { %2125 = vmatpush1.msra.mxu0 %v6045_v6  ;;  %3989 = vmatpush3.msra.mxu1 %v6219_v19  ;;  %7428 = vst [vmem:[#allocation24_spill] sm:$0xff] %v6428_v40  ;;  %v6447_v40 = vrot.slane %v1639_v49, %v7434_v46 }
 0x728   :  { %2126 = vmatprep.subr.mxu0 %v6051_v12  ;;  %3990 = vmatprep.subr.mxu1 %v7361_v62  ;;  %v6430_v57 = vpop.f32.mrf.mxu0 }
 0x729   :  { %2127 = vmatpush1.msra.mxu0 %v6057_v35  ;;  %3991 = vmatpush3.msra.mxu1 %v6227_v60  ;;  %7429 = vst [vmem:[#allocation25_spill] sm:$0xff] %v6430_v57  ;;  %7435 = vst [vmem:[#allocation27_spill] sm:$0xff] %v6447_v40  ;;  %v6450_v57 = vrot.slane %v1932_v7, %v7434_v46 }
 0x72a   :  { %2128 = vmatprep.subr.mxu0 %v6063_v18  ;;  %3992 = vmatprep.subr.mxu1 %v7361_v62  ;;  %v6432_v36 = vpop.f32.mrf.mxu0 }
 0x72b   :  { %2129 = vmatpush1.msra.mxu0 %v6069_v48  ;;  %3993 = vmatpush3.msra.mxu1 %v6234_v1  ;;  %7430 = vst [vmem:[#allocation32_spill] sm:$0xff] %v6432_v36  ;;  %7436 = vst [vmem:[#allocation33_spill] sm:$0xff] %v6450_v57 }
 0x72c   :  { %2130 = vmatprep.subr.mxu0 %v6075_v52  ;;  %3994 = vmatprep.subr.mxu1 %v7361_v62  ;;  %v6437_v51 = vpop.f32.mrf.mxu0 }
 0x72d   :  { %2131 = vmatpush1.msra.mxu0 %v6081_v4  ;;  %3995 = vmatpush3.msra.mxu1 %v6241_v25  ;;  %7431 = vst [vmem:[#allocation34_spill] sm:$0xff] %v6437_v51  ;;  %v1723_v51 = vadd.f32 %v1722_v9, %v6447_v40 }
 0x72e   :  { %2132 = vmatprep.subr.mxu0 %v6087_v33  ;;  %3996 = vmatprep.subr.mxu1 %v7361_v62 }
 0x72f   :  { %2133 = vmatpush1.msra.mxu0 %v6093_v54  ;;  %3997 = vmatpush3.msra.mxu1 %v6248_v47 }
 0x730   :  { %2134 = vmatprep.subr.mxu0 %v6099_v14  ;;  %3998 = vmatprep.subr.mxu1 %v7361_v62 }
 0x731   :  { %2135 = vmatpush1.msra.mxu0 %v6105_v8  ;;  %3999 = vmatpush3.msra.mxu1 %v6255_v20 }
 0x732   :  { %2136 = vmatprep.subr.mxu0 %v6111_v16  ;;  %4000 = vmatprep.subr.mxu1 %v7361_v62 }
 0x733   :  { %2137 = vmatpush1.msra.mxu0 %v6117_v10  ;;  %4001 = vmatpush3.msra.mxu1 %v6262_v22 }
 0x734   :  { %2138 = vmatprep.subr.mxu0 %v6123_v43  ;;  %4002 = vmatprep.subr.mxu1 %v7361_v62 }
 0x735   :  { %2139 = vmatpush1.msra.mxu0 %v6129_v58  ;;  %4003 = vmatpush3.msra.mxu1 %v6269_v24 }
 0x736   :  { %2140 = vmatprep.subr.mxu0 %v6135_v17  ;;  %4004 = vmatprep.subr.mxu1 %v7361_v62 }
 0x737   :  { %2141 = vmatpush1.msra.mxu0 %v6141_v53  ;;  %4005 = vmatpush3.msra.mxu1 %v6276_v26 }
 0x738   :  { %2142 = vmatprep.subr.mxu0 %v6147_v59  ;;  %4006 = vmatprep.subr.mxu1 %v7361_v62 }
 0x739   :  { %2143 = vmatpush1.msra.mxu0 %v6153_v63  ;;  %4007 = vmatpush3.msra.mxu1 %v6283_v28 }
 0x73a   :  { %2144 = vmatprep.subr.mxu0 %v6159_v2  ;;  %4008 = vmatprep.subr.mxu1 %v7361_v62 }
 0x73b   :  { %2145 = vmatpush1.msra.mxu0 %v6164_v3  ;;  %4009 = vmatpush3.msra.mxu1 %v6290_v30 }
 0x73c   :  { %2146 = vmatprep.subr.mxu0 %v6169_v39  ;;  %4010 = vmatprep.subr.mxu1 %v7361_v62 }
 0x73d   :  { %2147 = vmatpush1.msra.mxu0 %v6175_v21  ;;  %4011 = vmatpush3.msra.mxu1 %v6297_v32 }
 0x73e   :  { %2148 = vmatprep.subr.mxu0 %v6182_v31  ;;  %4012 = vmatprep.subr.mxu1 %v7361_v62 }
 0x73f   :  { %2149 = vmatpush1.msra.mxu0 %v7416_v50  ;;  %4013 = vmatpush3.msra.mxu1 %v7417_v23 }
 0x740   :  { %2150 = vmatprep.subr.mxu0 %v7418_v44  ;;  %4014 = vmatprep.subr.mxu1 %v7361_v62 }
 0x741   :  { %2151 = vmatpush1.msra.mxu0 %v7419_v55  ;;  %2184 = vmatprep.mubr.f32.mxu0 %v7361_v62  ;;  %v7438_v55 = vld [vmem:[#allocation14_spill] sm:$0xff] }
 0x742   :  { %4015 = vmatpush3.msra.mxu1 %v7420_v37  ;;  %4016 = vmatprep.mubr.msk.f32.mxu1 %vm4486_vm0, %v7361_v62  ;;  %v6457_v44 = vrot.slane %v1932_v7, %v7438_v55  ;;  %v6460_v23 = vrot.slane %v1639_v49, %v7438_v55 }
 0x743   :  { %2286 = vmatprep.subr.mxu0 %v7421_v41  ;;  %4019 = vmatprep.subr.mxu1 %v7361_v62 }
 0x7de   :  { %v6442_v13 = vpop.f32.mrf.mxu0  ;;  %v6444_v38 = vpop.f32.mrf.mxu1 }
 0x7df   :  { %7432 = vst [vmem:[#allocation5_spill] sm:$0xff] %v6442_v13  ;;  %7433 = vst [vmem:[#allocation26_spill] sm:$0xff] %v6444_v38 }
 0x7e0   :  { %v6452_v36 = vpop.f32.mrf.mxu0  ;;  %v3948_v34 = vpop.f32.mrf.mxu1 }
 0x7e1   :  { %7437 = vst [vmem:[#allocation13_spill] sm:$0xff] %v6452_v36  ;;  %v1725_v34 = vadd.f32 %v1724_v56, %v6460_v23 }
 0x7e2   :  { %v2020_v11 = vpop.f32.mrf.mxu0  ;;  %v2091_v41 = vpop.f32.mrf.mxu1 }
 0x7e3   :  { %v2021_v37 = vadd.f32 %v2020_v11, %v6450_v57  ;;  %v7439_v57 = vld [vmem:[#allocation28_spill] sm:$0xff] }
 0x7e4   :  { %v2022_v13 = vpop.f32.mrf.mxu0  ;;  %v3983_v38 = vpop.f32.mrf.mxu1  ;;  %v6465_v40 = vrot.slane %v1932_v7, %v7439_v57  ;;  %v6468_v55 = vrot.slane %v1639_v49, %v7439_v57  ;;  %v7442_v49 = vld [vmem:[#allocation15_spill] sm:$0xff]  ;;  %v7443_v57 = vld [vmem:[#allocation16_spill] sm:$0xff] }
 0x7e5   :  { %v2095_v50 = vadd.f32 %v2021_v37, %v1723_v51  ;;  %v2023_v31 = vadd.f32 %v2022_v13, %v6457_v44 }
 0x7e6   :  { %v1830_v56 = vadd.f32 %v6321_v29, %v6468_v55  ;;  %v7441_v29 = vld [vmem:[#allocation29_spill] sm:$0xff] }
 0x7e7   :  { %v3275_v46 = vmul.f32 -1.442695, %v2095_v50  ;;  %v2102_v36 = vadd.f32 %v2023_v31, %v1725_v34  ;;  %v2092_v50 = vadd.f32 %v2091_v41, %v6465_v40  ;;  %v7445_v41 = vld [vmem:[#allocation17_spill] sm:$0xff] }
 0x7e9   :  { %4319 = vpow2.f32 %v3275_v46  ;;  %v3276_v32 = vmul.f32 -1.442695, %v2102_v36 }
 0x7eb   :  { %4321 = vpow2.f32 %v3276_v32 }
 0x7f6   :  { %v4320_v9 = vpop.eup %4319 }
 0x7f7   :  { %v2099_v11 = vadd.f32 1.0, %v4320_v9 }
 0x7f8   :  { %v4322_v38 = vpop.eup %4321 }
 0x7f9   :  { %4323 = vrcp.f32 %v2099_v11  ;;  %v2106_v51 = vadd.f32 1.0, %v4322_v38  ;;  %v7446_v11 = vld [vmem:[#allocation18_spill] sm:$0xff]  ;;  %v7447_v38 = vld [vmem:[#allocation20_spill] sm:$0xff] }
 0x7fb   :  { %4325 = vrcp.f32 %v2106_v51  ;;  %v7448_v51 = vld [vmem:[#allocation9_spill] sm:$0xff] }
 0x806   :  { %v4324_v37 = vpop.eup %4323 }
 0x807   :  { %v2109_v31 = vmul.f32 %v4324_v37, %v2092_v50 }
 0x808   :  { %v4326_v36 = vpop.eup %4325 }
 0x809   :  { %v2110_v32 = vadd.f32 %v2109_v31, %v1830_v56  ;;  %v2112_v13 = vsub.f32 1.0, %v4326_v36  ;;  %v2114_v34 = vmul.f32 %v4326_v36, %v6342_v42  ;;  %v7444_v42 = vld [vmem:[#allocation19_spill] sm:$0xff]  ;;  %v7450_v31 = vld [vmem:[#allocation12_spill] sm:$0xff]  ;;  %v7451_v36 = vld [vmem:[#allocation33_spill] sm:$0xff] }
 0x80a   :  { %v7449_v56 = vld [vmem:[#allocation27_spill] sm:$0xff] }
 0x80b   :  { %4327 = vtanh.f32 %v2110_v32  ;;  %v1729_v32 = vadd.f32 %v7450_v31, %v7449_v56 }
 0x818   :  { %v4328_v46 = vpop.eup %4327 }
 0x819   :  { %v2113_v7 = vmul.f32 %v4328_v46, %v2112_v13 }
 0x81b   :  { %v6474_v9 = vadd.f32 %v2114_v34, %v2113_v7 }
 0x81d   :  { %7440 = vst [vmem:[#allocation14_spill] sm:$0xff] %v6474_v9  ;;  %2185 = vmatmul.mubr.f32.vlgmr.msra.gmra.mxu0 %v6474_v9  ;;  %4017 = vmatmul.mubr.f32.vlgmr.msra.gmra.mxu1 %v6474_v9 }
 0x81e   :  { %2287 = vmatpush1.msra.mxu0 %v6021_v5  ;;  %4020 = vmatpush3.msra.mxu1 %v6206_v0 }
 0x81f   :  { %2288 = vmatprep.subr.mxu0 %v6027_v61  ;;  %4021 = vmatprep.subr.mxu1 %v7361_v62 }
 0x820   :  { %2289 = vmatpush1.msra.mxu0 %v6033_v15  ;;  %4022 = vmatpush3.msra.mxu1 %v6211_v27 }
 0x821   :  { %2290 = vmatprep.subr.mxu0 %v6039_v45  ;;  %4023 = vmatprep.subr.mxu1 %v7361_v62 }
 0x822   :  { %2291 = vmatpush1.msra.mxu0 %v6045_v6  ;;  %4024 = vmatpush3.msra.mxu1 %v6219_v19 }
 0x823   :  { %2292 = vmatprep.subr.mxu0 %v6051_v12  ;;  %4025 = vmatprep.subr.mxu1 %v7361_v62 }
 0x824   :  { %2293 = vmatpush1.msra.mxu0 %v6057_v35  ;;  %4026 = vmatpush3.msra.mxu1 %v6227_v60 }
 0x825   :  { %2294 = vmatprep.subr.mxu0 %v6063_v18  ;;  %4027 = vmatprep.subr.mxu1 %v7361_v62 }
 0x826   :  { %2295 = vmatpush1.msra.mxu0 %v6069_v48  ;;  %4028 = vmatpush3.msra.mxu1 %v6234_v1 }
 0x827   :  { %2296 = vmatprep.subr.mxu0 %v6075_v52  ;;  %4029 = vmatprep.subr.mxu1 %v7361_v62 }
 0x828   :  { %2297 = vmatpush1.msra.mxu0 %v6081_v4  ;;  %4030 = vmatpush3.msra.mxu1 %v6241_v25 }
 0x829   :  { %2298 = vmatprep.subr.mxu0 %v6087_v33  ;;  %4031 = vmatprep.subr.mxu1 %v7361_v62 }
 0x82a   :  { %2299 = vmatpush1.msra.mxu0 %v6093_v54  ;;  %4032 = vmatpush3.msra.mxu1 %v6248_v47 }
 0x82b   :  { %2300 = vmatprep.subr.mxu0 %v6099_v14  ;;  %4033 = vmatprep.subr.mxu1 %v7361_v62 }
 0x82c   :  { %2301 = vmatpush1.msra.mxu0 %v6105_v8  ;;  %4034 = vmatpush3.msra.mxu1 %v6255_v20 }
 0x82d   :  { %2302 = vmatprep.subr.mxu0 %v6111_v16  ;;  %4035 = vmatprep.subr.mxu1 %v7361_v62 }
 0x82e   :  { %2303 = vmatpush1.msra.mxu0 %v6117_v10  ;;  %4036 = vmatpush3.msra.mxu1 %v6262_v22 }
 0x82f   :  { %2304 = vmatprep.subr.mxu0 %v6123_v43  ;;  %4037 = vmatprep.subr.mxu1 %v7361_v62 }
 0x830   :  { %2305 = vmatpush1.msra.mxu0 %v6129_v58  ;;  %4038 = vmatpush3.msra.mxu1 %v6269_v24 }
 0x831   :  { %2306 = vmatprep.subr.mxu0 %v6135_v17  ;;  %4039 = vmatprep.subr.mxu1 %v7361_v62 }
 0x832   :  { %2307 = vmatpush1.msra.mxu0 %v6141_v53  ;;  %4040 = vmatpush3.msra.mxu1 %v6276_v26 }
 0x833   :  { %2308 = vmatprep.subr.mxu0 %v6147_v59  ;;  %4041 = vmatprep.subr.mxu1 %v7361_v62 }
 0x834   :  { %2309 = vmatpush1.msra.mxu0 %v6153_v63  ;;  %4042 = vmatpush3.msra.mxu1 %v6283_v28 }
 0x835   :  { %2310 = vmatprep.subr.mxu0 %v6159_v2  ;;  %4043 = vmatprep.subr.mxu1 %v7361_v62 }
 0x836   :  { %2311 = vmatpush1.msra.mxu0 %v6164_v3  ;;  %4044 = vmatpush3.msra.mxu1 %v6290_v30 }
 0x837   :  { %2312 = vmatprep.subr.mxu0 %v6169_v39  ;;  %4045 = vmatprep.subr.mxu1 %v7361_v62 }
 0x838   :  { %2313 = vmatpush1.msra.mxu0 %v6175_v21  ;;  %4046 = vmatpush3.msra.mxu1 %v7441_v29 }
 0x839   :  { %2314 = vmatprep.subr.mxu0 %v7442_v49  ;;  %4047 = vmatprep.subr.mxu1 %v7361_v62 }
 0x83a   :  { %2315 = vmatpush1.msra.mxu0 %v7443_v57  ;;  %4048 = vmatpush3.msra.mxu1 %v7444_v42 }
 0x83b   :  { %2316 = vmatprep.subr.mxu0 %v7445_v41  ;;  %4049 = vmatprep.subr.mxu1 %v7361_v62  ;;  %v7452_v41 = vld [vmem:[#allocation10_spill] sm:$0xff] }
 0x83c   :  { %2317 = vmatpush1.msra.mxu0 %v7446_v11  ;;  %2350 = vmatprep.mubr.f32.mxu0 %v7361_v62  ;;  %v1731_v42 = vadd.f32 %v7452_v41, %v6460_v23 }
 0x83d   :  { %4050 = vmatpush3.msra.mxu1 %v7447_v38  ;;  %4051 = vmatprep.mubr.msk.f32.mxu1 %vm4486_vm0, %v7361_v62 }
 0x83e   :  { %2452 = vmatprep.subr.mxu0 %v7448_v51  ;;  %4054 = vmatprep.subr.mxu1 %v7361_v62 }
 0x8dd   :  { %v2186_v50 = vpop.f32.mrf.mxu0  ;;  %v2257_v37 = vpop.f32.mrf.mxu1 }
 0x8de   :  { %v2187_v13 = vadd.f32 %v2186_v50, %v7451_v36  ;;  %v2258_v50 = vadd.f32 %v2257_v37, %v6465_v40  ;;  %v7458_v37 = vld [vmem:[#allocation16_spill] sm:$0xff] }
 0x8df   :  { %v2188_v46 = vpop.f32.mrf.mxu0  ;;  %v4018_v7 = vpop.f32.mrf.mxu1 }
 0x8e0   :  { %v2261_v34 = vadd.f32 %v2187_v13, %v1729_v32  ;;  %v2189_v38 = vadd.f32 %v2188_v46, %v6457_v44  ;;  %v7453_v32 = vld [vmem:[#allocation30_spill] sm:$0xff] }
 0x8e1   :  { %v1835_v13 = vadd.f32 %v7453_v32, %v6468_v55  ;;  %v7463_v32 = vld [vmem:[#allocation9_spill] sm:$0xff] }
 0x8e2   :  { %v3277_v11 = vmul.f32 -1.442695, %v2261_v34  ;;  %v2268_v51 = vadd.f32 %v2189_v38, %v1731_v42  ;;  %v7460_v34 = vld [vmem:[#allocation17_spill] sm:$0xff] }
 0x8e4   :  { %4329 = vpow2.f32 %v3277_v11  ;;  %v3278_v57 = vmul.f32 -1.442695, %v2268_v51  ;;  %v7457_v51 = vld [vmem:[#allocation15_spill] sm:$0xff] }
 0x8e6   :  { %4331 = vpow2.f32 %v3278_v57 }
 0x8f1   :  { %v4330_v49 = vpop.eup %4329 }
 0x8f2   :  { %v2265_v29 = vadd.f32 1.0, %v4330_v49 }
 0x8f3   :  { %v4332_v21 = vpop.eup %4331 }
 0x8f4   :  { %4333 = vrcp.f32 %v2265_v29  ;;  %v2272_v31 = vadd.f32 1.0, %v4332_v21  ;;  %v7455_v21 = vld [vmem:[#allocation4_spill] sm:$0xff]  ;;  %v7456_v29 = vld [vmem:[#allocation29_spill] sm:$0xff] }
 0x8f6   :  { %4335 = vrcp.f32 %v2272_v31  ;;  %v7461_v31 = vld [vmem:[#allocation18_spill] sm:$0xff] }
 0x901   :  { %v4334_v36 = vpop.eup %4333 }
 0x902   :  { %v2275_v7 = vmul.f32 %v4334_v36, %v2258_v50  ;;  %v7459_v36 = vld [vmem:[#allocation19_spill] sm:$0xff]  ;;  %v7462_v50 = vld [vmem:[#allocation20_spill] sm:$0xff] }
 0x903   :  { %v4336_v41 = vpop.eup %4335 }
 0x904   :  { %v2276_v46 = vadd.f32 %v2275_v7, %v1835_v13  ;;  %v2278_v11 = vsub.f32 1.0, %v4336_v41  ;;  %v2280_v57 = vmul.f32 %v4336_v41, %v6474_v9 }
 0x906   :  { %4337 = vtanh.f32 %v2276_v46  ;;  %v7464_v46 = vld [vmem:[#allocation21_spill] sm:$0xff] }
 0x907   :  { %v1735_v41 = vadd.f32 %v7464_v46, %v7449_v56 }
 0x913   :  { %v4338_v42 = vpop.eup %4337 }
 0x914   :  { %v2279_v38 = vmul.f32 %v4338_v42, %v2278_v11  ;;  %v7465_v11 = vld [vmem:[#allocation33_spill] sm:$0xff] }
 0x916   :  { %v6555_v49 = vadd.f32 %v2280_v57, %v2279_v38 }
 0x918   :  { %7454 = vst [vmem:[#allocation28_spill] sm:$0xff] %v6555_v49  ;;  %2351 = vmatmul.mubr.f32.vlgmr.msra.gmra.mxu0 %v6555_v49  ;;  %4052 = vmatmul.mubr.f32.vlgmr.msra.gmra.mxu1 %v6555_v49 }
 0x919   :  { %2453 = vmatpush1.msra.mxu0 %v6021_v5  ;;  %4055 = vmatpush3.msra.mxu1 %v6206_v0 }
 0x91a   :  { %2454 = vmatprep.subr.mxu0 %v6027_v61  ;;  %4056 = vmatprep.subr.mxu1 %v7361_v62 }
 0x91b   :  { %2455 = vmatpush1.msra.mxu0 %v6033_v15  ;;  %4057 = vmatpush3.msra.mxu1 %v6211_v27 }
 0x91c   :  { %2456 = vmatprep.subr.mxu0 %v6039_v45  ;;  %4058 = vmatprep.subr.mxu1 %v7361_v62 }
 0x91d   :  { %2457 = vmatpush1.msra.mxu0 %v6045_v6  ;;  %4059 = vmatpush3.msra.mxu1 %v6219_v19 }
 0x91e   :  { %2458 = vmatprep.subr.mxu0 %v6051_v12  ;;  %4060 = vmatprep.subr.mxu1 %v7361_v62 }
 0x91f   :  { %2459 = vmatpush1.msra.mxu0 %v6057_v35  ;;  %4061 = vmatpush3.msra.mxu1 %v6227_v60 }
 0x920   :  { %2460 = vmatprep.subr.mxu0 %v6063_v18  ;;  %4062 = vmatprep.subr.mxu1 %v7361_v62 }
 0x921   :  { %2461 = vmatpush1.msra.mxu0 %v6069_v48  ;;  %4063 = vmatpush3.msra.mxu1 %v6234_v1 }
 0x922   :  { %2462 = vmatprep.subr.mxu0 %v6075_v52  ;;  %4064 = vmatprep.subr.mxu1 %v7361_v62 }
 0x923   :  { %2463 = vmatpush1.msra.mxu0 %v6081_v4  ;;  %4065 = vmatpush3.msra.mxu1 %v6241_v25 }
 0x924   :  { %2464 = vmatprep.subr.mxu0 %v6087_v33  ;;  %4066 = vmatprep.subr.mxu1 %v7361_v62 }
 0x925   :  { %2465 = vmatpush1.msra.mxu0 %v6093_v54  ;;  %4067 = vmatpush3.msra.mxu1 %v6248_v47 }
 0x926   :  { %2466 = vmatprep.subr.mxu0 %v6099_v14  ;;  %4068 = vmatprep.subr.mxu1 %v7361_v62 }
 0x927   :  { %2467 = vmatpush1.msra.mxu0 %v6105_v8  ;;  %4069 = vmatpush3.msra.mxu1 %v6255_v20 }
 0x928   :  { %2468 = vmatprep.subr.mxu0 %v6111_v16  ;;  %4070 = vmatprep.subr.mxu1 %v7361_v62 }
 0x929   :  { %2469 = vmatpush1.msra.mxu0 %v6117_v10  ;;  %4071 = vmatpush3.msra.mxu1 %v6262_v22 }
 0x92a   :  { %2470 = vmatprep.subr.mxu0 %v6123_v43  ;;  %4072 = vmatprep.subr.mxu1 %v7361_v62 }
 0x92b   :  { %2471 = vmatpush1.msra.mxu0 %v6129_v58  ;;  %4073 = vmatpush3.msra.mxu1 %v6269_v24 }
 0x92c   :  { %2472 = vmatprep.subr.mxu0 %v6135_v17  ;;  %4074 = vmatprep.subr.mxu1 %v7361_v62 }
 0x92d   :  { %2473 = vmatpush1.msra.mxu0 %v6141_v53  ;;  %4075 = vmatpush3.msra.mxu1 %v6276_v26 }
 0x92e   :  { %2474 = vmatprep.subr.mxu0 %v6147_v59  ;;  %4076 = vmatprep.subr.mxu1 %v7361_v62 }
 0x92f   :  { %2475 = vmatpush1.msra.mxu0 %v6153_v63  ;;  %4077 = vmatpush3.msra.mxu1 %v6283_v28 }
 0x930   :  { %2476 = vmatprep.subr.mxu0 %v6159_v2  ;;  %4078 = vmatprep.subr.mxu1 %v7361_v62 }
 0x931   :  { %2477 = vmatpush1.msra.mxu0 %v6164_v3  ;;  %4079 = vmatpush3.msra.mxu1 %v6290_v30 }
 0x932   :  { %2478 = vmatprep.subr.mxu0 %v6169_v39  ;;  %4080 = vmatprep.subr.mxu1 %v7361_v62 }
 0x933   :  { %2479 = vmatpush1.msra.mxu0 %v7455_v21  ;;  %4081 = vmatpush3.msra.mxu1 %v7456_v29 }
 0x934   :  { %2480 = vmatprep.subr.mxu0 %v7457_v51  ;;  %4082 = vmatprep.subr.mxu1 %v7361_v62 }
 0x935   :  { %2481 = vmatpush1.msra.mxu0 %v7458_v37  ;;  %4083 = vmatpush3.msra.mxu1 %v7459_v36 }
 0x936   :  { %2482 = vmatprep.subr.mxu0 %v7460_v34  ;;  %4084 = vmatprep.subr.mxu1 %v7361_v62  ;;  %v7466_v34 = vld [vmem:[#allocation22_spill] sm:$0xff] }
 0x937   :  { %2483 = vmatpush1.msra.mxu0 %v7461_v31  ;;  %2516 = vmatprep.mubr.f32.mxu0 %v7361_v62  ;;  %v1737_v36 = vadd.f32 %v7466_v34, %v6460_v23 }
 0x938   :  { %4085 = vmatpush3.msra.mxu1 %v7462_v50  ;;  %4086 = vmatprep.mubr.msk.f32.mxu1 %vm4486_vm0, %v7361_v62 }
 0x939   :  { %2618 = vmatprep.subr.mxu0 %v7463_v32  ;;  %4089 = vmatprep.subr.mxu1 %v7361_v62 }
 0x9d8   :  { %v2352_v13 = vpop.f32.mrf.mxu0  ;;  %v2423_v7 = vpop.f32.mrf.mxu1 }
 0x9d9   :  { %v2353_v42 = vadd.f32 %v2352_v13, %v7465_v11  ;;  %v2424_v13 = vadd.f32 %v2423_v7, %v6465_v40  ;;  %v6735_v7 = vld [vmem:[%s7249_s7 + $0x178] sm:$0xff] }
 0x9da   :  { %v2354_v38 = vpop.f32.mrf.mxu0  ;;  %v4053_v57 = vpop.f32.mrf.mxu1 }
 0x9db   :  { %v2427_v9 = vadd.f32 %v2353_v42, %v1735_v41  ;;  %v2355_v50 = vadd.f32 %v2354_v38, %v6457_v44  ;;  %v7467_v41 = vld [vmem:[#allocation6_spill] sm:$0xff] }
 0x9dc   :  { %v6748_v57 = vld [vmem:[%s7249_s7 + $0x150] sm:$0xff] }
 0x9dd   :  { %v3279_v31 = vmul.f32 -1.442695, %v2427_v9  ;;  %v2434_v32 = vadd.f32 %v2355_v50, %v1737_v36  ;;  %v1840_v9 = vadd.f32 %v7467_v41, %v6468_v55  ;;  %v6773_v41 = vld [vmem:[%s7249_s7 + $0x148] sm:$0xff] }
 0x9df   :  { %4339 = vpow2.f32 %v3279_v31  ;;  %v3280_v37 = vmul.f32 -1.442695, %v2434_v32  ;;  %v6754_v32 = vld [vmem:[%s7249_s7 + $0x160] sm:$0xff] }
 0x9e1   :  { %4341 = vpow2.f32 %v3280_v37 }
 0x9ec   :  { %v4340_v51 = vpop.eup %4339 }
 0x9ed   :  { %v2431_v29 = vadd.f32 1.0, %v4340_v51 }
 0x9ee   :  { %v4342_v21 = vpop.eup %4341 }
 0x9ef   :  { %4343 = vrcp.f32 %v2431_v29  ;;  %v2438_v46 = vadd.f32 1.0, %v4342_v21  ;;  %v6729_v29 = vld [vmem:[%s7249_s7 + $0x168] sm:$0xff] }
 0x9f1   :  { %4345 = vrcp.f32 %v2438_v46  ;;  %v6760_v46 = vld [vmem:[%s7249_s7 + $0x140] sm:$0xff] }
 0x9fc   :  { %v4344_v11 = vpop.eup %4343 }
 0x9fd   :  { %v2441_v42 = vmul.f32 %v4344_v11, %v2424_v13  ;;  %v6741_v11 = vld [vmem:[%s7249_s7 + $0x158] sm:$0xff] }
 0x9fe   :  { %v4346_v34 = vpop.eup %4345  ;;  %v6767_v13 = vld [vmem:[%s7249_s7 + $0x138] sm:$0xff] }
 0x9ff   :  { %v2442_v38 = vadd.f32 %v2441_v42, %v1840_v9  ;;  %v2444_v31 = vsub.f32 1.0, %v4346_v34  ;;  %v2446_v37 = vmul.f32 %v4346_v34, %v6555_v49  ;;  %v6779_v9 = vld [vmem:[%s7249_s7 + $0x128] sm:$0xff]  ;;  %v6786_v42 = vld [vmem:[%s7249_s7 + $0x120] sm:$0xff]  ;;  %v6798_v34 = vld [vmem:[%s7249_s7 + $0x110] sm:$0xff] }
 0xa01   :  { %4347 = vtanh.f32 %v2442_v38  ;;  %v6792_v38 = vld [vmem:[%s7249_s7 + $0x130] sm:$0xff] }
 0xa0e   :  { %v4348_v36 = vpop.eup %4347 }
 0xa0f   :  { %v2445_v50 = vmul.f32 %v4348_v36, %v2444_v31  ;;  %v6805_v31 = vld [vmem:[%s7249_s7 + $0x108] sm:$0xff]  ;;  %v6811_v36 = vld [vmem:[%s7249_s7 + $0x118] sm:$0xff] }
 0xa11   :  { %v6636_v51 = vadd.f32 %v2446_v37, %v2445_v50  ;;  %v6817_v50 = vld [vmem:[%s7249_s7 + $0xf8] sm:$0xff]  ;;  %v6824_v37 = vld [vmem:[%s7249_s7 + $0xf0] sm:$0xff] }
 0xa13   :  { %7468 = vst [vmem:[#allocation27_spill] sm:$0xff] %v6636_v51  ;;  %2517 = vmatmul.mubr.f32.vlgmr.msra.gmra.mxu0 %v6636_v51  ;;  %4087 = vmatmul.mubr.f32.vlgmr.msra.gmra.mxu1 %v6636_v51 }
 0xa14   :  { %2619 = vmatpush1.msra.mxu0 %v6021_v5  ;;  %4090 = vmatpush3.msra.mxu1 %v6206_v0  ;;  %v7469_v5 = vld [vmem:[#allocation4_spill] sm:$0xff] }
 0xa15   :  { %2620 = vmatprep.subr.mxu0 %v6027_v61  ;;  %4091 = vmatprep.subr.mxu1 %v7361_v62  ;;  %v7470_v61 = vld [vmem:[#allocation29_spill] sm:$0xff] }
 0xa16   :  { %2621 = vmatpush1.msra.mxu0 %v6033_v15  ;;  %4092 = vmatpush3.msra.mxu1 %v6211_v27  ;;  %v7471_v15 = vld [vmem:[#allocation15_spill] sm:$0xff] }
 0xa17   :  { %2622 = vmatprep.subr.mxu0 %v6039_v45  ;;  %4093 = vmatprep.subr.mxu1 %v7361_v62  ;;  %v7472_v45 = vld [vmem:[#allocation16_spill] sm:$0xff] }
 0xa18   :  { %2623 = vmatpush1.msra.mxu0 %v6045_v6  ;;  %4094 = vmatpush3.msra.mxu1 %v6219_v19  ;;  %v7473_v6 = vld [vmem:[#allocation19_spill] sm:$0xff] }
 0xa19   :  { %2624 = vmatprep.subr.mxu0 %v6051_v12  ;;  %4095 = vmatprep.subr.mxu1 %v7361_v62  ;;  %v7474_v12 = vld [vmem:[#allocation17_spill] sm:$0xff] }
 0xa1a   :  { %2625 = vmatpush1.msra.mxu0 %v6057_v35  ;;  %4096 = vmatpush3.msra.mxu1 %v6227_v60  ;;  %v7475_v35 = vld [vmem:[#allocation18_spill] sm:$0xff] }
 0xa1b   :  { %2626 = vmatprep.subr.mxu0 %v6063_v18  ;;  %4097 = vmatprep.subr.mxu1 %v7361_v62  ;;  %v7476_v18 = vld [vmem:[#allocation20_spill] sm:$0xff] }
 0xa1c   :  { %2627 = vmatpush1.msra.mxu0 %v6069_v48  ;;  %4098 = vmatpush3.msra.mxu1 %v6234_v1  ;;  %v6708_v48 = vld [vmem:[%s7249_s7 + $0x170] sm:$0xff]  ;;  %v7480_v1 = vld [vmem:[#allocation11_spill] sm:$0xff] }
 0xa1d   :  { %2628 = vmatprep.subr.mxu0 %v6075_v52  ;;  %4099 = vmatprep.subr.mxu1 %v7361_v62 }
 0xa1e   :  { %2629 = vmatpush1.msra.mxu0 %v6081_v4  ;;  %4100 = vmatpush3.msra.mxu1 %v6241_v25  ;;  %v1845_v25 = vadd.f32 %v7480_v1, %v6468_v55  ;;  %v7007_v1 = vld [vmem:[%s7249_s7 + $0x8] sm:$0xff] }
 0xa1f   :  { %2630 = vmatprep.subr.mxu0 %v6087_v33  ;;  %4101 = vmatprep.subr.mxu1 %v7361_v62  ;;  %v7477_v33 = vld [vmem:[#allocation23_spill] sm:$0xff]  ;;  %7486 = vst [vmem:[#allocation22_spill] sm:$0xff] %v7007_v1 }
 0xa20   :  { %2631 = vmatpush1.msra.mxu0 %v6093_v54  ;;  %4102 = vmatpush3.msra.mxu1 %v6248_v47  ;;  %v1741_v54 = vadd.f32 %v7477_v33, %v7449_v56  ;;  %v6893_v33 = vld [vmem:[%s7249_s7 + $0x98] sm:$0xff] }
 0xa21   :  { %2632 = vmatprep.subr.mxu0 %v6099_v14  ;;  %4103 = vmatprep.subr.mxu1 %v7361_v62  ;;  %v7478_v14 = vld [vmem:[#allocation33_spill] sm:$0xff] }
 0xa22   :  { %2633 = vmatpush1.msra.mxu0 %v6105_v8  ;;  %4104 = vmatpush3.msra.mxu1 %v6255_v20 }
 0xa23   :  { %2634 = vmatprep.subr.mxu0 %v6111_v16  ;;  %4105 = vmatprep.subr.mxu1 %v7361_v62 }
 0xa24   :  { %2635 = vmatpush1.msra.mxu0 %v6117_v10  ;;  %4106 = vmatpush3.msra.mxu1 %v6262_v22 }
 0xa25   :  { %2636 = vmatprep.subr.mxu0 %v6123_v43  ;;  %4107 = vmatprep.subr.mxu1 %v7361_v62 }
 0xa26   :  { %2637 = vmatpush1.msra.mxu0 %v6129_v58  ;;  %4108 = vmatpush3.msra.mxu1 %v6269_v24 }
 0xa27   :  { %2638 = vmatprep.subr.mxu0 %v6135_v17  ;;  %4109 = vmatprep.subr.mxu1 %v7361_v62 }
 0xa28   :  { %2639 = vmatpush1.msra.mxu0 %v6141_v53  ;;  %4110 = vmatpush3.msra.mxu1 %v6276_v26  ;;  %v7479_v53 = vld [vmem:[#allocation31_spill] sm:$0xff] }
 0xa29   :  { %2640 = vmatprep.subr.mxu0 %v6147_v59  ;;  %4111 = vmatprep.subr.mxu1 %v7361_v62  ;;  %v1743_v59 = vadd.f32 %v7479_v53, %v6460_v23  ;;  %v6944_v53 = vld [vmem:[%s7249_s7 + $0x70] sm:$0xff] }
 0xa2a   :  { %2641 = vmatpush1.msra.mxu0 %v6153_v63  ;;  %4112 = vmatpush3.msra.mxu1 %v6283_v28 }
 0xa2b   :  { %2642 = vmatprep.subr.mxu0 %v6159_v2  ;;  %4113 = vmatprep.subr.mxu1 %v7361_v62 }
 0xa2c   :  { %2643 = vmatpush1.msra.mxu0 %v6164_v3  ;;  %4114 = vmatpush3.msra.mxu1 %v6290_v30 }
 0xa2d   :  { %2644 = vmatprep.subr.mxu0 %v6169_v39  ;;  %4115 = vmatprep.subr.mxu1 %v7361_v62 }
 0xa2e   :  { %2645 = vmatpush1.msra.mxu0 %v7469_v5  ;;  %4116 = vmatpush3.msra.mxu1 %v7470_v61  ;;  %v6830_v5 = vld [vmem:[%s7249_s7 + $0x100] sm:$0xff] }
 0xa2f   :  { %2646 = vmatprep.subr.mxu0 %v7471_v15  ;;  %4117 = vmatprep.subr.mxu1 %v7361_v62  ;;  %v6836_v61 = vld [vmem:[%s7249_s7 + $0xe0] sm:$0xff]  ;;  %v6843_v15 = vld [vmem:[%s7249_s7 + $0xd8] sm:$0xff] }
 0xa30   :  { %2647 = vmatpush1.msra.mxu0 %v7472_v45  ;;  %4118 = vmatpush3.msra.mxu1 %v7473_v6  ;;  %v6849_v45 = vld [vmem:[%s7249_s7 + $0xe8] sm:$0xff] }
 0xa31   :  { %2648 = vmatprep.subr.mxu0 %v7474_v12  ;;  %4119 = vmatprep.subr.mxu1 %v7361_v62  ;;  %v6855_v6 = vld [vmem:[%s7249_s7 + $0xc8] sm:$0xff]  ;;  %v6862_v12 = vld [vmem:[%s7249_s7 + $0xc0] sm:$0xff] }
 0xa32   :  { %2649 = vmatpush1.msra.mxu0 %v7475_v35  ;;  %2682 = vmatprep.mubr.f32.mxu0 %v7361_v62  ;;  %v6868_v35 = vld [vmem:[%s7249_s7 + $0xd0] sm:$0xff] }
 0xa33   :  { %4120 = vmatpush3.msra.mxu1 %v7476_v18  ;;  %4121 = vmatprep.mubr.msk.f32.mxu1 %vm4486_vm0, %v7361_v62  ;;  %v6874_v18 = vld [vmem:[%s7249_s7 + $0xb0] sm:$0xff] }
 0xa34   :  { %2784 = vmatprep.subr.mxu0 %v6708_v48  ;;  %4124 = vmatprep.subr.mxu1 %v7361_v62 }
 0xad3   :  { %v2518_v52 = vpop.f32.mrf.mxu0  ;;  %v2589_v4 = vpop.f32.mrf.mxu1 }
 0xad4   :  { %v2519_v8 = vadd.f32 %v2518_v52, %v7478_v14  ;;  %v2590_v19 = vadd.f32 %v2589_v4, %v6465_v40  ;;  %v6881_v52 = vld [vmem:[%s7249_s7 + $0xa8] sm:$0xff]  ;;  %v6887_v4 = vld [vmem:[%s7249_s7 + $0xb8] sm:$0xff] }
 0xad5   :  { %v2520_v16 = vpop.f32.mrf.mxu0  ;;  %v4088_v10 = vpop.f32.mrf.mxu1 }
 0xad6   :  { %v2593_v43 = vadd.f32 %v2519_v8, %v1741_v54  ;;  %v2521_v17 = vadd.f32 %v2520_v16, %v6457_v44  ;;  %v6900_v54 = vld [vmem:[%s7249_s7 + $0x90] sm:$0xff]  ;;  %v6906_v8 = vld [vmem:[%s7249_s7 + $0xa0] sm:$0xff]  ;;  %v6919_v10 = vld [vmem:[%s7249_s7 + $0x78] sm:$0xff] }
 0xad7   :  { %v6912_v16 = vld [vmem:[%s7249_s7 + $0x80] sm:$0xff] }
 0xad8   :  { %v3281_v58 = vmul.f32 -1.442695, %v2593_v43  ;;  %v2600_v63 = vadd.f32 %v2521_v17, %v1743_v59  ;;  %v6925_v43 = vld [vmem:[%s7249_s7 + $0x88] sm:$0xff]  ;;  %v6938_v17 = vld [vmem:[%s7249_s7 + $0x60] sm:$0xff]  ;;  %v6950_v59 = vld [vmem:[%s7249_s7 + $0x50] sm:$0xff] }
 0xada   :  { %4349 = vpow2.f32 %v3281_v58  ;;  %v3282_v2 = vmul.f32 -1.442695, %v2600_v63  ;;  %v6931_v58 = vld [vmem:[%s7249_s7 + $0x68] sm:$0xff] }
 0xadb   :  { %v6957_v63 = vld [vmem:[%s7249_s7 + $0x48] sm:$0xff] }
 0xadc   :  { %4351 = vpow2.f32 %v3282_v2  ;;  %v6963_v2 = vld [vmem:[%s7249_s7 + $0x58] sm:$0xff] }
 0xae7   :  { %v4350_v3 = vpop.eup %4349 }
 0xae8   :  { %v2597_v39 = vadd.f32 1.0, %v4350_v3  ;;  %v6969_v3 = vld [vmem:[%s7249_s7 + $0x38] sm:$0xff] }
 0xae9   :  { %v4352_v0 = vpop.eup %4351 }
 0xaea   :  { %4353 = vrcp.f32 %v2597_v39  ;;  %v2604_v27 = vadd.f32 1.0, %v4352_v0  ;;  %v6976_v39 = vld [vmem:[%s7249_s7 + $0x30] sm:$0xff]  ;;  %v6982_v0 = vld [vmem:[%s7249_s7 + $0x40] sm:$0xff] }
 0xaeb   :  { %7481 = vst [vmem:[#allocation12_spill] sm:$0xff] %v6976_v39  ;;  %7482 = vst [vmem:[#allocation10_spill] sm:$0xff] %v6982_v0 }
 0xaec   :  { %4355 = vrcp.f32 %v2604_v27  ;;  %v6988_v27 = vld [vmem:[%s7249_s7 + $0x20] sm:$0xff] }
 0xaed   :  { %7483 = vst [vmem:[#allocation30_spill] sm:$0xff] %v6988_v27 }
 0xaf7   :  { %v4354_v60 = vpop.eup %4353 }
 0xaf8   :  { %v2607_v47 = vmul.f32 %v4354_v60, %v2590_v19  ;;  %v6995_v19 = vld [vmem:[%s7249_s7 + $0x18] sm:$0xff]  ;;  %v7001_v60 = vld [vmem:[%s7249_s7 + $0x28] sm:$0xff] }
 0xaf9   :  { %v4356_v22 = vpop.eup %4355  ;;  %7484 = vst [vmem:[#allocation9_spill] sm:$0xff] %v6995_v19  ;;  %7485 = vst [vmem:[#allocation21_spill] sm:$0xff] %v7001_v60 }
 0xafa   :  { %v2608_v20 = vadd.f32 %v2607_v47, %v1845_v25  ;;  %v2610_v24 = vsub.f32 1.0, %v4356_v22  ;;  %v2612_v30 = vmul.f32 %v4356_v22, %v6636_v51  ;;  %v7014_v25 = vld [vmem:[%s7249_s7] sm:$0xff]  ;;  %v7021_v47 = vld [vmem:[%s7249_s7 + $0x10] sm:$0xff] }
 0xafb   :  { %7487 = vst [vmem:[#allocation6_spill] sm:$0xff] %v7014_v25  ;;  %7488 = vst [vmem:[#allocation4_spill] sm:$0xff] %v7021_v47 }
 0xafc   :  { %4357 = vtanh.f32 %v2608_v20 }
 0xb09   :  { %v4358_v26 = vpop.eup %4357 }
 0xb0a   :  { %v2611_v28 = vmul.f32 %v4358_v26, %v2610_v24  ;;  %v7489_v24 = vld [vmem:[#allocation24_spill] sm:$0xff] }
 0xb0b   :  { %v1747_v26 = vadd.f32 %v7489_v24, %v7449_v56 }
 0xb0c   :  { %v6722_v21 = vadd.f32 %v2612_v30, %v2611_v28 }
 0xb0e   :  { %2683 = vmatmul.mubr.f32.vlgmr.msra.gmra.mxu0 %v6722_v21  ;;  %4122 = vmatmul.mubr.f32.vlgmr.msra.gmra.mxu1 %v6722_v21 }
 0xb0f   :  { %2785 = vmatpush1.msra.mxu0 %v6729_v29  ;;  %4125 = vmatpush3.msra.mxu1 %v6735_v7 }
 0xb10   :  { %2786 = vmatprep.subr.mxu0 %v6741_v11  ;;  %4126 = vmatprep.subr.mxu1 %v7361_v62 }
 0xb11   :  { %2787 = vmatpush1.msra.mxu0 %v6748_v57  ;;  %4127 = vmatpush3.msra.mxu1 %v6754_v32 }
 0xb12   :  { %2788 = vmatprep.subr.mxu0 %v6760_v46  ;;  %4128 = vmatprep.subr.mxu1 %v7361_v62 }
 0xb13   :  { %2789 = vmatpush1.msra.mxu0 %v6767_v13  ;;  %4129 = vmatpush3.msra.mxu1 %v6773_v41 }
 0xb14   :  { %2790 = vmatprep.subr.mxu0 %v6779_v9  ;;  %4130 = vmatprep.subr.mxu1 %v7361_v62 }
 0xb15   :  { %2791 = vmatpush1.msra.mxu0 %v6786_v42  ;;  %4131 = vmatpush3.msra.mxu1 %v6792_v38 }
 0xb16   :  { %2792 = vmatprep.subr.mxu0 %v6798_v34  ;;  %4132 = vmatprep.subr.mxu1 %v7361_v62 }
 0xb17   :  { %2793 = vmatpush1.msra.mxu0 %v6805_v31  ;;  %4133 = vmatpush3.msra.mxu1 %v6811_v36 }
 0xb18   :  { %2794 = vmatprep.subr.mxu0 %v6817_v50  ;;  %4134 = vmatprep.subr.mxu1 %v7361_v62 }
 0xb19   :  { %2795 = vmatpush1.msra.mxu0 %v6824_v37  ;;  %4135 = vmatpush3.msra.mxu1 %v6830_v5 }
 0xb1a   :  { %2796 = vmatprep.subr.mxu0 %v6836_v61  ;;  %4136 = vmatprep.subr.mxu1 %v7361_v62 }
 0xb1b   :  { %2797 = vmatpush1.msra.mxu0 %v6843_v15  ;;  %4137 = vmatpush3.msra.mxu1 %v6849_v45 }
 0xb1c   :  { %2798 = vmatprep.subr.mxu0 %v6855_v6  ;;  %4138 = vmatprep.subr.mxu1 %v7361_v62 }
 0xb1d   :  { %2799 = vmatpush1.msra.mxu0 %v6862_v12  ;;  %4139 = vmatpush3.msra.mxu1 %v6868_v35 }
 0xb1e   :  { %2800 = vmatprep.subr.mxu0 %v6874_v18  ;;  %4140 = vmatprep.subr.mxu1 %v7361_v62 }
 0xb1f   :  { %2801 = vmatpush1.msra.mxu0 %v6881_v52  ;;  %4141 = vmatpush3.msra.mxu1 %v6887_v4 }
 0xb20   :  { %2802 = vmatprep.subr.mxu0 %v6893_v33  ;;  %4142 = vmatprep.subr.mxu1 %v7361_v62 }
 0xb21   :  { %2803 = vmatpush1.msra.mxu0 %v6900_v54  ;;  %4143 = vmatpush3.msra.mxu1 %v6906_v8 }
 0xb22   :  { %2804 = vmatprep.subr.mxu0 %v6912_v16  ;;  %4144 = vmatprep.subr.mxu1 %v7361_v62 }
 0xb23   :  { %2805 = vmatpush1.msra.mxu0 %v6919_v10  ;;  %4145 = vmatpush3.msra.mxu1 %v6925_v43 }
 0xb24   :  { %2806 = vmatprep.subr.mxu0 %v6931_v58  ;;  %4146 = vmatprep.subr.mxu1 %v7361_v62 }
 0xb25   :  { %2807 = vmatpush1.msra.mxu0 %v6938_v17  ;;  %4147 = vmatpush3.msra.mxu1 %v6944_v53 }
 0xb26   :  { %2808 = vmatprep.subr.mxu0 %v6950_v59  ;;  %4148 = vmatprep.subr.mxu1 %v7361_v62 }
 0xb27   :  { %2809 = vmatpush1.msra.mxu0 %v6957_v63  ;;  %4149 = vmatpush3.msra.mxu1 %v6963_v2 }
 0xb28   :  { %2810 = vmatprep.subr.mxu0 %v6969_v3  ;;  %4150 = vmatprep.subr.mxu1 %v7361_v62 }
 0xb29   :  { %2811 = vmatpush1.msra.mxu0 %v6976_v39  ;;  %4151 = vmatpush3.msra.mxu1 %v6982_v0 }
 0xb2a   :  { %2812 = vmatprep.subr.mxu0 %v6988_v27  ;;  %4152 = vmatprep.subr.mxu1 %v7361_v62 }
 0xb2b   :  { %2813 = vmatpush1.msra.mxu0 %v6995_v19  ;;  %4153 = vmatpush3.msra.mxu1 %v7001_v60 }
 0xb2c   :  { %2814 = vmatprep.subr.mxu0 %v7007_v1  ;;  %4154 = vmatprep.subr.mxu1 %v7361_v62  ;;  %v7490_v1 = vld [vmem:[#allocation25_spill] sm:$0xff] }
 0xb2d   :  { %2815 = vmatpush1.msra.mxu0 %v7014_v25  ;;  %2848 = vmatprep.mubr.f32.mxu0 %v7361_v62  ;;  %v1749_v60 = vadd.f32 %v7490_v1, %v6460_v23 }
 0xb2e   :  { %4155 = vmatpush3.msra.mxu1 %v7021_v47  ;;  %4156 = vmatprep.mubr.msk.f32.mxu1 %vm4486_vm0, %v7361_v62 }
 0xb2f   :  { %2950 = vmatprep.subr.mxu0 %v6708_v48  ;;  %4159 = vmatprep.subr.mxu1 %v7361_v62 }
 0xbce   :  { %v2684_v20 = vpop.f32.mrf.mxu0  ;;  %v2755_v22 = vpop.f32.mrf.mxu1 }
 0xbcf   :  { %v2685_v28 = vadd.f32 %v2684_v20, %v7478_v14  ;;  %v2756_v20 = vadd.f32 %v2755_v22, %v6465_v40  ;;  %v3134_v22 = vld [vmem:[%s7253_s10 + $0x60] sm:$0xff] }
 0xbd0   :  { %v2686_v30 = vpop.f32.mrf.mxu0  ;;  %v4123_v51 = vpop.f32.mrf.mxu1 }
 0xbd1   :  { %v2759_v49 = vadd.f32 %v2685_v28, %v1747_v26  ;;  %v2687_v47 = vadd.f32 %v2686_v30, %v6457_v44  ;;  %v7491_v51 = vld [vmem:[#allocation7_spill] sm:$0xff] }
 0xbd2   :  { %v3133_v30 = vld [vmem:[%s7253_s10 + $0x58] sm:$0xff] }
 0xbd3   :  { %v3283_v25 = vmul.f32 -1.442695, %v2759_v49  ;;  %v2766_v48 = vadd.f32 %v2687_v47, %v1749_v60  ;;  %v1850_v49 = vadd.f32 %v7491_v51, %v6468_v55  ;;  %v3129_v51 = vld [vmem:[%s7253_s10 + $0x38] sm:$0xff] }
 0xbd5   :  { %4359 = vpow2.f32 %v3283_v25  ;;  %v3284_v19 = vmul.f32 -1.442695, %v2766_v48  ;;  %v3132_v48 = vld [vmem:[%s7253_s10 + $0x50] sm:$0xff] }
 0xbd7   :  { %4361 = vpow2.f32 %v3284_v19 }
 0xbe2   :  { %v4360_v27 = vpop.eup %4359 }
 0xbe3   :  { %v2763_v0 = vadd.f32 1.0, %v4360_v27 }
 0xbe4   :  { %v4362_v39 = vpop.eup %4361 }
 0xbe5   :  { %4363 = vrcp.f32 %v2763_v0  ;;  %v2770_v24 = vadd.f32 1.0, %v4362_v39  ;;  %v3136_v39 = vld [vmem:[%s7253_s10 + $0x70] sm:$0xff]  ;;  %v3135_v0 = vld [vmem:[%s7253_s10 + $0x68] sm:$0xff] }
 0xbe7   :  { %4365 = vrcp.f32 %v2770_v24  ;;  %v3131_v24 = vld [vmem:[%s7253_s10 + $0x48] sm:$0xff] }
 0xbf2   :  { %v4364_v14 = vpop.eup %4363 }
 0xbf3   :  { %v2773_v26 = vmul.f32 %v4364_v14, %v2756_v20  ;;  %v7492_v14 = vld [vmem:[#allocation12_spill] sm:$0xff] }
 0xbf4   :  { %v4366_v1 = vpop.eup %4365  ;;  %v3130_v20 = vld [vmem:[%s7253_s10 + $0x40] sm:$0xff] }
 0xbf5   :  { %v2774_v28 = vadd.f32 %v2773_v26, %v1850_v49  ;;  %v2776_v25 = vsub.f32 1.0, %v4366_v1  ;;  %v2778_v19 = vmul.f32 %v4366_v1, %v6722_v21  ;;  %v3128_v49 = vld [vmem:[%s7253_s10 + $0x30] sm:$0xff]  ;;  %v3127_v26 = vld [vmem:[%s7253_s10 + $0x28] sm:$0xff]  ;;  %v3125_v1 = vld [vmem:[%s7253_s10 + $0x18] sm:$0xff] }
 0xbf7   :  { %4367 = vtanh.f32 %v2774_v28  ;;  %v3126_v28 = vld [vmem:[%s7253_s10 + $0x20] sm:$0xff] }
 0xc04   :  { %v4368_v60 = vpop.eup %4367 }
 0xc05   :  { %v2777_v47 = vmul.f32 %v4368_v60, %v2776_v25  ;;  %v3124_v25 = vld [vmem:[%s7253_s10 + $0x10] sm:$0xff]  ;;  %v3123_v60 = vld [vmem:[%s7253_s10 + $0x8] sm:$0xff] }
 0xc07   :  { %v7038_v27 = vadd.f32 %v2778_v19, %v2777_v47  ;;  %v3122_v47 = vld [vmem:[%s7253_s10] sm:$0xff]  ;;  %v7504_v19 = vld [vmem:[#allocation14_spill] sm:$0xff] }
 0xc09   :  { %2849 = vmatmul.mubr.f32.vlgmr.msra.gmra.mxu0 %v7038_v27  ;;  %4157 = vmatmul.mubr.f32.vlgmr.msra.gmra.mxu1 %v7038_v27 }
 0xc0a   :  { %2951 = vmatpush1.msra.mxu0 %v6729_v29  ;;  %4160 = vmatpush3.msra.mxu1 %v6735_v7  ;;  %v7493_v29 = vld [vmem:[#allocation10_spill] sm:$0xff] }
 0xc0b   :  { %2952 = vmatprep.subr.mxu0 %v6741_v11  ;;  %4161 = vmatprep.subr.mxu1 %v7361_v62  ;;  %v7494_v7 = vld [vmem:[#allocation30_spill] sm:$0xff]  ;;  %v7495_v11 = vld [vmem:[#allocation9_spill] sm:$0xff] }
 0xc0c   :  { %2953 = vmatpush1.msra.mxu0 %v6748_v57  ;;  %4162 = vmatpush3.msra.mxu1 %v6754_v32  ;;  %v7496_v57 = vld [vmem:[#allocation21_spill] sm:$0xff]  ;;  %v7497_v32 = vld [vmem:[#allocation22_spill] sm:$0xff] }
 0xc0d   :  { %2954 = vmatprep.subr.mxu0 %v6760_v46  ;;  %4163 = vmatprep.subr.mxu1 %v7361_v62  ;;  %v7498_v46 = vld [vmem:[#allocation6_spill] sm:$0xff] }
 0xc0e   :  { %2955 = vmatpush1.msra.mxu0 %v6767_v13  ;;  %4164 = vmatpush3.msra.mxu1 %v6773_v41  ;;  %v7499_v13 = vld [vmem:[#allocation4_spill] sm:$0xff] }
 0xc0f   :  { %2956 = vmatprep.subr.mxu0 %v6779_v9  ;;  %4165 = vmatprep.subr.mxu1 %v7361_v62 }
 0xc10   :  { %2957 = vmatpush1.msra.mxu0 %v6786_v42  ;;  %4166 = vmatpush3.msra.mxu1 %v6792_v38  ;;  %v7500_v42 = vld [vmem:[#allocation32_spill] sm:$0xff] }
 0xc11   :  { %2958 = vmatprep.subr.mxu0 %v6798_v34  ;;  %4167 = vmatprep.subr.mxu1 %v7361_v62  ;;  %v1753_v38 = vadd.f32 %v7500_v42, %v7449_v56  ;;  %v7501_v34 = vld [vmem:[#allocation33_spill] sm:$0xff] }
 0xc12   :  { %2959 = vmatpush1.msra.mxu0 %v6805_v31  ;;  %4168 = vmatpush3.msra.mxu1 %v6811_v36  ;;  %v7508_v42 = vld [vmem:[#allocation13_spill] sm:$0xff] }
 0xc13   :  { %2960 = vmatprep.subr.mxu0 %v6817_v50  ;;  %4169 = vmatprep.subr.mxu1 %v7361_v62 }
 0xc14   :  { %2961 = vmatpush1.msra.mxu0 %v6824_v37  ;;  %4170 = vmatpush3.msra.mxu1 %v6830_v5 }
 0xc15   :  { %2962 = vmatprep.subr.mxu0 %v6836_v61  ;;  %4171 = vmatprep.subr.mxu1 %v7361_v62 }
 0xc16   :  { %2963 = vmatpush1.msra.mxu0 %v6843_v15  ;;  %4172 = vmatpush3.msra.mxu1 %v6849_v45  ;;  %v7502_v15 = vld [vmem:[#allocation34_spill] sm:$0xff] }
 0xc17   :  { %2964 = vmatprep.subr.mxu0 %v6855_v6  ;;  %4173 = vmatprep.subr.mxu1 %v7361_v62  ;;  %v1755_v45 = vadd.f32 %v7502_v15, %v6460_v23 }
 0xc18   :  { %2965 = vmatpush1.msra.mxu0 %v6862_v12  ;;  %4174 = vmatpush3.msra.mxu1 %v6868_v35 }
 0xc19   :  { %2966 = vmatprep.subr.mxu0 %v6874_v18  ;;  %4175 = vmatprep.subr.mxu1 %v7361_v62 }
 0xc1a   :  { %2967 = vmatpush1.msra.mxu0 %v6881_v52  ;;  %4176 = vmatpush3.msra.mxu1 %v6887_v4 }
 0xc1b   :  { %2968 = vmatprep.subr.mxu0 %v6893_v33  ;;  %4177 = vmatprep.subr.mxu1 %v7361_v62 }
 0xc1c   :  { %2969 = vmatpush1.msra.mxu0 %v6900_v54  ;;  %4178 = vmatpush3.msra.mxu1 %v6906_v8  ;;  %v7503_v8 = vld [vmem:[#allocation8_spill] sm:$0xff] }
 0xc1d   :  { %2970 = vmatprep.subr.mxu0 %v6912_v16  ;;  %4179 = vmatprep.subr.mxu1 %v7361_v62  ;;  %v1855_v16 = vadd.f32 %v7503_v8, %v6468_v55 }
 0xc1e   :  { %2971 = vmatpush1.msra.mxu0 %v6919_v10  ;;  %4180 = vmatpush3.msra.mxu1 %v6925_v43 }
 0xc1f   :  { %2972 = vmatprep.subr.mxu0 %v6931_v58  ;;  %4181 = vmatprep.subr.mxu1 %v7361_v62 }
 0xc20   :  { %2973 = vmatpush1.msra.mxu0 %v6938_v17  ;;  %4182 = vmatpush3.msra.mxu1 %v6944_v53 }
 0xc21   :  { %2974 = vmatprep.subr.mxu0 %v6950_v59  ;;  %4183 = vmatprep.subr.mxu1 %v7361_v62 }
 0xc22   :  { %2975 = vmatpush1.msra.mxu0 %v6957_v63  ;;  %4184 = vmatpush3.msra.mxu1 %v6963_v2 }
 0xc23   :  { %2976 = vmatprep.subr.mxu0 %v6969_v3  ;;  %4185 = vmatprep.subr.mxu1 %v7361_v62  ;;  %v3137_v3 = vld [vmem:[%s7253_s10 + $0x78] sm:$0xff] }
 0xc24   :  { %2977 = vmatpush1.msra.mxu0 %v7492_v14  ;;  %4186 = vmatpush3.msra.mxu1 %v7493_v29  ;;  %v7505_v14 = vld [vmem:[#allocation28_spill] sm:$0xff]  ;;  %v7506_v29 = vld [vmem:[#allocation27_spill] sm:$0xff] }
 0xc25   :  { %2978 = vmatprep.subr.mxu0 %v7494_v7  ;;  %4187 = vmatprep.subr.mxu1 %v7361_v62 }
 0xc26   :  { %2979 = vmatpush1.msra.mxu0 %v7495_v11  ;;  %4188 = vmatpush3.msra.mxu1 %v7496_v57  ;;  %v7507_v57 = vld [vmem:[#allocation5_spill] sm:$0xff] }
 0xc27   :  { %2980 = vmatprep.subr.mxu0 %v7497_v32  ;;  %4189 = vmatprep.subr.mxu1 %v7361_v62  ;;  %v1759_v32 = vadd.f32 %v7507_v57, %v7449_v56  ;;  %v3290_v56 = vld [vmem:[%s7254_s11] ss:$0 sm:$0xff] }
 0xc28   :  { %2981 = vmatpush1.msra.mxu0 %v7498_v46  ;;  %3014 = vmatprep.mubr.f32.mxu0 %v7361_v62 }
 0xc29   :  { %4190 = vmatpush3.msra.mxu1 %v7499_v13  ;;  %4191 = vmatprep.mubr.msk.f32.mxu1 %vm4486_vm0, %v7361_v62 }
 0xc2a   :  { %4194 = vmatprep.subr.mxu0 %v7361_v62 }
 0xcc9   :  { %v2850_v41 = vpop.f32.mrf.mxu0  ;;  %v2921_v9 = vpop.f32.mrf.mxu1 }
 0xcca   :  { %v2851_v31 = vadd.f32 %v2850_v41, %v7501_v34  ;;  %v2922_v33 = vadd.f32 %v2921_v9, %v6465_v40 }
 0xccb   :  { %v2852_v36 = vpop.f32.mrf.mxu0  ;;  %v4158_v50 = vpop.f32.mrf.mxu1 }
 0xccc   :  { %v2925_v37 = vadd.f32 %v2851_v31, %v1753_v38  ;;  %v2853_v61 = vadd.f32 %v2852_v36, %v6457_v44  ;;  %v1761_v38 = vadd.f32 %v7508_v42, %v6460_v23 }
 0xcce   :  { %v3285_v5 = vmul.f32 -1.442695, %v2925_v37  ;;  %v2932_v6 = vadd.f32 %v2853_v61, %v1755_v45 }
 0xcd0   :  { %4369 = vpow2.f32 %v3285_v5  ;;  %v3286_v12 = vmul.f32 -1.442695, %v2932_v6  ;;  %v7509_v6 = vld [vmem:[#allocation26_spill] sm:$0xff] }
 0xcd2   :  { %4371 = vpow2.f32 %v3286_v12  ;;  %v1860_v12 = vadd.f32 %v7509_v6, %v6468_v55 }
 0xcdd   :  { %v4370_v35 = vpop.eup %4369 }
 0xcde   :  { %v2929_v18 = vadd.f32 1.0, %v4370_v35 }
 0xcdf   :  { %v4372_v52 = vpop.eup %4371 }
 0xce0   :  { %4373 = vrcp.f32 %v2929_v18  ;;  %v2936_v4 = vadd.f32 1.0, %v4372_v52 }
 0xce2   :  { %4375 = vrcp.f32 %v2936_v4 }
 0xced   :  { %v4374_v54 = vpop.eup %4373 }
 0xcee   :  { %v2939_v10 = vmul.f32 %v4374_v54, %v2922_v33 }
 0xcef   :  { %v4376_v58 = vpop.eup %4375 }
 0xcf0   :  { %v2940_v43 = vadd.f32 %v2939_v10, %v1855_v16  ;;  %v2942_v17 = vsub.f32 1.0, %v4376_v58  ;;  %v2944_v63 = vmul.f32 %v4376_v58, %v7038_v27 }
 0xcf2   :  { %4377 = vtanh.f32 %v2940_v43 }
 0xcff   :  { %v4378_v53 = vpop.eup %4377 }
 0xd00   :  { %v2943_v59 = vmul.f32 %v4378_v53, %v2942_v17 }
 0xd02   :  { %v7118_v2 = vadd.f32 %v2944_v63, %v2943_v59 }
 0xd04   :  { %3015 = vmatmul.mubr.f32.vlgmr.msra.gmra.mxu0 %v7118_v2  ;;  %4192 = vmatmul.mubr.f32.vlgmr.msra.gmra.mxu1 %v7118_v2 }
 0xd05   :  { %4195 = vmatpush3.msra.mxu0 %v3137_v3  ;;  %4226 = vmatprep.mubr.msk.f32.mxu0 %vm4486_vm0, %v7361_v62 }
 0xd06   :  { %4196 = vmatprep.subr.mxu0 %v7361_v62 }
 0xd07   :  { %4197 = vmatpush3.msra.mxu0 %v3136_v39 }
 0xd08   :  { %4198 = vmatprep.subr.mxu0 %v7361_v62 }
 0xd09   :  { %4199 = vmatpush3.msra.mxu0 %v3135_v0 }
 0xd0a   :  { %4200 = vmatprep.subr.mxu0 %v7361_v62 }
 0xd0b   :  { %4201 = vmatpush3.msra.mxu0 %v3134_v22 }
 0xd0c   :  { %4202 = vmatprep.subr.mxu0 %v7361_v62 }
 0xd0d   :  { %4203 = vmatpush3.msra.mxu0 %v3133_v30 }
 0xd0e   :  { %4204 = vmatprep.subr.mxu0 %v7361_v62 }
 0xd0f   :  { %4205 = vmatpush3.msra.mxu0 %v3132_v48 }
 0xd10   :  { %4206 = vmatprep.subr.mxu0 %v7361_v62 }
 0xd11   :  { %4207 = vmatpush3.msra.mxu0 %v3131_v24 }
 0xd12   :  { %4208 = vmatprep.subr.mxu0 %v7361_v62 }
 0xd13   :  { %4209 = vmatpush3.msra.mxu0 %v3130_v20 }
 0xd14   :  { %4210 = vmatprep.subr.mxu0 %v7361_v62 }
 0xd15   :  { %4211 = vmatpush3.msra.mxu0 %v3129_v51 }
 0xd16   :  { %4212 = vmatprep.subr.mxu0 %v7361_v62 }
 0xd17   :  { %4213 = vmatpush3.msra.mxu0 %v3128_v49 }
 0xd18   :  { %4214 = vmatprep.subr.mxu0 %v7361_v62 }
 0xd19   :  { %4215 = vmatpush3.msra.mxu0 %v3127_v26 }
 0xd1a   :  { %4216 = vmatprep.subr.mxu0 %v7361_v62 }
 0xd1b   :  { %4217 = vmatpush3.msra.mxu0 %v3126_v28 }
 0xd1c   :  { %4218 = vmatprep.subr.mxu0 %v7361_v62 }
 0xd1d   :  { %4219 = vmatpush3.msra.mxu0 %v3125_v1 }
 0xd1e   :  { %4220 = vmatprep.subr.mxu0 %v7361_v62 }
 0xd1f   :  { %4221 = vmatpush3.msra.mxu0 %v3124_v25 }
 0xd20   :  { %4222 = vmatprep.subr.mxu0 %v7361_v62 }
 0xd21   :  { %4223 = vmatpush3.msra.mxu0 %v3123_v60 }
 0xd22   :  { %4224 = vmatprep.subr.mxu0 %v7361_v62 }
 0xd23   :  { %4225 = vmatpush3.msra.mxu0 %v3122_v47 }
 0xd24   :  { %4227 = vmatmul.mubr.f32.vlgmr.msra.gmra.mxu0 %v7504_v19 }
 0xd25   :  { %4229 = vmatprep.mubr.msk.f32.mxu0 %vm4486_vm0, %v7361_v62 }
 0xd28   :  { %4230 = vmatmul.mubr.f32.gmra.mxu0 %v7505_v14 }
 0xd29   :  { %4232 = vmatprep.mubr.msk.f32.mxu0 %vm4486_vm0, %v7361_v62 }
 0xd2c   :  { %4233 = vmatmul.mubr.f32.gmra.mxu0 %v7506_v29 }
 0xd2d   :  { %4235 = vmatprep.mubr.msk.f32.mxu0 %vm4486_vm0, %v7361_v62 }
 0xd30   :  { %4236 = vmatmul.mubr.f32.gmra.mxu0 %v6722_v21 }
 0xd31   :  { %4238 = vmatprep.mubr.msk.f32.mxu0 %vm4486_vm0, %v7361_v62 }
 0xd34   :  { %4239 = vmatmul.mubr.f32.gmra.mxu0 %v7038_v27 }
 0xd35   :  { %4241 = vmatprep.mubr.msk.f32.mxu0 %vm4486_vm0, %v7361_v62 }
 0xd38   :  { %4242 = vmatmul.mubr.f32.gmra.mxu0 %v7118_v2 }
 0xd39   :  { %4244 = vmatprep.mubr.msk.f32.mxu0 %vm4486_vm0, %v7361_v62 }
 0xdc4   :  { %v3016_v7 = vpop.f32.mrf.mxu0  ;;  %v3087_v11 = vpop.f32.mrf.mxu1 }
 0xdc5   :  { %v3017_v21 = vadd.f32 %v3016_v7, %v7501_v34 }
 0xdc6   :  { %v3018_v46 = vpop.f32.mrf.mxu0  ;;  %v4193_v13 = vpop.f32.mrf.mxu1 }
 0xdc7   :  { %v3091_v41 = vadd.f32 %v3017_v21, %v1759_v32  ;;  %v3019_v27 = vadd.f32 %v3018_v46, %v6457_v44  ;;  %v3088_v44 = vadd.f32 %v3087_v11, %v6465_v40 }
 0xdc9   :  { %v3287_v9 = vmul.f32 -1.442695, %v3091_v41  ;;  %v3098_v31 = vadd.f32 %v3019_v27, %v1761_v38 }
 0xdcb   :  { %4379 = vpow2.f32 %v3287_v9  ;;  %v3288_v36 = vmul.f32 -1.442695, %v3098_v31 }
 0xdcd   :  { %4381 = vpow2.f32 %v3288_v36 }
 0xdd8   :  { %v4380_v62 = vpop.eup %4379 }
 0xdd9   :  { %v3095_v50 = vadd.f32 1.0, %v4380_v62 }
 0xdda   :  { %v4382_v37 = vpop.eup %4381 }
 0xddb   :  { %4383 = vrcp.f32 %v3095_v50  ;;  %v3102_v5 = vadd.f32 1.0, %v4382_v37 }
 0xddd   :  { %4385 = vrcp.f32 %v3102_v5 }
 0xde4   :  { %v3211_v34 = vpop.f32.mrf.mxu0 }
 0xde5   :  { %v3212_v61 = vadd.f32 %v3290_v56, %v3211_v34 }
 0xde6   :  { %v4228_v15 = vpop.f32.mrf.mxu0 }
 0xde7   :  { %3245 = vst [vmem:[%s7255_s12] sm:$0xff] %v3212_v61 }
 0xde8   :  { %v4384_v23 = vpop.eup %4383  ;;  %v3216_v45 = vpop.f32.mrf.mxu0 }
 0xde9   :  { %v3105_v35 = vmul.f32 %v4384_v23, %v3088_v44  ;;  %v3217_v18 = vadd.f32 %v3290_v56, %v3216_v45 }
 0xdea   :  { %v4231_v52 = vpop.f32.mrf.mxu0  ;;  %v4386_v58 = vpop.eup %4385 }
 0xdeb   :  { %v3106_v4 = vadd.f32 %v3105_v35, %v1860_v12  ;;  %3246 = vst [vmem:[%s7255_s12 + $0x8] sm:$0xff] %v3217_v18  ;;  %v3108_v63 = vsub.f32 1.0, %v4386_v58  ;;  %v3110_v22 = vmul.f32 %v4386_v58, %v7118_v2 }
 0xdec   :  { %v3221_v33 = vpop.f32.mrf.mxu0 }
 0xded   :  { %4387 = vtanh.f32 %v3106_v4  ;;  %v3222_v40 = vadd.f32 %v3290_v56, %v3221_v33 }
 0xdee   :  { %v4234_v54 = vpop.f32.mrf.mxu0 }
 0xdef   :  { %3247 = vst [vmem:[%s7255_s12 + $0x10] sm:$0xff] %v3222_v40 }
 0xdf0   :  { %v3226_v8 = vpop.f32.mrf.mxu0 }
 0xdf1   :  { %v3227_v16 = vadd.f32 %v3290_v56, %v3226_v8 }
 0xdf2   :  { %v4237_v55 = vpop.f32.mrf.mxu0 }
 0xdf3   :  { %3248 = vst [vmem:[%s7255_s12 + $0x18] sm:$0xff] %v3227_v16 }
 0xdf4   :  { %v3231_v10 = vpop.f32.mrf.mxu0 }
 0xdf5   :  { %v3232_v43 = vadd.f32 %v3290_v56, %v3231_v10 }
 0xdf6   :  { %v4240_v17 = vpop.f32.mrf.mxu0 }
 0xdf7   :  { %3249 = vst [vmem:[%s7255_s12 + $0x20] sm:$0xff] %v3232_v43 }
 0xdf8   :  { %v3236_v53 = vpop.f32.mrf.mxu0 }
 0xdf9   :  { %v3237_v59 = vadd.f32 %v3290_v56, %v3236_v53 }
 0xdfa   :  { %v4388_v3 = vpop.eup %4387  ;;  %v4243_v39 = vpop.f32.mrf.mxu0 }
 0xdfb   :  { %3250 = vst [vmem:[%s7255_s12 + $0x28] sm:$0xff] %v3237_v59  ;;  %v3109_v0 = vmul.f32 %v4388_v3, %v3108_v63 }
 0xdfd   :  { %v3111_v30 = vadd.f32 %v3110_v22, %v3109_v0 }
 0xdff   :  { %3289 = vst [vmem:[%s7250_s13 + $0x8] sm:$0xff] %v3111_v30  ;;  %4245 = vmatmul.mubr.f32.gmra.mxu0 %v3111_v30 }
 0xebf   :  { %v3241_v48 = vpop.f32.mrf.mxu0 }
 0xec0   :  { %v3242_v24 = vadd.f32 %v3290_v56, %v3241_v48 }
 0xec1   :  { %v4246_v20 = vpop.f32.mrf.mxu0 }
 0xec2   :  { %3251 = vst [vmem:[%s7255_s12 + $0x30] sm:$0xff] %v3242_v24 }

</bundles_post_ra>
